<compile_context>
chip_gen: v7x
topology: tpu7x:2x2x1
jax: 0.10.0
libtpu: 0.0.40
codegen_flags: <defaults>
</compile_context>

<pallas_src>
import functools

import jax
import jax.numpy as jnp
from jax import lax
from jax.experimental import pallas as pl
from jax.experimental.pallas import tpu as pltpu

INPUT_SIZE = 28
HIDDEN_SIZE = 100
NUM_LAYERS = 2
HP = 128   # hidden dim padded to one full lane register
IP = 128   # input dim padded to one full lane register
BP = 8     # batch padded to one full sublane tile (aligned per-step slices)


# ----------------------------------------------------------------------------
# Pallas kernel: wavefront-interleaved 2-layer LSTM, whole sequence in VMEM.
# ----------------------------------------------------------------------------
def _lstm_kernel(x_ref,                       # (T*Bp, Ip)   layer-0 input
                 wih0_ref,                    # (Ip, 4Hp)    layer-0 input weights
                 b0_ref,                      # (1, 4Hp)     layer-0 folded bias
                 wbig_ref,                    # (2Hp, 8Hp)   [Whh0|Wih1 ; 0|Whh1]
                 b1_ref,                      # (1, 4Hp)     layer-1 folded bias
                 out_ref,                     # (T*Bp, Hp)   layer-1 hiddens
                 xg_ref,                      # (T*Bp, 4Hp)  scratch: layer-0 input gates
                 *, T, Bp):
    Hp = out_ref.shape[-1]
    G = 4 * Hp

    def cell(gates, c_prev):
        i_g = jax.nn.sigmoid(gates[:, 0 * Hp:1 * Hp])
        f_g = jax.nn.sigmoid(gates[:, 1 * Hp:2 * Hp])
        g_g = jnp.tanh(gates[:, 2 * Hp:3 * Hp])
        o_g = jax.nn.sigmoid(gates[:, 3 * Hp:4 * Hp])
        c = f_g * c_prev + i_g * g_g
        h = o_g * jnp.tanh(c)
        return h, c

    # Hoisted, batched layer-0 input projection + bias: one M = T*Bp matmul,
    # completely off the recurrent critical path.
    xg_ref[...] = (
        jnp.dot(x_ref[...], wih0_ref[...], preferred_element_type=jnp.float32)
        + b0_ref[...]
    )

    # Hoist the layer-1 bias broadcast out of the unrolled loop.
    b1b = jnp.broadcast_to(b1_ref[...], (Bp, G))

    zeros = jnp.zeros((Bp, Hp), jnp.float32)
    h0, c0 = zeros, zeros          # layer-0 state (matches torch.zeros init)
    h1, c1 = zeros, zeros          # layer-1 state

    # Wavefront: step s runs layer-0 timestep s and layer-1 timestep s-1.
    # T is static & small, so the Python loop is fully unrolled for the
    # scheduler.  Weights are read from the VMEM ref at each dot (never held
    # as a long-lived register value).
    for s in range(T + 1):
        if s == 0:
            # layer-0 timestep 0: h0_init == 0 -> no recurrent matmul at all.
            gates0 = xg_ref[0:Bp, :]
            h0, c0 = cell(gates0, c0)
        elif s < T:
            # One fused MXU push: [h0_{s-1} | h1_{s-2}] @ [Whh0|Wih1 ; 0|Whh1]
            lhs = jnp.concatenate([h0, h1], axis=-1)                # (Bp, 2Hp)
            fused = jnp.dot(lhs, wbig_ref[...],
                            preferred_element_type=jnp.float32)     # (Bp, 8Hp)
            gates0 = xg_ref[s * Bp:(s + 1) * Bp, :] + fused[:, :G]
            gates1 = fused[:, G:] + b1b
            h1, c1 = cell(gates1, c1)                               # layer-1 step s-1
            out_ref[(s - 1) * Bp:s * Bp, :] = h1.astype(out_ref.dtype)
            h0, c0 = cell(gates0, c0)                               # layer-0 step s
        else:
            # s == T: only layer-1 timestep T-1 remains; use the right half
            # of the fused weight (lane-aligned static slice of the ref).
            lhs = jnp.concatenate([h0, h1], axis=-1)                # (Bp, 2Hp)
            fused1 = jnp.dot(lhs, wbig_ref[:, G:],
                             preferred_element_type=jnp.float32)    # (Bp, 4Hp)
            gates1 = fused1 + b1b
            h1, c1 = cell(gates1, c1)
            out_ref[(s - 1) * Bp:s * Bp, :] = h1.astype(out_ref.dtype)


# ----------------------------------------------------------------------------
# Wrapper: parameter padding / layout plumbing around the kernel.
# ----------------------------------------------------------------------------
def _pad_gate_cols(w_t, H, Hp):
    """w_t: (in_dim, 4H) with PyTorch gate order [i|f|g|o] -> (in_dim, 4Hp)."""
    blocks = [w_t[:, g * H:(g + 1) * H] for g in range(4)]
    blocks = [jnp.pad(b, ((0, 0), (0, Hp - H))) for b in blocks]
    return jnp.concatenate(blocks, axis=1)


@jax.jit
def lstm_pallas(x, params):
    """x: (B, T, INPUT_SIZE) float32. params: list of (w_ih, w_hh, b_ih, b_hh)."""
    B, T, I = x.shape
    H, Hp, Ip, Bp = HIDDEN_SIZE, HP, IP, BP
    G = 4 * Hp

    # time-major; pad batch to a full sublane tile and input to a full lane
    # register so every per-step slice/store in the kernel is (8,128)-aligned.
    x_tm = jnp.transpose(x, (1, 0, 2)).astype(jnp.float32)          # (T, B, I)
    x_tm = jnp.pad(x_tm, ((0, 0), (0, Bp - B), (0, Ip - I)))        # (T, Bp, Ip)
    x2d = x_tm.reshape(T * Bp, Ip)

    (w_ih0, w_hh0, b_ih0, b_hh0), (w_ih1, w_hh1, b_ih1, b_hh1) = params

    # layer-0 input weights / folded bias
    wih0 = _pad_gate_cols(w_ih0.T.astype(jnp.float32), H, Hp)       # (I, 4Hp)
    wih0 = jnp.pad(wih0, ((0, Ip - I), (0, 0)))                     # (Ip, 4Hp)
    b0 = _pad_gate_cols((b_ih0 + b_hh0)[None, :].astype(jnp.float32), H, Hp)

    # recurrent weights of both layers + layer-1 input weights, padded
    whh0 = jnp.pad(_pad_gate_cols(w_hh0.T.astype(jnp.float32), H, Hp),
                   ((0, Hp - H), (0, 0)))                           # (Hp, 4Hp)
    wih1 = jnp.pad(_pad_gate_cols(w_ih1.T.astype(jnp.float32), H, Hp),
                   ((0, Hp - H), (0, 0)))                           # (Hp, 4Hp)
    whh1 = jnp.pad(_pad_gate_cols(w_hh1.T.astype(jnp.float32), H, Hp),
                   ((0, Hp - H), (0, 0)))                           # (Hp, 4Hp)
    b1 = _pad_gate_cols((b_ih1 + b_hh1)[None, :].astype(jnp.float32), H, Hp)

    # Fused block weight for the per-step wavefront matmul:
    #   [ Whh0 | Wih1 ]
    #   [   0  | Whh1 ]
    wbig = jnp.concatenate(
        [jnp.concatenate([whh0, wih1], axis=1),
         jnp.concatenate([jnp.zeros_like(whh1), whh1], axis=1)],
        axis=0)                                                      # (2Hp, 8Hp)

    vmem = pl.BlockSpec(memory_space=pltpu.MemorySpace.VMEM)
    out2d = pl.pallas_call(
        functools.partial(_lstm_kernel, T=T, Bp=Bp),
        out_shape=jax.ShapeDtypeStruct((T * Bp, Hp), jnp.float32),
        in_specs=[vmem] * 5,
        out_specs=vmem,
        scratch_shapes=[pltpu.VMEM((T * Bp, G), jnp.float32)],       # layer-0 input gates
    )(x2d, wih0, b0, wbig, b1)

    # back to batch-first; strip batch and hidden-dim padding
    out = out2d.reshape(T, Bp, Hp)[:, :B, :H]
    return jnp.transpose(out, (1, 0, 2))                             # (B, T, H)


# ----------------------------------------------------------------------------
# Pure-JAX reference (mirrors torch.nn.LSTM math) for a correctness check.
# ----------------------------------------------------------------------------
def lstm_ref(x, params):
    B, T, _ = x.shape
    H = HIDDEN_SIZE
    layer_in = x
    for (w_ih, w_hh, b_ih, b_hh) in params:
        def step(carry, x_t):
            h, c = carry
            gates = x_t @ w_ih.T + b_ih + h @ w_hh.T + b_hh
            i = jax.nn.sigmoid(gates[:, :H])
            f = jax.nn.sigmoid(gates[:, H:2 * H])
            g = jnp.tanh(gates[:, 2 * H:3 * H])
            o = jax.nn.sigmoid(gates[:, 3 * H:])
            c = f * c + i * g
            h = o * jnp.tanh(c)
            return (h, c), h
        init = (jnp.zeros((B, H), jnp.float32), jnp.zeros((B, H), jnp.float32))
        _, ys = lax.scan(step, init, jnp.swapaxes(layer_in, 0, 1))
        layer_in = jnp.swapaxes(ys, 0, 1)
    return layer_in


def init_params(key):
    """Deterministic init matching nn.LSTM's U(-1/sqrt(H), 1/sqrt(H)) shapes."""
    k = 1.0 / (HIDDEN_SIZE ** 0.5)
    params = []
    for li in range(NUM_LAYERS):
        in_dim = INPUT_SIZE if li == 0 else HIDDEN_SIZE
        key, k1, k2, k3, k4 = jax.random.split(key, 5)
        w_ih = jax.random.uniform(k1, (4 * HIDDEN_SIZE, in_dim),
                                  jnp.float32, -k, k)
        w_hh = jax.random.uniform(k2, (4 * HIDDEN_SIZE, HIDDEN_SIZE),
                                  jnp.float32, -k, k)
        b_ih = jax.random.uniform(k3, (4 * HIDDEN_SIZE,), jnp.float32, -k, k)
        b_hh = jax.random.uniform(k4, (4 * HIDDEN_SIZE,), jnp.float32, -k, k)
        params.append((w_ih, w_hh, b_ih, b_hh))
    return params


if __name__ == "__main__":
    key = jax.random.PRNGKey(0)
    k_x, k_p = jax.random.split(key)

    batch, seq = 2, 8
    x = jax.random.normal(k_x, (batch, seq, INPUT_SIZE), jnp.float32)
    params = init_params(k_p)

    out = lstm_pallas(x, params)
    out = jax.block_until_ready(out)

    ref = lstm_ref(x, params)
    assert out.shape == (batch, seq, HIDDEN_SIZE), out.shape
    assert jnp.allclose(out, ref, atol=1e-4, rtol=1e-4), \
        float(jnp.max(jnp.abs(out - ref)))

    print("KERNEL_OK")
</pallas_src>

<mosaic_0001>
module attributes {stable_mosaic.version = 11 : i64} {
  func.func @_lstm_kernel(%arg0: memref<64x128xf32, #tpu.memory_space<vmem>>, %arg1: memref<128x512xf32, #tpu.memory_space<vmem>>, %arg2: memref<1x512xf32, #tpu.memory_space<vmem>>, %arg3: memref<256x1024xf32, #tpu.memory_space<vmem>>, %arg4: memref<1x512xf32, #tpu.memory_space<vmem>>, %arg5: memref<64x128xf32, #tpu.memory_space<vmem>>, %arg6: memref<64x512xf32, #tpu.memory_space<vmem>>) attributes {dimension_semantics = [], scalar_prefetch = 0 : i64, scratch_operands = 1 : i64, tpu.core_type = #tpu.core_type<tc>} {
    %c0 = arith.constant 0 : index
    %c0_0 = arith.constant 0 : index
    %0 = vector.load %arg0[%c0, %c0_0] : memref<64x128xf32, #tpu.memory_space<vmem>>, vector<64x128xf32>
    %c0_1 = arith.constant 0 : index
    %c0_2 = arith.constant 0 : index
    %1 = vector.load %arg1[%c0_1, %c0_2] : memref<128x512xf32, #tpu.memory_space<vmem>>, vector<128x512xf32>
    %cst = arith.constant dense<0.000000e+00> : vector<64x512xf32>
    %2 = tpu.matmul %0, %1, %cst {dimension_numbers = #tpu.dot_dimension_numbers<[1], [0], [0], [1], [0, 0, 1, 1], [], []>} : vector<64x128xf32>, vector<128x512xf32>, vector<64x512xf32> -> vector<64x512xf32>
    %c0_3 = arith.constant 0 : index
    %c0_4 = arith.constant 0 : index
    %3 = vector.load %arg2[%c0_3, %c0_4] : memref<1x512xf32, #tpu.memory_space<vmem>>, vector<1x512xf32>
    %4 = vector.broadcast %3 : vector<1x512xf32> to vector<64x512xf32>
    %5 = arith.addf %2, %4 : vector<64x512xf32>
    %c0_5 = arith.constant 0 : index
    %c0_6 = arith.constant 0 : index
    %6 = vector.load %arg6[%c0_5, %c0_6] : memref<64x512xf32, #tpu.memory_space<vmem>>, vector<64x512xf32>
    tpu.vector_store %arg6[%c0_5, %c0_6], %5 {strides = array<i32>} : memref<64x512xf32, #tpu.memory_space<vmem>>, vector<64x512xf32>,
    %c0_7 = arith.constant 0 : index
    %c0_8 = arith.constant 0 : index
    %7 = vector.load %arg4[%c0_7, %c0_8] : memref<1x512xf32, #tpu.memory_space<vmem>>, vector<1x512xf32>
    %8 = vector.shape_cast %7 : vector<1x512xf32> to vector<1x512xf32>
    %9 = vector.broadcast %8 : vector<1x512xf32> to vector<8x512xf32>
    %cst_9 = arith.constant 0.000000e+00 : f32
    %10 = vector.broadcast %cst_9 : f32 to vector<8x128xf32>
    %c0_10 = arith.constant 0 : index
    %c0_11 = arith.constant 0 : index
    %11 = vector.load %arg6[%c0_10, %c0_11] : memref<64x512xf32, #tpu.memory_space<vmem>>, vector<8x512xf32>
    %12 = vector.extract_strided_slice %11 {offsets = [0, 0], sizes = [8, 128], strides = [1, 1]} : vector<8x512xf32> to vector<8x128xf32>
    %13 = arith.negf %12 : vector<8x128xf32>
    %14 = math.exp %13 : vector<8x128xf32>
    %cst_12 = arith.constant 1.000000e+00 : f32
    %15 = vector.broadcast %cst_12 : f32 to vector<8x128xf32>
    %16 = arith.addf %15, %14 : vector<8x128xf32>
    %17 = arith.divf %15, %16 : vector<8x128xf32>
    %18 = vector.extract_strided_slice %11 {offsets = [0, 128], sizes = [8, 128], strides = [1, 1]} : vector<8x512xf32> to vector<8x128xf32>
    %19 = arith.negf %18 : vector<8x128xf32>
    %20 = math.exp %19 : vector<8x128xf32>
    %cst_13 = arith.constant 1.000000e+00 : f32
    %21 = vector.broadcast %cst_13 : f32 to vector<8x128xf32>
    %22 = arith.addf %21, %20 : vector<8x128xf32>
    %23 = arith.divf %21, %22 : vector<8x128xf32>
    %24 = vector.extract_strided_slice %11 {offsets = [0, 256], sizes = [8, 128], strides = [1, 1]} : vector<8x512xf32> to vector<8x128xf32>
    %25 = math.tanh %24 : vector<8x128xf32>
    %26 = vector.extract_strided_slice %11 {offsets = [0, 384], sizes = [8, 128], strides = [1, 1]} : vector<8x512xf32> to vector<8x128xf32>
    %27 = arith.negf %26 : vector<8x128xf32>
    %28 = math.exp %27 : vector<8x128xf32>
    %cst_14 = arith.constant 1.000000e+00 : f32
    %29 = vector.broadcast %cst_14 : f32 to vector<8x128xf32>
    %30 = arith.addf %29, %28 : vector<8x128xf32>
    %31 = arith.divf %29, %30 : vector<8x128xf32>
    %32 = arith.mulf %23, %10 : vector<8x128xf32>
    %33 = arith.mulf %17, %25 : vector<8x128xf32>
    %34 = arith.addf %32, %33 : vector<8x128xf32>
    %35 = math.tanh %34 : vector<8x128xf32>
    %36 = arith.mulf %31, %35 : vector<8x128xf32>
    %37 = tpu.concatenate %36, %10 in 1 : vector<8x128xf32>, vector<8x128xf32> -> vector<8x256xf32>
    %c0_15 = arith.constant 0 : index
    %c0_16 = arith.constant 0 : index
    %38 = vector.load %arg3[%c0_15, %c0_16] : memref<256x1024xf32, #tpu.memory_space<vmem>>, vector<256x1024xf32>
    %cst_17 = arith.constant dense<0.000000e+00> : vector<8x1024xf32>
    %39 = tpu.matmul %37, %38, %cst_17 {dimension_numbers = #tpu.dot_dimension_numbers<[1], [0], [0], [1], [0, 0, 1, 1], [], []>} : vector<8x256xf32>, vector<256x1024xf32>, vector<8x1024xf32> -> vector<8x1024xf32>
    %c8 = arith.constant 8 : index
    %c0_18 = arith.constant 0 : index
    %40 = vector.load %arg6[%c8, %c0_18] : memref<64x512xf32, #tpu.memory_space<vmem>>, vector<8x512xf32>
    %41 = vector.extract_strided_slice %39 {offsets = [0, 0], sizes = [8, 512], strides = [1, 1]} : vector<8x1024xf32> to vector<8x512xf32>
    %42 = arith.addf %40, %41 : vector<8x512xf32>
    %43 = vector.extract_strided_slice %39 {offsets = [0, 512], sizes = [8, 512], strides = [1, 1]} : vector<8x1024xf32> to vector<8x512xf32>
    %44 = arith.addf %43, %9 : vector<8x512xf32>
    %45 = vector.extract_strided_slice %44 {offsets = [0, 0], sizes = [8, 128], strides = [1, 1]} : vector<8x512xf32> to vector<8x128xf32>
    %46 = arith.negf %45 : vector<8x128xf32>
    %47 = math.exp %46 : vector<8x128xf32>
    %cst_19 = arith.constant 1.000000e+00 : f32
    %48 = vector.broadcast %cst_19 : f32 to vector<8x128xf32>
    %49 = arith.addf %48, %47 : vector<8x128xf32>
    %50 = arith.divf %48, %49 : vector<8x128xf32>
    %51 = vector.extract_strided_slice %44 {offsets = [0, 128], sizes = [8, 128], strides = [1, 1]} : vector<8x512xf32> to vector<8x128xf32>
    %52 = arith.negf %51 : vector<8x128xf32>
    %53 = math.exp %52 : vector<8x128xf32>
    %cst_20 = arith.constant 1.000000e+00 : f32
    %54 = vector.broadcast %cst_20 : f32 to vector<8x128xf32>
    %55 = arith.addf %54, %53 : vector<8x128xf32>
    %56 = arith.divf %54, %55 : vector<8x128xf32>
    %57 = vector.extract_strided_slice %44 {offsets = [0, 256], sizes = [8, 128], strides = [1, 1]} : vector<8x512xf32> to vector<8x128xf32>
    %58 = math.tanh %57 : vector<8x128xf32>
    %59 = vector.extract_strided_slice %44 {offsets = [0, 384], sizes = [8, 128], strides = [1, 1]} : vector<8x512xf32> to vector<8x128xf32>
    %60 = arith.negf %59 : vector<8x128xf32>
    %61 = math.exp %60 : vector<8x128xf32>
    %cst_21 = arith.constant 1.000000e+00 : f32
    %62 = vector.broadcast %cst_21 : f32 to vector<8x128xf32>
    %63 = arith.addf %62, %61 : vector<8x128xf32>
    %64 = arith.divf %62, %63 : vector<8x128xf32>
    %65 = arith.mulf %56, %10 : vector<8x128xf32>
    %66 = arith.mulf %50, %58 : vector<8x128xf32>
    %67 = arith.addf %65, %66 : vector<8x128xf32>
    %68 = math.tanh %67 : vector<8x128xf32>
    %69 = arith.mulf %64, %68 : vector<8x128xf32>
    %c0_22 = arith.constant 0 : index
    %c0_23 = arith.constant 0 : index
    %70 = vector.load %arg5[%c0_22, %c0_23] : memref<64x128xf32, #tpu.memory_space<vmem>>, vector<8x128xf32>
    tpu.vector_store %arg5[%c0_22, %c0_23], %69 {strides = array<i32>} : memref<64x128xf32, #tpu.memory_space<vmem>>, vector<8x128xf32>,
    %71 = vector.extract_strided_slice %42 {offsets = [0, 0], sizes = [8, 128], strides = [1, 1]} : vector<8x512xf32> to vector<8x128xf32>
    %72 = arith.negf %71 : vector<8x128xf32>
    %73 = math.exp %72 : vector<8x128xf32>
    %cst_24 = arith.constant 1.000000e+00 : f32
    %74 = vector.broadcast %cst_24 : f32 to vector<8x128xf32>
    %75 = arith.addf %74, %73 : vector<8x128xf32>
    %76 = arith.divf %74, %75 : vector<8x128xf32>
    %77 = vector.extract_strided_slice %42 {offsets = [0, 128], sizes = [8, 128], strides = [1, 1]} : vector<8x512xf32> to vector<8x128xf32>
    %78 = arith.negf %77 : vector<8x128xf32>
    %79 = math.exp %78 : vector<8x128xf32>
    %cst_25 = arith.constant 1.000000e+00 : f32
    %80 = vector.broadcast %cst_25 : f32 to vector<8x128xf32>
    %81 = arith.addf %80, %79 : vector<8x128xf32>
    %82 = arith.divf %80, %81 : vector<8x128xf32>
    %83 = vector.extract_strided_slice %42 {offsets = [0, 256], sizes = [8, 128], strides = [1, 1]} : vector<8x512xf32> to vector<8x128xf32>
    %84 = math.tanh %83 : vector<8x128xf32>
    %85 = vector.extract_strided_slice %42 {offsets = [0, 384], sizes = [8, 128], strides = [1, 1]} : vector<8x512xf32> to vector<8x128xf32>
    %86 = arith.negf %85 : vector<8x128xf32>
    %87 = math.exp %86 : vector<8x128xf32>
    %cst_26 = arith.constant 1.000000e+00 : f32
    %88 = vector.broadcast %cst_26 : f32 to vector<8x128xf32>
    %89 = arith.addf %88, %87 : vector<8x128xf32>
    %90 = arith.divf %88, %89 : vector<8x128xf32>
    %91 = arith.mulf %82, %34 : vector<8x128xf32>
    %92 = arith.mulf %76, %84 : vector<8x128xf32>
    %93 = arith.addf %91, %92 : vector<8x128xf32>
    %94 = math.tanh %93 : vector<8x128xf32>
    %95 = arith.mulf %90, %94 : vector<8x128xf32>
    %96 = tpu.concatenate %95, %69 in 1 : vector<8x128xf32>, vector<8x128xf32> -> vector<8x256xf32>
    %c0_27 = arith.constant 0 : index
    %c0_28 = arith.constant 0 : index
    %97 = vector.load %arg3[%c0_27, %c0_28] : memref<256x1024xf32, #tpu.memory_space<vmem>>, vector<256x1024xf32>
    %cst_29 = arith.constant dense<0.000000e+00> : vector<8x1024xf32>
    %98 = tpu.matmul %96, %97, %cst_29 {dimension_numbers = #tpu.dot_dimension_numbers<[1], [0], [0], [1], [0, 0, 1, 1], [], []>} : vector<8x256xf32>, vector<256x1024xf32>, vector<8x1024xf32> -> vector<8x1024xf32>
    %c16 = arith.constant 16 : index
    %c0_30 = arith.constant 0 : index
    %99 = vector.load %arg6[%c16, %c0_30] : memref<64x512xf32, #tpu.memory_space<vmem>>, vector<8x512xf32>
    %100 = vector.extract_strided_slice %98 {offsets = [0, 0], sizes = [8, 512], strides = [1, 1]} : vector<8x1024xf32> to vector<8x512xf32>
    %101 = arith.addf %99, %100 : vector<8x512xf32>
    %102 = vector.extract_strided_slice %98 {offsets = [0, 512], sizes = [8, 512], strides = [1, 1]} : vector<8x1024xf32> to vector<8x512xf32>
    %103 = arith.addf %102, %9 : vector<8x512xf32>
    %104 = vector.extract_strided_slice %103 {offsets = [0, 0], sizes = [8, 128], strides = [1, 1]} : vector<8x512xf32> to vector<8x128xf32>
    %105 = arith.negf %104 : vector<8x128xf32>
    %106 = math.exp %105 : vector<8x128xf32>
    %cst_31 = arith.constant 1.000000e+00 : f32
    %107 = vector.broadcast %cst_31 : f32 to vector<8x128xf32>
    %108 = arith.addf %107, %106 : vector<8x128xf32>
    %109 = arith.divf %107, %108 : vector<8x128xf32>
    %110 = vector.extract_strided_slice %103 {offsets = [0, 128], sizes = [8, 128], strides = [1, 1]} : vector<8x512xf32> to vector<8x128xf32>
    %111 = arith.negf %110 : vector<8x128xf32>
    %112 = math.exp %111 : vector<8x128xf32>
    %cst_32 = arith.constant 1.000000e+00 : f32
    %113 = vector.broadcast %cst_32 : f32 to vector<8x128xf32>
    %114 = arith.addf %113, %112 : vector<8x128xf32>
    %115 = arith.divf %113, %114 : vector<8x128xf32>
    %116 = vector.extract_strided_slice %103 {offsets = [0, 256], sizes = [8, 128], strides = [1, 1]} : vector<8x512xf32> to vector<8x128xf32>
    %117 = math.tanh %116 : vector<8x128xf32>
    %118 = vector.extract_strided_slice %103 {offsets = [0, 384], sizes = [8, 128], strides = [1, 1]} : vector<8x512xf32> to vector<8x128xf32>
    %119 = arith.negf %118 : vector<8x128xf32>
    %120 = math.exp %119 : vector<8x128xf32>
    %cst_33 = arith.constant 1.000000e+00 : f32
    %121 = vector.broadcast %cst_33 : f32 to vector<8x128xf32>
    %122 = arith.addf %121, %120 : vector<8x128xf32>
    %123 = arith.divf %121, %122 : vector<8x128xf32>
    %124 = arith.mulf %115, %67 : vector<8x128xf32>
    %125 = arith.mulf %109, %117 : vector<8x128xf32>
    %126 = arith.addf %124, %125 : vector<8x128xf32>
    %127 = math.tanh %126 : vector<8x128xf32>
    %128 = arith.mulf %123, %127 : vector<8x128xf32>
    %c8_34 = arith.constant 8 : index
    %c0_35 = arith.constant 0 : index
    %129 = vector.load %arg5[%c8_34, %c0_35] : memref<64x128xf32, #tpu.memory_space<vmem>>, vector<8x128xf32>
    tpu.vector_store %arg5[%c8_34, %c0_35], %128 {strides = array<i32>} : memref<64x128xf32, #tpu.memory_space<vmem>>, vector<8x128xf32>,
    %130 = vector.extract_strided_slice %101 {offsets = [0, 0], sizes = [8, 128], strides = [1, 1]} : vector<8x512xf32> to vector<8x128xf32>
    %131 = arith.negf %130 : vector<8x128xf32>
    %132 = math.exp %131 : vector<8x128xf32>
    %cst_36 = arith.constant 1.000000e+00 : f32
    %133 = vector.broadcast %cst_36 : f32 to vector<8x128xf32>
    %134 = arith.addf %133, %132 : vector<8x128xf32>
    %135 = arith.divf %133, %134 : vector<8x128xf32>
    %136 = vector.extract_strided_slice %101 {offsets = [0, 128], sizes = [8, 128], strides = [1, 1]} : vector<8x512xf32> to vector<8x128xf32>
    %137 = arith.negf %136 : vector<8x128xf32>
    %138 = math.exp %137 : vector<8x128xf32>
    %cst_37 = arith.constant 1.000000e+00 : f32
    %139 = vector.broadcast %cst_37 : f32 to vector<8x128xf32>
    %140 = arith.addf %139, %138 : vector<8x128xf32>
    %141 = arith.divf %139, %140 : vector<8x128xf32>
    %142 = vector.extract_strided_slice %101 {offsets = [0, 256], sizes = [8, 128], strides = [1, 1]} : vector<8x512xf32> to vector<8x128xf32>
    %143 = math.tanh %142 : vector<8x128xf32>
    %144 = vector.extract_strided_slice %101 {offsets = [0, 384], sizes = [8, 128], strides = [1, 1]} : vector<8x512xf32> to vector<8x128xf32>
    %145 = arith.negf %144 : vector<8x128xf32>
    %146 = math.exp %145 : vector<8x128xf32>
    %cst_38 = arith.constant 1.000000e+00 : f32
    %147 = vector.broadcast %cst_38 : f32 to vector<8x128xf32>
    %148 = arith.addf %147, %146 : vector<8x128xf32>
    %149 = arith.divf %147, %148 : vector<8x128xf32>
    %150 = arith.mulf %141, %93 : vector<8x128xf32>
    %151 = arith.mulf %135, %143 : vector<8x128xf32>
    %152 = arith.addf %150, %151 : vector<8x128xf32>
    %153 = math.tanh %152 : vector<8x128xf32>
    %154 = arith.mulf %149, %153 : vector<8x128xf32>
    %155 = tpu.concatenate %154, %128 in 1 : vector<8x128xf32>, vector<8x128xf32> -> vector<8x256xf32>
    %c0_39 = arith.constant 0 : index
    %c0_40 = arith.constant 0 : index
    %156 = vector.load %arg3[%c0_39, %c0_40] : memref<256x1024xf32, #tpu.memory_space<vmem>>, vector<256x1024xf32>
    %cst_41 = arith.constant dense<0.000000e+00> : vector<8x1024xf32>
    %157 = tpu.matmul %155, %156, %cst_41 {dimension_numbers = #tpu.dot_dimension_numbers<[1], [0], [0], [1], [0, 0, 1, 1], [], []>} : vector<8x256xf32>, vector<256x1024xf32>, vector<8x1024xf32> -> vector<8x1024xf32>
    %c24 = arith.constant 24 : index
    %c0_42 = arith.constant 0 : index
    %158 = vector.load %arg6[%c24, %c0_42] : memref<64x512xf32, #tpu.memory_space<vmem>>, vector<8x512xf32>
    %159 = vector.extract_strided_slice %157 {offsets = [0, 0], sizes = [8, 512], strides = [1, 1]} : vector<8x1024xf32> to vector<8x512xf32>
    %160 = arith.addf %158, %159 : vector<8x512xf32>
    %161 = vector.extract_strided_slice %157 {offsets = [0, 512], sizes = [8, 512], strides = [1, 1]} : vector<8x1024xf32> to vector<8x512xf32>
    %162 = arith.addf %161, %9 : vector<8x512xf32>
    %163 = vector.extract_strided_slice %162 {offsets = [0, 0], sizes = [8, 128], strides = [1, 1]} : vector<8x512xf32> to vector<8x128xf32>
    %164 = arith.negf %163 : vector<8x128xf32>
    %165 = math.exp %164 : vector<8x128xf32>
    %cst_43 = arith.constant 1.000000e+00 : f32
    %166 = vector.broadcast %cst_43 : f32 to vector<8x128xf32>
    %167 = arith.addf %166, %165 : vector<8x128xf32>
    %168 = arith.divf %166, %167 : vector<8x128xf32>
    %169 = vector.extract_strided_slice %162 {offsets = [0, 128], sizes = [8, 128], strides = [1, 1]} : vector<8x512xf32> to vector<8x128xf32>
    %170 = arith.negf %169 : vector<8x128xf32>
    %171 = math.exp %170 : vector<8x128xf32>
    %cst_44 = arith.constant 1.000000e+00 : f32
    %172 = vector.broadcast %cst_44 : f32 to vector<8x128xf32>
    %173 = arith.addf %172, %171 : vector<8x128xf32>
    %174 = arith.divf %172, %173 : vector<8x128xf32>
    %175 = vector.extract_strided_slice %162 {offsets = [0, 256], sizes = [8, 128], strides = [1, 1]} : vector<8x512xf32> to vector<8x128xf32>
    %176 = math.tanh %175 : vector<8x128xf32>
    %177 = vector.extract_strided_slice %162 {offsets = [0, 384], sizes = [8, 128], strides = [1, 1]} : vector<8x512xf32> to vector<8x128xf32>
    %178 = arith.negf %177 : vector<8x128xf32>
    %179 = math.exp %178 : vector<8x128xf32>
    %cst_45 = arith.constant 1.000000e+00 : f32
    %180 = vector.broadcast %cst_45 : f32 to vector<8x128xf32>
    %181 = arith.addf %180, %179 : vector<8x128xf32>
    %182 = arith.divf %180, %181 : vector<8x128xf32>
    %183 = arith.mulf %174, %126 : vector<8x128xf32>
    %184 = arith.mulf %168, %176 : vector<8x128xf32>
    %185 = arith.addf %183, %184 : vector<8x128xf32>
    %186 = math.tanh %185 : vector<8x128xf32>
    %187 = arith.mulf %182, %186 : vector<8x128xf32>
    %c16_46 = arith.constant 16 : index
    %c0_47 = arith.constant 0 : index
    %188 = vector.load %arg5[%c16_46, %c0_47] : memref<64x128xf32, #tpu.memory_space<vmem>>, vector<8x128xf32>
    tpu.vector_store %arg5[%c16_46, %c0_47], %187 {strides = array<i32>} : memref<64x128xf32, #tpu.memory_space<vmem>>, vector<8x128xf32>,
    %189 = vector.extract_strided_slice %160 {offsets = [0, 0], sizes = [8, 128], strides = [1, 1]} : vector<8x512xf32> to vector<8x128xf32>
    %190 = arith.negf %189 : vector<8x128xf32>
    %191 = math.exp %190 : vector<8x128xf32>
    %cst_48 = arith.constant 1.000000e+00 : f32
    %192 = vector.broadcast %cst_48 : f32 to vector<8x128xf32>
    %193 = arith.addf %192, %191 : vector<8x128xf32>
    %194 = arith.divf %192, %193 : vector<8x128xf32>
    %195 = vector.extract_strided_slice %160 {offsets = [0, 128], sizes = [8, 128], strides = [1, 1]} : vector<8x512xf32> to vector<8x128xf32>
    %196 = arith.negf %195 : vector<8x128xf32>
    %197 = math.exp %196 : vector<8x128xf32>
    %cst_49 = arith.constant 1.000000e+00 : f32
    %198 = vector.broadcast %cst_49 : f32 to vector<8x128xf32>
    %199 = arith.addf %198, %197 : vector<8x128xf32>
    %200 = arith.divf %198, %199 : vector<8x128xf32>
    %201 = vector.extract_strided_slice %160 {offsets = [0, 256], sizes = [8, 128], strides = [1, 1]} : vector<8x512xf32> to vector<8x128xf32>
    %202 = math.tanh %201 : vector<8x128xf32>
    %203 = vector.extract_strided_slice %160 {offsets = [0, 384], sizes = [8, 128], strides = [1, 1]} : vector<8x512xf32> to vector<8x128xf32>
    %204 = arith.negf %203 : vector<8x128xf32>
    %205 = math.exp %204 : vector<8x128xf32>
    %cst_50 = arith.constant 1.000000e+00 : f32
    %206 = vector.broadcast %cst_50 : f32 to vector<8x128xf32>
    %207 = arith.addf %206, %205 : vector<8x128xf32>
    %208 = arith.divf %206, %207 : vector<8x128xf32>
    %209 = arith.mulf %200, %152 : vector<8x128xf32>
    %210 = arith.mulf %194, %202 : vector<8x128xf32>
    %211 = arith.addf %209, %210 : vector<8x128xf32>
    %212 = math.tanh %211 : vector<8x128xf32>
    %213 = arith.mulf %208, %212 : vector<8x128xf32>
    %214 = tpu.concatenate %213, %187 in 1 : vector<8x128xf32>, vector<8x128xf32> -> vector<8x256xf32>
    %c0_51 = arith.constant 0 : index
    %c0_52 = arith.constant 0 : index
    %215 = vector.load %arg3[%c0_51, %c0_52] : memref<256x1024xf32, #tpu.memory_space<vmem>>, vector<256x1024xf32>
    %cst_53 = arith.constant dense<0.000000e+00> : vector<8x1024xf32>
    %216 = tpu.matmul %214, %215, %cst_53 {dimension_numbers = #tpu.dot_dimension_numbers<[1], [0], [0], [1], [0, 0, 1, 1], [], []>} : vector<8x256xf32>, vector<256x1024xf32>, vector<8x1024xf32> -> vector<8x1024xf32>
    %c32 = arith.constant 32 : index
    %c0_54 = arith.constant 0 : index
    %217 = vector.load %arg6[%c32, %c0_54] : memref<64x512xf32, #tpu.memory_space<vmem>>, vector<8x512xf32>
    %218 = vector.extract_strided_slice %216 {offsets = [0, 0], sizes = [8, 512], strides = [1, 1]} : vector<8x1024xf32> to vector<8x512xf32>
    %219 = arith.addf %217, %218 : vector<8x512xf32>
    %220 = vector.extract_strided_slice %216 {offsets = [0, 512], sizes = [8, 512], strides = [1, 1]} : vector<8x1024xf32> to vector<8x512xf32>
    %221 = arith.addf %220, %9 : vector<8x512xf32>
    %222 = vector.extract_strided_slice %221 {offsets = [0, 0], sizes = [8, 128], strides = [1, 1]} : vector<8x512xf32> to vector<8x128xf32>
    %223 = arith.negf %222 : vector<8x128xf32>
    %224 = math.exp %223 : vector<8x128xf32>
    %cst_55 = arith.constant 1.000000e+00 : f32
    %225 = vector.broadcast %cst_55 : f32 to vector<8x128xf32>
    %226 = arith.addf %225, %224 : vector<8x128xf32>
    %227 = arith.divf %225, %226 : vector<8x128xf32>
    %228 = vector.extract_strided_slice %221 {offsets = [0, 128], sizes = [8, 128], strides = [1, 1]} : vector<8x512xf32> to vector<8x128xf32>
    %229 = arith.negf %228 : vector<8x128xf32>
    %230 = math.exp %229 : vector<8x128xf32>
    %cst_56 = arith.constant 1.000000e+00 : f32
    %231 = vector.broadcast %cst_56 : f32 to vector<8x128xf32>
    %232 = arith.addf %231, %230 : vector<8x128xf32>
    %233 = arith.divf %231, %232 : vector<8x128xf32>
    %234 = vector.extract_strided_slice %221 {offsets = [0, 256], sizes = [8, 128], strides = [1, 1]} : vector<8x512xf32> to vector<8x128xf32>
    %235 = math.tanh %234 : vector<8x128xf32>
    %236 = vector.extract_strided_slice %221 {offsets = [0, 384], sizes = [8, 128], strides = [1, 1]} : vector<8x512xf32> to vector<8x128xf32>
    %237 = arith.negf %236 : vector<8x128xf32>
    %238 = math.exp %237 : vector<8x128xf32>
    %cst_57 = arith.constant 1.000000e+00 : f32
    %239 = vector.broadcast %cst_57 : f32 to vector<8x128xf32>
    %240 = arith.addf %239, %238 : vector<8x128xf32>
    %241 = arith.divf %239, %240 : vector<8x128xf32>
    %242 = arith.mulf %233, %185 : vector<8x128xf32>
    %243 = arith.mulf %227, %235 : vector<8x128xf32>
    %244 = arith.addf %242, %243 : vector<8x128xf32>
    %245 = math.tanh %244 : vector<8x128xf32>
    %246 = arith.mulf %241, %245 : vector<8x128xf32>
    %c24_58 = arith.constant 24 : index
    %c0_59 = arith.constant 0 : index
    %247 = vector.load %arg5[%c24_58, %c0_59] : memref<64x128xf32, #tpu.memory_space<vmem>>, vector<8x128xf32>
    tpu.vector_store %arg5[%c24_58, %c0_59], %246 {strides = array<i32>} : memref<64x128xf32, #tpu.memory_space<vmem>>, vector<8x128xf32>,
    %248 = vector.extract_strided_slice %219 {offsets = [0, 0], sizes = [8, 128], strides = [1, 1]} : vector<8x512xf32> to vector<8x128xf32>
    %249 = arith.negf %248 : vector<8x128xf32>
    %250 = math.exp %249 : vector<8x128xf32>
    %cst_60 = arith.constant 1.000000e+00 : f32
    %251 = vector.broadcast %cst_60 : f32 to vector<8x128xf32>
    %252 = arith.addf %251, %250 : vector<8x128xf32>
    %253 = arith.divf %251, %252 : vector<8x128xf32>
    %254 = vector.extract_strided_slice %219 {offsets = [0, 128], sizes = [8, 128], strides = [1, 1]} : vector<8x512xf32> to vector<8x128xf32>
    %255 = arith.negf %254 : vector<8x128xf32>
    %256 = math.exp %255 : vector<8x128xf32>
    %cst_61 = arith.constant 1.000000e+00 : f32
    %257 = vector.broadcast %cst_61 : f32 to vector<8x128xf32>
    %258 = arith.addf %257, %256 : vector<8x128xf32>
    %259 = arith.divf %257, %258 : vector<8x128xf32>
    %260 = vector.extract_strided_slice %219 {offsets = [0, 256], sizes = [8, 128], strides = [1, 1]} : vector<8x512xf32> to vector<8x128xf32>
    %261 = math.tanh %260 : vector<8x128xf32>
    %262 = vector.extract_strided_slice %219 {offsets = [0, 384], sizes = [8, 128], strides = [1, 1]} : vector<8x512xf32> to vector<8x128xf32>
    %263 = arith.negf %262 : vector<8x128xf32>
    %264 = math.exp %263 : vector<8x128xf32>
    %cst_62 = arith.constant 1.000000e+00 : f32
    %265 = vector.broadcast %cst_62 : f32 to vector<8x128xf32>
    %266 = arith.addf %265, %264 : vector<8x128xf32>
    %267 = arith.divf %265, %266 : vector<8x128xf32>
    %268 = arith.mulf %259, %211 : vector<8x128xf32>
    %269 = arith.mulf %253, %261 : vector<8x128xf32>
    %270 = arith.addf %268, %269 : vector<8x128xf32>
    %271 = math.tanh %270 : vector<8x128xf32>
    %272 = arith.mulf %267, %271 : vector<8x128xf32>
    %273 = tpu.concatenate %272, %246 in 1 : vector<8x128xf32>, vector<8x128xf32> -> vector<8x256xf32>
    %c0_63 = arith.constant 0 : index
    %c0_64 = arith.constant 0 : index
    %274 = vector.load %arg3[%c0_63, %c0_64] : memref<256x1024xf32, #tpu.memory_space<vmem>>, vector<256x1024xf32>
    %cst_65 = arith.constant dense<0.000000e+00> : vector<8x1024xf32>
    %275 = tpu.matmul %273, %274, %cst_65 {dimension_numbers = #tpu.dot_dimension_numbers<[1], [0], [0], [1], [0, 0, 1, 1], [], []>} : vector<8x256xf32>, vector<256x1024xf32>, vector<8x1024xf32> -> vector<8x1024xf32>
    %c40 = arith.constant 40 : index
    %c0_66 = arith.constant 0 : index
    %276 = vector.load %arg6[%c40, %c0_66] : memref<64x512xf32, #tpu.memory_space<vmem>>, vector<8x512xf32>
    %277 = vector.extract_strided_slice %275 {offsets = [0, 0], sizes = [8, 512], strides = [1, 1]} : vector<8x1024xf32> to vector<8x512xf32>
    %278 = arith.addf %276, %277 : vector<8x512xf32>
    %279 = vector.extract_strided_slice %275 {offsets = [0, 512], sizes = [8, 512], strides = [1, 1]} : vector<8x1024xf32> to vector<8x512xf32>
    %280 = arith.addf %279, %9 : vector<8x512xf32>
    %281 = vector.extract_strided_slice %280 {offsets = [0, 0], sizes = [8, 128], strides = [1, 1]} : vector<8x512xf32> to vector<8x128xf32>
    %282 = arith.negf %281 : vector<8x128xf32>
    %283 = math.exp %282 : vector<8x128xf32>
    %cst_67 = arith.constant 1.000000e+00 : f32
    %284 = vector.broadcast %cst_67 : f32 to vector<8x128xf32>
    %285 = arith.addf %284, %283 : vector<8x128xf32>
    %286 = arith.divf %284, %285 : vector<8x128xf32>
    %287 = vector.extract_strided_slice %280 {offsets = [0, 128], sizes = [8, 128], strides = [1, 1]} : vector<8x512xf32> to vector<8x128xf32>
    %288 = arith.negf %287 : vector<8x128xf32>
    %289 = math.exp %288 : vector<8x128xf32>
    %cst_68 = arith.constant 1.000000e+00 : f32
    %290 = vector.broadcast %cst_68 : f32 to vector<8x128xf32>
    %291 = arith.addf %290, %289 : vector<8x128xf32>
    %292 = arith.divf %290, %291 : vector<8x128xf32>
    %293 = vector.extract_strided_slice %280 {offsets = [0, 256], sizes = [8, 128], strides = [1, 1]} : vector<8x512xf32> to vector<8x128xf32>
    %294 = math.tanh %293 : vector<8x128xf32>
    %295 = vector.extract_strided_slice %280 {offsets = [0, 384], sizes = [8, 128], strides = [1, 1]} : vector<8x512xf32> to vector<8x128xf32>
    %296 = arith.negf %295 : vector<8x128xf32>
    %297 = math.exp %296 : vector<8x128xf32>
    %cst_69 = arith.constant 1.000000e+00 : f32
    %298 = vector.broadcast %cst_69 : f32 to vector<8x128xf32>
    %299 = arith.addf %298, %297 : vector<8x128xf32>
    %300 = arith.divf %298, %299 : vector<8x128xf32>
    %301 = arith.mulf %292, %244 : vector<8x128xf32>
    %302 = arith.mulf %286, %294 : vector<8x128xf32>
    %303 = arith.addf %301, %302 : vector<8x128xf32>
    %304 = math.tanh %303 : vector<8x128xf32>
    %305 = arith.mulf %300, %304 : vector<8x128xf32>
    %c32_70 = arith.constant 32 : index
    %c0_71 = arith.constant 0 : index
    %306 = vector.load %arg5[%c32_70, %c0_71] : memref<64x128xf32, #tpu.memory_space<vmem>>, vector<8x128xf32>
    tpu.vector_store %arg5[%c32_70, %c0_71], %305 {strides = array<i32>} : memref<64x128xf32, #tpu.memory_space<vmem>>, vector<8x128xf32>,
    %307 = vector.extract_strided_slice %278 {offsets = [0, 0], sizes = [8, 128], strides = [1, 1]} : vector<8x512xf32> to vector<8x128xf32>
    %308 = arith.negf %307 : vector<8x128xf32>
    %309 = math.exp %308 : vector<8x128xf32>
    %cst_72 = arith.constant 1.000000e+00 : f32
    %310 = vector.broadcast %cst_72 : f32 to vector<8x128xf32>
    %311 = arith.addf %310, %309 : vector<8x128xf32>
    %312 = arith.divf %310, %311 : vector<8x128xf32>
    %313 = vector.extract_strided_slice %278 {offsets = [0, 128], sizes = [8, 128], strides = [1, 1]} : vector<8x512xf32> to vector<8x128xf32>
    %314 = arith.negf %313 : vector<8x128xf32>
    %315 = math.exp %314 : vector<8x128xf32>
    %cst_73 = arith.constant 1.000000e+00 : f32
    %316 = vector.broadcast %cst_73 : f32 to vector<8x128xf32>
    %317 = arith.addf %316, %315 : vector<8x128xf32>
    %318 = arith.divf %316, %317 : vector<8x128xf32>
    %319 = vector.extract_strided_slice %278 {offsets = [0, 256], sizes = [8, 128], strides = [1, 1]} : vector<8x512xf32> to vector<8x128xf32>
    %320 = math.tanh %319 : vector<8x128xf32>
    %321 = vector.extract_strided_slice %278 {offsets = [0, 384], sizes = [8, 128], strides = [1, 1]} : vector<8x512xf32> to vector<8x128xf32>
    %322 = arith.negf %321 : vector<8x128xf32>
    %323 = math.exp %322 : vector<8x128xf32>
    %cst_74 = arith.constant 1.000000e+00 : f32
    %324 = vector.broadcast %cst_74 : f32 to vector<8x128xf32>
    %325 = arith.addf %324, %323 : vector<8x128xf32>
    %326 = arith.divf %324, %325 : vector<8x128xf32>
    %327 = arith.mulf %318, %270 : vector<8x128xf32>
    %328 = arith.mulf %312, %320 : vector<8x128xf32>
    %329 = arith.addf %327, %328 : vector<8x128xf32>
    %330 = math.tanh %329 : vector<8x128xf32>
    %331 = arith.mulf %326, %330 : vector<8x128xf32>
    %332 = tpu.concatenate %331, %305 in 1 : vector<8x128xf32>, vector<8x128xf32> -> vector<8x256xf32>
    %c0_75 = arith.constant 0 : index
    %c0_76 = arith.constant 0 : index
    %333 = vector.load %arg3[%c0_75, %c0_76] : memref<256x1024xf32, #tpu.memory_space<vmem>>, vector<256x1024xf32>
    %cst_77 = arith.constant dense<0.000000e+00> : vector<8x1024xf32>
    %334 = tpu.matmul %332, %333, %cst_77 {dimension_numbers = #tpu.dot_dimension_numbers<[1], [0], [0], [1], [0, 0, 1, 1], [], []>} : vector<8x256xf32>, vector<256x1024xf32>, vector<8x1024xf32> -> vector<8x1024xf32>
    %c48 = arith.constant 48 : index
    %c0_78 = arith.constant 0 : index
    %335 = vector.load %arg6[%c48, %c0_78] : memref<64x512xf32, #tpu.memory_space<vmem>>, vector<8x512xf32>
    %336 = vector.extract_strided_slice %334 {offsets = [0, 0], sizes = [8, 512], strides = [1, 1]} : vector<8x1024xf32> to vector<8x512xf32>
    %337 = arith.addf %335, %336 : vector<8x512xf32>
    %338 = vector.extract_strided_slice %334 {offsets = [0, 512], sizes = [8, 512], strides = [1, 1]} : vector<8x1024xf32> to vector<8x512xf32>
    %339 = arith.addf %338, %9 : vector<8x512xf32>
    %340 = vector.extract_strided_slice %339 {offsets = [0, 0], sizes = [8, 128], strides = [1, 1]} : vector<8x512xf32> to vector<8x128xf32>
    %341 = arith.negf %340 : vector<8x128xf32>
    %342 = math.exp %341 : vector<8x128xf32>
    %cst_79 = arith.constant 1.000000e+00 : f32
    %343 = vector.broadcast %cst_79 : f32 to vector<8x128xf32>
    %344 = arith.addf %343, %342 : vector<8x128xf32>
    %345 = arith.divf %343, %344 : vector<8x128xf32>
    %346 = vector.extract_strided_slice %339 {offsets = [0, 128], sizes = [8, 128], strides = [1, 1]} : vector<8x512xf32> to vector<8x128xf32>
    %347 = arith.negf %346 : vector<8x128xf32>
    %348 = math.exp %347 : vector<8x128xf32>
    %cst_80 = arith.constant 1.000000e+00 : f32
    %349 = vector.broadcast %cst_80 : f32 to vector<8x128xf32>
    %350 = arith.addf %349, %348 : vector<8x128xf32>
    %351 = arith.divf %349, %350 : vector<8x128xf32>
    %352 = vector.extract_strided_slice %339 {offsets = [0, 256], sizes = [8, 128], strides = [1, 1]} : vector<8x512xf32> to vector<8x128xf32>
    %353 = math.tanh %352 : vector<8x128xf32>
    %354 = vector.extract_strided_slice %339 {offsets = [0, 384], sizes = [8, 128], strides = [1, 1]} : vector<8x512xf32> to vector<8x128xf32>
    %355 = arith.negf %354 : vector<8x128xf32>
    %356 = math.exp %355 : vector<8x128xf32>
    %cst_81 = arith.constant 1.000000e+00 : f32
    %357 = vector.broadcast %cst_81 : f32 to vector<8x128xf32>
    %358 = arith.addf %357, %356 : vector<8x128xf32>
    %359 = arith.divf %357, %358 : vector<8x128xf32>
    %360 = arith.mulf %351, %303 : vector<8x128xf32>
    %361 = arith.mulf %345, %353 : vector<8x128xf32>
    %362 = arith.addf %360, %361 : vector<8x128xf32>
    %363 = math.tanh %362 : vector<8x128xf32>
    %364 = arith.mulf %359, %363 : vector<8x128xf32>
    %c40_82 = arith.constant 40 : index
    %c0_83 = arith.constant 0 : index
    %365 = vector.load %arg5[%c40_82, %c0_83] : memref<64x128xf32, #tpu.memory_space<vmem>>, vector<8x128xf32>
    tpu.vector_store %arg5[%c40_82, %c0_83], %364 {strides = array<i32>} : memref<64x128xf32, #tpu.memory_space<vmem>>, vector<8x128xf32>,
    %366 = vector.extract_strided_slice %337 {offsets = [0, 0], sizes = [8, 128], strides = [1, 1]} : vector<8x512xf32> to vector<8x128xf32>
    %367 = arith.negf %366 : vector<8x128xf32>
    %368 = math.exp %367 : vector<8x128xf32>
    %cst_84 = arith.constant 1.000000e+00 : f32
    %369 = vector.broadcast %cst_84 : f32 to vector<8x128xf32>
    %370 = arith.addf %369, %368 : vector<8x128xf32>
    %371 = arith.divf %369, %370 : vector<8x128xf32>
    %372 = vector.extract_strided_slice %337 {offsets = [0, 128], sizes = [8, 128], strides = [1, 1]} : vector<8x512xf32> to vector<8x128xf32>
    %373 = arith.negf %372 : vector<8x128xf32>
    %374 = math.exp %373 : vector<8x128xf32>
    %cst_85 = arith.constant 1.000000e+00 : f32
    %375 = vector.broadcast %cst_85 : f32 to vector<8x128xf32>
    %376 = arith.addf %375, %374 : vector<8x128xf32>
    %377 = arith.divf %375, %376 : vector<8x128xf32>
    %378 = vector.extract_strided_slice %337 {offsets = [0, 256], sizes = [8, 128], strides = [1, 1]} : vector<8x512xf32> to vector<8x128xf32>
    %379 = math.tanh %378 : vector<8x128xf32>
    %380 = vector.extract_strided_slice %337 {offsets = [0, 384], sizes = [8, 128], strides = [1, 1]} : vector<8x512xf32> to vector<8x128xf32>
    %381 = arith.negf %380 : vector<8x128xf32>
    %382 = math.exp %381 : vector<8x128xf32>
    %cst_86 = arith.constant 1.000000e+00 : f32
    %383 = vector.broadcast %cst_86 : f32 to vector<8x128xf32>
    %384 = arith.addf %383, %382 : vector<8x128xf32>
    %385 = arith.divf %383, %384 : vector<8x128xf32>
    %386 = arith.mulf %377, %329 : vector<8x128xf32>
    %387 = arith.mulf %371, %379 : vector<8x128xf32>
    %388 = arith.addf %386, %387 : vector<8x128xf32>
    %389 = math.tanh %388 : vector<8x128xf32>
    %390 = arith.mulf %385, %389 : vector<8x128xf32>
    %391 = tpu.concatenate %390, %364 in 1 : vector<8x128xf32>, vector<8x128xf32> -> vector<8x256xf32>
    %c0_87 = arith.constant 0 : index
    %c0_88 = arith.constant 0 : index
    %392 = vector.load %arg3[%c0_87, %c0_88] : memref<256x1024xf32, #tpu.memory_space<vmem>>, vector<256x1024xf32>
    %cst_89 = arith.constant dense<0.000000e+00> : vector<8x1024xf32>
    %393 = tpu.matmul %391, %392, %cst_89 {dimension_numbers = #tpu.dot_dimension_numbers<[1], [0], [0], [1], [0, 0, 1, 1], [], []>} : vector<8x256xf32>, vector<256x1024xf32>, vector<8x1024xf32> -> vector<8x1024xf32>
    %c56 = arith.constant 56 : index
    %c0_90 = arith.constant 0 : index
    %394 = vector.load %arg6[%c56, %c0_90] : memref<64x512xf32, #tpu.memory_space<vmem>>, vector<8x512xf32>
    %395 = vector.extract_strided_slice %393 {offsets = [0, 0], sizes = [8, 512], strides = [1, 1]} : vector<8x1024xf32> to vector<8x512xf32>
    %396 = arith.addf %394, %395 : vector<8x512xf32>
    %397 = vector.extract_strided_slice %393 {offsets = [0, 512], sizes = [8, 512], strides = [1, 1]} : vector<8x1024xf32> to vector<8x512xf32>
    %398 = arith.addf %397, %9 : vector<8x512xf32>
    %399 = vector.extract_strided_slice %398 {offsets = [0, 0], sizes = [8, 128], strides = [1, 1]} : vector<8x512xf32> to vector<8x128xf32>
    %400 = arith.negf %399 : vector<8x128xf32>
    %401 = math.exp %400 : vector<8x128xf32>
    %cst_91 = arith.constant 1.000000e+00 : f32
    %402 = vector.broadcast %cst_91 : f32 to vector<8x128xf32>
    %403 = arith.addf %402, %401 : vector<8x128xf32>
    %404 = arith.divf %402, %403 : vector<8x128xf32>
    %405 = vector.extract_strided_slice %398 {offsets = [0, 128], sizes = [8, 128], strides = [1, 1]} : vector<8x512xf32> to vector<8x128xf32>
    %406 = arith.negf %405 : vector<8x128xf32>
    %407 = math.exp %406 : vector<8x128xf32>
    %cst_92 = arith.constant 1.000000e+00 : f32
    %408 = vector.broadcast %cst_92 : f32 to vector<8x128xf32>
    %409 = arith.addf %408, %407 : vector<8x128xf32>
    %410 = arith.divf %408, %409 : vector<8x128xf32>
    %411 = vector.extract_strided_slice %398 {offsets = [0, 256], sizes = [8, 128], strides = [1, 1]} : vector<8x512xf32> to vector<8x128xf32>
    %412 = math.tanh %411 : vector<8x128xf32>
    %413 = vector.extract_strided_slice %398 {offsets = [0, 384], sizes = [8, 128], strides = [1, 1]} : vector<8x512xf32> to vector<8x128xf32>
    %414 = arith.negf %413 : vector<8x128xf32>
    %415 = math.exp %414 : vector<8x128xf32>
    %cst_93 = arith.constant 1.000000e+00 : f32
    %416 = vector.broadcast %cst_93 : f32 to vector<8x128xf32>
    %417 = arith.addf %416, %415 : vector<8x128xf32>
    %418 = arith.divf %416, %417 : vector<8x128xf32>
    %419 = arith.mulf %410, %362 : vector<8x128xf32>
    %420 = arith.mulf %404, %412 : vector<8x128xf32>
    %421 = arith.addf %419, %420 : vector<8x128xf32>
    %422 = math.tanh %421 : vector<8x128xf32>
    %423 = arith.mulf %418, %422 : vector<8x128xf32>
    %c48_94 = arith.constant 48 : index
    %c0_95 = arith.constant 0 : index
    %424 = vector.load %arg5[%c48_94, %c0_95] : memref<64x128xf32, #tpu.memory_space<vmem>>, vector<8x128xf32>
    tpu.vector_store %arg5[%c48_94, %c0_95], %423 {strides = array<i32>} : memref<64x128xf32, #tpu.memory_space<vmem>>, vector<8x128xf32>,
    %425 = vector.extract_strided_slice %396 {offsets = [0, 0], sizes = [8, 128], strides = [1, 1]} : vector<8x512xf32> to vector<8x128xf32>
    %426 = arith.negf %425 : vector<8x128xf32>
    %427 = math.exp %426 : vector<8x128xf32>
    %cst_96 = arith.constant 1.000000e+00 : f32
    %428 = vector.broadcast %cst_96 : f32 to vector<8x128xf32>
    %429 = arith.addf %428, %427 : vector<8x128xf32>
    %430 = arith.divf %428, %429 : vector<8x128xf32>
    %431 = vector.extract_strided_slice %396 {offsets = [0, 128], sizes = [8, 128], strides = [1, 1]} : vector<8x512xf32> to vector<8x128xf32>
    %432 = arith.negf %431 : vector<8x128xf32>
    %433 = math.exp %432 : vector<8x128xf32>
    %cst_97 = arith.constant 1.000000e+00 : f32
    %434 = vector.broadcast %cst_97 : f32 to vector<8x128xf32>
    %435 = arith.addf %434, %433 : vector<8x128xf32>
    %436 = arith.divf %434, %435 : vector<8x128xf32>
    %437 = vector.extract_strided_slice %396 {offsets = [0, 256], sizes = [8, 128], strides = [1, 1]} : vector<8x512xf32> to vector<8x128xf32>
    %438 = math.tanh %437 : vector<8x128xf32>
    %439 = vector.extract_strided_slice %396 {offsets = [0, 384], sizes = [8, 128], strides = [1, 1]} : vector<8x512xf32> to vector<8x128xf32>
    %440 = arith.negf %439 : vector<8x128xf32>
    %441 = math.exp %440 : vector<8x128xf32>
    %cst_98 = arith.constant 1.000000e+00 : f32
    %442 = vector.broadcast %cst_98 : f32 to vector<8x128xf32>
    %443 = arith.addf %442, %441 : vector<8x128xf32>
    %444 = arith.divf %442, %443 : vector<8x128xf32>
    %445 = arith.mulf %436, %388 : vector<8x128xf32>
    %446 = arith.mulf %430, %438 : vector<8x128xf32>
    %447 = arith.addf %445, %446 : vector<8x128xf32>
    %448 = math.tanh %447 : vector<8x128xf32>
    %449 = arith.mulf %444, %448 : vector<8x128xf32>
    %450 = tpu.concatenate %449, %423 in 1 : vector<8x128xf32>, vector<8x128xf32> -> vector<8x256xf32>
    %c0_99 = arith.constant 0 : index
    %c512 = arith.constant 512 : index
    %451 = vector.load %arg3[%c0_99, %c512] : memref<256x1024xf32, #tpu.memory_space<vmem>>, vector<256x512xf32>
    %cst_100 = arith.constant dense<0.000000e+00> : vector<8x512xf32>
    %452 = tpu.matmul %450, %451, %cst_100 {dimension_numbers = #tpu.dot_dimension_numbers<[1], [0], [0], [1], [0, 0, 1, 1], [], []>} : vector<8x256xf32>, vector<256x512xf32>, vector<8x512xf32> -> vector<8x512xf32>
    %453 = arith.addf %452, %9 : vector<8x512xf32>
    %454 = vector.extract_strided_slice %453 {offsets = [0, 0], sizes = [8, 128], strides = [1, 1]} : vector<8x512xf32> to vector<8x128xf32>
    %455 = arith.negf %454 : vector<8x128xf32>
    %456 = math.exp %455 : vector<8x128xf32>
    %cst_101 = arith.constant 1.000000e+00 : f32
    %457 = vector.broadcast %cst_101 : f32 to vector<8x128xf32>
    %458 = arith.addf %457, %456 : vector<8x128xf32>
    %459 = arith.divf %457, %458 : vector<8x128xf32>
    %460 = vector.extract_strided_slice %453 {offsets = [0, 128], sizes = [8, 128], strides = [1, 1]} : vector<8x512xf32> to vector<8x128xf32>
    %461 = arith.negf %460 : vector<8x128xf32>
    %462 = math.exp %461 : vector<8x128xf32>
    %cst_102 = arith.constant 1.000000e+00 : f32
    %463 = vector.broadcast %cst_102 : f32 to vector<8x128xf32>
    %464 = arith.addf %463, %462 : vector<8x128xf32>
    %465 = arith.divf %463, %464 : vector<8x128xf32>
    %466 = vector.extract_strided_slice %453 {offsets = [0, 256], sizes = [8, 128], strides = [1, 1]} : vector<8x512xf32> to vector<8x128xf32>
    %467 = math.tanh %466 : vector<8x128xf32>
    %468 = vector.extract_strided_slice %453 {offsets = [0, 384], sizes = [8, 128], strides = [1, 1]} : vector<8x512xf32> to vector<8x128xf32>
    %469 = arith.negf %468 : vector<8x128xf32>
    %470 = math.exp %469 : vector<8x128xf32>
    %cst_103 = arith.constant 1.000000e+00 : f32
    %471 = vector.broadcast %cst_103 : f32 to vector<8x128xf32>
    %472 = arith.addf %471, %470 : vector<8x128xf32>
    %473 = arith.divf %471, %472 : vector<8x128xf32>
    %474 = arith.mulf %465, %421 : vector<8x128xf32>
    %475 = arith.mulf %459, %467 : vector<8x128xf32>
    %476 = arith.addf %474, %475 : vector<8x128xf32>
    %477 = math.tanh %476 : vector<8x128xf32>
    %478 = arith.mulf %473, %477 : vector<8x128xf32>
    %c56_104 = arith.constant 56 : index
    %c0_105 = arith.constant 0 : index
    %479 = vector.load %arg5[%c56_104, %c0_105] : memref<64x128xf32, #tpu.memory_space<vmem>>, vector<8x128xf32>
    tpu.vector_store %arg5[%c56_104, %c0_105], %478 {strides = array<i32>} : memref<64x128xf32, #tpu.memory_space<vmem>>, vector<8x128xf32>,
    return
  }
}

</mosaic_0001>

<bundles_post_ra>
// kernel: lstm_pallas.1
= control target key start
LH: loop header
LB: loop body
LE: loop exit
PB: predicated region body
PF: predicated region fallthrough
CT: control target
= control target key end

     0   :  { %v7273_v3 = vmov 0.0   ;;  %s13398_s1 = inlined_call_operand.vmem [shape: f32[128,512], index: 1, kind: input, shape index: {}]   ;;  %s13399_s3 = inlined_call_operand.vmem [shape: f32[256,1024], index: 3, kind: input, shape index: {}]   ;;  %s13400_s0 = inlined_call_operand.vmem [shape: f32[64,128], index: 0, kind: input, shape index: {}]   ;;  %s13401_s2 = inlined_call_operand.vmem [shape: f32[1,512], index: 2, kind: input, shape index: {}]   ;;  %s13402_s4 = inlined_call_operand.vmem [shape: f32[1,512], index: 4, kind: input, shape index: {}]   ;;  %s13403_s5 = inlined_call_operand.vmem [shape: f32[64,128], index: 5, kind: output, shape index: {}]  }
   0x1   :  { %v29_v0 = vld [vmem:[%s13398_s1 + $0x8] sm:$0xff]  ;;  %v28_v2 = vld [vmem:[%s13398_s1] sm:$0xff]  ;;  %178 = vmatprep.mubr.f32.mxu0 %v7273_v3  ;;  %291 = vmatprep.mubr.f32.mxu1 %v7273_v3  ;;  %v31_v19 = vld [vmem:[%s13398_s1 + $0x18] sm:$0xff] }
   0x2   :  { %v33_v1 = vld [vmem:[%s13398_s1 + $0x28] sm:$0xff]  ;;  %v32_v5 = vld [vmem:[%s13398_s1 + $0x20] sm:$0xff]  ;;  %v35_v20 = vld [vmem:[%s13398_s1 + $0x38] sm:$0xff] }
   0x3   :  { %v4976_v4 = vpack.c.bf16 %v33_v1, %v29_v0  ;;  %v37_v6 = vld [vmem:[%s13398_s1 + $0x48] sm:$0xff]  ;;  %v4978_v8 = vpack.c.bf16 %v32_v5, %v28_v2  ;;  %v36_v10 = vld [vmem:[%s13398_s1 + $0x40] sm:$0xff]  ;;  %v5008_v22 = vpack.c.bf16 %v35_v20, %v31_v19  ;;  %v30_v23 = vld [vmem:[%s13398_s1 + $0x10] sm:$0xff] }
   0x4   :  { %v41_v7 = vld [vmem:[%s13398_s1 + $0x68] sm:$0xff]  ;;  %v40_v11 = vld [vmem:[%s13398_s1 + $0x60] sm:$0xff]  ;;  %v34_v24 = vld [vmem:[%s13398_s1 + $0x30] sm:$0xff] }
   0x5   :  { %v4980_v9 = vpack.c.bf16 %v41_v7, %v37_v6  ;;  %v45_v12 = vld [vmem:[%s13398_s1 + $0x88] sm:$0xff]  ;;  %4977 = vmatprep.subr.bf16.mxu0 %v4976_v4  ;;  %v4982_v14 = vpack.c.bf16 %v40_v11, %v36_v10  ;;  %v44_v15 = vld [vmem:[%s13398_s1 + $0x80] sm:$0xff]  ;;  %v5010_v25 = vpack.c.bf16 %v34_v24, %v30_v23  ;;  %5009 = vmatprep.subr.bf16.mxu1 %v5008_v22  ;;  %v39_v27 = vld [vmem:[%s13398_s1 + $0x58] sm:$0xff] }
   0x6   :  { %v49_v13 = vld [vmem:[%s13398_s1 + $0xa8] sm:$0xff]  ;;  %4979 = vmatpush1.bf16.msra.mxu0 %v4978_v8  ;;  %v48_v16 = vld [vmem:[%s13398_s1 + $0xa0] sm:$0xff]  ;;  %v43_v28 = vld [vmem:[%s13398_s1 + $0x78] sm:$0xff] }
   0x7   :  { %4981 = vmatprep.subr.bf16.mxu0 %v4980_v9  ;;  %v4984_v17 = vpack.c.bf16 %v49_v13, %v45_v12  ;;  %v53_v18 = vld [vmem:[%s13398_s1 + $0xc8] sm:$0xff]  ;;  %v4986_v26 = vpack.c.bf16 %v48_v16, %v44_v15  ;;  %v38_v29 = vld [vmem:[%s13398_s1 + $0x50] sm:$0xff]  ;;  %v52_v31 = vld [vmem:[%s13398_s1 + $0xc0] sm:$0xff]  ;;  %5011 = vmatpush1.bf16.msra.mxu1 %v5010_v25  ;;  %v5012_v33 = vpack.c.bf16 %v43_v28, %v39_v27 }
   0x8   :  { %v57_v21 = vld [vmem:[%s13398_s1 + $0xe8] sm:$0xff]  ;;  %v56_v32 = vld [vmem:[%s13398_s1 + $0xe0] sm:$0xff]  ;;  %v42_v34 = vld [vmem:[%s13398_s1 + $0x70] sm:$0xff] }
   0x9   :  { %v4988_v30 = vpack.c.bf16 %v57_v21, %v53_v18  ;;  %v61_v35 = vld [vmem:[%s13398_s1 + $0x108] sm:$0xff]  ;;  %v5014_v37 = vpack.c.bf16 %v42_v34, %v38_v29  ;;  %v47_v38 = vld [vmem:[%s13398_s1 + $0x98] sm:$0xff]  ;;  %5013 = vmatprep.subr.bf16.mxu1 %v5012_v33  ;;  %v46_v40 = vld [vmem:[%s13398_s1 + $0x90] sm:$0xff]  ;;  %v4990_v42 = vpack.c.bf16 %v56_v32, %v52_v31 }
   0xa   :  { %4983 = vmatpush1.bf16.msra.mxu0 %v4982_v14  ;;  %v65_v36 = vld [vmem:[%s13398_s1 + $0x128] sm:$0xff]  ;;  %v51_v39 = vld [vmem:[%s13398_s1 + $0xb8] sm:$0xff]  ;;  %v50_v41 = vld [vmem:[%s13398_s1 + $0xb0] sm:$0xff] }
   0xb   :  { %4985 = vmatprep.subr.bf16.mxu0 %v4984_v17  ;;  %v60_v43 = vld [vmem:[%s13398_s1 + $0x100] sm:$0xff]  ;;  %v5016_v45 = vpack.c.bf16 %v51_v39, %v47_v38  ;;  %v4992_v46 = vpack.c.bf16 %v65_v36, %v61_v35  ;;  %5015 = vmatpush1.bf16.msra.mxu1 %v5014_v37  ;;  %v69_v47 = vld [vmem:[%s13398_s1 + $0x148] sm:$0xff]  ;;  %v5018_v48 = vpack.c.bf16 %v50_v41, %v46_v40  ;;  %v55_v49 = vld [vmem:[%s13398_s1 + $0xd8] sm:$0xff] }
   0xc   :  { %v64_v44 = vld [vmem:[%s13398_s1 + $0x120] sm:$0xff]  ;;  %v59_v50 = vld [vmem:[%s13398_s1 + $0xf8] sm:$0xff]  ;;  %v73_v51 = vld [vmem:[%s13398_s1 + $0x168] sm:$0xff] }
   0xd   :  { %5017 = vmatprep.subr.bf16.mxu1 %v5016_v45  ;;  %v5020_v52 = vpack.c.bf16 %v59_v50, %v55_v49  ;;  %v54_v53 = vld [vmem:[%s13398_s1 + $0xd0] sm:$0xff]  ;;  %v4994_v55 = vpack.c.bf16 %v64_v44, %v60_v43  ;;  %v63_v56 = vld [vmem:[%s13398_s1 + $0x118] sm:$0xff]  ;;  %v4996_v58 = vpack.c.bf16 %v73_v51, %v69_v47  ;;  %v68_v59 = vld [vmem:[%s13398_s1 + $0x140] sm:$0xff] }
   0xe   :  { %4987 = vmatpush1.bf16.msra.mxu0 %v4986_v26  ;;  %v58_v54 = vld [vmem:[%s13398_s1 + $0xf0] sm:$0xff]  ;;  %v67_v57 = vld [vmem:[%s13398_s1 + $0x138] sm:$0xff]  ;;  %v72_v60 = vld [vmem:[%s13398_s1 + $0x160] sm:$0xff] }
   0xf   :  { %4989 = vmatprep.subr.bf16.mxu0 %v4988_v30  ;;  %5019 = vmatpush1.bf16.msra.mxu1 %v5018_v48  ;;  %v77_v61 = vld [vmem:[%s13398_s1 + $0x188] sm:$0xff]  ;;  %v5022_v62 = vpack.c.bf16 %v58_v54, %v54_v53  ;;  %v5024_v0 = vpack.c.bf16 %v67_v57, %v63_v56  ;;  %v62_v1 = vld [vmem:[%s13398_s1 + $0x110] sm:$0xff]  ;;  %v71_v4 = vld [vmem:[%s13398_s1 + $0x158] sm:$0xff]  ;;  %v4998_v6 = vpack.c.bf16 %v72_v60, %v68_v59 }
  0x10   :  { %v81_v63 = vld [vmem:[%s13398_s1 + $0x1a8] sm:$0xff]  ;;  %5021 = vmatprep.subr.bf16.mxu1 %v5020_v52  ;;  %v66_v2 = vld [vmem:[%s13398_s1 + $0x130] sm:$0xff]  ;;  %v75_v5 = vld [vmem:[%s13398_s1 + $0x178] sm:$0xff] }
  0x11   :  { %v5000_v7 = vpack.c.bf16 %v81_v63, %v77_v61  ;;  %v76_v8 = vld [vmem:[%s13398_s1 + $0x180] sm:$0xff]  ;;  %v85_v10 = vld [vmem:[%s13398_s1 + $0x1c8] sm:$0xff]  ;;  %v5026_v11 = vpack.c.bf16 %v66_v2, %v62_v1  ;;  %v5028_v13 = vpack.c.bf16 %v75_v5, %v71_v4  ;;  %v70_v14 = vld [vmem:[%s13398_s1 + $0x150] sm:$0xff] }
  0x12   :  { %4991 = vmatpush1.bf16.msra.mxu0 %v4990_v42  ;;  %v80_v9 = vld [vmem:[%s13398_s1 + $0x1a0] sm:$0xff]  ;;  %v89_v12 = vld [vmem:[%s13398_s1 + $0x1e8] sm:$0xff]  ;;  %v74_v15 = vld [vmem:[%s13398_s1 + $0x170] sm:$0xff] }
  0x13   :  { %4993 = vmatprep.subr.bf16.mxu0 %v4992_v46  ;;  %5023 = vmatpush1.bf16.msra.mxu1 %v5022_v62  ;;  %v79_v16 = vld [vmem:[%s13398_s1 + $0x198] sm:$0xff]  ;;  %v5002_v18 = vpack.c.bf16 %v80_v9, %v76_v8  ;;  %v5004_v19 = vpack.c.bf16 %v89_v12, %v85_v10  ;;  %v84_v20 = vld [vmem:[%s13398_s1 + $0x1c0] sm:$0xff]  ;;  %v5030_v22 = vpack.c.bf16 %v74_v15, %v70_v14  ;;  %v78_v23 = vld [vmem:[%s13398_s1 + $0x190] sm:$0xff] }
  0x14   :  { %5025 = vmatprep.subr.bf16.mxu1 %v5024_v0  ;;  %v83_v17 = vld [vmem:[%s13398_s1 + $0x1b8] sm:$0xff]  ;;  %v88_v21 = vld [vmem:[%s13398_s1 + $0x1e0] sm:$0xff]  ;;  %v82_v25 = vld [vmem:[%s13398_s1 + $0x1b0] sm:$0xff] }
  0x15   :  { %v5032_v24 = vpack.c.bf16 %v83_v17, %v79_v16  ;;  %v423_v26 = vld [vmem:[%s13399_s3 + $0x8] sm:$0xff]  ;;  %v87_v28 = vld [vmem:[%s13398_s1 + $0x1d8] sm:$0xff]  ;;  %v5006_v30 = vpack.c.bf16 %v88_v21, %v84_v20  ;;  %v5034_v31 = vpack.c.bf16 %v82_v25, %v78_v23  ;;  %v86_v32 = vld [vmem:[%s13398_s1 + $0x1d0] sm:$0xff] }
  0x16   :  { %4995 = vmatpush1.bf16.msra.mxu0 %v4994_v55  ;;  %v431_v27 = vld [vmem:[%s13399_s3 + $0x48] sm:$0xff]  ;;  %v91_v29 = vld [vmem:[%s13398_s1 + $0x1f8] sm:$0xff]  ;;  %v422_v34 = vld [vmem:[%s13399_s3] sm:$0xff] }
  0x17   :  { %4997 = vmatprep.subr.bf16.mxu0 %v4996_v58  ;;  %5027 = vmatpush1.bf16.msra.mxu1 %v5026_v11  ;;  %v5040_v33 = vpack.c.bf16 %v431_v27, %v423_v26  ;;  %v430_v35 = vld [vmem:[%s13399_s3 + $0x40] sm:$0xff]  ;;  %v5036_v36 = vpack.c.bf16 %v91_v29, %v87_v28  ;;  %v90_v37 = vld [vmem:[%s13398_s1 + $0x1f0] sm:$0xff]  ;;  %v439_v38 = vld [vmem:[%s13399_s3 + $0x88] sm:$0xff] }
  0x18   :  { %5029 = vmatprep.subr.bf16.mxu1 %v5028_v13  ;;  %v447_v39 = vld [vmem:[%s13399_s3 + $0xc8] sm:$0xff]  ;;  %v425_v40 = vld [vmem:[%s13399_s3 + $0x18] sm:$0xff]  ;;  %v20_v42 = vld [vmem:[%s13400_s0] sm:$0xff]  ;;  %v5042_v43 = vpack.c.bf16 %v430_v35, %v422_v34  ;;  %v5038_v44 = vpack.c.bf16 %v90_v37, %v86_v32 }
  0x19   :  { %v433_v41 = vld [vmem:[%s13399_s3 + $0x58] sm:$0xff]  ;;  %v424_v45 = vld [vmem:[%s13399_s3 + $0x10] sm:$0xff]  ;;  %v5044_v46 = vpack.c.bf16 %v447_v39, %v439_v38  ;;  %v438_v47 = vld [vmem:[%s13399_s3 + $0x80] sm:$0xff] }
  0x1a   :  { %4999 = vmatpush1.bf16.msra.mxu0 %v4998_v6  ;;  %v446_v48 = vld [vmem:[%s13399_s3 + $0xc0] sm:$0xff]  ;;  %v5104_v49 = vpack.c.bf16 %v433_v41, %v425_v40  ;;  %v432_v50 = vld [vmem:[%s13399_s3 + $0x50] sm:$0xff]  ;;  %v455_v51 = vld [vmem:[%s13399_s3 + $0x108] sm:$0xff] }
  0x1b   :  { %5001 = vmatprep.subr.bf16.mxu0 %v5000_v7  ;;  %5031 = vmatpush1.bf16.msra.mxu1 %v5030_v22  ;;  %v463_v52 = vld [vmem:[%s13399_s3 + $0x148] sm:$0xff]  ;;  %v441_v53 = vld [vmem:[%s13399_s3 + $0x98] sm:$0xff]  ;;  %v5046_v55 = vpack.c.bf16 %v446_v48, %v438_v47  ;;  %v5106_v56 = vpack.c.bf16 %v432_v50, %v424_v45  ;;  %v440_v57 = vld [vmem:[%s13399_s3 + $0x90] sm:$0xff] }
  0x1c   :  { %5033 = vmatprep.subr.bf16.mxu1 %v5032_v24  ;;  %v449_v54 = vld [vmem:[%s13399_s3 + $0xd8] sm:$0xff]  ;;  %v5048_v58 = vpack.c.bf16 %v463_v52, %v455_v51  ;;  %v454_v59 = vld [vmem:[%s13399_s3 + $0x100] sm:$0xff]  ;;  %v448_v62 = vld [vmem:[%s13399_s3 + $0xd0] sm:$0xff] }
  0x1d   :  { %v462_v60 = vld [vmem:[%s13399_s3 + $0x140] sm:$0xff]  ;;  %v5108_v61 = vpack.c.bf16 %v449_v54, %v441_v53  ;;  %v471_v63 = vld [vmem:[%s13399_s3 + $0x188] sm:$0xff]  ;;  %v457_v1 = vld [vmem:[%s13399_s3 + $0x118] sm:$0xff]  ;;  %v5110_v5 = vpack.c.bf16 %v448_v62, %v440_v57 }
  0x1e   :  { %5003 = vmatpush1.bf16.msra.mxu0 %v5002_v18  ;;  %v479_v0 = vld [vmem:[%s13399_s3 + $0x1c8] sm:$0xff]  ;;  %v465_v2 = vld [vmem:[%s13399_s3 + $0x158] sm:$0xff]  ;;  %v5050_v4 = vpack.c.bf16 %v462_v60, %v454_v59  ;;  %v456_v6 = vld [vmem:[%s13399_s3 + $0x110] sm:$0xff] }
  0x1f   :  { %5005 = vmatprep.subr.bf16.mxu0 %v5004_v19  ;;  %5035 = vmatpush1.bf16.msra.mxu1 %v5034_v31  ;;  %v5052_v7 = vpack.c.bf16 %v479_v0, %v471_v63  ;;  %v470_v8 = vld [vmem:[%s13399_s3 + $0x180] sm:$0xff]  ;;  %v5112_v10 = vpack.c.bf16 %v465_v2, %v457_v1  ;;  %v464_v11 = vld [vmem:[%s13399_s3 + $0x150] sm:$0xff]  ;;  %v487_v12 = vld [vmem:[%s13399_s3 + $0x208] sm:$0xff] }
  0x20   :  { %5037 = vmatprep.subr.bf16.mxu1 %v5036_v36  ;;  %v478_v9 = vld [vmem:[%s13399_s3 + $0x1c0] sm:$0xff]  ;;  %v495_v13 = vld [vmem:[%s13399_s3 + $0x248] sm:$0xff]  ;;  %v473_v14 = vld [vmem:[%s13399_s3 + $0x198] sm:$0xff]  ;;  %v5114_v17 = vpack.c.bf16 %v464_v11, %v456_v6 }
  0x21   :  { %v481_v15 = vld [vmem:[%s13399_s3 + $0x1d8] sm:$0xff]  ;;  %v5054_v16 = vpack.c.bf16 %v478_v9, %v470_v8  ;;  %v5056_v18 = vpack.c.bf16 %v495_v13, %v487_v12  ;;  %v486_v19 = vld [vmem:[%s13399_s3 + $0x200] sm:$0xff]  ;;  %v472_v22 = vld [vmem:[%s13399_s3 + $0x190] sm:$0xff] }
  0x22   :  { %5007 = vmatpush1.bf16.msra.mxu0 %v5006_v30  ;;  %v494_v20 = vld [vmem:[%s13399_s3 + $0x240] sm:$0xff]  ;;  %v5116_v21 = vpack.c.bf16 %v481_v15, %v473_v14  ;;  %v480_v23 = vld [vmem:[%s13399_s3 + $0x1d0] sm:$0xff]  ;;  %v489_v24 = vld [vmem:[%s13399_s3 + $0x218] sm:$0xff] }
  0x23   :  { %5041 = vmatprep.subr.bf16.mxu0 %v5040_v33  ;;  %5039 = vmatpush1.bf16.msra.mxu1 %v5038_v44  ;;  %v497_v25 = vld [vmem:[%s13399_s3 + $0x258] sm:$0xff]  ;;  %v5058_v26 = vpack.c.bf16 %v494_v20, %v486_v19  ;;  %v5118_v27 = vpack.c.bf16 %v480_v23, %v472_v22  ;;  %v488_v29 = vld [vmem:[%s13399_s3 + $0x210] sm:$0xff]  ;;  %v503_v32 = vld [vmem:[%s13399_s3 + $0x288] sm:$0xff] }
  0x24   :  { %5105 = vmatprep.subr.bf16.mxu1 %v5104_v49  ;;  %v5120_v28 = vpack.c.bf16 %v497_v25, %v489_v24  ;;  %v496_v30 = vld [vmem:[%s13399_s3 + $0x250] sm:$0xff]  ;;  %v511_v33 = vld [vmem:[%s13399_s3 + $0x2c8] sm:$0xff]  ;;  %v505_v34 = vld [vmem:[%s13399_s3 + $0x298] sm:$0xff] }
  0x25   :  { %179 = vmatmul.mubr.f32.vlgmr.msra.gmra.mrb[0].mxu0 %v20_v42  ;;  %v5122_v31 = vpack.c.bf16 %v496_v30, %v488_v29  ;;  %v5060_v35 = vpack.c.bf16 %v511_v33, %v503_v32  ;;  %v513_v36 = vld [vmem:[%s13399_s3 + $0x2d8] sm:$0xff]  ;;  %v502_v37 = vld [vmem:[%s13399_s3 + $0x280] sm:$0xff]  ;;  %v504_v41 = vld [vmem:[%s13399_s3 + $0x290] sm:$0xff] }
  0x26   :  { %5043 = vmatpush1.bf16.msra.mxu0 %v5042_v43  ;;  %184 = vmatprep.mubr.f32.mxu0 %v7273_v3  ;;  %v510_v38 = vld [vmem:[%s13399_s3 + $0x2c0] sm:$0xff]  ;;  %v5124_v39 = vpack.c.bf16 %v513_v36, %v505_v34  ;;  %v519_v44 = vld [vmem:[%s13399_s3 + $0x308] sm:$0xff]  ;;  %v529_v48 = vld [vmem:[%s13399_s3 + $0x358] sm:$0xff] }
  0x27   :  { %5045 = vmatprep.subr.bf16.mxu0 %v5044_v46  ;;  %292 = vmatmul.mubr.f32.vlgmr.msra.gmra.mrb[0].mxu1 %v20_v42  ;;  %v5062_v40 = vpack.c.bf16 %v510_v38, %v502_v37  ;;  %v512_v42 = vld [vmem:[%s13399_s3 + $0x2d0] sm:$0xff]  ;;  %v527_v45 = vld [vmem:[%s13399_s3 + $0x348] sm:$0xff]  ;;  %v521_v46 = vld [vmem:[%s13399_s3 + $0x318] sm:$0xff] }
  0x28   :  { %5107 = vmatpush1.bf16.msra.mxu1 %v5106_v56  ;;  %297 = vmatprep.mubr.f32.mxu1 %v7273_v3  ;;  %v5126_v43 = vpack.c.bf16 %v512_v42, %v504_v41  ;;  %v5064_v47 = vpack.c.bf16 %v527_v45, %v519_v44  ;;  %v518_v49 = vld [vmem:[%s13399_s3 + $0x300] sm:$0xff]  ;;  %v5128_v51 = vpack.c.bf16 %v529_v48, %v521_v46  ;;  %v520_v53 = vld [vmem:[%s13399_s3 + $0x310] sm:$0xff]  ;;  %v535_v56 = vld [vmem:[%s13399_s3 + $0x388] sm:$0xff] }
  0x29   :  { %5109 = vmatprep.subr.bf16.mxu1 %v5108_v61  ;;  %v526_v50 = vld [vmem:[%s13399_s3 + $0x340] sm:$0xff]  ;;  %v528_v54 = vld [vmem:[%s13399_s3 + $0x350] sm:$0xff]  ;;  %v543_v57 = vld [vmem:[%s13399_s3 + $0x3c8] sm:$0xff] }
  0x2a   :  { %5047 = vmatpush1.bf16.msra.mxu0 %v5046_v55  ;;  %v5066_v52 = vpack.c.bf16 %v526_v50, %v518_v49  ;;  %v5130_v55 = vpack.c.bf16 %v528_v54, %v520_v53  ;;  %v5068_v59 = vpack.c.bf16 %v543_v57, %v535_v56  ;;  %v545_v60 = vld [vmem:[%s13399_s3 + $0x3d8] sm:$0xff]  ;;  %v534_v61 = vld [vmem:[%s13399_s3 + $0x380] sm:$0xff]  ;;  %v536_v1 = vld [vmem:[%s13399_s3 + $0x390] sm:$0xff] }
  0x2b   :  { %5049 = vmatprep.subr.bf16.mxu0 %v5048_v58  ;;  %v537_v58 = vld [vmem:[%s13399_s3 + $0x398] sm:$0xff]  ;;  %v542_v62 = vld [vmem:[%s13399_s3 + $0x3c0] sm:$0xff]  ;;  %v544_v2 = vld [vmem:[%s13399_s3 + $0x3d0] sm:$0xff] }
  0x2c   :  { %5111 = vmatpush1.bf16.msra.mxu1 %v5110_v5  ;;  %v5132_v63 = vpack.c.bf16 %v545_v60, %v537_v58  ;;  %v5070_v0 = vpack.c.bf16 %v542_v62, %v534_v61  ;;  %v551_v5 = vld [vmem:[%s13399_s3 + $0x408] sm:$0xff]  ;;  %v561_v9 = vld [vmem:[%s13399_s3 + $0x458] sm:$0xff]  ;;  %v558_v11 = vld [vmem:[%s13399_s3 + $0x440] sm:$0xff] }
  0x2d   :  { %5113 = vmatprep.subr.bf16.mxu1 %v5112_v10  ;;  %v559_v6 = vld [vmem:[%s13399_s3 + $0x448] sm:$0xff]  ;;  %v550_v10 = vld [vmem:[%s13399_s3 + $0x400] sm:$0xff]  ;;  %v552_v14 = vld [vmem:[%s13399_s3 + $0x410] sm:$0xff] }
  0x2e   :  { %5051 = vmatpush1.bf16.msra.mxu0 %v5050_v4  ;;  %v5134_v4 = vpack.c.bf16 %v544_v2, %v536_v1  ;;  %v5072_v8 = vpack.c.bf16 %v559_v6, %v551_v5  ;;  %v5074_v13 = vpack.c.bf16 %v558_v11, %v550_v10  ;;  %v560_v15 = vld [vmem:[%s13399_s3 + $0x450] sm:$0xff]  ;;  %v569_v19 = vld [vmem:[%s13399_s3 + $0x498] sm:$0xff]  ;;  %v566_v22 = vld [vmem:[%s13399_s3 + $0x480] sm:$0xff] }
  0x2f   :  { %5053 = vmatprep.subr.bf16.mxu0 %v5052_v7  ;;  %v553_v7 = vld [vmem:[%s13399_s3 + $0x418] sm:$0xff]  ;;  %v574_v23 = vld [vmem:[%s13399_s3 + $0x4c0] sm:$0xff]  ;;  %v583_v30 = vld [vmem:[%s13399_s3 + $0x508] sm:$0xff] }
  0x30   :  { %5115 = vmatpush1.bf16.msra.mxu1 %v5114_v17  ;;  %v5136_v12 = vpack.c.bf16 %v561_v9, %v553_v7  ;;  %v567_v17 = vld [vmem:[%s13399_s3 + $0x488] sm:$0xff]  ;;  %v5078_v25 = vpack.c.bf16 %v574_v23, %v566_v22  ;;  %v585_v32 = vld [vmem:[%s13399_s3 + $0x518] sm:$0xff]  ;;  %v590_v36 = vld [vmem:[%s13399_s3 + $0x540] sm:$0xff] }
  0x31   :  { %5117 = vmatprep.subr.bf16.mxu1 %v5116_v21  ;;  %v577_v21 = vld [vmem:[%s13399_s3 + $0x4d8] sm:$0xff]  ;;  %v22_v41 = vld [vmem:[%s13400_s0 + $0x10] sm:$0xff]  ;;  %v607_v44 = vld [vmem:[%s13399_s3 + $0x5c8] sm:$0xff] }
  0x32   :  { %5055 = vmatpush1.bf16.msra.mxu0 %v5054_v16  ;;  %v5138_v16 = vpack.c.bf16 %v560_v15, %v552_v14  ;;  %v5140_v24 = vpack.c.bf16 %v577_v21, %v569_v19  ;;  %v593_v34 = vld [vmem:[%s13399_s3 + $0x558] sm:$0xff]  ;;  %v598_v48 = vld [vmem:[%s13399_s3 + $0x580] sm:$0xff]  ;;  %v608_v53 = vld [vmem:[%s13399_s3 + $0x5d0] sm:$0xff] }
  0x33   :  { %5057 = vmatprep.subr.bf16.mxu0 %v5056_v18  ;;  %v575_v18 = vld [vmem:[%s13399_s3 + $0x4c8] sm:$0xff]  ;;  %v5144_v37 = vpack.c.bf16 %v593_v34, %v585_v32  ;;  %v601_v45 = vld [vmem:[%s13399_s3 + $0x598] sm:$0xff]  ;;  %v606_v49 = vld [vmem:[%s13399_s3 + $0x5c0] sm:$0xff] }
  0x34   :  { %5119 = vmatpush1.bf16.msra.mxu1 %v5118_v27  ;;  %v5076_v20 = vpack.c.bf16 %v575_v18, %v567_v17  ;;  %v576_v27 = vld [vmem:[%s13399_s3 + $0x4d0] sm:$0xff]  ;;  %v23_v54 = vld [vmem:[%s13400_s0 + $0x18] sm:$0xff]  ;;  %v615_v56 = vld [vmem:[%s13399_s3 + $0x608] sm:$0xff] }
  0x35   :  { %5121 = vmatprep.subr.bf16.mxu1 %v5120_v28  ;;  %v21_v28 = vld [vmem:[%s13400_s0 + $0x8] sm:$0xff]  ;;  %v617_v58 = vld [vmem:[%s13399_s3 + $0x618] sm:$0xff]  ;;  %v614_v61 = vld [vmem:[%s13399_s3 + $0x600] sm:$0xff] }
  0x36   :  { %5059 = vmatpush1.bf16.msra.mxu0 %v5058_v26  ;;  %v568_v26 = vld [vmem:[%s13399_s3 + $0x490] sm:$0xff]  ;;  %298 = vmatmul.mubr.f32.gmra.mrb[2].mxu1 %v21_v28  ;;  %v623_v57 = vld [vmem:[%s13399_s3 + $0x648] sm:$0xff]  ;;  %v625_v60 = vld [vmem:[%s13399_s3 + $0x658] sm:$0xff] }
  0x37   :  { %5061 = vmatprep.subr.bf16.mxu0 %v5060_v35  ;;  %v5142_v29 = vpack.c.bf16 %v576_v27, %v568_v26  ;;  %185 = vmatmul.mubr.f32.gmra.mrb[2].mxu0 %v21_v28  ;;  %v582_v35 = vld [vmem:[%s13399_s3 + $0x500] sm:$0xff]  ;;  %v616_v1 = vld [vmem:[%s13399_s3 + $0x610] sm:$0xff]  ;;  %v631_v6 = vld [vmem:[%s13399_s3 + $0x688] sm:$0xff] }
  0x38   :  { %5123 = vmatpush1.bf16.msra.mxu1 %v5122_v31  ;;  %v591_v31 = vld [vmem:[%s13399_s3 + $0x548] sm:$0xff]  ;;  %190 = vmatprep.mubr.f32.mxu0 %v7273_v3  ;;  %v5082_v38 = vpack.c.bf16 %v590_v36, %v582_v35  ;;  %v622_v62 = vld [vmem:[%s13399_s3 + $0x640] sm:$0xff]  ;;  %v624_v2 = vld [vmem:[%s13399_s3 + $0x650] sm:$0xff] }
  0x39   :  { %5125 = vmatprep.subr.bf16.mxu1 %v5124_v39  ;;  %v5080_v33 = vpack.c.bf16 %v591_v31, %v583_v30  ;;  %v584_v39 = vld [vmem:[%s13399_s3 + $0x510] sm:$0xff]  ;;  %303 = vmatprep.mubr.f32.mxu1 %v7273_v3  ;;  %v5154_v5 = vpack.c.bf16 %v624_v2, %v616_v1  ;;  %v639_v7 = vld [vmem:[%s13399_s3 + $0x6c8] sm:$0xff]  ;;  %v641_v10 = vld [vmem:[%s13399_s3 + $0x6d8] sm:$0xff] }
  0x3a   :  { %5063 = vmatpush1.bf16.msra.mxu0 %v5062_v40  ;;  %v592_v40 = vld [vmem:[%s13399_s3 + $0x550] sm:$0xff]  ;;  %304 = vmatmul.mubr.f32.gmra.mrb[4].mxu1 %v22_v41  ;;  %v5092_v9 = vpack.c.bf16 %v639_v7, %v631_v6  ;;  %v630_v11 = vld [vmem:[%s13399_s3 + $0x680] sm:$0xff]  ;;  %v25_v17 = vld [vmem:[%s13400_s0 + $0x28] sm:$0xff] }
  0x3b   :  { %5065 = vmatprep.subr.bf16.mxu0 %v5064_v47  ;;  %v5146_v42 = vpack.c.bf16 %v592_v40, %v584_v39  ;;  %191 = vmatmul.mubr.f32.gmra.mrb[4].mxu0 %v22_v41  ;;  %v609_v47 = vld [vmem:[%s13399_s3 + $0x5d8] sm:$0xff]  ;;  %v632_v15 = vld [vmem:[%s13399_s3 + $0x690] sm:$0xff]  ;;  %v647_v19 = vld [vmem:[%s13399_s3 + $0x708] sm:$0xff] }
  0x3c   :  { %5127 = vmatpush1.bf16.msra.mxu1 %v5126_v43  ;;  %v599_v43 = vld [vmem:[%s13399_s3 + $0x588] sm:$0xff]  ;;  %196 = vmatprep.mubr.f32.mxu0 %v7273_v3  ;;  %v5148_v50 = vpack.c.bf16 %v609_v47, %v601_v45  ;;  %v649_v22 = vld [vmem:[%s13399_s3 + $0x718] sm:$0xff]  ;;  %v646_v26 = vld [vmem:[%s13399_s3 + $0x700] sm:$0xff] }
  0x3d   :  { %5129 = vmatprep.subr.bf16.mxu1 %v5128_v51  ;;  %v5084_v46 = vpack.c.bf16 %v607_v44, %v599_v43  ;;  %v5086_v51 = vpack.c.bf16 %v606_v49, %v598_v48  ;;  %309 = vmatprep.mubr.f32.mxu1 %v7273_v3  ;;  %v657_v23 = vld [vmem:[%s13399_s3 + $0x758] sm:$0xff]  ;;  %v654_v27 = vld [vmem:[%s13399_s3 + $0x740] sm:$0xff]  ;;  %v648_v28 = vld [vmem:[%s13399_s3 + $0x710] sm:$0xff] }
  0x3e   :  { %5067 = vmatpush1.bf16.msra.mxu0 %v5066_v52  ;;  %v600_v52 = vld [vmem:[%s13399_s3 + $0x590] sm:$0xff]  ;;  %310 = vmatmul.mubr.f32.gmra.mrb[6].mxu1 %v23_v54  ;;  %v663_v31 = vld [vmem:[%s13399_s3 + $0x788] sm:$0xff]  ;;  %v665_v35 = vld [vmem:[%s13399_s3 + $0x798] sm:$0xff] }
  0x3f   :  { %5069 = vmatprep.subr.bf16.mxu0 %v5068_v59  ;;  %197 = vmatmul.mubr.f32.gmra.mrb[6].mxu0 %v23_v54  ;;  %v5088_v59 = vpack.c.bf16 %v623_v57, %v615_v56  ;;  %v656_v30 = vld [vmem:[%s13399_s3 + $0x750] sm:$0xff]  ;;  %v671_v32 = vld [vmem:[%s13399_s3 + $0x7c8] sm:$0xff]  ;;  %v673_v36 = vld [vmem:[%s13399_s3 + $0x7d8] sm:$0xff] }
  0x40   :  { %5131 = vmatpush1.bf16.msra.mxu1 %v5130_v55  ;;  %v5150_v55 = vpack.c.bf16 %v608_v53, %v600_v52  ;;  %202 = vmatprep.mubr.f32.mxu0 %v7273_v3  ;;  %v5100_v34 = vpack.c.bf16 %v671_v32, %v663_v31  ;;  %v662_v39 = vld [vmem:[%s13399_s3 + $0x780] sm:$0xff]  ;;  %v664_v41 = vld [vmem:[%s13399_s3 + $0x790] sm:$0xff]  ;;  %v427_v44 = vld [vmem:[%s13399_s3 + $0x28] sm:$0xff] }
  0x41   :  { %5133 = vmatprep.subr.bf16.mxu1 %v5132_v63  ;;  %v5152_v63 = vpack.c.bf16 %v625_v60, %v617_v58  ;;  %315 = vmatprep.mubr.f32.mxu1 %v7273_v3  ;;  %v670_v40 = vld [vmem:[%s13399_s3 + $0x7c0] sm:$0xff]  ;;  %v672_v43 = vld [vmem:[%s13399_s3 + $0x7d0] sm:$0xff]  ;;  %v435_v45 = vld [vmem:[%s13399_s3 + $0x68] sm:$0xff] }
  0x42   :  { %5071 = vmatpush1.bf16.msra.mxu0 %v5070_v0  ;;  %v5090_v0 = vpack.c.bf16 %v622_v62, %v614_v61  ;;  %v429_v47 = vld [vmem:[%s13399_s3 + $0x38] sm:$0xff]  ;;  %v5168_v49 = vpack.c.bf16 %v435_v45, %v427_v44  ;;  %v92_v54 = vld [vmem:[%s13401_s2] sm:$0xf] }
  0x43   :  { %5073 = vmatprep.subr.bf16.mxu0 %v5072_v8  ;;  %v633_v8 = vld [vmem:[%s13399_s3 + $0x698] sm:$0xff] }
  0x44   :  { %5135 = vmatpush1.bf16.msra.mxu1 %v5134_v4  ;;  %v24_v4 = vld [vmem:[%s13400_s0 + $0x20] sm:$0xff]  ;;  %v437_v48 = vld [vmem:[%s13399_s3 + $0x78] sm:$0xff] }
  0x45   :  { %5137 = vmatprep.subr.bf16.mxu1 %v5136_v12  ;;  %203 = vmatmul.mubr.f32.gmra.mrb[8].mxu0 %v24_v4  ;;  %v638_v12 = vld [vmem:[%s13399_s3 + $0x6c0] sm:$0xff]  ;;  %v469_v44 = vld [vmem:[%s13399_s3 + $0x178] sm:$0xff] }
  0x46   :  { %5075 = vmatpush1.bf16.msra.mxu0 %v5074_v13  ;;  %316 = vmatmul.mubr.f32.gmra.mrb[8].mxu1 %v24_v4  ;;  %v5156_v13 = vpack.c.bf16 %v641_v10, %v633_v8  ;;  %v5094_v14 = vpack.c.bf16 %v638_v12, %v630_v11 }
  0x47   :  { %5077 = vmatprep.subr.bf16.mxu0 %v5076_v20  ;;  %208 = vmatprep.mubr.f32.mxu0 %v7273_v3  ;;  %v655_v20 = vld [vmem:[%s13399_s3 + $0x748] sm:$0xff] }
  0x48   :  { %5139 = vmatpush1.bf16.msra.mxu1 %v5138_v16  ;;  %v640_v16 = vld [vmem:[%s13399_s3 + $0x6d0] sm:$0xff]  ;;  %321 = vmatprep.mubr.f32.mxu1 %v7273_v3  ;;  %v5096_v21 = vpack.c.bf16 %v655_v20, %v647_v19 }
  0x49   :  { %5141 = vmatprep.subr.bf16.mxu1 %v5140_v24  ;;  %v5158_v18 = vpack.c.bf16 %v640_v16, %v632_v15  ;;  %209 = vmatmul.mubr.f32.gmra.mrb[10].mxu0 %v25_v17  ;;  %v26_v24 = vld [vmem:[%s13400_s0 + $0x30] sm:$0xff] }
  0x4a   :  { %5079 = vmatpush1.bf16.msra.mxu0 %v5078_v25  ;;  %322 = vmatmul.mubr.f32.gmra.mrb[10].mxu1 %v25_v17  ;;  %v5160_v25 = vpack.c.bf16 %v657_v23, %v649_v22  ;;  %v426_v22 = vld [vmem:[%s13399_s3 + $0x20] sm:$0xff] }
  0x4b   :  { %5081 = vmatprep.subr.bf16.mxu0 %v5080_v33  ;;  %214 = vmatprep.mubr.f32.mxu0 %v7273_v3  ;;  %v5162_v33 = vpack.c.bf16 %v656_v30, %v648_v28  ;;  %v434_v23 = vld [vmem:[%s13399_s3 + $0x60] sm:$0xff]  ;;  %v451_v28 = vld [vmem:[%s13399_s3 + $0xe8] sm:$0xff]  ;;  %v453_v30 = vld [vmem:[%s13399_s3 + $0xf8] sm:$0xff] }
  0x4c   :  { %5143 = vmatpush1.bf16.msra.mxu1 %v5142_v29  ;;  %v5098_v29 = vpack.c.bf16 %v654_v27, %v646_v26  ;;  %327 = vmatprep.mubr.f32.mxu1 %v7273_v3  ;;  %v443_v26 = vld [vmem:[%s13399_s3 + $0xa8] sm:$0xff]  ;;  %v5170_v32 = vpack.c.bf16 %v434_v23, %v426_v22  ;;  %v500_v22 = vld [vmem:[%s13399_s3 + $0x270] sm:$0xff] }
  0x4d   :  { %5145 = vmatprep.subr.bf16.mxu1 %v5144_v37  ;;  %v27_v37 = vld [vmem:[%s13400_s0 + $0x38] sm:$0xff]  ;;  %215 = vmatmul.mubr.f32.gmra.mrb[12].mxu0 %v26_v24  ;;  %v507_v23 = vld [vmem:[%s13399_s3 + $0x2a8] sm:$0xff] }
  0x4e   :  { %5083 = vmatpush1.bf16.msra.mxu0 %v5082_v38  ;;  %v5164_v38 = vpack.c.bf16 %v673_v36, %v665_v35  ;;  %328 = vmatmul.mubr.f32.gmra.mrb[12].mxu1 %v26_v24  ;;  %v428_v24 = vld [vmem:[%s13399_s3 + $0x30] sm:$0xff]  ;;  %v450_v35 = vld [vmem:[%s13399_s3 + $0xe0] sm:$0xff] }
  0x4f   :  { %5085 = vmatprep.subr.bf16.mxu0 %v5084_v46  ;;  %220 = vmatprep.mubr.f32.mxu0 %v7273_v3  ;;  %v5166_v46 = vpack.c.bf16 %v672_v43, %v664_v41  ;;  %v459_v41 = vld [vmem:[%s13399_s3 + $0x128] sm:$0xff]  ;;  %v461_v43 = vld [vmem:[%s13399_s3 + $0x138] sm:$0xff] }
  0x50   :  { %5147 = vmatpush1.bf16.msra.mxu1 %v5146_v42  ;;  %v5102_v42 = vpack.c.bf16 %v670_v40, %v662_v39  ;;  %333 = vmatprep.mubr.f32.mxu1 %v7273_v3  ;;  %v444_v39 = vld [vmem:[%s13399_s3 + $0xb0] sm:$0xff] }
  0x51   :  { %5149 = vmatprep.subr.bf16.mxu1 %v5148_v50  ;;  %221 = vmatmul.mubr.f32.gmra.mrb[14].mxu0 %v27_v37  ;;  %v5232_v50 = vpack.c.bf16 %v437_v48, %v429_v47  ;;  %v452_v40 = vld [vmem:[%s13399_s3 + $0xf0] sm:$0xff]  ;;  %v458_v47 = vld [vmem:[%s13399_s3 + $0x120] sm:$0xff] }
  0x52   :  { %5087 = vmatpush1.bf16.msra.mxu0 %v5086_v51  ;;  %334 = vmatmul.mubr.f32.gmra.mrb[14].mxu1 %v27_v37  ;;  %v94_v51 = vlaneseq  ;;  %v5172_v37 = vpack.c.bf16 %v451_v28, %v443_v26  ;;  %v466_v48 = vld [vmem:[%s13399_s3 + $0x160] sm:$0xff]  ;;  %v517_v26 = vld [vmem:[%s13399_s3 + $0x2f8] sm:$0xff] }
  0x53   :  { %5089 = vmatprep.subr.bf16.mxu0 %v5088_v59  ;;  %742 = vmatprep.mubr.f32.mxu0 %v7273_v3 }
  0x54   :  { %5151 = vmatpush1.bf16.msra.mxu1 %v5150_v55  ;;  %813 = vmatprep.mubr.f32.mxu1 %v7273_v3  ;;  %v7934_v52 = vshrl.u32 %v94_v51, 7  ;;  %v460_v51 = vld [vmem:[%s13399_s3 + $0x130] sm:$0xff] }
  0x55   :  { %5153 = vmatprep.subr.bf16.mxu1 %v5152_v63 }
  0x56   :  { %5091 = vmatpush1.bf16.msra.mxu0 %v5090_v0  ;;  %v96_v53 = vsub.s32 0, %v7934_v52  ;;  %v100_v55 = vsub.s32 1, %v7934_v52  ;;  %v108_v58 = vsub.s32 3, %v7934_v52  ;;  %v104_v2 = vsub.s32 2, %v7934_v52 }
  0x57   :  { %5093 = vmatprep.subr.bf16.mxu0 %v5092_v9 }
  0x58   :  { %5155 = vmatpush1.bf16.msra.mxu1 %v5154_v5  ;;  %v7943_v56 = vrot.slane %v92_v54, %v96_v53  ;;  %v7947_v57 = vrot.slane %v92_v54, %v100_v55  ;;  %v7954_v0 = vrot.slane %v92_v54, %v108_v58  ;;  %v7960_v7 = vrot.slane %v92_v54, %v104_v2  ;;  %v468_v54 = vld [vmem:[%s13399_s3 + $0x170] sm:$0xff] }
  0x59   :  { %5157 = vmatprep.subr.bf16.mxu1 %v5156_v13 }
  0x5a   :  { %5095 = vmatpush1.bf16.msra.mxu0 %v5094_v14  ;;  %13427 = vst [vmem:[#allocation3_spill] sm:$0xff] %v7943_v56  ;;  %13428 = vst [vmem:[#allocation4_spill] sm:$0xff] %v7947_v57 }
  0x5b   :  { %5097 = vmatprep.subr.bf16.mxu0 %v5096_v21  ;;  %13429 = vst [vmem:[#allocation5_spill] sm:$0xff] %v7954_v0  ;;  %13430 = vst [vmem:[#allocation6_spill] sm:$0xff] %v7960_v7 }
  0x5c   :  { %5159 = vmatpush1.bf16.msra.mxu1 %v5158_v18 }
  0x5d   :  { %5161 = vmatprep.subr.bf16.mxu1 %v5160_v25  ;;  %v436_v25 = vld [vmem:[%s13399_s3 + $0x70] sm:$0xff] }
  0x5e   :  { %5099 = vmatpush1.bf16.msra.mxu0 %v5098_v29  ;;  %v445_v29 = vld [vmem:[%s13399_s3 + $0xb8] sm:$0xff] }
  0x5f   :  { %5101 = vmatprep.subr.bf16.mxu0 %v5100_v34  ;;  %v442_v34 = vld [vmem:[%s13399_s3 + $0xa0] sm:$0xff] }
  0x60   :  { %5163 = vmatpush1.bf16.msra.mxu1 %v5162_v33  ;;  %v5234_v33 = vpack.c.bf16 %v436_v25, %v428_v24  ;;  %v5174_v45 = vpack.c.bf16 %v450_v35, %v442_v34  ;;  %v515_v24 = vld [vmem:[%s13399_s3 + $0x2e8] sm:$0xff]  ;;  %v509_v25 = vld [vmem:[%s13399_s3 + $0x2b8] sm:$0xff]  ;;  %v516_v34 = vld [vmem:[%s13399_s3 + $0x2f0] sm:$0xff] }
  0x61   :  { %5165 = vmatprep.subr.bf16.mxu1 %v5164_v38  ;;  %v5236_v38 = vpack.c.bf16 %v453_v30, %v445_v29  ;;  %v506_v29 = vld [vmem:[%s13399_s3 + $0x2a0] sm:$0xff]  ;;  %v523_v35 = vld [vmem:[%s13399_s3 + $0x328] sm:$0xff] }
  0x62   :  { %5103 = vmatpush1.bf16.msra.mxu0 %v5102_v42  ;;  %v467_v42 = vld [vmem:[%s13399_s3 + $0x168] sm:$0xff]  ;;  %v514_v30 = vld [vmem:[%s13399_s3 + $0x2e0] sm:$0xff] }
  0x63   :  { %5169 = vmatprep.subr.bf16.mxu0 %v5168_v49  ;;  %v5176_v49 = vpack.c.bf16 %v467_v42, %v459_v41  ;;  %v522_v42 = vld [vmem:[%s13399_s3 + $0x320] sm:$0xff] }
  0x64   :  { %5167 = vmatpush1.bf16.msra.mxu1 %v5166_v46  ;;  %v5238_v46 = vpack.c.bf16 %v452_v40, %v444_v39  ;;  %v533_v39 = vld [vmem:[%s13399_s3 + $0x378] sm:$0xff]  ;;  %v5190_v40 = vpack.c.bf16 %v514_v30, %v506_v29  ;;  %v580_v29 = vld [vmem:[%s13399_s3 + $0x4f0] sm:$0xff]  ;;  %v587_v30 = vld [vmem:[%s13399_s3 + $0x528] sm:$0xff] }
  0x65   :  { %5233 = vmatprep.subr.bf16.mxu1 %v5232_v50  ;;  %v5240_v50 = vpack.c.bf16 %v469_v44, %v461_v43  ;;  %v530_v43 = vld [vmem:[%s13399_s3 + $0x360] sm:$0xff] }
  0xf8   :  { %v180_v59 = vpop.f32.mrb[0].mxu0 }
  0xf9   :  { %v181_v60 = vadd.f32 %v180_v59, %v7943_v56  ;;  %v182_v61 = vpop.f32.mrb[1].mxu0  ;;  %v475_v59 = vld [vmem:[%s13399_s3 + $0x1a8] sm:$0xff] }
  0xfa   :  { %v183_v62 = vadd.f32 %v182_v61, %v7947_v57  ;;  %v293_v4 = vpop.f32.mrb[0].mxu1  ;;  %v477_v61 = vld [vmem:[%s13399_s3 + $0x1b8] sm:$0xff] }
  0xfb   :  { %v4928_v63 = vmul.f32 -1.442695, %v181_v60  ;;  %v295_v5 = vpop.f32.mrb[1].mxu1  ;;  %v294_v9 = vadd.f32 %v293_v4, %v7960_v7  ;;  %v483_v60 = vld [vmem:[%s13399_s3 + $0x1e8] sm:$0xff]  ;;  %v474_v4 = vld [vmem:[%s13399_s3 + $0x1a0] sm:$0xff] }
  0xfc   :  { %v4929_v1 = vmul.f32 -1.442695, %v183_v62  ;;  %v296_v6 = vadd.f32 %v295_v5, %v7954_v0  ;;  %v485_v62 = vld [vmem:[%s13399_s3 + $0x1f8] sm:$0xff]  ;;  %v482_v5 = vld [vmem:[%s13399_s3 + $0x1e0] sm:$0xff] }
  0xfd   :  { %7017 = vpow2.f32 %v4928_v63  ;;  %v5178_v63 = vpack.c.bf16 %v466_v48, %v458_v47  ;;  %v532_v47 = vld [vmem:[%s13399_s3 + $0x370] sm:$0xff]  ;;  %v539_v48 = vld [vmem:[%s13399_s3 + $0x3a8] sm:$0xff] }
  0xfe   :  { %7019 = vpow2.f32 %v4929_v1  ;;  %v4930_v8 = vmul.f32 -1.442695, %v296_v6  ;;  %v5242_v1 = vpack.c.bf16 %v468_v54, %v460_v51  ;;  %v5180_v6 = vpack.c.bf16 %v483_v60, %v475_v59  ;;  %v549_v51 = vld [vmem:[%s13399_s3 + $0x3f8] sm:$0xff]  ;;  %v538_v60 = vld [vmem:[%s13399_s3 + $0x3a0] sm:$0xff] }
  0xff   :  { %v5194_v54 = vpack.c.bf16 %v530_v43, %v522_v42  ;;  %v596_v42 = vld [vmem:[%s13399_s3 + $0x570] sm:$0xff]  ;;  %v603_v43 = vld [vmem:[%s13399_s3 + $0x5a8] sm:$0xff] }
 0x100   :  { %7021 = vpow2.f32 %v4930_v8  ;;  %v5244_v8 = vpack.c.bf16 %v485_v62, %v477_v61  ;;  %v546_v61 = vld [vmem:[%s13399_s3 + $0x3e0] sm:$0xff] }
 0x101   :  { %7023 = vtanh.f32 %v294_v9  ;;  %v484_v9 = vld [vmem:[%s13399_s3 + $0x1f0] sm:$0xff] }
 0x107   :  { %v7018_v10 = vpop.eup %7017 }
 0x108   :  { %v7020_v11 = vpop.eup %7019  ;;  %v401_v12 = vadd.f32 1.0, %v7018_v10  ;;  %v491_v10 = vld [vmem:[%s13399_s3 + $0x228] sm:$0xff] }
 0x109   :  { %v407_v13 = vadd.f32 1.0, %v7020_v11  ;;  %v499_v11 = vld [vmem:[%s13399_s3 + $0x268] sm:$0xff] }
 0x10a   :  { %7025 = vrcp.f32 %v401_v12  ;;  %v7022_v14 = vpop.eup %7021  ;;  %v493_v12 = vld [vmem:[%s13399_s3 + $0x238] sm:$0xff] }
 0x10b   :  { %7027 = vrcp.f32 %v407_v13  ;;  %v7024_v15 = vpop.eup %7023  ;;  %v414_v17 = vadd.f32 1.0, %v7022_v14  ;;  %v501_v13 = vld [vmem:[%s13399_s3 + $0x278] sm:$0xff]  ;;  %v5182_v14 = vpack.c.bf16 %v482_v5, %v474_v4  ;;  %v548_v4 = vld [vmem:[%s13399_s3 + $0x3f0] sm:$0xff]  ;;  %v555_v5 = vld [vmem:[%s13399_s3 + $0x428] sm:$0xff] }
 0x10d   :  { %7029 = vrcp.f32 %v414_v17  ;;  %v498_v17 = vld [vmem:[%s13399_s3 + $0x260] sm:$0xff] }
 0x114   :  { %v7026_v16 = vpop.eup %7025 }
 0x115   :  { %v7028_v18 = vpop.eup %7027  ;;  %v418_v19 = vmul.f32 %v7026_v16, %v7024_v15  ;;  %v490_v16 = vld [vmem:[%s13399_s3 + $0x220] sm:$0xff] }
 0x116   :  { %v417_v20 = vmul.f32 0.0, %v7028_v18  ;;  %v5184_v18 = vpack.c.bf16 %v499_v11, %v491_v10  ;;  %v554_v11 = vld [vmem:[%s13399_s3 + $0x420] sm:$0xff] }
 0x117   :  { %v7030_v27 = vpop.eup %7029 }
 0x118   :  { %v7963_v21 = vadd.f32 %v418_v19, %v417_v20  ;;  %v5248_v19 = vpack.c.bf16 %v501_v13, %v493_v12  ;;  %v492_v20 = vld [vmem:[%s13399_s3 + $0x230] sm:$0xff]  ;;  %v562_v12 = vld [vmem:[%s13399_s3 + $0x460] sm:$0xff] }
 0x119   :  { %v5250_v28 = vpack.c.bf16 %v500_v22, %v492_v20  ;;  %v581_v20 = vld [vmem:[%s13399_s3 + $0x4f8] sm:$0xff]  ;;  %v5202_v22 = vpack.c.bf16 %v562_v12, %v554_v11  ;;  %v628_v11 = vld [vmem:[%s13399_s3 + $0x670] sm:$0xff]  ;;  %v635_v12 = vld [vmem:[%s13399_s3 + $0x6a8] sm:$0xff] }
 0x11a   :  { %7031 = vtanh.f32 %v7963_v21 }
 0x124   :  { %v7032_v31 = vpop.eup %7031 }
 0x125   :  { %v7996_v36 = vmul.f32 %v7032_v31, %v7030_v27  ;;  %v5186_v27 = vpack.c.bf16 %v498_v17, %v490_v16  ;;  %v5188_v31 = vpack.c.bf16 %v515_v24, %v507_v23  ;;  %v564_v16 = vld [vmem:[%s13399_s3 + $0x470] sm:$0xff]  ;;  %v571_v17 = vld [vmem:[%s13399_s3 + $0x4a8] sm:$0xff]  ;;  %v570_v24 = vld [vmem:[%s13399_s3 + $0x4a0] sm:$0xff] }
 0x127   :  { %743 = vmatmul.mubr.f32.vlgmr.msra.gmra.mrb[2].mxu0 %v7996_v36  ;;  %814 = vmatmul.mubr.f32.vlgmr.msra.gmra.mrb[2].mxu1 %v7996_v36 }
 0x128   :  { %5171 = vmatpush1.bf16.msra.mxu0 %v5170_v32  ;;  %5235 = vmatpush1.bf16.msra.mxu1 %v5234_v33  ;;  %v5252_v32 = vpack.c.bf16 %v517_v26, %v509_v25  ;;  %v508_v33 = vld [vmem:[%s13399_s3 + $0x2b0] sm:$0xff]  ;;  %v578_v25 = vld [vmem:[%s13399_s3 + $0x4e0] sm:$0xff] }
 0x129   :  { %5173 = vmatprep.subr.bf16.mxu0 %v5172_v37  ;;  %5237 = vmatprep.subr.bf16.mxu1 %v5236_v38  ;;  %v531_v37 = vld [vmem:[%s13399_s3 + $0x368] sm:$0xff]  ;;  %v525_v38 = vld [vmem:[%s13399_s3 + $0x338] sm:$0xff]  ;;  %v5254_v41 = vpack.c.bf16 %v516_v34, %v508_v33  ;;  %v5206_v34 = vpack.c.bf16 %v578_v25, %v570_v24  ;;  %v644_v24 = vld [vmem:[%s13399_s3 + $0x6f0] sm:$0xff] }
 0x12a   :  { %884 = vmatprep.mubr.f32.mxu0 %v7273_v3  ;;  %955 = vmatprep.mubr.f32.mxu1 %v7273_v3  ;;  %v476_v3 = vld [vmem:[%s13399_s3 + $0x1b0] sm:$0xff]  ;;  %v5192_v44 = vpack.c.bf16 %v531_v37, %v523_v35  ;;  %v597_v33 = vld [vmem:[%s13399_s3 + $0x578] sm:$0xff]  ;;  %v586_v37 = vld [vmem:[%s13399_s3 + $0x520] sm:$0xff] }
 0x12b   :  { %v5246_v15 = vpack.c.bf16 %v484_v9, %v476_v3  ;;  %v565_v3 = vld [vmem:[%s13399_s3 + $0x478] sm:$0xff]  ;;  %v5198_v9 = vpack.c.bf16 %v546_v61, %v538_v60  ;;  %v612_v60 = vld [vmem:[%s13399_s3 + $0x5f0] sm:$0xff]  ;;  %v619_v61 = vld [vmem:[%s13399_s3 + $0x628] sm:$0xff] }
 0x12c   :  { %5175 = vmatpush1.bf16.msra.mxu0 %v5174_v45  ;;  %5239 = vmatpush1.bf16.msra.mxu1 %v5238_v46  ;;  %v5256_v45 = vpack.c.bf16 %v533_v39, %v525_v38  ;;  %v524_v46 = vld [vmem:[%s13399_s3 + $0x330] sm:$0xff]  ;;  %v594_v38 = vld [vmem:[%s13399_s3 + $0x560] sm:$0xff]  ;;  %v651_v25 = vld [vmem:[%s13399_s3 + $0x728] sm:$0xff] }
 0x12d   :  { %5177 = vmatprep.subr.bf16.mxu0 %v5176_v49  ;;  %5241 = vmatprep.subr.bf16.mxu1 %v5240_v50  ;;  %v547_v49 = vld [vmem:[%s13399_s3 + $0x3e8] sm:$0xff]  ;;  %v541_v50 = vld [vmem:[%s13399_s3 + $0x3b8] sm:$0xff]  ;;  %v5258_v59 = vpack.c.bf16 %v532_v47, %v524_v46  ;;  %v5210_v47 = vpack.c.bf16 %v594_v38, %v586_v37  ;;  %v660_v37 = vld [vmem:[%s13399_s3 + $0x770] sm:$0xff] }
 0x12e   :  { %v5196_v62 = vpack.c.bf16 %v547_v49, %v539_v48  ;;  %v613_v46 = vld [vmem:[%s13399_s3 + $0x5f8] sm:$0xff]  ;;  %v602_v49 = vld [vmem:[%s13399_s3 + $0x5a0] sm:$0xff]  ;;  %v667_v38 = vld [vmem:[%s13399_s3 + $0x7a8] sm:$0xff] }
 0x130   :  { %5179 = vmatpush1.bf16.msra.mxu0 %v5178_v63  ;;  %5243 = vmatpush1.bf16.msra.mxu1 %v5242_v1  ;;  %v5260_v63 = vpack.c.bf16 %v549_v51, %v541_v50  ;;  %v540_v1 = vld [vmem:[%s13399_s3 + $0x3b0] sm:$0xff]  ;;  %v610_v50 = vld [vmem:[%s13399_s3 + $0x5e0] sm:$0xff] }
 0x131   :  { %5181 = vmatprep.subr.bf16.mxu0 %v5180_v6  ;;  %5245 = vmatprep.subr.bf16.mxu1 %v5244_v8  ;;  %v563_v6 = vld [vmem:[%s13399_s3 + $0x468] sm:$0xff]  ;;  %v557_v8 = vld [vmem:[%s13399_s3 + $0x438] sm:$0xff]  ;;  %v5262_v10 = vpack.c.bf16 %v548_v4, %v540_v1  ;;  %v5214_v4 = vpack.c.bf16 %v610_v50, %v602_v49  ;;  %v676_v49 = vld [vmem:[%s13399_s3 + $0x7f0] sm:$0xff] }
 0x132   :  { %v5200_v13 = vpack.c.bf16 %v563_v6, %v555_v5  ;;  %v629_v1 = vld [vmem:[%s13399_s3 + $0x678] sm:$0xff]  ;;  %v618_v6 = vld [vmem:[%s13399_s3 + $0x620] sm:$0xff] }
 0x134   :  { %5183 = vmatpush1.bf16.msra.mxu0 %v5182_v14  ;;  %5247 = vmatpush1.bf16.msra.mxu1 %v5246_v15  ;;  %v5264_v14 = vpack.c.bf16 %v565_v3, %v557_v8  ;;  %v556_v15 = vld [vmem:[%s13399_s3 + $0x430] sm:$0xff]  ;;  %v626_v8 = vld [vmem:[%s13399_s3 + $0x660] sm:$0xff] }
 0x135   :  { %5185 = vmatprep.subr.bf16.mxu0 %v5184_v18  ;;  %5249 = vmatprep.subr.bf16.mxu1 %v5248_v19  ;;  %v579_v18 = vld [vmem:[%s13399_s3 + $0x4e8] sm:$0xff]  ;;  %v573_v19 = vld [vmem:[%s13399_s3 + $0x4b8] sm:$0xff]  ;;  %v5266_v23 = vpack.c.bf16 %v564_v16, %v556_v15  ;;  %v5218_v16 = vpack.c.bf16 %v626_v8, %v618_v6  ;;  %v1033_v6 = vld [vmem:[%s13399_s3 + $0x50] sm:$0xff] }
 0x136   :  { %v5204_v26 = vpack.c.bf16 %v579_v18, %v571_v17  ;;  %v645_v15 = vld [vmem:[%s13399_s3 + $0x6f8] sm:$0xff]  ;;  %v634_v18 = vld [vmem:[%s13399_s3 + $0x6a0] sm:$0xff]  ;;  %v1040_v8 = vld [vmem:[%s13399_s3 + $0x88] sm:$0xff] }
 0x138   :  { %5187 = vmatpush1.bf16.msra.mxu0 %v5186_v27  ;;  %5251 = vmatpush1.bf16.msra.mxu1 %v5250_v28  ;;  %v5268_v27 = vpack.c.bf16 %v581_v20, %v573_v19  ;;  %v572_v28 = vld [vmem:[%s13399_s3 + $0x4b0] sm:$0xff]  ;;  %v642_v19 = vld [vmem:[%s13399_s3 + $0x6e0] sm:$0xff] }
 0x139   :  { %5189 = vmatprep.subr.bf16.mxu0 %v5188_v31  ;;  %5253 = vmatprep.subr.bf16.mxu1 %v5252_v32  ;;  %v595_v31 = vld [vmem:[%s13399_s3 + $0x568] sm:$0xff]  ;;  %v589_v32 = vld [vmem:[%s13399_s3 + $0x538] sm:$0xff]  ;;  %v5270_v35 = vpack.c.bf16 %v580_v29, %v572_v28  ;;  %v5222_v29 = vpack.c.bf16 %v642_v19, %v634_v18  ;;  %v1049_v18 = vld [vmem:[%s13399_s3 + $0xd0] sm:$0xff] }
 0x13a   :  { %v5208_v39 = vpack.c.bf16 %v595_v31, %v587_v30  ;;  %v661_v28 = vld [vmem:[%s13399_s3 + $0x778] sm:$0xff]  ;;  %v650_v31 = vld [vmem:[%s13399_s3 + $0x720] sm:$0xff]  ;;  %v1056_v19 = vld [vmem:[%s13399_s3 + $0x108] sm:$0xff] }
 0x13c   :  { %5191 = vmatpush1.bf16.msra.mxu0 %v5190_v40  ;;  %5255 = vmatpush1.bf16.msra.mxu1 %v5254_v41  ;;  %v5272_v40 = vpack.c.bf16 %v597_v33, %v589_v32  ;;  %v588_v41 = vld [vmem:[%s13399_s3 + $0x530] sm:$0xff]  ;;  %v658_v32 = vld [vmem:[%s13399_s3 + $0x760] sm:$0xff] }
 0x13d   :  { %5193 = vmatprep.subr.bf16.mxu0 %v5192_v44  ;;  %5257 = vmatprep.subr.bf16.mxu1 %v5256_v45  ;;  %v611_v44 = vld [vmem:[%s13399_s3 + $0x5e8] sm:$0xff]  ;;  %v605_v45 = vld [vmem:[%s13399_s3 + $0x5b8] sm:$0xff]  ;;  %v5274_v48 = vpack.c.bf16 %v596_v42, %v588_v41  ;;  %v5226_v42 = vpack.c.bf16 %v658_v32, %v650_v31 }
 0x13e   :  { %v5212_v51 = vpack.c.bf16 %v611_v44, %v603_v43  ;;  %v677_v41 = vld [vmem:[%s13399_s3 + $0x7f8] sm:$0xff]  ;;  %v666_v44 = vld [vmem:[%s13399_s3 + $0x7a0] sm:$0xff]  ;;  %v1072_v32 = vld [vmem:[%s13399_s3 + $0x188] sm:$0xff] }
 0x140   :  { %5195 = vmatpush1.bf16.msra.mxu0 %v5194_v54  ;;  %5259 = vmatpush1.bf16.msra.mxu1 %v5258_v59  ;;  %v5276_v54 = vpack.c.bf16 %v613_v46, %v605_v45  ;;  %v604_v59 = vld [vmem:[%s13399_s3 + $0x5b0] sm:$0xff] }
 0x141   :  { %5197 = vmatprep.subr.bf16.mxu0 %v5196_v62  ;;  %5261 = vmatprep.subr.bf16.mxu1 %v5260_v63  ;;  %v627_v62 = vld [vmem:[%s13399_s3 + $0x668] sm:$0xff]  ;;  %v621_v63 = vld [vmem:[%s13399_s3 + $0x638] sm:$0xff]  ;;  %v5278_v5 = vpack.c.bf16 %v612_v60, %v604_v59 }
 0x142   :  { %v5216_v3 = vpack.c.bf16 %v627_v62, %v619_v61  ;;  %v1032_v59 = vld [vmem:[%s13399_s3 + $0x48] sm:$0xff]  ;;  %v1026_v60 = vld [vmem:[%s13399_s3 + $0x18] sm:$0xff] }
 0x143   :  { %v1034_v62 = vld [vmem:[%s13399_s3 + $0x58] sm:$0xff] }
 0x144   :  { %5199 = vmatpush1.bf16.msra.mxu0 %v5198_v9  ;;  %5263 = vmatpush1.bf16.msra.mxu1 %v5262_v10  ;;  %v5280_v9 = vpack.c.bf16 %v629_v1, %v621_v63  ;;  %v620_v10 = vld [vmem:[%s13399_s3 + $0x630] sm:$0xff]  ;;  %v1031_v63 = vld [vmem:[%s13399_s3 + $0x40] sm:$0xff]  ;;  %v5360_v1 = vpack.c.bf16 %v1034_v62, %v1026_v60 }
 0x145   :  { %5201 = vmatprep.subr.bf16.mxu0 %v5200_v13  ;;  %5265 = vmatprep.subr.bf16.mxu1 %v5264_v14  ;;  %v643_v13 = vld [vmem:[%s13399_s3 + $0x6e8] sm:$0xff]  ;;  %v637_v14 = vld [vmem:[%s13399_s3 + $0x6b8] sm:$0xff]  ;;  %v5282_v17 = vpack.c.bf16 %v628_v11, %v620_v10  ;;  %v1089_v60 = vld [vmem:[%s13399_s3 + $0x210] sm:$0xff] }
 0x146   :  { %v5220_v20 = vpack.c.bf16 %v643_v13, %v635_v12  ;;  %v1042_v10 = vld [vmem:[%s13399_s3 + $0x98] sm:$0xff]  ;;  %v1097_v62 = vld [vmem:[%s13399_s3 + $0x250] sm:$0xff] }
 0x147   :  { %v1050_v11 = vld [vmem:[%s13399_s3 + $0xd8] sm:$0xff] }
 0x148   :  { %5203 = vmatpush1.bf16.msra.mxu0 %v5202_v22  ;;  %5267 = vmatpush1.bf16.msra.mxu1 %v5266_v23  ;;  %v5284_v22 = vpack.c.bf16 %v645_v15, %v637_v14  ;;  %v636_v23 = vld [vmem:[%s13399_s3 + $0x6b0] sm:$0xff]  ;;  %v5364_v13 = vpack.c.bf16 %v1050_v11, %v1042_v10  ;;  %v1039_v14 = vld [vmem:[%s13399_s3 + $0x80] sm:$0xff] }
 0x149   :  { %5205 = vmatprep.subr.bf16.mxu0 %v5204_v26  ;;  %5269 = vmatprep.subr.bf16.mxu1 %v5268_v27  ;;  %v659_v26 = vld [vmem:[%s13399_s3 + $0x768] sm:$0xff]  ;;  %v653_v27 = vld [vmem:[%s13399_s3 + $0x738] sm:$0xff]  ;;  %v5286_v30 = vpack.c.bf16 %v644_v24, %v636_v23  ;;  %v1047_v15 = vld [vmem:[%s13399_s3 + $0xc0] sm:$0xff] }
 0x14a   :  { %v5224_v33 = vpack.c.bf16 %v659_v26, %v651_v25  ;;  %v1058_v24 = vld [vmem:[%s13399_s3 + $0x118] sm:$0xff]  ;;  %v1055_v26 = vld [vmem:[%s13399_s3 + $0x100] sm:$0xff]  ;;  %v1105_v11 = vld [vmem:[%s13399_s3 + $0x290] sm:$0xff] }
 0x14b   :  { %v1066_v25 = vld [vmem:[%s13399_s3 + $0x158] sm:$0xff] }
 0x14c   :  { %5207 = vmatpush1.bf16.msra.mxu0 %v5206_v34  ;;  %5271 = vmatpush1.bf16.msra.mxu1 %v5270_v35  ;;  %v5288_v34 = vpack.c.bf16 %v661_v28, %v653_v27  ;;  %v652_v35 = vld [vmem:[%s13399_s3 + $0x730] sm:$0xff]  ;;  %v5368_v27 = vpack.c.bf16 %v1066_v25, %v1058_v24  ;;  %v1063_v28 = vld [vmem:[%s13399_s3 + $0x140] sm:$0xff] }
 0x14d   :  { %5209 = vmatprep.subr.bf16.mxu0 %v5208_v39  ;;  %5273 = vmatprep.subr.bf16.mxu1 %v5272_v40  ;;  %v675_v39 = vld [vmem:[%s13399_s3 + $0x7e8] sm:$0xff]  ;;  %v669_v40 = vld [vmem:[%s13399_s3 + $0x7b8] sm:$0xff]  ;;  %v5290_v43 = vpack.c.bf16 %v660_v37, %v652_v35  ;;  %v5306_v31 = vpack.c.bf16 %v1063_v28, %v1055_v26  ;;  %v1121_v24 = vld [vmem:[%s13399_s3 + $0x310] sm:$0xff] }
 0x14e   :  { %v5228_v45 = vpack.c.bf16 %v675_v39, %v667_v38  ;;  %v5292_v46 = vpack.c.bf16 %v677_v41, %v669_v40  ;;  %v1082_v38 = vld [vmem:[%s13399_s3 + $0x1d8] sm:$0xff]  ;;  %v1071_v39 = vld [vmem:[%s13399_s3 + $0x180] sm:$0xff]  ;;  %v1129_v25 = vld [vmem:[%s13399_s3 + $0x350] sm:$0xff] }
 0x14f   :  { %v1079_v40 = vld [vmem:[%s13399_s3 + $0x1c0] sm:$0xff]  ;;  %v5386_v26 = vpack.c.bf16 %v1129_v25, %v1121_v24  ;;  %v1144_v28 = vld [vmem:[%s13399_s3 + $0x3c8] sm:$0xff]  ;;  %v1210_v25 = vld [vmem:[%s13399_s3 + $0x5d8] sm:$0xff] }
 0x150   :  { %5211 = vmatpush1.bf16.msra.mxu0 %v5210_v47  ;;  %5275 = vmatpush1.bf16.msra.mxu1 %v5274_v48  ;;  %v674_v47 = vld [vmem:[%s13399_s3 + $0x7e0] sm:$0xff]  ;;  %v668_v48 = vld [vmem:[%s13399_s3 + $0x7b0] sm:$0xff] }
 0x151   :  { %5213 = vmatprep.subr.bf16.mxu0 %v5212_v51  ;;  %5277 = vmatprep.subr.bf16.mxu1 %v5276_v54  ;;  %v5230_v50 = vpack.c.bf16 %v674_v47, %v666_v44  ;;  %v5294_v51 = vpack.c.bf16 %v676_v49, %v668_v48  ;;  %v1024_v54 = vld [vmem:[%s13399_s3 + $0x8] sm:$0xff]  ;;  %v1098_v47 = vld [vmem:[%s13399_s3 + $0x258] sm:$0xff]  ;;  %v5310_v48 = vpack.c.bf16 %v1079_v40, %v1071_v39 }
 0x152   :  { %v5296_v61 = vpack.c.bf16 %v1032_v59, %v1024_v54  ;;  %v1088_v44 = vld [vmem:[%s13399_s3 + $0x208] sm:$0xff]  ;;  %v1087_v54 = vld [vmem:[%s13399_s3 + $0x200] sm:$0xff] }
 0x153   :  { %v1095_v59 = vld [vmem:[%s13399_s3 + $0x240] sm:$0xff]  ;;  %v1152_v40 = vld [vmem:[%s13399_s3 + $0x408] sm:$0xff] }
 0x154   :  { %5215 = vmatpush1.bf16.msra.mxu0 %v5214_v4  ;;  %5279 = vmatpush1.bf16.msra.mxu1 %v5278_v5  ;;  %v1025_v5 = vld [vmem:[%s13399_s3 + $0x10] sm:$0xff] }
 0x155   :  { %5217 = vmatprep.subr.bf16.mxu0 %v5216_v3  ;;  %5281 = vmatprep.subr.bf16.mxu1 %v5280_v9  ;;  %v5362_v3 = vpack.c.bf16 %v1033_v6, %v1025_v5  ;;  %v1048_v9 = vld [vmem:[%s13399_s3 + $0xc8] sm:$0xff]  ;;  %v1114_v6 = vld [vmem:[%s13399_s3 + $0x2d8] sm:$0xff] }
 0x156   :  { %v5300_v12 = vpack.c.bf16 %v1048_v9, %v1040_v8  ;;  %v1103_v8 = vld [vmem:[%s13399_s3 + $0x280] sm:$0xff] }
 0x158   :  { %5219 = vmatpush1.bf16.msra.mxu0 %v5218_v16  ;;  %5283 = vmatpush1.bf16.msra.mxu1 %v5282_v17  ;;  %v1041_v16 = vld [vmem:[%s13399_s3 + $0x90] sm:$0xff]  ;;  %v5302_v17 = vpack.c.bf16 %v1047_v15, %v1039_v14  ;;  %v1120_v14 = vld [vmem:[%s13399_s3 + $0x308] sm:$0xff] }
 0x159   :  { %5221 = vmatprep.subr.bf16.mxu0 %v5220_v20  ;;  %5285 = vmatprep.subr.bf16.mxu1 %v5284_v22  ;;  %v1064_v20 = vld [vmem:[%s13399_s3 + $0x148] sm:$0xff]  ;;  %v5366_v22 = vpack.c.bf16 %v1049_v18, %v1041_v16  ;;  %v1122_v16 = vld [vmem:[%s13399_s3 + $0x318] sm:$0xff] }
 0x15a   :  { %v5304_v23 = vpack.c.bf16 %v1064_v20, %v1056_v19  ;;  %v1128_v15 = vld [vmem:[%s13399_s3 + $0x348] sm:$0xff]  ;;  %v1130_v18 = vld [vmem:[%s13399_s3 + $0x358] sm:$0xff]  ;;  %v1119_v19 = vld [vmem:[%s13399_s3 + $0x300] sm:$0xff] }
 0x15b   :  { %v1127_v20 = vld [vmem:[%s13399_s3 + $0x340] sm:$0xff] }
 0x15c   :  { %5223 = vmatpush1.bf16.msra.mxu0 %v5222_v29  ;;  %5287 = vmatpush1.bf16.msra.mxu1 %v5286_v30  ;;  %v1057_v29 = vld [vmem:[%s13399_s3 + $0x110] sm:$0xff] }
 0x15d   :  { %5225 = vmatprep.subr.bf16.mxu0 %v5224_v33  ;;  %5289 = vmatprep.subr.bf16.mxu1 %v5288_v34  ;;  %v1065_v30 = vld [vmem:[%s13399_s3 + $0x150] sm:$0xff]  ;;  %v1080_v33 = vld [vmem:[%s13399_s3 + $0x1c8] sm:$0xff]  ;;  %v1074_v34 = vld [vmem:[%s13399_s3 + $0x198] sm:$0xff] }
 0x15e   :  { %v5370_v35 = vpack.c.bf16 %v1065_v30, %v1057_v29  ;;  %v5308_v37 = vpack.c.bf16 %v1080_v33, %v1072_v32  ;;  %v5372_v41 = vpack.c.bf16 %v1082_v38, %v1074_v34  ;;  %v1138_v29 = vld [vmem:[%s13399_s3 + $0x398] sm:$0xff]  ;;  %v1135_v32 = vld [vmem:[%s13399_s3 + $0x380] sm:$0xff]  ;;  %v1145_v38 = vld [vmem:[%s13399_s3 + $0x3d0] sm:$0xff] }
 0x15f   :  { %v1143_v33 = vld [vmem:[%s13399_s3 + $0x3c0] sm:$0xff] }
 0x160   :  { %5227 = vmatpush1.bf16.msra.mxu0 %v5226_v42  ;;  %5291 = vmatpush1.bf16.msra.mxu1 %v5290_v43  ;;  %v1073_v42 = vld [vmem:[%s13399_s3 + $0x190] sm:$0xff] }
 0x161   :  { %5229 = vmatprep.subr.bf16.mxu0 %v5228_v45  ;;  %5293 = vmatprep.subr.bf16.mxu1 %v5292_v46  ;;  %v1081_v43 = vld [vmem:[%s13399_s3 + $0x1d0] sm:$0xff]  ;;  %v1096_v45 = vld [vmem:[%s13399_s3 + $0x248] sm:$0xff]  ;;  %v1090_v46 = vld [vmem:[%s13399_s3 + $0x218] sm:$0xff] }
 0x162   :  { %v5374_v49 = vpack.c.bf16 %v1081_v43, %v1073_v42  ;;  %v1154_v42 = vld [vmem:[%s13399_s3 + $0x418] sm:$0xff] }
 0x164   :  { %5231 = vmatpush1.bf16.msra.mxu0 %v5230_v50  ;;  %5295 = vmatpush1.bf16.msra.mxu1 %v5294_v51  ;;  %v5312_v50 = vpack.c.bf16 %v1096_v45, %v1088_v44  ;;  %v5376_v51 = vpack.c.bf16 %v1098_v47, %v1090_v46  ;;  %v1162_v44 = vld [vmem:[%s13399_s3 + $0x458] sm:$0xff]  ;;  %v1151_v45 = vld [vmem:[%s13399_s3 + $0x400] sm:$0xff] }
 0x165   :  { %5297 = vmatprep.subr.bf16.mxu0 %v5296_v61  ;;  %5361 = vmatprep.subr.bf16.mxu1 %v5360_v1  ;;  %v5314_v61 = vpack.c.bf16 %v1095_v59, %v1087_v54  ;;  %v1112_v1 = vld [vmem:[%s13399_s3 + $0x2c8] sm:$0xff]  ;;  %v1159_v46 = vld [vmem:[%s13399_s3 + $0x440] sm:$0xff]  ;;  %v5392_v47 = vpack.c.bf16 %v1162_v44, %v1154_v42  ;;  %v1225_v44 = vld [vmem:[%s13399_s3 + $0x650] sm:$0xff] }
 0x166   :  { %v1168_v54 = vld [vmem:[%s13399_s3 + $0x488] sm:$0xff] }
 0x167   :  { %885 = vmatmul.mubr.f32.vlgmr.msra.gmra.mrb[16].mxu0 %v7996_v36  ;;  %956 = vmatmul.mubr.f32.vlgmr.msra.gmra.mrb[16].mxu1 %v7996_v36  ;;  %v1023_v36 = vld [vmem:[%s13399_s3] sm:$0xff]  ;;  %v1176_v59 = vld [vmem:[%s13399_s3 + $0x4c8] sm:$0xff] }
 0x168   :  { %v5298_v4 = vpack.c.bf16 %v1031_v63, %v1023_v36  ;;  %5363 = vmatpush1.bf16.msra.mxu1 %v5362_v3  ;;  %v5378_v36 = vpack.c.bf16 %v1097_v62, %v1089_v60  ;;  %v1104_v63 = vld [vmem:[%s13399_s3 + $0x288] sm:$0xff]  ;;  %v1111_v3 = vld [vmem:[%s13399_s3 + $0x2c0] sm:$0xff]  ;;  %v1170_v60 = vld [vmem:[%s13399_s3 + $0x498] sm:$0xff] }
 0x169   :  { %5365 = vmatprep.subr.bf16.mxu1 %v5364_v13  ;;  %v5316_v5 = vpack.c.bf16 %v1112_v1, %v1104_v63  ;;  %v5318_v10 = vpack.c.bf16 %v1111_v3, %v1103_v8  ;;  %v1178_v62 = vld [vmem:[%s13399_s3 + $0x4d8] sm:$0xff]  ;;  %v1175_v63 = vld [vmem:[%s13399_s3 + $0x4c0] sm:$0xff]  ;;  %v1184_v3 = vld [vmem:[%s13399_s3 + $0x508] sm:$0xff] }
 0x16a   :  { %5299 = vmatpush1.bf16.msra.mxu0 %v5298_v4  ;;  %v1106_v4 = vld [vmem:[%s13399_s3 + $0x298] sm:$0xff]  ;;  %v5396_v1 = vpack.c.bf16 %v1178_v62, %v1170_v60  ;;  %v1241_v62 = vld [vmem:[%s13399_s3 + $0x6d0] sm:$0xff] }
 0x16b   :  { %5301 = vmatprep.subr.bf16.mxu0 %v5300_v12  ;;  %v5380_v9 = vpack.c.bf16 %v1114_v6, %v1106_v4  ;;  %v1113_v12 = vld [vmem:[%s13399_s3 + $0x2d0] sm:$0xff] }
 0x16c   :  { %5367 = vmatpush1.bf16.msra.mxu1 %v5366_v22  ;;  %v5382_v13 = vpack.c.bf16 %v1113_v12, %v1105_v11  ;;  %v5384_v22 = vpack.c.bf16 %v1130_v18, %v1122_v16  ;;  %v1177_v6 = vld [vmem:[%s13399_s3 + $0x4d0] sm:$0xff]  ;;  %v1194_v12 = vld [vmem:[%s13399_s3 + $0x558] sm:$0xff] }
 0x16d   :  { %5369 = vmatprep.subr.bf16.mxu1 %v5368_v27  ;;  %v1136_v27 = vld [vmem:[%s13399_s3 + $0x388] sm:$0xff]  ;;  %v1193_v18 = vld [vmem:[%s13399_s3 + $0x550] sm:$0xff] }
 0x16e   :  { %5303 = vmatpush1.bf16.msra.mxu0 %v5302_v17  ;;  %v5320_v17 = vpack.c.bf16 %v1128_v15, %v1120_v14  ;;  %v5324_v30 = vpack.c.bf16 %v1144_v28, %v1136_v27  ;;  %v1191_v14 = vld [vmem:[%s13399_s3 + $0x540] sm:$0xff] }
 0x16f   :  { %5305 = vmatprep.subr.bf16.mxu0 %v5304_v23  ;;  %v5322_v23 = vpack.c.bf16 %v1127_v20, %v1119_v19  ;;  %v1200_v20 = vld [vmem:[%s13399_s3 + $0x588] sm:$0xff]  ;;  %v1207_v27 = vld [vmem:[%s13399_s3 + $0x5c0] sm:$0xff] }
 0x170   :  { %5371 = vmatpush1.bf16.msra.mxu1 %v5370_v35  ;;  %v5326_v35 = vpack.c.bf16 %v1143_v33, %v1135_v32  ;;  %v1216_v33 = vld [vmem:[%s13399_s3 + $0x608] sm:$0xff] }
 0x171   :  { %5373 = vmatprep.subr.bf16.mxu1 %v5372_v41  ;;  %v1160_v41 = vld [vmem:[%s13399_s3 + $0x448] sm:$0xff] }
 0x172   :  { %5307 = vmatpush1.bf16.msra.mxu0 %v5306_v31  ;;  %v1146_v31 = vld [vmem:[%s13399_s3 + $0x3d8] sm:$0xff]  ;;  %v5328_v43 = vpack.c.bf16 %v1160_v41, %v1152_v40  ;;  %v1223_v40 = vld [vmem:[%s13399_s3 + $0x640] sm:$0xff] }
 0x173   :  { %5309 = vmatprep.subr.bf16.mxu0 %v5308_v37  ;;  %v5388_v34 = vpack.c.bf16 %v1146_v31, %v1138_v29  ;;  %v1137_v37 = vld [vmem:[%s13399_s3 + $0x390] sm:$0xff] }
 0x174   :  { %5375 = vmatpush1.bf16.msra.mxu1 %v5374_v49  ;;  %v5390_v39 = vpack.c.bf16 %v1145_v38, %v1137_v37  ;;  %v1153_v49 = vld [vmem:[%s13399_s3 + $0x410] sm:$0xff]  ;;  %v1226_v38 = vld [vmem:[%s13399_s3 + $0x658] sm:$0xff] }
 0x175   :  { %5377 = vmatprep.subr.bf16.mxu1 %v5376_v51  ;;  %v1209_v31 = vld [vmem:[%s13399_s3 + $0x5d0] sm:$0xff] }
 0x176   :  { %5311 = vmatpush1.bf16.msra.mxu0 %v5310_v48  ;;  %v5330_v48 = vpack.c.bf16 %v1159_v46, %v1151_v45  ;;  %v1232_v46 = vld [vmem:[%s13399_s3 + $0x688] sm:$0xff] }
 0x177   :  { %5313 = vmatprep.subr.bf16.mxu0 %v5312_v50  ;;  %v1161_v50 = vld [vmem:[%s13399_s3 + $0x450] sm:$0xff] }
 0x178   :  { %5379 = vmatpush1.bf16.msra.mxu1 %v5378_v36  ;;  %v5394_v51 = vpack.c.bf16 %v1161_v50, %v1153_v49  ;;  %v1167_v36 = vld [vmem:[%s13399_s3 + $0x480] sm:$0xff]  ;;  %v1242_v50 = vld [vmem:[%s13399_s3 + $0x6d8] sm:$0xff] }
 0x179   :  { %5381 = vmatprep.subr.bf16.mxu1 %v5380_v9  ;;  %v5334_v4 = vpack.c.bf16 %v1175_v63, %v1167_v36  ;;  %v1192_v9 = vld [vmem:[%s13399_s3 + $0x548] sm:$0xff] }
 0x17a   :  { %5315 = vmatpush1.bf16.msra.mxu0 %v5314_v61  ;;  %v5332_v61 = vpack.c.bf16 %v1176_v59, %v1168_v54  ;;  %v5336_v11 = vpack.c.bf16 %v1192_v9, %v1184_v3  ;;  %v1239_v54 = vld [vmem:[%s13399_s3 + $0x6c0] sm:$0xff]  ;;  %v1248_v36 = vld [vmem:[%s13399_s3 + $0x708] sm:$0xff] }
 0x17b   :  { %5317 = vmatprep.subr.bf16.mxu0 %v5316_v5  ;;  %v1169_v5 = vld [vmem:[%s13399_s3 + $0x490] sm:$0xff]  ;;  %v1247_v3 = vld [vmem:[%s13399_s3 + $0x700] sm:$0xff] }
 0x17c   :  { %5383 = vmatpush1.bf16.msra.mxu1 %v5382_v13  ;;  %v5398_v8 = vpack.c.bf16 %v1177_v6, %v1169_v5  ;;  %v1183_v13 = vld [vmem:[%s13399_s3 + $0x500] sm:$0xff]  ;;  %v1258_v5 = vld [vmem:[%s13399_s3 + $0x758] sm:$0xff] }
 0x17d   :  { %5385 = vmatprep.subr.bf16.mxu1 %v5384_v22  ;;  %v5338_v16 = vpack.c.bf16 %v1191_v14, %v1183_v13  ;;  %v1208_v22 = vld [vmem:[%s13399_s3 + $0x5c8] sm:$0xff]  ;;  %v1255_v9 = vld [vmem:[%s13399_s3 + $0x740] sm:$0xff] }
 0x17e   :  { %5319 = vmatpush1.bf16.msra.mxu0 %v5318_v10  ;;  %v1186_v10 = vld [vmem:[%s13399_s3 + $0x518] sm:$0xff]  ;;  %v5340_v24 = vpack.c.bf16 %v1208_v22, %v1200_v20  ;;  %v1264_v13 = vld [vmem:[%s13399_s3 + $0x788] sm:$0xff]  ;;  %v1271_v22 = vld [vmem:[%s13399_s3 + $0x7c0] sm:$0xff] }
 0x17f   :  { %5321 = vmatprep.subr.bf16.mxu0 %v5320_v17  ;;  %v5400_v15 = vpack.c.bf16 %v1194_v12, %v1186_v10  ;;  %v1185_v17 = vld [vmem:[%s13399_s3 + $0x510] sm:$0xff]  ;;  %v1272_v14 = vld [vmem:[%s13399_s3 + $0x7c8] sm:$0xff] }
 0x180   :  { %5387 = vmatpush1.bf16.msra.mxu1 %v5386_v26  ;;  %v5402_v19 = vpack.c.bf16 %v1193_v18, %v1185_v17  ;;  %v1199_v26 = vld [vmem:[%s13399_s3 + $0x580] sm:$0xff]  ;;  %v1249_v10 = vld [vmem:[%s13399_s3 + $0x710] sm:$0xff]  ;;  %v1266_v17 = vld [vmem:[%s13399_s3 + $0x798] sm:$0xff] }
 0x181   :  { %5389 = vmatprep.subr.bf16.mxu1 %v5388_v34  ;;  %v5342_v29 = vpack.c.bf16 %v1207_v27, %v1199_v26  ;;  %v1224_v34 = vld [vmem:[%s13399_s3 + $0x648] sm:$0xff]  ;;  %v1257_v12 = vld [vmem:[%s13399_s3 + $0x750] sm:$0xff]  ;;  %v1274_v18 = vld [vmem:[%s13399_s3 + $0x7d8] sm:$0xff] }
 0x182   :  { %5323 = vmatpush1.bf16.msra.mxu0 %v5322_v23  ;;  %v1202_v23 = vld [vmem:[%s13399_s3 + $0x598] sm:$0xff]  ;;  %v5344_v37 = vpack.c.bf16 %v1224_v34, %v1216_v33  ;;  %v5420_v20 = vpack.c.bf16 %v1274_v18, %v1266_v17  ;;  %v1028_v27 = vld [vmem:[%s13399_s3 + $0x28] sm:$0xff] }
 0x183   :  { %5325 = vmatprep.subr.bf16.mxu0 %v5324_v30  ;;  %v5404_v28 = vpack.c.bf16 %v1210_v25, %v1202_v23  ;;  %v1201_v30 = vld [vmem:[%s13399_s3 + $0x590] sm:$0xff] }
 0x184   :  { %5391 = vmatpush1.bf16.msra.mxu1 %v5390_v39  ;;  %v5406_v32 = vpack.c.bf16 %v1209_v31, %v1201_v30  ;;  %v1215_v39 = vld [vmem:[%s13399_s3 + $0x600] sm:$0xff]  ;;  %v1265_v23 = vld [vmem:[%s13399_s3 + $0x790] sm:$0xff]  ;;  %v1038_v31 = vld [vmem:[%s13399_s3 + $0x78] sm:$0xff] }
 0x185   :  { %5393 = vmatprep.subr.bf16.mxu1 %v5392_v47  ;;  %v5346_v42 = vpack.c.bf16 %v1223_v40, %v1215_v39  ;;  %v1240_v47 = vld [vmem:[%s13399_s3 + $0x6c8] sm:$0xff] }
 0x186   :  { %5327 = vmatpush1.bf16.msra.mxu0 %v5326_v35  ;;  %v1218_v35 = vld [vmem:[%s13399_s3 + $0x618] sm:$0xff]  ;;  %v5348_v49 = vpack.c.bf16 %v1240_v47, %v1232_v46 }
 0x187   :  { %5329 = vmatprep.subr.bf16.mxu0 %v5328_v43  ;;  %v5408_v41 = vpack.c.bf16 %v1226_v38, %v1218_v35  ;;  %v1217_v43 = vld [vmem:[%s13399_s3 + $0x610] sm:$0xff] }
 0x188   :  { %5395 = vmatpush1.bf16.msra.mxu1 %v5394_v51  ;;  %v5410_v45 = vpack.c.bf16 %v1225_v44, %v1217_v43  ;;  %v1231_v51 = vld [vmem:[%s13399_s3 + $0x680] sm:$0xff] }
 0x189   :  { %5397 = vmatprep.subr.bf16.mxu1 %v5396_v1  ;;  %v5350_v60 = vpack.c.bf16 %v1239_v54, %v1231_v51  ;;  %v1256_v1 = vld [vmem:[%s13399_s3 + $0x748] sm:$0xff] }
 0x18a   :  { %5331 = vmatpush1.bf16.msra.mxu0 %v5330_v48  ;;  %v1234_v48 = vld [vmem:[%s13399_s3 + $0x698] sm:$0xff]  ;;  %v5352_v6 = vpack.c.bf16 %v1256_v1, %v1248_v36 }
 0x18b   :  { %5333 = vmatprep.subr.bf16.mxu0 %v5332_v61  ;;  %v5412_v59 = vpack.c.bf16 %v1242_v50, %v1234_v48  ;;  %v1233_v61 = vld [vmem:[%s13399_s3 + $0x690] sm:$0xff] }
 0x18c   :  { %5399 = vmatpush1.bf16.msra.mxu1 %v5398_v8  ;;  %v5414_v63 = vpack.c.bf16 %v1241_v62, %v1233_v61 }
 0x18d   :  { %5401 = vmatprep.subr.bf16.mxu1 %v5400_v15  ;;  %v5418_v15 = vpack.c.bf16 %v1257_v12, %v1249_v10 }
 0x18e   :  { %5335 = vmatpush1.bf16.msra.mxu0 %v5334_v4  ;;  %v1250_v4 = vld [vmem:[%s13399_s3 + $0x718] sm:$0xff] }
 0x18f   :  { %5337 = vmatprep.subr.bf16.mxu0 %v5336_v11  ;;  %v5416_v8 = vpack.c.bf16 %v1258_v5, %v1250_v4  ;;  %v5354_v11 = vpack.c.bf16 %v1255_v9, %v1247_v3 }
 0x190   :  { %5403 = vmatpush1.bf16.msra.mxu1 %v5402_v19  ;;  %v1263_v19 = vld [vmem:[%s13399_s3 + $0x780] sm:$0xff] }
 0x191   :  { %5405 = vmatprep.subr.bf16.mxu1 %v5404_v28  ;;  %v5358_v25 = vpack.c.bf16 %v1271_v22, %v1263_v19  ;;  %v1036_v28 = vld [vmem:[%s13399_s3 + $0x68] sm:$0xff] }
 0x192   :  { %5339 = vmatpush1.bf16.msra.mxu0 %v5338_v16  ;;  %v5356_v16 = vpack.c.bf16 %v1272_v14, %v1264_v13  ;;  %v5424_v30 = vpack.c.bf16 %v1036_v28, %v1028_v27  ;;  %v1029_v27 = vld [vmem:[%s13399_s3 + $0x30] sm:$0xff] }
 0x193   :  { %5341 = vmatprep.subr.bf16.mxu0 %v5340_v24  ;;  %v1273_v24 = vld [vmem:[%s13399_s3 + $0x7d0] sm:$0xff] }
 0x194   :  { %5407 = vmatpush1.bf16.msra.mxu1 %v5406_v32  ;;  %v5422_v26 = vpack.c.bf16 %v1273_v24, %v1265_v23  ;;  %v1027_v24 = vld [vmem:[%s13399_s3 + $0x20] sm:$0xff]  ;;  %v1037_v28 = vld [vmem:[%s13399_s3 + $0x70] sm:$0xff] }
 0x195   :  { %5409 = vmatprep.subr.bf16.mxu1 %v5408_v41 }
 0x196   :  { %5343 = vmatpush1.bf16.msra.mxu0 %v5342_v29  ;;  %v1030_v29 = vld [vmem:[%s13399_s3 + $0x38] sm:$0xff] }
 0x197   :  { %5345 = vmatprep.subr.bf16.mxu0 %v5344_v37  ;;  %v5488_v32 = vpack.c.bf16 %v1038_v31, %v1030_v29 }
 0x198   :  { %5411 = vmatpush1.bf16.msra.mxu1 %v5410_v45 }
 0x199   :  { %5413 = vmatprep.subr.bf16.mxu1 %v5412_v59  ;;  %v372_v59 = vld [vmem:[%s13402_s4] sm:$0xf] }
 0x19a   :  { %5347 = vmatpush1.bf16.msra.mxu0 %v5346_v42  ;;  %v8757_v61 = vrot.slane %v372_v59, %v100_v55  ;;  %v8769_v3 = vrot.slane %v372_v59, %v104_v2 }
 0x19b   :  { %5349 = vmatprep.subr.bf16.mxu0 %v5348_v49 }
 0x19c   :  { %5415 = vmatpush1.bf16.msra.mxu1 %v5414_v63  ;;  %13432 = vst [vmem:[#allocation8_spill] sm:$0xff] %v8757_v61  ;;  %13434 = vst [vmem:[#allocation10_spill] sm:$0xff] %v8769_v3 }
 0x19d   :  { %5417 = vmatprep.subr.bf16.mxu1 %v5416_v8  ;;  %v8763_v8 = vrot.slane %v372_v59, %v108_v58 }
 0x19e   :  { %5351 = vmatpush1.bf16.msra.mxu0 %v5350_v60  ;;  %v8753_v60 = vrot.slane %v372_v59, %v96_v53 }
 0x19f   :  { %5353 = vmatprep.subr.bf16.mxu0 %v5352_v6  ;;  %13433 = vst [vmem:[#allocation9_spill] sm:$0xff] %v8763_v8 }
 0x1a0   :  { %5419 = vmatpush1.bf16.msra.mxu1 %v5418_v15  ;;  %13431 = vst [vmem:[#allocation7_spill] sm:$0xff] %v8753_v60 }
 0x1a1   :  { %5421 = vmatprep.subr.bf16.mxu1 %v5420_v20 }
 0x1a2   :  { %5355 = vmatpush1.bf16.msra.mxu0 %v5354_v11 }
 0x1a3   :  { %5357 = vmatprep.subr.bf16.mxu0 %v5356_v16 }
 0x1a4   :  { %5423 = vmatpush1.bf16.msra.mxu1 %v5422_v26  ;;  %v1035_v26 = vld [vmem:[%s13399_s3 + $0x60] sm:$0xff] }
 0x1a5   :  { %5489 = vmatprep.subr.bf16.mxu1 %v5488_v32  ;;  %v1052_v32 = vld [vmem:[%s13399_s3 + $0xe8] sm:$0xff] }
 0x1a6   :  { %5359 = vmatpush1.bf16.msra.mxu0 %v5358_v25 }
 0x1a7   :  { %5425 = vmatprep.subr.bf16.mxu0 %v5424_v30  ;;  %v1044_v30 = vld [vmem:[%s13399_s3 + $0xa8] sm:$0xff] }
 0x1fa   :  { %v744_v33 = vpop.f32.mrb[2].mxu0  ;;  %v815_v34 = vpop.f32.mrb[2].mxu1 }
 0x1fb   :  { %v6960_v35 = vadd.f32 %v744_v33, %v7943_v56  ;;  %v746_v37 = vpop.f32.mrb[3].mxu0  ;;  %v817_v38 = vpop.f32.mrb[3].mxu1  ;;  %v6974_v42 = vadd.f32 %v815_v34, %v7960_v7  ;;  %v1046_v33 = vld [vmem:[%s13399_s3 + $0xb8] sm:$0xff] }
 0x1fc   :  { %v6961_v39 = vadd.f32 %v746_v37, %v7947_v57  ;;  %v6975_v53 = vadd.f32 %v817_v38, %v7954_v0  ;;  %v1054_v34 = vld [vmem:[%s13399_s3 + $0xf8] sm:$0xff]  ;;  %v5426_v38 = vpack.c.bf16 %v1035_v26, %v1027_v24  ;;  %v1093_v26 = vld [vmem:[%s13399_s3 + $0x230] sm:$0xff] }
 0x1fd   :  { %v4934_v40 = vmul.f32 -1.442695, %v6960_v35 }
 0x1fe   :  { %v4935_v41 = vmul.f32 -1.442695, %v6961_v39  ;;  %v4936_v9 = vmul.f32 -1.442695, %v6975_v53  ;;  %v5490_v39 = vpack.c.bf16 %v1037_v28, %v1029_v27  ;;  %v1078_v53 = vld [vmem:[%s13399_s3 + $0x1b8] sm:$0xff]  ;;  %v1101_v27 = vld [vmem:[%s13399_s3 + $0x270] sm:$0xff] }
 0x1ff   :  { %7033 = vpow2.f32 %v4934_v40  ;;  %v1043_v40 = vld [vmem:[%s13399_s3 + $0xa0] sm:$0xff]  ;;  %v1108_v28 = vld [vmem:[%s13399_s3 + $0x2a8] sm:$0xff] }
 0x200   :  { %7035 = vpow2.f32 %v4935_v41  ;;  %v1051_v41 = vld [vmem:[%s13399_s3 + $0xe0] sm:$0xff] }
 0x201   :  { %7037 = vtanh.f32 %v6974_v42 }
 0x209   :  { %v7034_v43 = vpop.eup %7033 }
 0x20a   :  { %v7036_v44 = vpop.eup %7035  ;;  %v1002_v45 = vadd.f32 1.0, %v7034_v43  ;;  %v1045_v43 = vld [vmem:[%s13399_s3 + $0xb0] sm:$0xff] }
 0x20b   :  { %v1008_v46 = vadd.f32 1.0, %v7036_v44  ;;  %v7038_v47 = vpop.eup %7037  ;;  %v1053_v44 = vld [vmem:[%s13399_s3 + $0xf0] sm:$0xff] }
 0x20c   :  { %7039 = vrcp.f32 %v1002_v45  ;;  %v1060_v45 = vld [vmem:[%s13399_s3 + $0x128] sm:$0xff]  ;;  %v5494_v59 = vpack.c.bf16 %v1053_v44, %v1045_v43  ;;  %v1126_v44 = vld [vmem:[%s13399_s3 + $0x338] sm:$0xff] }
 0x20d   :  { %7041 = vrcp.f32 %v1008_v46  ;;  %v5428_v46 = vpack.c.bf16 %v1052_v32, %v1044_v30  ;;  %v1110_v30 = vld [vmem:[%s13399_s3 + $0x2b8] sm:$0xff]  ;;  %v1132_v43 = vld [vmem:[%s13399_s3 + $0x368] sm:$0xff] }
 0x216   :  { %v7040_v48 = vpop.eup %7039 }
 0x217   :  { %v7042_v49 = vpop.eup %7041  ;;  %v1019_v50 = vmul.f32 %v7040_v48, %v7038_v47  ;;  %v5492_v47 = vpack.c.bf16 %v1054_v34, %v1046_v33  ;;  %v1068_v48 = vld [vmem:[%s13399_s3 + $0x168] sm:$0xff]  ;;  %v5506_v33 = vpack.c.bf16 %v1101_v27, %v1093_v26  ;;  %v1107_v34 = vld [vmem:[%s13399_s3 + $0x2a0] sm:$0xff]  ;;  %v1182_v26 = vld [vmem:[%s13399_s3 + $0x4f8] sm:$0xff] }
 0x218   :  { %v1018_v51 = vmul.f32 %v7042_v49, %v7963_v21  ;;  %v1062_v49 = vld [vmem:[%s13399_s3 + $0x138] sm:$0xff] }
 0x21a   :  { %v8746_v54 = vadd.f32 %v1019_v50, %v1018_v51  ;;  %v1070_v50 = vld [vmem:[%s13399_s3 + $0x178] sm:$0xff]  ;;  %v5430_v51 = vpack.c.bf16 %v1051_v41, %v1043_v40  ;;  %v1117_v40 = vld [vmem:[%s13399_s3 + $0x2f0] sm:$0xff]  ;;  %v1124_v41 = vld [vmem:[%s13399_s3 + $0x328] sm:$0xff] }
 0x23a   :  { %v886_v62 = vpop.f32.mrb[16].mxu0  ;;  %v957_v36 = vpop.f32.mrb[16].mxu1 }
 0x23b   :  { %v970_v63 = vadd.f32 %v886_v62, %v8753_v60  ;;  %v888_v1 = vpop.f32.mrb[17].mxu0  ;;  %v959_v21 = vpop.f32.mrb[17].mxu1  ;;  %v972_v11 = vadd.f32 %v957_v36, %v8769_v3  ;;  %v1059_v62 = vld [vmem:[%s13399_s3 + $0x120] sm:$0xff] }
 0x23c   :  { %v971_v4 = vadd.f32 %v888_v1, %v8757_v61  ;;  %v973_v55 = vadd.f32 %v959_v21, %v8763_v8  ;;  %v1067_v36 = vld [vmem:[%s13399_s3 + $0x160] sm:$0xff]  ;;  %v5496_v1 = vpack.c.bf16 %v1070_v50, %v1062_v49  ;;  %v1061_v21 = vld [vmem:[%s13399_s3 + $0x130] sm:$0xff]  ;;  %v5448_v50 = vpack.c.bf16 %v1132_v43, %v1124_v41 }
 0x23d   :  { %v4931_v5 = vmul.f32 -1.442695, %v970_v63  ;;  %v5432_v63 = vpack.c.bf16 %v1068_v48, %v1060_v45  ;;  %v1134_v45 = vld [vmem:[%s13399_s3 + $0x378] sm:$0xff]  ;;  %v1123_v48 = vld [vmem:[%s13399_s3 + $0x320] sm:$0xff] }
 0x23e   :  { %v4932_v6 = vmul.f32 -1.442695, %v971_v4  ;;  %v4933_v10 = vmul.f32 -1.442695, %v973_v55  ;;  %v1069_v4 = vld [vmem:[%s13399_s3 + $0x170] sm:$0xff]  ;;  %v1086_v55 = vld [vmem:[%s13399_s3 + $0x1f8] sm:$0xff] }
 0x23f   :  { %7043 = vpow2.f32 %v4931_v5  ;;  %v1076_v5 = vld [vmem:[%s13399_s3 + $0x1a8] sm:$0xff]  ;;  %v1131_v49 = vld [vmem:[%s13399_s3 + $0x360] sm:$0xff] }
 0x240   :  { %7045 = vpow2.f32 %v4932_v6  ;;  %v1084_v6 = vld [vmem:[%s13399_s3 + $0x1e8] sm:$0xff]  ;;  %v1187_v43 = vld [vmem:[%s13399_s3 + $0x520] sm:$0xff] }
 0x241   :  { %7047 = vpow2.f32 %v4936_v9  ;;  %v5434_v9 = vpack.c.bf16 %v1067_v36, %v1059_v62  ;;  %v1133_v62 = vld [vmem:[%s13399_s3 + $0x370] sm:$0xff]  ;;  %v1140_v36 = vld [vmem:[%s13399_s3 + $0x3a8] sm:$0xff] }
 0x242   :  { %7049 = vpow2.f32 %v4933_v10  ;;  %v5498_v10 = vpack.c.bf16 %v1069_v4, %v1061_v21  ;;  %v1150_v21 = vld [vmem:[%s13399_s3 + $0x3f8] sm:$0xff]  ;;  %v5450_v4 = vpack.c.bf16 %v1131_v49, %v1123_v48  ;;  %v1197_v48 = vld [vmem:[%s13399_s3 + $0x570] sm:$0xff]  ;;  %v1204_v49 = vld [vmem:[%s13399_s3 + $0x5a8] sm:$0xff] }
 0x243   :  { %7051 = vtanh.f32 %v972_v11  ;;  %v1075_v11 = vld [vmem:[%s13399_s3 + $0x1a0] sm:$0xff] }
 0x249   :  { %v7044_v12 = vpop.eup %7043 }
 0x24a   :  { %v7046_v13 = vpop.eup %7045  ;;  %v977_v14 = vadd.f32 1.0, %v7044_v12  ;;  %v1083_v12 = vld [vmem:[%s13399_s3 + $0x1e0] sm:$0xff] }
 0x24b   :  { %v983_v58 = vadd.f32 1.0, %v7046_v13  ;;  %v7048_v15 = vpop.eup %7047  ;;  %v5436_v13 = vpack.c.bf16 %v1084_v6, %v1076_v5  ;;  %v1139_v6 = vld [vmem:[%s13399_s3 + $0x3a0] sm:$0xff] }
 0x24c   :  { %7053 = vrcp.f32 %v977_v14  ;;  %v7050_v16 = vpop.eup %7049  ;;  %v1015_v22 = vadd.f32 1.0, %v7048_v15  ;;  %v5500_v14 = vpack.c.bf16 %v1086_v55, %v1078_v53  ;;  %v1085_v15 = vld [vmem:[%s13399_s3 + $0x1f0] sm:$0xff]  ;;  %v1147_v53 = vld [vmem:[%s13399_s3 + $0x3e0] sm:$0xff] }
 0x24d   :  { %7055 = vrcp.f32 %v983_v58  ;;  %v7052_v17 = vpop.eup %7051  ;;  %v990_v19 = vadd.f32 1.0, %v7050_v16  ;;  %v1077_v58 = vld [vmem:[%s13399_s3 + $0x1b0] sm:$0xff]  ;;  %v1092_v16 = vld [vmem:[%s13399_s3 + $0x228] sm:$0xff] }
 0x24e   :  { %7057 = vtanh.f32 %v8746_v54 }
 0x24f   :  { %7059 = vrcp.f32 %v990_v19  ;;  %v5502_v19 = vpack.c.bf16 %v1085_v15, %v1077_v58  ;;  %v1166_v58 = vld [vmem:[%s13399_s3 + $0x478] sm:$0xff]  ;;  %v5454_v15 = vpack.c.bf16 %v1147_v53, %v1139_v6  ;;  %v1213_v6 = vld [vmem:[%s13399_s3 + $0x5f0] sm:$0xff]  ;;  %v1220_v53 = vld [vmem:[%s13399_s3 + $0x628] sm:$0xff] }
 0x256   :  { %v7054_v18 = vpop.eup %7053 }
 0x257   :  { %v7056_v52 = vpop.eup %7055  ;;  %v994_v2 = vmul.f32 %v7054_v18, %v7052_v17  ;;  %v1100_v17 = vld [vmem:[%s13399_s3 + $0x268] sm:$0xff]  ;;  %v1094_v18 = vld [vmem:[%s13399_s3 + $0x238] sm:$0xff] }
 0x258   :  { %v993_v20 = vmul.f32 0.0, %v7056_v52  ;;  %v7058_v25 = vpop.eup %7057  ;;  %v1102_v52 = vld [vmem:[%s13399_s3 + $0x278] sm:$0xff]  ;;  %v5440_v24 = vpack.c.bf16 %v1100_v17, %v1092_v16  ;;  %v1155_v17 = vld [vmem:[%s13399_s3 + $0x420] sm:$0xff] }
 0x259   :  { %v7060_v29 = vpop.eup %7059 }
 0x25a   :  { %v8772_v23 = vadd.f32 %v994_v2, %v993_v20  ;;  %v5438_v2 = vpack.c.bf16 %v1083_v12, %v1075_v11  ;;  %v1091_v20 = vld [vmem:[%s13399_s3 + $0x220] sm:$0xff]  ;;  %v1149_v11 = vld [vmem:[%s13399_s3 + $0x3f0] sm:$0xff]  ;;  %v1156_v12 = vld [vmem:[%s13399_s3 + $0x428] sm:$0xff] }
 0x25c   :  { %7061 = vtanh.f32 %v8772_v23 }
 0x25d   :  { %7063 = vrcp.f32 %v1015_v22  ;;  %v1099_v22 = vld [vmem:[%s13399_s3 + $0x260] sm:$0xff] }
 0x25e   :  { %v5442_v32 = vpack.c.bf16 %v1099_v22, %v1091_v20  ;;  %v1165_v20 = vld [vmem:[%s13399_s3 + $0x470] sm:$0xff]  ;;  %v1172_v22 = vld [vmem:[%s13399_s3 + $0x4a8] sm:$0xff] }
 0x266   :  { %v7062_v31 = vpop.eup %7061 }
 0x267   :  { %v7064_v35 = vpop.eup %7063  ;;  %v997_v37 = vmul.f32 %v7062_v31, %v7060_v29  ;;  %v1116_v29 = vld [vmem:[%s13399_s3 + $0x2e8] sm:$0xff]  ;;  %v1118_v31 = vld [vmem:[%s13399_s3 + $0x2f8] sm:$0xff] }
 0x268   :  { %v8806_v42 = vmul.f32 %v7064_v35, %v7058_v25  ;;  %v5504_v25 = vpack.c.bf16 %v1102_v52, %v1094_v18  ;;  %v1115_v35 = vld [vmem:[%s13399_s3 + $0x2e0] sm:$0xff] }
 0x269   :  { %998 = vst [vmem:[%s13403_s5] sm:$0xff] %v997_v37  ;;  %1343 = vmatprep.mubr.f32.mxu0 %v997_v37  ;;  %1414 = vmatprep.mubr.f32.mxu1 %v997_v37  ;;  %v1163_v18 = vld [vmem:[%s13399_s3 + $0x460] sm:$0xff] }
 0x26a   :  { %1344 = vmatmul.mubr.f32.vlgmr.msra.gmra.mrb[4].mxu0 %v8806_v42  ;;  %1415 = vmatmul.mubr.f32.vlgmr.msra.gmra.mrb[4].mxu1 %v8806_v42  ;;  %v5458_v27 = vpack.c.bf16 %v1163_v18, %v1155_v17  ;;  %v1229_v17 = vld [vmem:[%s13399_s3 + $0x670] sm:$0xff]  ;;  %v1236_v18 = vld [vmem:[%s13399_s3 + $0x6a8] sm:$0xff] }
 0x26b   :  { %5427 = vmatpush1.bf16.msra.mxu0 %v5426_v38  ;;  %5491 = vmatpush1.bf16.msra.mxu1 %v5490_v39  ;;  %v5508_v38 = vpack.c.bf16 %v1118_v31, %v1110_v30  ;;  %v1109_v39 = vld [vmem:[%s13399_s3 + $0x2b0] sm:$0xff]  ;;  %v1179_v30 = vld [vmem:[%s13399_s3 + $0x4e0] sm:$0xff] }
 0x26c   :  { %1485 = vmatprep.mubr.f32.mxu0 %v997_v37  ;;  %1556 = vmatprep.mubr.f32.mxu1 %v997_v37  ;;  %v5444_v37 = vpack.c.bf16 %v1116_v29, %v1108_v28  ;;  %v1171_v29 = vld [vmem:[%s13399_s3 + $0x4a0] sm:$0xff] }
 0x26d   :  { %5429 = vmatprep.subr.bf16.mxu0 %v5428_v46  ;;  %5493 = vmatprep.subr.bf16.mxu1 %v5492_v47  ;;  %v5446_v46 = vpack.c.bf16 %v1115_v35, %v1107_v34  ;;  %v5510_v47 = vpack.c.bf16 %v1117_v40, %v1109_v39  ;;  %v1181_v34 = vld [vmem:[%s13399_s3 + $0x4f0] sm:$0xff]  ;;  %v1188_v35 = vld [vmem:[%s13399_s3 + $0x528] sm:$0xff]  ;;  %v1198_v39 = vld [vmem:[%s13399_s3 + $0x578] sm:$0xff]  ;;  %v5462_v40 = vpack.c.bf16 %v1179_v30, %v1171_v29 }
 0x26e   :  { %v1245_v29 = vld [vmem:[%s13399_s3 + $0x6f0] sm:$0xff]  ;;  %v1252_v30 = vld [vmem:[%s13399_s3 + $0x728] sm:$0xff] }
 0x26f   :  { %5431 = vmatpush1.bf16.msra.mxu0 %v5430_v51  ;;  %5495 = vmatpush1.bf16.msra.mxu1 %v5494_v59  ;;  %v5512_v51 = vpack.c.bf16 %v1134_v45, %v1126_v44  ;;  %v1125_v59 = vld [vmem:[%s13399_s3 + $0x330] sm:$0xff]  ;;  %v1195_v44 = vld [vmem:[%s13399_s3 + $0x560] sm:$0xff] }
 0x270   :  { %5433 = vmatprep.subr.bf16.mxu0 %v5432_v63  ;;  %5497 = vmatprep.subr.bf16.mxu1 %v5496_v1  ;;  %v1148_v63 = vld [vmem:[%s13399_s3 + $0x3e8] sm:$0xff]  ;;  %v1142_v1 = vld [vmem:[%s13399_s3 + $0x3b8] sm:$0xff]  ;;  %v5514_v5 = vpack.c.bf16 %v1133_v62, %v1125_v59  ;;  %v5466_v62 = vpack.c.bf16 %v1195_v44, %v1187_v43  ;;  %v1261_v43 = vld [vmem:[%s13399_s3 + $0x770] sm:$0xff] }
 0x271   :  { %v5452_v55 = vpack.c.bf16 %v1148_v63, %v1140_v36  ;;  %v1214_v59 = vld [vmem:[%s13399_s3 + $0x5f8] sm:$0xff]  ;;  %v1203_v63 = vld [vmem:[%s13399_s3 + $0x5a0] sm:$0xff]  ;;  %v1268_v44 = vld [vmem:[%s13399_s3 + $0x7a8] sm:$0xff] }
 0x273   :  { %5435 = vmatpush1.bf16.msra.mxu0 %v5434_v9  ;;  %5499 = vmatpush1.bf16.msra.mxu1 %v5498_v10  ;;  %v5516_v9 = vpack.c.bf16 %v1150_v21, %v1142_v1  ;;  %v1141_v10 = vld [vmem:[%s13399_s3 + $0x3b0] sm:$0xff]  ;;  %v1211_v1 = vld [vmem:[%s13399_s3 + $0x5e0] sm:$0xff] }
 0x274   :  { %5437 = vmatprep.subr.bf16.mxu0 %v5436_v13  ;;  %5501 = vmatprep.subr.bf16.mxu1 %v5500_v14  ;;  %v1164_v13 = vld [vmem:[%s13399_s3 + $0x468] sm:$0xff]  ;;  %v1158_v14 = vld [vmem:[%s13399_s3 + $0x438] sm:$0xff]  ;;  %v5518_v16 = vpack.c.bf16 %v1149_v11, %v1141_v10  ;;  %v5470_v11 = vpack.c.bf16 %v1211_v1, %v1203_v63  ;;  %v1277_v63 = vld [vmem:[%s13399_s3 + $0x7f0] sm:$0xff] }
 0x275   :  { %v5456_v52 = vpack.c.bf16 %v1164_v13, %v1156_v12  ;;  %v1230_v10 = vld [vmem:[%s13399_s3 + $0x678] sm:$0xff]  ;;  %v1219_v13 = vld [vmem:[%s13399_s3 + $0x620] sm:$0xff] }
 0x277   :  { %5439 = vmatpush1.bf16.msra.mxu0 %v5438_v2  ;;  %5503 = vmatpush1.bf16.msra.mxu1 %v5502_v19  ;;  %v5520_v2 = vpack.c.bf16 %v1166_v58, %v1158_v14  ;;  %v1157_v19 = vld [vmem:[%s13399_s3 + $0x430] sm:$0xff]  ;;  %v1227_v14 = vld [vmem:[%s13399_s3 + $0x660] sm:$0xff] }
 0x278   :  { %5441 = vmatprep.subr.bf16.mxu0 %v5440_v24  ;;  %5505 = vmatprep.subr.bf16.mxu1 %v5504_v25  ;;  %v1180_v24 = vld [vmem:[%s13399_s3 + $0x4e8] sm:$0xff]  ;;  %v1174_v25 = vld [vmem:[%s13399_s3 + $0x4b8] sm:$0xff]  ;;  %v5522_v28 = vpack.c.bf16 %v1165_v20, %v1157_v19  ;;  %v5474_v20 = vpack.c.bf16 %v1227_v14, %v1219_v13  ;;  %v1634_v13 = vld [vmem:[%s13399_s3 + $0x50] sm:$0xff] }
 0x279   :  { %v5460_v31 = vpack.c.bf16 %v1180_v24, %v1172_v22  ;;  %v1246_v19 = vld [vmem:[%s13399_s3 + $0x6f8] sm:$0xff]  ;;  %v1235_v24 = vld [vmem:[%s13399_s3 + $0x6a0] sm:$0xff]  ;;  %v1641_v14 = vld [vmem:[%s13399_s3 + $0x88] sm:$0xff] }
 0x27b   :  { %5443 = vmatpush1.bf16.msra.mxu0 %v5442_v32  ;;  %5507 = vmatpush1.bf16.msra.mxu1 %v5506_v33  ;;  %v5524_v32 = vpack.c.bf16 %v1182_v26, %v1174_v25  ;;  %v1173_v33 = vld [vmem:[%s13399_s3 + $0x4b0] sm:$0xff]  ;;  %v1243_v25 = vld [vmem:[%s13399_s3 + $0x6e0] sm:$0xff] }
 0x27c   :  { %5445 = vmatprep.subr.bf16.mxu0 %v5444_v37  ;;  %5509 = vmatprep.subr.bf16.mxu1 %v5508_v38  ;;  %v1196_v37 = vld [vmem:[%s13399_s3 + $0x568] sm:$0xff]  ;;  %v1190_v38 = vld [vmem:[%s13399_s3 + $0x538] sm:$0xff]  ;;  %v5526_v41 = vpack.c.bf16 %v1181_v34, %v1173_v33  ;;  %v5478_v34 = vpack.c.bf16 %v1243_v25, %v1235_v24  ;;  %v1650_v24 = vld [vmem:[%s13399_s3 + $0xd0] sm:$0xff] }
 0x27d   :  { %v5464_v45 = vpack.c.bf16 %v1196_v37, %v1188_v35  ;;  %v1262_v33 = vld [vmem:[%s13399_s3 + $0x778] sm:$0xff]  ;;  %v1251_v37 = vld [vmem:[%s13399_s3 + $0x720] sm:$0xff]  ;;  %v1657_v25 = vld [vmem:[%s13399_s3 + $0x108] sm:$0xff] }
 0x27f   :  { %5447 = vmatpush1.bf16.msra.mxu0 %v5446_v46  ;;  %5511 = vmatpush1.bf16.msra.mxu1 %v5510_v47  ;;  %v5528_v46 = vpack.c.bf16 %v1198_v39, %v1190_v38  ;;  %v1189_v47 = vld [vmem:[%s13399_s3 + $0x530] sm:$0xff]  ;;  %v1259_v38 = vld [vmem:[%s13399_s3 + $0x760] sm:$0xff] }
 0x280   :  { %5449 = vmatprep.subr.bf16.mxu0 %v5448_v50  ;;  %5513 = vmatprep.subr.bf16.mxu1 %v5512_v51  ;;  %v1212_v50 = vld [vmem:[%s13399_s3 + $0x5e8] sm:$0xff]  ;;  %v1206_v51 = vld [vmem:[%s13399_s3 + $0x5b8] sm:$0xff]  ;;  %v5530_v36 = vpack.c.bf16 %v1197_v48, %v1189_v47  ;;  %v5482_v48 = vpack.c.bf16 %v1259_v38, %v1251_v37 }
 0x281   :  { %v5468_v21 = vpack.c.bf16 %v1212_v50, %v1204_v49  ;;  %v1278_v47 = vld [vmem:[%s13399_s3 + $0x7f8] sm:$0xff]  ;;  %v1267_v50 = vld [vmem:[%s13399_s3 + $0x7a0] sm:$0xff]  ;;  %v1673_v38 = vld [vmem:[%s13399_s3 + $0x188] sm:$0xff] }
 0x283   :  { %5451 = vmatpush1.bf16.msra.mxu0 %v5450_v4  ;;  %5515 = vmatpush1.bf16.msra.mxu1 %v5514_v5  ;;  %v5532_v4 = vpack.c.bf16 %v1214_v59, %v1206_v51  ;;  %v1205_v5 = vld [vmem:[%s13399_s3 + $0x5b0] sm:$0xff] }
 0x284   :  { %5453 = vmatprep.subr.bf16.mxu0 %v5452_v55  ;;  %5517 = vmatprep.subr.bf16.mxu1 %v5516_v9  ;;  %v1228_v55 = vld [vmem:[%s13399_s3 + $0x668] sm:$0xff]  ;;  %v1222_v9 = vld [vmem:[%s13399_s3 + $0x638] sm:$0xff]  ;;  %v5534_v12 = vpack.c.bf16 %v1213_v6, %v1205_v5 }
 0x285   :  { %v5472_v58 = vpack.c.bf16 %v1228_v55, %v1220_v53  ;;  %v1633_v5 = vld [vmem:[%s13399_s3 + $0x48] sm:$0xff]  ;;  %v1627_v6 = vld [vmem:[%s13399_s3 + $0x18] sm:$0xff] }
 0x286   :  { %v1635_v55 = vld [vmem:[%s13399_s3 + $0x58] sm:$0xff] }
 0x287   :  { %5455 = vmatpush1.bf16.msra.mxu0 %v5454_v15  ;;  %5519 = vmatpush1.bf16.msra.mxu1 %v5518_v16  ;;  %v5536_v15 = vpack.c.bf16 %v1230_v10, %v1222_v9  ;;  %v1221_v16 = vld [vmem:[%s13399_s3 + $0x630] sm:$0xff]  ;;  %v1632_v9 = vld [vmem:[%s13399_s3 + $0x40] sm:$0xff]  ;;  %v5616_v10 = vpack.c.bf16 %v1635_v55, %v1627_v6 }
 0x288   :  { %5457 = vmatprep.subr.bf16.mxu0 %v5456_v52  ;;  %5521 = vmatprep.subr.bf16.mxu1 %v5520_v2  ;;  %v1244_v52 = vld [vmem:[%s13399_s3 + $0x6e8] sm:$0xff]  ;;  %v1238_v2 = vld [vmem:[%s13399_s3 + $0x6b8] sm:$0xff]  ;;  %v5538_v22 = vpack.c.bf16 %v1229_v17, %v1221_v16  ;;  %v1690_v6 = vld [vmem:[%s13399_s3 + $0x210] sm:$0xff] }
 0x289   :  { %v5476_v26 = vpack.c.bf16 %v1244_v52, %v1236_v18  ;;  %v1643_v16 = vld [vmem:[%s13399_s3 + $0x98] sm:$0xff]  ;;  %v1698_v55 = vld [vmem:[%s13399_s3 + $0x250] sm:$0xff] }
 0x28a   :  { %v1651_v17 = vld [vmem:[%s13399_s3 + $0xd8] sm:$0xff] }
 0x28b   :  { %5459 = vmatpush1.bf16.msra.mxu0 %v5458_v27  ;;  %5523 = vmatpush1.bf16.msra.mxu1 %v5522_v28  ;;  %v5540_v27 = vpack.c.bf16 %v1246_v19, %v1238_v2  ;;  %v1237_v28 = vld [vmem:[%s13399_s3 + $0x6b0] sm:$0xff]  ;;  %v5620_v52 = vpack.c.bf16 %v1651_v17, %v1643_v16  ;;  %v1640_v2 = vld [vmem:[%s13399_s3 + $0x80] sm:$0xff] }
 0x28c   :  { %5461 = vmatprep.subr.bf16.mxu0 %v5460_v31  ;;  %5525 = vmatprep.subr.bf16.mxu1 %v5524_v32  ;;  %v1260_v31 = vld [vmem:[%s13399_s3 + $0x768] sm:$0xff]  ;;  %v1254_v32 = vld [vmem:[%s13399_s3 + $0x738] sm:$0xff]  ;;  %v5542_v35 = vpack.c.bf16 %v1245_v29, %v1237_v28  ;;  %v1648_v19 = vld [vmem:[%s13399_s3 + $0xc0] sm:$0xff] }
 0x28d   :  { %v5480_v39 = vpack.c.bf16 %v1260_v31, %v1252_v30  ;;  %v1659_v29 = vld [vmem:[%s13399_s3 + $0x118] sm:$0xff]  ;;  %v1656_v31 = vld [vmem:[%s13399_s3 + $0x100] sm:$0xff]  ;;  %v1706_v17 = vld [vmem:[%s13399_s3 + $0x290] sm:$0xff] }
 0x28e   :  { %v1667_v30 = vld [vmem:[%s13399_s3 + $0x158] sm:$0xff] }
 0x28f   :  { %5463 = vmatpush1.bf16.msra.mxu0 %v5462_v40  ;;  %5527 = vmatpush1.bf16.msra.mxu1 %v5526_v41  ;;  %v5544_v40 = vpack.c.bf16 %v1262_v33, %v1254_v32  ;;  %v1253_v41 = vld [vmem:[%s13399_s3 + $0x730] sm:$0xff]  ;;  %v5624_v32 = vpack.c.bf16 %v1667_v30, %v1659_v29  ;;  %v1664_v33 = vld [vmem:[%s13399_s3 + $0x140] sm:$0xff] }
 0x290   :  { %5465 = vmatprep.subr.bf16.mxu0 %v5464_v45  ;;  %5529 = vmatprep.subr.bf16.mxu1 %v5528_v46  ;;  %v1276_v45 = vld [vmem:[%s13399_s3 + $0x7e8] sm:$0xff]  ;;  %v1270_v46 = vld [vmem:[%s13399_s3 + $0x7b8] sm:$0xff]  ;;  %v5546_v49 = vpack.c.bf16 %v1261_v43, %v1253_v41  ;;  %v5562_v37 = vpack.c.bf16 %v1664_v33, %v1656_v31  ;;  %v1722_v29 = vld [vmem:[%s13399_s3 + $0x310] sm:$0xff] }
 0x291   :  { %v5484_v51 = vpack.c.bf16 %v1276_v45, %v1268_v44  ;;  %v5548_v59 = vpack.c.bf16 %v1278_v47, %v1270_v46  ;;  %v1683_v44 = vld [vmem:[%s13399_s3 + $0x1d8] sm:$0xff]  ;;  %v1672_v45 = vld [vmem:[%s13399_s3 + $0x180] sm:$0xff]  ;;  %v1730_v30 = vld [vmem:[%s13399_s3 + $0x350] sm:$0xff] }
 0x292   :  { %v1680_v46 = vld [vmem:[%s13399_s3 + $0x1c0] sm:$0xff]  ;;  %v5642_v31 = vpack.c.bf16 %v1730_v30, %v1722_v29  ;;  %v1745_v33 = vld [vmem:[%s13399_s3 + $0x3c8] sm:$0xff]  ;;  %v1811_v30 = vld [vmem:[%s13399_s3 + $0x5d8] sm:$0xff] }
 0x293   :  { %5467 = vmatpush1.bf16.msra.mxu0 %v5466_v62  ;;  %5531 = vmatpush1.bf16.msra.mxu1 %v5530_v36  ;;  %v1275_v62 = vld [vmem:[%s13399_s3 + $0x7e0] sm:$0xff]  ;;  %v1269_v36 = vld [vmem:[%s13399_s3 + $0x7b0] sm:$0xff] }
 0x294   :  { %5469 = vmatprep.subr.bf16.mxu0 %v5468_v21  ;;  %5533 = vmatprep.subr.bf16.mxu1 %v5532_v4  ;;  %v5486_v1 = vpack.c.bf16 %v1275_v62, %v1267_v50  ;;  %v5550_v21 = vpack.c.bf16 %v1277_v63, %v1269_v36  ;;  %v1625_v4 = vld [vmem:[%s13399_s3 + $0x8] sm:$0xff]  ;;  %v1699_v62 = vld [vmem:[%s13399_s3 + $0x258] sm:$0xff]  ;;  %v5566_v36 = vpack.c.bf16 %v1680_v46, %v1672_v45 }
 0x295   :  { %v5552_v53 = vpack.c.bf16 %v1633_v5, %v1625_v4  ;;  %v1689_v50 = vld [vmem:[%s13399_s3 + $0x208] sm:$0xff]  ;;  %v1688_v4 = vld [vmem:[%s13399_s3 + $0x200] sm:$0xff] }
 0x296   :  { %v1696_v5 = vld [vmem:[%s13399_s3 + $0x240] sm:$0xff]  ;;  %v1753_v46 = vld [vmem:[%s13399_s3 + $0x408] sm:$0xff] }
 0x297   :  { %5471 = vmatpush1.bf16.msra.mxu0 %v5470_v11  ;;  %5535 = vmatpush1.bf16.msra.mxu1 %v5534_v12  ;;  %v1626_v12 = vld [vmem:[%s13399_s3 + $0x10] sm:$0xff] }
 0x298   :  { %5473 = vmatprep.subr.bf16.mxu0 %v5472_v58  ;;  %5537 = vmatprep.subr.bf16.mxu1 %v5536_v15  ;;  %v5618_v58 = vpack.c.bf16 %v1634_v13, %v1626_v12  ;;  %v1649_v15 = vld [vmem:[%s13399_s3 + $0xc8] sm:$0xff]  ;;  %v1715_v13 = vld [vmem:[%s13399_s3 + $0x2d8] sm:$0xff] }
 0x299   :  { %v5556_v18 = vpack.c.bf16 %v1649_v15, %v1641_v14  ;;  %v1704_v14 = vld [vmem:[%s13399_s3 + $0x280] sm:$0xff] }
 0x29b   :  { %5475 = vmatpush1.bf16.msra.mxu0 %v5474_v20  ;;  %5539 = vmatpush1.bf16.msra.mxu1 %v5538_v22  ;;  %v1642_v20 = vld [vmem:[%s13399_s3 + $0x90] sm:$0xff]  ;;  %v5558_v22 = vpack.c.bf16 %v1648_v19, %v1640_v2  ;;  %v1721_v2 = vld [vmem:[%s13399_s3 + $0x308] sm:$0xff] }
 0x29c   :  { %5477 = vmatprep.subr.bf16.mxu0 %v5476_v26  ;;  %5541 = vmatprep.subr.bf16.mxu1 %v5540_v27  ;;  %v1665_v26 = vld [vmem:[%s13399_s3 + $0x148] sm:$0xff]  ;;  %v5622_v27 = vpack.c.bf16 %v1650_v24, %v1642_v20  ;;  %v1723_v20 = vld [vmem:[%s13399_s3 + $0x318] sm:$0xff] }
 0x29d   :  { %v5560_v28 = vpack.c.bf16 %v1665_v26, %v1657_v25  ;;  %v1729_v19 = vld [vmem:[%s13399_s3 + $0x348] sm:$0xff]  ;;  %v1731_v24 = vld [vmem:[%s13399_s3 + $0x358] sm:$0xff]  ;;  %v1720_v25 = vld [vmem:[%s13399_s3 + $0x300] sm:$0xff] }
 0x29e   :  { %v1728_v26 = vld [vmem:[%s13399_s3 + $0x340] sm:$0xff] }
 0x29f   :  { %5479 = vmatpush1.bf16.msra.mxu0 %v5478_v34  ;;  %5543 = vmatpush1.bf16.msra.mxu1 %v5542_v35  ;;  %v1658_v34 = vld [vmem:[%s13399_s3 + $0x110] sm:$0xff] }
 0x2a0   :  { %5481 = vmatprep.subr.bf16.mxu0 %v5480_v39  ;;  %5545 = vmatprep.subr.bf16.mxu1 %v5544_v40  ;;  %v1666_v35 = vld [vmem:[%s13399_s3 + $0x150] sm:$0xff]  ;;  %v1681_v39 = vld [vmem:[%s13399_s3 + $0x1c8] sm:$0xff]  ;;  %v1675_v40 = vld [vmem:[%s13399_s3 + $0x198] sm:$0xff] }
 0x2a1   :  { %v5626_v41 = vpack.c.bf16 %v1666_v35, %v1658_v34  ;;  %v5564_v43 = vpack.c.bf16 %v1681_v39, %v1673_v38  ;;  %v5628_v47 = vpack.c.bf16 %v1683_v44, %v1675_v40  ;;  %v1739_v34 = vld [vmem:[%s13399_s3 + $0x398] sm:$0xff]  ;;  %v1736_v38 = vld [vmem:[%s13399_s3 + $0x380] sm:$0xff]  ;;  %v1746_v44 = vld [vmem:[%s13399_s3 + $0x3d0] sm:$0xff] }
 0x2a2   :  { %v1744_v39 = vld [vmem:[%s13399_s3 + $0x3c0] sm:$0xff] }
 0x2a3   :  { %5483 = vmatpush1.bf16.msra.mxu0 %v5482_v48  ;;  %5547 = vmatpush1.bf16.msra.mxu1 %v5546_v49  ;;  %v1674_v48 = vld [vmem:[%s13399_s3 + $0x190] sm:$0xff] }
 0x2a4   :  { %5485 = vmatprep.subr.bf16.mxu0 %v5484_v51  ;;  %5549 = vmatprep.subr.bf16.mxu1 %v5548_v59  ;;  %v1682_v49 = vld [vmem:[%s13399_s3 + $0x1d0] sm:$0xff]  ;;  %v1697_v51 = vld [vmem:[%s13399_s3 + $0x248] sm:$0xff]  ;;  %v1691_v59 = vld [vmem:[%s13399_s3 + $0x218] sm:$0xff] }
 0x2a5   :  { %v5630_v63 = vpack.c.bf16 %v1682_v49, %v1674_v48  ;;  %v1755_v48 = vld [vmem:[%s13399_s3 + $0x418] sm:$0xff] }
 0x2a7   :  { %5487 = vmatpush1.bf16.msra.mxu0 %v5486_v1  ;;  %5551 = vmatpush1.bf16.msra.mxu1 %v5550_v21  ;;  %v5568_v1 = vpack.c.bf16 %v1697_v51, %v1689_v50  ;;  %v5632_v21 = vpack.c.bf16 %v1699_v62, %v1691_v59  ;;  %v1763_v50 = vld [vmem:[%s13399_s3 + $0x458] sm:$0xff]  ;;  %v1752_v51 = vld [vmem:[%s13399_s3 + $0x400] sm:$0xff] }
 0x2a8   :  { %5553 = vmatprep.subr.bf16.mxu0 %v5552_v53  ;;  %5617 = vmatprep.subr.bf16.mxu1 %v5616_v10  ;;  %v5570_v53 = vpack.c.bf16 %v1696_v5, %v1688_v4  ;;  %v1713_v10 = vld [vmem:[%s13399_s3 + $0x2c8] sm:$0xff]  ;;  %v1760_v59 = vld [vmem:[%s13399_s3 + $0x440] sm:$0xff]  ;;  %v5648_v62 = vpack.c.bf16 %v1763_v50, %v1755_v48  ;;  %v1826_v50 = vld [vmem:[%s13399_s3 + $0x650] sm:$0xff] }
 0x2a9   :  { %v1769_v4 = vld [vmem:[%s13399_s3 + $0x488] sm:$0xff] }
 0x2aa   :  { %1486 = vmatmul.mubr.f32.vlgmr.msra.gmra.mrb[18].mxu0 %v8806_v42  ;;  %1557 = vmatmul.mubr.f32.vlgmr.msra.gmra.mrb[18].mxu1 %v8806_v42  ;;  %v1624_v42 = vld [vmem:[%s13399_s3] sm:$0xff]  ;;  %v1777_v5 = vld [vmem:[%s13399_s3 + $0x4c8] sm:$0xff] }
 0x2ab   :  { %v5554_v11 = vpack.c.bf16 %v1632_v9, %v1624_v42  ;;  %5619 = vmatpush1.bf16.msra.mxu1 %v5618_v58  ;;  %v5634_v42 = vpack.c.bf16 %v1698_v55, %v1690_v6  ;;  %v1705_v9 = vld [vmem:[%s13399_s3 + $0x288] sm:$0xff]  ;;  %v1712_v58 = vld [vmem:[%s13399_s3 + $0x2c0] sm:$0xff]  ;;  %v1771_v6 = vld [vmem:[%s13399_s3 + $0x498] sm:$0xff] }
 0x2ac   :  { %5621 = vmatprep.subr.bf16.mxu1 %v5620_v52  ;;  %v5572_v12 = vpack.c.bf16 %v1713_v10, %v1705_v9  ;;  %v5574_v16 = vpack.c.bf16 %v1712_v58, %v1704_v14  ;;  %v1779_v55 = vld [vmem:[%s13399_s3 + $0x4d8] sm:$0xff]  ;;  %v1776_v9 = vld [vmem:[%s13399_s3 + $0x4c0] sm:$0xff]  ;;  %v1785_v58 = vld [vmem:[%s13399_s3 + $0x508] sm:$0xff] }
 0x2ad   :  { %5555 = vmatpush1.bf16.msra.mxu0 %v5554_v11  ;;  %v1707_v11 = vld [vmem:[%s13399_s3 + $0x298] sm:$0xff]  ;;  %v5652_v10 = vpack.c.bf16 %v1779_v55, %v1771_v6  ;;  %v1842_v55 = vld [vmem:[%s13399_s3 + $0x6d0] sm:$0xff] }
 0x2ae   :  { %5557 = vmatprep.subr.bf16.mxu0 %v5556_v18  ;;  %v5636_v15 = vpack.c.bf16 %v1715_v13, %v1707_v11  ;;  %v1714_v18 = vld [vmem:[%s13399_s3 + $0x2d0] sm:$0xff] }
 0x2af   :  { %5623 = vmatpush1.bf16.msra.mxu1 %v5622_v27  ;;  %v5638_v52 = vpack.c.bf16 %v1714_v18, %v1706_v17  ;;  %v5640_v27 = vpack.c.bf16 %v1731_v24, %v1723_v20  ;;  %v1778_v13 = vld [vmem:[%s13399_s3 + $0x4d0] sm:$0xff]  ;;  %v1795_v18 = vld [vmem:[%s13399_s3 + $0x558] sm:$0xff] }
 0x2b0   :  { %5625 = vmatprep.subr.bf16.mxu1 %v5624_v32  ;;  %v1737_v32 = vld [vmem:[%s13399_s3 + $0x388] sm:$0xff]  ;;  %v1794_v24 = vld [vmem:[%s13399_s3 + $0x550] sm:$0xff] }
 0x2b1   :  { %5559 = vmatpush1.bf16.msra.mxu0 %v5558_v22  ;;  %v5576_v22 = vpack.c.bf16 %v1729_v19, %v1721_v2  ;;  %v5580_v35 = vpack.c.bf16 %v1745_v33, %v1737_v32  ;;  %v1792_v2 = vld [vmem:[%s13399_s3 + $0x540] sm:$0xff] }
 0x2b2   :  { %5561 = vmatprep.subr.bf16.mxu0 %v5560_v28  ;;  %v5578_v28 = vpack.c.bf16 %v1728_v26, %v1720_v25  ;;  %v1801_v26 = vld [vmem:[%s13399_s3 + $0x588] sm:$0xff]  ;;  %v1808_v32 = vld [vmem:[%s13399_s3 + $0x5c0] sm:$0xff] }
 0x2b3   :  { %5627 = vmatpush1.bf16.msra.mxu1 %v5626_v41  ;;  %v5582_v41 = vpack.c.bf16 %v1744_v39, %v1736_v38  ;;  %v1817_v39 = vld [vmem:[%s13399_s3 + $0x608] sm:$0xff] }
 0x2b4   :  { %5629 = vmatprep.subr.bf16.mxu1 %v5628_v47  ;;  %v1761_v47 = vld [vmem:[%s13399_s3 + $0x448] sm:$0xff] }
 0x2b5   :  { %5563 = vmatpush1.bf16.msra.mxu0 %v5562_v37  ;;  %v1747_v37 = vld [vmem:[%s13399_s3 + $0x3d8] sm:$0xff]  ;;  %v5584_v49 = vpack.c.bf16 %v1761_v47, %v1753_v46  ;;  %v1824_v46 = vld [vmem:[%s13399_s3 + $0x640] sm:$0xff] }
 0x2b6   :  { %5565 = vmatprep.subr.bf16.mxu0 %v5564_v43  ;;  %v5644_v40 = vpack.c.bf16 %v1747_v37, %v1739_v34  ;;  %v1738_v43 = vld [vmem:[%s13399_s3 + $0x390] sm:$0xff] }
 0x2b7   :  { %5631 = vmatpush1.bf16.msra.mxu1 %v5630_v63  ;;  %v5646_v45 = vpack.c.bf16 %v1746_v44, %v1738_v43  ;;  %v1754_v63 = vld [vmem:[%s13399_s3 + $0x410] sm:$0xff]  ;;  %v1827_v44 = vld [vmem:[%s13399_s3 + $0x658] sm:$0xff] }
 0x2b8   :  { %5633 = vmatprep.subr.bf16.mxu1 %v5632_v21  ;;  %v1810_v37 = vld [vmem:[%s13399_s3 + $0x5d0] sm:$0xff] }
 0x2b9   :  { %5567 = vmatpush1.bf16.msra.mxu0 %v5566_v36  ;;  %v5586_v36 = vpack.c.bf16 %v1760_v59, %v1752_v51  ;;  %v1833_v59 = vld [vmem:[%s13399_s3 + $0x688] sm:$0xff] }
 0x2ba   :  { %5569 = vmatprep.subr.bf16.mxu0 %v5568_v1  ;;  %v1762_v1 = vld [vmem:[%s13399_s3 + $0x450] sm:$0xff] }
 0x2bb   :  { %5635 = vmatpush1.bf16.msra.mxu1 %v5634_v42  ;;  %v5650_v21 = vpack.c.bf16 %v1762_v1, %v1754_v63  ;;  %v1768_v42 = vld [vmem:[%s13399_s3 + $0x480] sm:$0xff]  ;;  %v1843_v1 = vld [vmem:[%s13399_s3 + $0x6d8] sm:$0xff] }
 0x2bc   :  { %5637 = vmatprep.subr.bf16.mxu1 %v5636_v15  ;;  %v5590_v11 = vpack.c.bf16 %v1776_v9, %v1768_v42  ;;  %v1793_v15 = vld [vmem:[%s13399_s3 + $0x548] sm:$0xff] }
 0x2bd   :  { %5571 = vmatpush1.bf16.msra.mxu0 %v5570_v53  ;;  %v5588_v53 = vpack.c.bf16 %v1777_v5, %v1769_v4  ;;  %v5592_v17 = vpack.c.bf16 %v1793_v15, %v1785_v58  ;;  %v1840_v4 = vld [vmem:[%s13399_s3 + $0x6c0] sm:$0xff]  ;;  %v1849_v42 = vld [vmem:[%s13399_s3 + $0x708] sm:$0xff] }
 0x2be   :  { %5573 = vmatprep.subr.bf16.mxu0 %v5572_v12  ;;  %v1770_v12 = vld [vmem:[%s13399_s3 + $0x490] sm:$0xff]  ;;  %v1848_v58 = vld [vmem:[%s13399_s3 + $0x700] sm:$0xff] }
 0x2bf   :  { %5639 = vmatpush1.bf16.msra.mxu1 %v5638_v52  ;;  %v5654_v14 = vpack.c.bf16 %v1778_v13, %v1770_v12  ;;  %v1784_v52 = vld [vmem:[%s13399_s3 + $0x500] sm:$0xff]  ;;  %v1859_v12 = vld [vmem:[%s13399_s3 + $0x758] sm:$0xff] }
 0x2c0   :  { %5641 = vmatprep.subr.bf16.mxu1 %v5640_v27  ;;  %v5594_v20 = vpack.c.bf16 %v1792_v2, %v1784_v52  ;;  %v1809_v27 = vld [vmem:[%s13399_s3 + $0x5c8] sm:$0xff]  ;;  %v1856_v15 = vld [vmem:[%s13399_s3 + $0x740] sm:$0xff] }
 0x2c1   :  { %5575 = vmatpush1.bf16.msra.mxu0 %v5574_v16  ;;  %v1787_v16 = vld [vmem:[%s13399_s3 + $0x518] sm:$0xff]  ;;  %v5596_v29 = vpack.c.bf16 %v1809_v27, %v1801_v26  ;;  %v1865_v52 = vld [vmem:[%s13399_s3 + $0x788] sm:$0xff]  ;;  %v1872_v27 = vld [vmem:[%s13399_s3 + $0x7c0] sm:$0xff] }
 0x2c2   :  { %5577 = vmatprep.subr.bf16.mxu0 %v5576_v22  ;;  %v5656_v19 = vpack.c.bf16 %v1795_v18, %v1787_v16  ;;  %v1786_v22 = vld [vmem:[%s13399_s3 + $0x510] sm:$0xff]  ;;  %v1873_v2 = vld [vmem:[%s13399_s3 + $0x7c8] sm:$0xff] }
 0x2c3   :  { %5643 = vmatpush1.bf16.msra.mxu1 %v5642_v31  ;;  %v5658_v25 = vpack.c.bf16 %v1794_v24, %v1786_v22  ;;  %v1800_v31 = vld [vmem:[%s13399_s3 + $0x580] sm:$0xff]  ;;  %v1850_v16 = vld [vmem:[%s13399_s3 + $0x710] sm:$0xff]  ;;  %v1867_v22 = vld [vmem:[%s13399_s3 + $0x798] sm:$0xff] }
 0x2c4   :  { %5645 = vmatprep.subr.bf16.mxu1 %v5644_v40  ;;  %v5598_v34 = vpack.c.bf16 %v1808_v32, %v1800_v31  ;;  %v1825_v40 = vld [vmem:[%s13399_s3 + $0x648] sm:$0xff]  ;;  %v1858_v18 = vld [vmem:[%s13399_s3 + $0x750] sm:$0xff]  ;;  %v1875_v24 = vld [vmem:[%s13399_s3 + $0x7d8] sm:$0xff] }
 0x2c5   :  { %5579 = vmatpush1.bf16.msra.mxu0 %v5578_v28  ;;  %v1803_v28 = vld [vmem:[%s13399_s3 + $0x598] sm:$0xff]  ;;  %v5600_v43 = vpack.c.bf16 %v1825_v40, %v1817_v39  ;;  %v5676_v26 = vpack.c.bf16 %v1875_v24, %v1867_v22  ;;  %v1629_v32 = vld [vmem:[%s13399_s3 + $0x28] sm:$0xff] }
 0x2c6   :  { %5581 = vmatprep.subr.bf16.mxu0 %v5580_v35  ;;  %v5660_v33 = vpack.c.bf16 %v1811_v30, %v1803_v28  ;;  %v1802_v35 = vld [vmem:[%s13399_s3 + $0x590] sm:$0xff] }
 0x2c7   :  { %5647 = vmatpush1.bf16.msra.mxu1 %v5646_v45  ;;  %v5662_v38 = vpack.c.bf16 %v1810_v37, %v1802_v35  ;;  %v1816_v45 = vld [vmem:[%s13399_s3 + $0x600] sm:$0xff]  ;;  %v1866_v28 = vld [vmem:[%s13399_s3 + $0x790] sm:$0xff]  ;;  %v1639_v37 = vld [vmem:[%s13399_s3 + $0x78] sm:$0xff] }
 0x2c8   :  { %5649 = vmatprep.subr.bf16.mxu1 %v5648_v62  ;;  %v5602_v48 = vpack.c.bf16 %v1824_v46, %v1816_v45  ;;  %v1841_v62 = vld [vmem:[%s13399_s3 + $0x6c8] sm:$0xff] }
 0x2c9   :  { %5583 = vmatpush1.bf16.msra.mxu0 %v5582_v41  ;;  %v1819_v41 = vld [vmem:[%s13399_s3 + $0x618] sm:$0xff]  ;;  %v5604_v63 = vpack.c.bf16 %v1841_v62, %v1833_v59 }
 0x2ca   :  { %5585 = vmatprep.subr.bf16.mxu0 %v5584_v49  ;;  %v5664_v47 = vpack.c.bf16 %v1827_v44, %v1819_v41  ;;  %v1818_v49 = vld [vmem:[%s13399_s3 + $0x610] sm:$0xff] }
 0x2cb   :  { %5651 = vmatpush1.bf16.msra.mxu1 %v5650_v21  ;;  %v5666_v51 = vpack.c.bf16 %v1826_v50, %v1818_v49  ;;  %v1832_v21 = vld [vmem:[%s13399_s3 + $0x680] sm:$0xff] }
 0x2cc   :  { %5653 = vmatprep.subr.bf16.mxu1 %v5652_v10  ;;  %v5606_v6 = vpack.c.bf16 %v1840_v4, %v1832_v21  ;;  %v1857_v10 = vld [vmem:[%s13399_s3 + $0x748] sm:$0xff] }
 0x2cd   :  { %5587 = vmatpush1.bf16.msra.mxu0 %v5586_v36  ;;  %v1835_v36 = vld [vmem:[%s13399_s3 + $0x698] sm:$0xff]  ;;  %v5608_v13 = vpack.c.bf16 %v1857_v10, %v1849_v42 }
 0x2ce   :  { %5589 = vmatprep.subr.bf16.mxu0 %v5588_v53  ;;  %v5668_v5 = vpack.c.bf16 %v1843_v1, %v1835_v36  ;;  %v1834_v53 = vld [vmem:[%s13399_s3 + $0x690] sm:$0xff] }
 0x2cf   :  { %5655 = vmatpush1.bf16.msra.mxu1 %v5654_v14  ;;  %v5670_v9 = vpack.c.bf16 %v1842_v55, %v1834_v53 }
 0x2d0   :  { %5657 = vmatprep.subr.bf16.mxu1 %v5656_v19  ;;  %v5674_v19 = vpack.c.bf16 %v1858_v18, %v1850_v16 }
 0x2d1   :  { %5591 = vmatpush1.bf16.msra.mxu0 %v5590_v11  ;;  %v1851_v11 = vld [vmem:[%s13399_s3 + $0x718] sm:$0xff] }
 0x2d2   :  { %5593 = vmatprep.subr.bf16.mxu0 %v5592_v17  ;;  %v5672_v14 = vpack.c.bf16 %v1859_v12, %v1851_v11  ;;  %v5610_v17 = vpack.c.bf16 %v1856_v15, %v1848_v58 }
 0x2d3   :  { %5659 = vmatpush1.bf16.msra.mxu1 %v5658_v25  ;;  %v1864_v25 = vld [vmem:[%s13399_s3 + $0x780] sm:$0xff] }
 0x2d4   :  { %5661 = vmatprep.subr.bf16.mxu1 %v5660_v33  ;;  %v5614_v30 = vpack.c.bf16 %v1872_v27, %v1864_v25  ;;  %v1637_v33 = vld [vmem:[%s13399_s3 + $0x68] sm:$0xff] }
 0x2d5   :  { %5595 = vmatpush1.bf16.msra.mxu0 %v5594_v20  ;;  %v5612_v20 = vpack.c.bf16 %v1873_v2, %v1865_v52  ;;  %v5680_v35 = vpack.c.bf16 %v1637_v33, %v1629_v32  ;;  %v1638_v32 = vld [vmem:[%s13399_s3 + $0x70] sm:$0xff] }
 0x2d6   :  { %5597 = vmatprep.subr.bf16.mxu0 %v5596_v29  ;;  %v1874_v29 = vld [vmem:[%s13399_s3 + $0x7d0] sm:$0xff] }
 0x2d7   :  { %5663 = vmatpush1.bf16.msra.mxu1 %v5662_v38  ;;  %v5678_v31 = vpack.c.bf16 %v1874_v29, %v1866_v28  ;;  %v1628_v29 = vld [vmem:[%s13399_s3 + $0x20] sm:$0xff] }
 0x2d8   :  { %5665 = vmatprep.subr.bf16.mxu1 %v5664_v47 }
 0x2d9   :  { %5599 = vmatpush1.bf16.msra.mxu0 %v5598_v34  ;;  %v1631_v34 = vld [vmem:[%s13399_s3 + $0x38] sm:$0xff] }
 0x2da   :  { %5601 = vmatprep.subr.bf16.mxu0 %v5600_v43  ;;  %v5744_v38 = vpack.c.bf16 %v1639_v37, %v1631_v34  ;;  %v1645_v34 = vld [vmem:[%s13399_s3 + $0xa8] sm:$0xff] }
 0x2db   :  { %5667 = vmatpush1.bf16.msra.mxu1 %v5666_v51  ;;  %v1653_v37 = vld [vmem:[%s13399_s3 + $0xe8] sm:$0xff] }
 0x2dc   :  { %5669 = vmatprep.subr.bf16.mxu1 %v5668_v5 }
 0x2dd   :  { %5603 = vmatpush1.bf16.msra.mxu0 %v5602_v48 }
 0x2de   :  { %5605 = vmatprep.subr.bf16.mxu0 %v5604_v63 }
 0x2df   :  { %5671 = vmatpush1.bf16.msra.mxu1 %v5670_v9 }
 0x2e0   :  { %5673 = vmatprep.subr.bf16.mxu1 %v5672_v14 }
 0x2e1   :  { %5607 = vmatpush1.bf16.msra.mxu0 %v5606_v6 }
 0x2e2   :  { %5609 = vmatprep.subr.bf16.mxu0 %v5608_v13 }
 0x2e3   :  { %5675 = vmatpush1.bf16.msra.mxu1 %v5674_v19 }
 0x2e4   :  { %5677 = vmatprep.subr.bf16.mxu1 %v5676_v26 }
 0x2e5   :  { %5611 = vmatpush1.bf16.msra.mxu0 %v5610_v17 }
 0x2e6   :  { %5613 = vmatprep.subr.bf16.mxu0 %v5612_v20 }
 0x2e7   :  { %5679 = vmatpush1.bf16.msra.mxu1 %v5678_v31  ;;  %v1636_v31 = vld [vmem:[%s13399_s3 + $0x60] sm:$0xff] }
 0x2e8   :  { %5745 = vmatprep.subr.bf16.mxu1 %v5744_v38  ;;  %v1647_v38 = vld [vmem:[%s13399_s3 + $0xb8] sm:$0xff] }
 0x2e9   :  { %5615 = vmatpush1.bf16.msra.mxu0 %v5614_v30 }
 0x2ea   :  { %5681 = vmatprep.subr.bf16.mxu0 %v5680_v35 }
 0x33d   :  { %v1345_v39 = vpop.f32.mrb[4].mxu0  ;;  %v1416_v40 = vpop.f32.mrb[4].mxu1 }
 0x33e   :  { %v6962_v41 = vadd.f32 %v1345_v39, %v7943_v56  ;;  %v1347_v43 = vpop.f32.mrb[5].mxu0  ;;  %v1418_v44 = vpop.f32.mrb[5].mxu1  ;;  %v6976_v48 = vadd.f32 %v1416_v40, %v7960_v7  ;;  %v1655_v39 = vld [vmem:[%s13399_s3 + $0xf8] sm:$0xff] }
 0x33f   :  { %v6963_v45 = vadd.f32 %v1347_v43, %v7947_v57  ;;  %v6977_v12 = vadd.f32 %v1418_v44, %v7954_v0  ;;  %v5682_v43 = vpack.c.bf16 %v1636_v31, %v1628_v29  ;;  %v1694_v31 = vld [vmem:[%s13399_s3 + $0x230] sm:$0xff] }
 0x340   :  { %v4940_v46 = vmul.f32 -1.442695, %v6962_v41 }
 0x341   :  { %v4941_v47 = vmul.f32 -1.442695, %v6963_v45  ;;  %v4942_v14 = vmul.f32 -1.442695, %v6977_v12  ;;  %v1644_v45 = vld [vmem:[%s13399_s3 + $0xa0] sm:$0xff]  ;;  %v1679_v12 = vld [vmem:[%s13399_s3 + $0x1b8] sm:$0xff] }
 0x342   :  { %7065 = vpow2.f32 %v4940_v46  ;;  %v1652_v46 = vld [vmem:[%s13399_s3 + $0xe0] sm:$0xff] }
 0x343   :  { %7067 = vpow2.f32 %v4941_v47 }
 0x344   :  { %7069 = vtanh.f32 %v6976_v48  ;;  %v1646_v48 = vld [vmem:[%s13399_s3 + $0xb0] sm:$0xff] }
 0x34c   :  { %v7066_v49 = vpop.eup %7065 }
 0x34d   :  { %v7068_v50 = vpop.eup %7067  ;;  %v1603_v51 = vadd.f32 1.0, %v7066_v49  ;;  %v1654_v49 = vld [vmem:[%s13399_s3 + $0xf0] sm:$0xff] }
 0x34e   :  { %v1609_v59 = vadd.f32 1.0, %v7068_v50  ;;  %v7070_v62 = vpop.eup %7069  ;;  %v1661_v50 = vld [vmem:[%s13399_s3 + $0x128] sm:$0xff] }
 0x34f   :  { %7071 = vrcp.f32 %v1603_v51  ;;  %v5684_v51 = vpack.c.bf16 %v1653_v37, %v1645_v34  ;;  %v1711_v34 = vld [vmem:[%s13399_s3 + $0x2b8] sm:$0xff] }
 0x350   :  { %7073 = vrcp.f32 %v1609_v59  ;;  %v5748_v59 = vpack.c.bf16 %v1655_v39, %v1647_v38  ;;  %v1708_v39 = vld [vmem:[%s13399_s3 + $0x2a0] sm:$0xff] }
 0x359   :  { %v7072_v36 = vpop.eup %7071 }
 0x35a   :  { %v7074_v63 = vpop.eup %7073  ;;  %v1620_v1 = vmul.f32 %v7072_v36, %v7070_v62  ;;  %v1669_v62 = vld [vmem:[%s13399_s3 + $0x168] sm:$0xff]  ;;  %v1663_v36 = vld [vmem:[%s13399_s3 + $0x138] sm:$0xff] }
 0x35b   :  { %v1619_v21 = vmul.f32 %v7074_v63, %v8746_v54  ;;  %v1671_v63 = vld [vmem:[%s13399_s3 + $0x178] sm:$0xff] }
 0x35d   :  { %v9557_v4 = vadd.f32 %v1620_v1, %v1619_v21  ;;  %v5686_v1 = vpack.c.bf16 %v1652_v46, %v1644_v45  ;;  %v5750_v21 = vpack.c.bf16 %v1654_v49, %v1646_v48  ;;  %v1718_v45 = vld [vmem:[%s13399_s3 + $0x2f0] sm:$0xff]  ;;  %v1725_v46 = vld [vmem:[%s13399_s3 + $0x328] sm:$0xff]  ;;  %v1727_v49 = vld [vmem:[%s13399_s3 + $0x338] sm:$0xff] }
 0x35e   :  { %v1733_v48 = vld [vmem:[%s13399_s3 + $0x368] sm:$0xff] }
 0x37d   :  { %v1487_v5 = vpop.f32.mrb[18].mxu0  ;;  %v1558_v6 = vpop.f32.mrb[18].mxu1 }
 0x37e   :  { %v1571_v53 = vadd.f32 %v1487_v5, %v8753_v60  ;;  %v1489_v55 = vpop.f32.mrb[19].mxu0  ;;  %v1560_v42 = vpop.f32.mrb[19].mxu1  ;;  %v1573_v58 = vadd.f32 %v1558_v6, %v8769_v3  ;;  %v1660_v5 = vld [vmem:[%s13399_s3 + $0x120] sm:$0xff] }
 0x37f   :  { %v1572_v9 = vadd.f32 %v1489_v55, %v8757_v61  ;;  %v1574_v13 = vadd.f32 %v1560_v42, %v8763_v8  ;;  %v1668_v6 = vld [vmem:[%s13399_s3 + $0x160] sm:$0xff]  ;;  %v5752_v55 = vpack.c.bf16 %v1671_v63, %v1663_v36  ;;  %v1662_v42 = vld [vmem:[%s13399_s3 + $0x130] sm:$0xff]  ;;  %v5704_v63 = vpack.c.bf16 %v1733_v48, %v1725_v46 }
 0x380   :  { %v4937_v10 = vmul.f32 -1.442695, %v1571_v53  ;;  %v5688_v53 = vpack.c.bf16 %v1669_v62, %v1661_v50  ;;  %v1735_v50 = vld [vmem:[%s13399_s3 + $0x378] sm:$0xff]  ;;  %v1724_v62 = vld [vmem:[%s13399_s3 + $0x320] sm:$0xff] }
 0x381   :  { %v4938_v11 = vmul.f32 -1.442695, %v1572_v9  ;;  %v4939_v54 = vmul.f32 -1.442695, %v1574_v13  ;;  %v1670_v9 = vld [vmem:[%s13399_s3 + $0x170] sm:$0xff]  ;;  %v1687_v13 = vld [vmem:[%s13399_s3 + $0x1f8] sm:$0xff] }
 0x382   :  { %7075 = vpow2.f32 %v4937_v10  ;;  %v1677_v10 = vld [vmem:[%s13399_s3 + $0x1a8] sm:$0xff]  ;;  %v1732_v36 = vld [vmem:[%s13399_s3 + $0x360] sm:$0xff] }
 0x383   :  { %7077 = vpow2.f32 %v4938_v11  ;;  %v1685_v11 = vld [vmem:[%s13399_s3 + $0x1e8] sm:$0xff]  ;;  %v1788_v48 = vld [vmem:[%s13399_s3 + $0x520] sm:$0xff] }
 0x384   :  { %7079 = vpow2.f32 %v4942_v14  ;;  %v5690_v14 = vpack.c.bf16 %v1668_v6, %v1660_v5  ;;  %v1734_v5 = vld [vmem:[%s13399_s3 + $0x370] sm:$0xff]  ;;  %v1741_v6 = vld [vmem:[%s13399_s3 + $0x3a8] sm:$0xff] }
 0x385   :  { %7081 = vpow2.f32 %v4939_v54  ;;  %v5754_v54 = vpack.c.bf16 %v1670_v9, %v1662_v42  ;;  %v1751_v42 = vld [vmem:[%s13399_s3 + $0x3f8] sm:$0xff]  ;;  %v5706_v9 = vpack.c.bf16 %v1732_v36, %v1724_v62  ;;  %v1798_v62 = vld [vmem:[%s13399_s3 + $0x570] sm:$0xff]  ;;  %v1805_v36 = vld [vmem:[%s13399_s3 + $0x5a8] sm:$0xff] }
 0x386   :  { %7083 = vtanh.f32 %v1573_v58  ;;  %v1676_v58 = vld [vmem:[%s13399_s3 + $0x1a0] sm:$0xff] }
 0x38c   :  { %v7076_v15 = vpop.eup %7075 }
 0x38d   :  { %v7078_v16 = vpop.eup %7077  ;;  %v1578_v17 = vadd.f32 1.0, %v7076_v15  ;;  %v1684_v15 = vld [vmem:[%s13399_s3 + $0x1e0] sm:$0xff] }
 0x38e   :  { %v1584_v18 = vadd.f32 1.0, %v7078_v16  ;;  %v7080_v52 = vpop.eup %7079  ;;  %v5692_v16 = vpack.c.bf16 %v1685_v11, %v1677_v10  ;;  %v1740_v11 = vld [vmem:[%s13399_s3 + $0x3a0] sm:$0xff] }
 0x38f   :  { %7085 = vrcp.f32 %v1578_v17  ;;  %v7082_v2 = vpop.eup %7081  ;;  %v1616_v27 = vadd.f32 1.0, %v7080_v52  ;;  %v5756_v17 = vpack.c.bf16 %v1687_v13, %v1679_v12  ;;  %v1686_v52 = vld [vmem:[%s13399_s3 + $0x1f0] sm:$0xff]  ;;  %v1748_v12 = vld [vmem:[%s13399_s3 + $0x3e0] sm:$0xff] }
 0x390   :  { %7087 = vrcp.f32 %v1584_v18  ;;  %v7084_v19 = vpop.eup %7083  ;;  %v1591_v25 = vadd.f32 1.0, %v7082_v2  ;;  %v1678_v18 = vld [vmem:[%s13399_s3 + $0x1b0] sm:$0xff]  ;;  %v1693_v2 = vld [vmem:[%s13399_s3 + $0x228] sm:$0xff] }
 0x391   :  { %7089 = vtanh.f32 %v9557_v4 }
 0x392   :  { %7091 = vrcp.f32 %v1591_v25  ;;  %v5758_v25 = vpack.c.bf16 %v1686_v52, %v1678_v18  ;;  %v1767_v18 = vld [vmem:[%s13399_s3 + $0x478] sm:$0xff]  ;;  %v5710_v52 = vpack.c.bf16 %v1748_v12, %v1740_v11  ;;  %v1814_v11 = vld [vmem:[%s13399_s3 + $0x5f0] sm:$0xff]  ;;  %v1821_v12 = vld [vmem:[%s13399_s3 + $0x628] sm:$0xff] }
 0x399   :  { %v7086_v20 = vpop.eup %7085 }
 0x39a   :  { %v7088_v22 = vpop.eup %7087  ;;  %v1595_v24 = vmul.f32 %v7086_v20, %v7084_v19  ;;  %v1701_v19 = vld [vmem:[%s13399_s3 + $0x268] sm:$0xff]  ;;  %v1695_v20 = vld [vmem:[%s13399_s3 + $0x238] sm:$0xff] }
 0x39b   :  { %v1594_v26 = vmul.f32 %v7088_v22, %v8772_v23  ;;  %v7090_v30 = vpop.eup %7089  ;;  %v1630_v23 = vld [vmem:[%s13399_s3 + $0x30] sm:$0xff]  ;;  %v1703_v22 = vld [vmem:[%s13399_s3 + $0x278] sm:$0xff]  ;;  %v5696_v29 = vpack.c.bf16 %v1701_v19, %v1693_v2  ;;  %v1756_v19 = vld [vmem:[%s13399_s3 + $0x420] sm:$0xff] }
 0x39c   :  { %v7092_v33 = vpop.eup %7091  ;;  %v5746_v44 = vpack.c.bf16 %v1638_v32, %v1630_v23  ;;  %v1702_v23 = vld [vmem:[%s13399_s3 + $0x270] sm:$0xff]  ;;  %v1709_v32 = vld [vmem:[%s13399_s3 + $0x2a8] sm:$0xff] }
 0x39d   :  { %v9565_v28 = vadd.f32 %v1595_v24, %v1594_v26  ;;  %v5694_v24 = vpack.c.bf16 %v1684_v15, %v1676_v58  ;;  %v1692_v26 = vld [vmem:[%s13399_s3 + $0x220] sm:$0xff]  ;;  %v5762_v38 = vpack.c.bf16 %v1702_v23, %v1694_v31  ;;  %v1750_v58 = vld [vmem:[%s13399_s3 + $0x3f0] sm:$0xff]  ;;  %v1757_v15 = vld [vmem:[%s13399_s3 + $0x428] sm:$0xff] }
 0x39e   :  { %v1783_v31 = vld [vmem:[%s13399_s3 + $0x4f8] sm:$0xff] }
 0x39f   :  { %7093 = vtanh.f32 %v9565_v28 }
 0x3a0   :  { %7095 = vrcp.f32 %v1616_v27  ;;  %v1700_v27 = vld [vmem:[%s13399_s3 + $0x260] sm:$0xff] }
 0x3a1   :  { %v5698_v37 = vpack.c.bf16 %v1700_v27, %v1692_v26  ;;  %v1766_v26 = vld [vmem:[%s13399_s3 + $0x470] sm:$0xff]  ;;  %v1773_v27 = vld [vmem:[%s13399_s3 + $0x4a8] sm:$0xff] }
 0x3a9   :  { %v7094_v35 = vpop.eup %7093 }
 0x3aa   :  { %v7096_v40 = vpop.eup %7095  ;;  %v1598_v41 = vmul.f32 %v7094_v35, %v7092_v33  ;;  %v1717_v33 = vld [vmem:[%s13399_s3 + $0x2e8] sm:$0xff]  ;;  %v1719_v35 = vld [vmem:[%s13399_s3 + $0x2f8] sm:$0xff] }
 0x3ab   :  { %v9599_v47 = vmul.f32 %v7096_v40, %v7090_v30  ;;  %v5760_v30 = vpack.c.bf16 %v1703_v22, %v1695_v20  ;;  %v1716_v40 = vld [vmem:[%s13399_s3 + $0x2e0] sm:$0xff] }
 0x3ac   :  { %1599 = vst [vmem:[%s13403_s5 + $0x8] sm:$0xff] %v1598_v41  ;;  %1944 = vmatprep.mubr.f32.mxu0 %v1598_v41  ;;  %2015 = vmatprep.mubr.f32.mxu1 %v1598_v41  ;;  %v1764_v20 = vld [vmem:[%s13399_s3 + $0x460] sm:$0xff] }
 0x3ad   :  { %1945 = vmatmul.mubr.f32.vlgmr.msra.gmra.mrb[6].mxu0 %v9599_v47  ;;  %2016 = vmatmul.mubr.f32.vlgmr.msra.gmra.mrb[6].mxu1 %v9599_v47  ;;  %v5714_v23 = vpack.c.bf16 %v1764_v20, %v1756_v19  ;;  %v1830_v19 = vld [vmem:[%s13399_s3 + $0x670] sm:$0xff]  ;;  %v1837_v20 = vld [vmem:[%s13399_s3 + $0x6a8] sm:$0xff] }
 0x3ae   :  { %5683 = vmatpush1.bf16.msra.mxu0 %v5682_v43  ;;  %5747 = vmatpush1.bf16.msra.mxu1 %v5746_v44  ;;  %v5764_v43 = vpack.c.bf16 %v1719_v35, %v1711_v34  ;;  %v1710_v44 = vld [vmem:[%s13399_s3 + $0x2b0] sm:$0xff]  ;;  %v1780_v34 = vld [vmem:[%s13399_s3 + $0x4e0] sm:$0xff] }
 0x3af   :  { %2086 = vmatprep.mubr.f32.mxu0 %v1598_v41  ;;  %2157 = vmatprep.mubr.f32.mxu1 %v1598_v41  ;;  %v5700_v41 = vpack.c.bf16 %v1717_v33, %v1709_v32  ;;  %v1772_v33 = vld [vmem:[%s13399_s3 + $0x4a0] sm:$0xff] }
 0x3b0   :  { %5685 = vmatprep.subr.bf16.mxu0 %v5684_v51  ;;  %5749 = vmatprep.subr.bf16.mxu1 %v5748_v59  ;;  %v5702_v51 = vpack.c.bf16 %v1716_v40, %v1708_v39  ;;  %v5766_v59 = vpack.c.bf16 %v1718_v45, %v1710_v44  ;;  %v1782_v39 = vld [vmem:[%s13399_s3 + $0x4f0] sm:$0xff]  ;;  %v1789_v40 = vld [vmem:[%s13399_s3 + $0x528] sm:$0xff]  ;;  %v1799_v44 = vld [vmem:[%s13399_s3 + $0x578] sm:$0xff]  ;;  %v5718_v45 = vpack.c.bf16 %v1780_v34, %v1772_v33 }
 0x3b1   :  { %v1846_v33 = vld [vmem:[%s13399_s3 + $0x6f0] sm:$0xff]  ;;  %v1853_v34 = vld [vmem:[%s13399_s3 + $0x728] sm:$0xff] }
 0x3b2   :  { %5687 = vmatpush1.bf16.msra.mxu0 %v5686_v1  ;;  %5751 = vmatpush1.bf16.msra.mxu1 %v5750_v21  ;;  %v5768_v1 = vpack.c.bf16 %v1735_v50, %v1727_v49  ;;  %v1726_v21 = vld [vmem:[%s13399_s3 + $0x330] sm:$0xff]  ;;  %v1796_v49 = vld [vmem:[%s13399_s3 + $0x560] sm:$0xff] }
 0x3b3   :  { %5689 = vmatprep.subr.bf16.mxu0 %v5688_v53  ;;  %5753 = vmatprep.subr.bf16.mxu1 %v5752_v55  ;;  %v1749_v53 = vld [vmem:[%s13399_s3 + $0x3e8] sm:$0xff]  ;;  %v1743_v55 = vld [vmem:[%s13399_s3 + $0x3b8] sm:$0xff]  ;;  %v5770_v10 = vpack.c.bf16 %v1734_v5, %v1726_v21  ;;  %v5722_v5 = vpack.c.bf16 %v1796_v49, %v1788_v48  ;;  %v1862_v48 = vld [vmem:[%s13399_s3 + $0x770] sm:$0xff] }
 0x3b4   :  { %v5708_v13 = vpack.c.bf16 %v1749_v53, %v1741_v6  ;;  %v1815_v21 = vld [vmem:[%s13399_s3 + $0x5f8] sm:$0xff]  ;;  %v1804_v53 = vld [vmem:[%s13399_s3 + $0x5a0] sm:$0xff]  ;;  %v1869_v49 = vld [vmem:[%s13399_s3 + $0x7a8] sm:$0xff] }
 0x3b6   :  { %5691 = vmatpush1.bf16.msra.mxu0 %v5690_v14  ;;  %5755 = vmatpush1.bf16.msra.mxu1 %v5754_v54  ;;  %v5772_v14 = vpack.c.bf16 %v1751_v42, %v1743_v55  ;;  %v1742_v54 = vld [vmem:[%s13399_s3 + $0x3b0] sm:$0xff]  ;;  %v1812_v55 = vld [vmem:[%s13399_s3 + $0x5e0] sm:$0xff] }
 0x3b7   :  { %5693 = vmatprep.subr.bf16.mxu0 %v5692_v16  ;;  %5757 = vmatprep.subr.bf16.mxu1 %v5756_v17  ;;  %v1765_v16 = vld [vmem:[%s13399_s3 + $0x468] sm:$0xff]  ;;  %v1759_v17 = vld [vmem:[%s13399_s3 + $0x438] sm:$0xff]  ;;  %v5774_v2 = vpack.c.bf16 %v1750_v58, %v1742_v54  ;;  %v5726_v58 = vpack.c.bf16 %v1812_v55, %v1804_v53  ;;  %v1878_v53 = vld [vmem:[%s13399_s3 + $0x7f0] sm:$0xff] }
 0x3b8   :  { %v5712_v22 = vpack.c.bf16 %v1765_v16, %v1757_v15  ;;  %v1831_v54 = vld [vmem:[%s13399_s3 + $0x678] sm:$0xff]  ;;  %v1820_v16 = vld [vmem:[%s13399_s3 + $0x620] sm:$0xff] }
 0x3ba   :  { %5695 = vmatpush1.bf16.msra.mxu0 %v5694_v24  ;;  %5759 = vmatpush1.bf16.msra.mxu1 %v5758_v25  ;;  %v5776_v24 = vpack.c.bf16 %v1767_v18, %v1759_v17  ;;  %v1758_v25 = vld [vmem:[%s13399_s3 + $0x430] sm:$0xff]  ;;  %v1828_v17 = vld [vmem:[%s13399_s3 + $0x660] sm:$0xff] }
 0x3bb   :  { %5697 = vmatprep.subr.bf16.mxu0 %v5696_v29  ;;  %5761 = vmatprep.subr.bf16.mxu1 %v5760_v30  ;;  %v1781_v29 = vld [vmem:[%s13399_s3 + $0x4e8] sm:$0xff]  ;;  %v1775_v30 = vld [vmem:[%s13399_s3 + $0x4b8] sm:$0xff]  ;;  %v5778_v32 = vpack.c.bf16 %v1766_v26, %v1758_v25  ;;  %v5730_v26 = vpack.c.bf16 %v1828_v17, %v1820_v16  ;;  %v2235_v16 = vld [vmem:[%s13399_s3 + $0x50] sm:$0xff] }
 0x3bc   :  { %v5716_v35 = vpack.c.bf16 %v1781_v29, %v1773_v27  ;;  %v1847_v25 = vld [vmem:[%s13399_s3 + $0x6f8] sm:$0xff]  ;;  %v1836_v29 = vld [vmem:[%s13399_s3 + $0x6a0] sm:$0xff]  ;;  %v2242_v17 = vld [vmem:[%s13399_s3 + $0x88] sm:$0xff] }
 0x3be   :  { %5699 = vmatpush1.bf16.msra.mxu0 %v5698_v37  ;;  %5763 = vmatpush1.bf16.msra.mxu1 %v5762_v38  ;;  %v5780_v37 = vpack.c.bf16 %v1783_v31, %v1775_v30  ;;  %v1774_v38 = vld [vmem:[%s13399_s3 + $0x4b0] sm:$0xff]  ;;  %v1844_v30 = vld [vmem:[%s13399_s3 + $0x6e0] sm:$0xff] }
 0x3bf   :  { %5701 = vmatprep.subr.bf16.mxu0 %v5700_v41  ;;  %5765 = vmatprep.subr.bf16.mxu1 %v5764_v43  ;;  %v1797_v41 = vld [vmem:[%s13399_s3 + $0x568] sm:$0xff]  ;;  %v1791_v43 = vld [vmem:[%s13399_s3 + $0x538] sm:$0xff]  ;;  %v5782_v46 = vpack.c.bf16 %v1782_v39, %v1774_v38  ;;  %v5734_v39 = vpack.c.bf16 %v1844_v30, %v1836_v29  ;;  %v2251_v29 = vld [vmem:[%s13399_s3 + $0xd0] sm:$0xff] }
 0x3c0   :  { %v5720_v50 = vpack.c.bf16 %v1797_v41, %v1789_v40  ;;  %v1863_v38 = vld [vmem:[%s13399_s3 + $0x778] sm:$0xff]  ;;  %v1852_v41 = vld [vmem:[%s13399_s3 + $0x720] sm:$0xff]  ;;  %v2258_v30 = vld [vmem:[%s13399_s3 + $0x108] sm:$0xff] }
 0x3c2   :  { %5703 = vmatpush1.bf16.msra.mxu0 %v5702_v51  ;;  %5767 = vmatpush1.bf16.msra.mxu1 %v5766_v59  ;;  %v5784_v51 = vpack.c.bf16 %v1799_v44, %v1791_v43  ;;  %v1790_v59 = vld [vmem:[%s13399_s3 + $0x530] sm:$0xff]  ;;  %v1860_v43 = vld [vmem:[%s13399_s3 + $0x760] sm:$0xff] }
 0x3c3   :  { %5705 = vmatprep.subr.bf16.mxu0 %v5704_v63  ;;  %5769 = vmatprep.subr.bf16.mxu1 %v5768_v1  ;;  %v1813_v63 = vld [vmem:[%s13399_s3 + $0x5e8] sm:$0xff]  ;;  %v1807_v1 = vld [vmem:[%s13399_s3 + $0x5b8] sm:$0xff]  ;;  %v5786_v6 = vpack.c.bf16 %v1798_v62, %v1790_v59  ;;  %v5738_v62 = vpack.c.bf16 %v1860_v43, %v1852_v41 }
 0x3c4   :  { %v5724_v42 = vpack.c.bf16 %v1813_v63, %v1805_v36  ;;  %v1879_v59 = vld [vmem:[%s13399_s3 + $0x7f8] sm:$0xff]  ;;  %v1868_v63 = vld [vmem:[%s13399_s3 + $0x7a0] sm:$0xff]  ;;  %v2274_v43 = vld [vmem:[%s13399_s3 + $0x188] sm:$0xff] }
 0x3c6   :  { %5707 = vmatpush1.bf16.msra.mxu0 %v5706_v9  ;;  %5771 = vmatpush1.bf16.msra.mxu1 %v5770_v10  ;;  %v5788_v9 = vpack.c.bf16 %v1815_v21, %v1807_v1  ;;  %v1806_v10 = vld [vmem:[%s13399_s3 + $0x5b0] sm:$0xff] }
 0x3c7   :  { %5709 = vmatprep.subr.bf16.mxu0 %v5708_v13  ;;  %5773 = vmatprep.subr.bf16.mxu1 %v5772_v14  ;;  %v1829_v13 = vld [vmem:[%s13399_s3 + $0x668] sm:$0xff]  ;;  %v1823_v14 = vld [vmem:[%s13399_s3 + $0x638] sm:$0xff]  ;;  %v5790_v15 = vpack.c.bf16 %v1814_v11, %v1806_v10 }
 0x3c8   :  { %v5728_v18 = vpack.c.bf16 %v1829_v13, %v1821_v12  ;;  %v2234_v10 = vld [vmem:[%s13399_s3 + $0x48] sm:$0xff]  ;;  %v2228_v11 = vld [vmem:[%s13399_s3 + $0x18] sm:$0xff] }
 0x3c9   :  { %v2236_v13 = vld [vmem:[%s13399_s3 + $0x58] sm:$0xff] }
 0x3ca   :  { %5711 = vmatpush1.bf16.msra.mxu0 %v5710_v52  ;;  %5775 = vmatpush1.bf16.msra.mxu1 %v5774_v2  ;;  %v5792_v52 = vpack.c.bf16 %v1831_v54, %v1823_v14  ;;  %v1822_v2 = vld [vmem:[%s13399_s3 + $0x630] sm:$0xff]  ;;  %v2233_v14 = vld [vmem:[%s13399_s3 + $0x40] sm:$0xff]  ;;  %v5872_v54 = vpack.c.bf16 %v2236_v13, %v2228_v11 }
 0x3cb   :  { %5713 = vmatprep.subr.bf16.mxu0 %v5712_v22  ;;  %5777 = vmatprep.subr.bf16.mxu1 %v5776_v24  ;;  %v1845_v22 = vld [vmem:[%s13399_s3 + $0x6e8] sm:$0xff]  ;;  %v1839_v24 = vld [vmem:[%s13399_s3 + $0x6b8] sm:$0xff]  ;;  %v5794_v27 = vpack.c.bf16 %v1830_v19, %v1822_v2  ;;  %v2291_v11 = vld [vmem:[%s13399_s3 + $0x210] sm:$0xff] }
 0x3cc   :  { %v5732_v31 = vpack.c.bf16 %v1845_v22, %v1837_v20  ;;  %v2244_v2 = vld [vmem:[%s13399_s3 + $0x98] sm:$0xff]  ;;  %v2299_v13 = vld [vmem:[%s13399_s3 + $0x250] sm:$0xff] }
 0x3cd   :  { %v2252_v19 = vld [vmem:[%s13399_s3 + $0xd8] sm:$0xff] }
 0x3ce   :  { %5715 = vmatpush1.bf16.msra.mxu0 %v5714_v23  ;;  %5779 = vmatpush1.bf16.msra.mxu1 %v5778_v32  ;;  %v5796_v23 = vpack.c.bf16 %v1847_v25, %v1839_v24  ;;  %v1838_v32 = vld [vmem:[%s13399_s3 + $0x6b0] sm:$0xff]  ;;  %v5876_v22 = vpack.c.bf16 %v2252_v19, %v2244_v2  ;;  %v2241_v24 = vld [vmem:[%s13399_s3 + $0x80] sm:$0xff] }
 0x3cf   :  { %5717 = vmatprep.subr.bf16.mxu0 %v5716_v35  ;;  %5781 = vmatprep.subr.bf16.mxu1 %v5780_v37  ;;  %v1861_v35 = vld [vmem:[%s13399_s3 + $0x768] sm:$0xff]  ;;  %v1855_v37 = vld [vmem:[%s13399_s3 + $0x738] sm:$0xff]  ;;  %v5798_v40 = vpack.c.bf16 %v1846_v33, %v1838_v32  ;;  %v2249_v25 = vld [vmem:[%s13399_s3 + $0xc0] sm:$0xff] }
 0x3d0   :  { %v5736_v44 = vpack.c.bf16 %v1861_v35, %v1853_v34  ;;  %v2260_v33 = vld [vmem:[%s13399_s3 + $0x118] sm:$0xff]  ;;  %v2257_v35 = vld [vmem:[%s13399_s3 + $0x100] sm:$0xff]  ;;  %v2307_v19 = vld [vmem:[%s13399_s3 + $0x290] sm:$0xff] }
 0x3d1   :  { %v2268_v34 = vld [vmem:[%s13399_s3 + $0x158] sm:$0xff] }
 0x3d2   :  { %5719 = vmatpush1.bf16.msra.mxu0 %v5718_v45  ;;  %5783 = vmatpush1.bf16.msra.mxu1 %v5782_v46  ;;  %v5800_v45 = vpack.c.bf16 %v1863_v38, %v1855_v37  ;;  %v1854_v46 = vld [vmem:[%s13399_s3 + $0x730] sm:$0xff]  ;;  %v5880_v37 = vpack.c.bf16 %v2268_v34, %v2260_v33  ;;  %v2265_v38 = vld [vmem:[%s13399_s3 + $0x140] sm:$0xff] }
 0x3d3   :  { %5721 = vmatprep.subr.bf16.mxu0 %v5720_v50  ;;  %5785 = vmatprep.subr.bf16.mxu1 %v5784_v51  ;;  %v1877_v50 = vld [vmem:[%s13399_s3 + $0x7e8] sm:$0xff]  ;;  %v1871_v51 = vld [vmem:[%s13399_s3 + $0x7b8] sm:$0xff]  ;;  %v5802_v36 = vpack.c.bf16 %v1862_v48, %v1854_v46  ;;  %v5818_v41 = vpack.c.bf16 %v2265_v38, %v2257_v35  ;;  %v2323_v33 = vld [vmem:[%s13399_s3 + $0x310] sm:$0xff] }
 0x3d4   :  { %v5740_v1 = vpack.c.bf16 %v1877_v50, %v1869_v49  ;;  %v5804_v21 = vpack.c.bf16 %v1879_v59, %v1871_v51  ;;  %v2284_v49 = vld [vmem:[%s13399_s3 + $0x1d8] sm:$0xff]  ;;  %v2273_v50 = vld [vmem:[%s13399_s3 + $0x180] sm:$0xff]  ;;  %v2331_v34 = vld [vmem:[%s13399_s3 + $0x350] sm:$0xff] }
 0x3d5   :  { %v2281_v51 = vld [vmem:[%s13399_s3 + $0x1c0] sm:$0xff]  ;;  %v5898_v35 = vpack.c.bf16 %v2331_v34, %v2323_v33  ;;  %v2346_v38 = vld [vmem:[%s13399_s3 + $0x3c8] sm:$0xff]  ;;  %v2412_v34 = vld [vmem:[%s13399_s3 + $0x5d8] sm:$0xff] }
 0x3d6   :  { %5723 = vmatpush1.bf16.msra.mxu0 %v5722_v5  ;;  %5787 = vmatpush1.bf16.msra.mxu1 %v5786_v6  ;;  %v1876_v5 = vld [vmem:[%s13399_s3 + $0x7e0] sm:$0xff]  ;;  %v1870_v6 = vld [vmem:[%s13399_s3 + $0x7b0] sm:$0xff] }
 0x3d7   :  { %5725 = vmatprep.subr.bf16.mxu0 %v5724_v42  ;;  %5789 = vmatprep.subr.bf16.mxu1 %v5788_v9  ;;  %v5742_v55 = vpack.c.bf16 %v1876_v5, %v1868_v63  ;;  %v5806_v42 = vpack.c.bf16 %v1878_v53, %v1870_v6  ;;  %v2226_v9 = vld [vmem:[%s13399_s3 + $0x8] sm:$0xff]  ;;  %v2300_v5 = vld [vmem:[%s13399_s3 + $0x258] sm:$0xff]  ;;  %v5822_v6 = vpack.c.bf16 %v2281_v51, %v2273_v50 }
 0x3d8   :  { %v5808_v12 = vpack.c.bf16 %v2234_v10, %v2226_v9  ;;  %v2290_v63 = vld [vmem:[%s13399_s3 + $0x208] sm:$0xff]  ;;  %v2289_v9 = vld [vmem:[%s13399_s3 + $0x200] sm:$0xff] }
 0x3d9   :  { %v2297_v10 = vld [vmem:[%s13399_s3 + $0x240] sm:$0xff]  ;;  %v2354_v51 = vld [vmem:[%s13399_s3 + $0x408] sm:$0xff] }
 0x3da   :  { %5727 = vmatpush1.bf16.msra.mxu0 %v5726_v58  ;;  %5791 = vmatpush1.bf16.msra.mxu1 %v5790_v15  ;;  %v2227_v15 = vld [vmem:[%s13399_s3 + $0x10] sm:$0xff] }
 0x3db   :  { %5729 = vmatprep.subr.bf16.mxu0 %v5728_v18  ;;  %5793 = vmatprep.subr.bf16.mxu1 %v5792_v52  ;;  %v5874_v18 = vpack.c.bf16 %v2235_v16, %v2227_v15  ;;  %v2250_v52 = vld [vmem:[%s13399_s3 + $0xc8] sm:$0xff]  ;;  %v2316_v16 = vld [vmem:[%s13399_s3 + $0x2d8] sm:$0xff] }
 0x3dc   :  { %v5812_v20 = vpack.c.bf16 %v2250_v52, %v2242_v17  ;;  %v2305_v17 = vld [vmem:[%s13399_s3 + $0x280] sm:$0xff] }
 0x3de   :  { %5731 = vmatpush1.bf16.msra.mxu0 %v5730_v26  ;;  %5795 = vmatpush1.bf16.msra.mxu1 %v5794_v27  ;;  %v2243_v26 = vld [vmem:[%s13399_s3 + $0x90] sm:$0xff]  ;;  %v5814_v27 = vpack.c.bf16 %v2249_v25, %v2241_v24  ;;  %v2322_v24 = vld [vmem:[%s13399_s3 + $0x308] sm:$0xff] }
 0x3df   :  { %5733 = vmatprep.subr.bf16.mxu0 %v5732_v31  ;;  %5797 = vmatprep.subr.bf16.mxu1 %v5796_v23  ;;  %v2266_v31 = vld [vmem:[%s13399_s3 + $0x148] sm:$0xff]  ;;  %v5878_v23 = vpack.c.bf16 %v2251_v29, %v2243_v26  ;;  %v2324_v26 = vld [vmem:[%s13399_s3 + $0x318] sm:$0xff] }
 0x3e0   :  { %v5816_v32 = vpack.c.bf16 %v2266_v31, %v2258_v30  ;;  %v2330_v25 = vld [vmem:[%s13399_s3 + $0x348] sm:$0xff]  ;;  %v2332_v29 = vld [vmem:[%s13399_s3 + $0x358] sm:$0xff]  ;;  %v2321_v30 = vld [vmem:[%s13399_s3 + $0x300] sm:$0xff] }
 0x3e1   :  { %v2329_v31 = vld [vmem:[%s13399_s3 + $0x340] sm:$0xff] }
 0x3e2   :  { %5735 = vmatpush1.bf16.msra.mxu0 %v5734_v39  ;;  %5799 = vmatpush1.bf16.msra.mxu1 %v5798_v40  ;;  %v2259_v39 = vld [vmem:[%s13399_s3 + $0x110] sm:$0xff] }
 0x3e3   :  { %5737 = vmatprep.subr.bf16.mxu0 %v5736_v44  ;;  %5801 = vmatprep.subr.bf16.mxu1 %v5800_v45  ;;  %v2267_v40 = vld [vmem:[%s13399_s3 + $0x150] sm:$0xff]  ;;  %v2282_v44 = vld [vmem:[%s13399_s3 + $0x1c8] sm:$0xff]  ;;  %v2276_v45 = vld [vmem:[%s13399_s3 + $0x198] sm:$0xff] }
 0x3e4   :  { %v5882_v46 = vpack.c.bf16 %v2267_v40, %v2259_v39  ;;  %v5820_v48 = vpack.c.bf16 %v2282_v44, %v2274_v43  ;;  %v5884_v59 = vpack.c.bf16 %v2284_v49, %v2276_v45  ;;  %v2340_v39 = vld [vmem:[%s13399_s3 + $0x398] sm:$0xff]  ;;  %v2337_v43 = vld [vmem:[%s13399_s3 + $0x380] sm:$0xff]  ;;  %v2347_v49 = vld [vmem:[%s13399_s3 + $0x3d0] sm:$0xff] }
 0x3e5   :  { %v2345_v44 = vld [vmem:[%s13399_s3 + $0x3c0] sm:$0xff] }
 0x3e6   :  { %5739 = vmatpush1.bf16.msra.mxu0 %v5738_v62  ;;  %5803 = vmatpush1.bf16.msra.mxu1 %v5802_v36  ;;  %v2275_v62 = vld [vmem:[%s13399_s3 + $0x190] sm:$0xff] }
 0x3e7   :  { %5741 = vmatprep.subr.bf16.mxu0 %v5740_v1  ;;  %5805 = vmatprep.subr.bf16.mxu1 %v5804_v21  ;;  %v2283_v36 = vld [vmem:[%s13399_s3 + $0x1d0] sm:$0xff]  ;;  %v2298_v1 = vld [vmem:[%s13399_s3 + $0x248] sm:$0xff]  ;;  %v2292_v21 = vld [vmem:[%s13399_s3 + $0x218] sm:$0xff] }
 0x3e8   :  { %v5886_v53 = vpack.c.bf16 %v2283_v36, %v2275_v62  ;;  %v2356_v62 = vld [vmem:[%s13399_s3 + $0x418] sm:$0xff] }
 0x3ea   :  { %5743 = vmatpush1.bf16.msra.mxu0 %v5742_v55  ;;  %5807 = vmatpush1.bf16.msra.mxu1 %v5806_v42  ;;  %v5824_v55 = vpack.c.bf16 %v2298_v1, %v2290_v63  ;;  %v5888_v42 = vpack.c.bf16 %v2300_v5, %v2292_v21  ;;  %v2364_v63 = vld [vmem:[%s13399_s3 + $0x458] sm:$0xff]  ;;  %v2353_v1 = vld [vmem:[%s13399_s3 + $0x400] sm:$0xff] }
 0x3eb   :  { %5809 = vmatprep.subr.bf16.mxu0 %v5808_v12  ;;  %5873 = vmatprep.subr.bf16.mxu1 %v5872_v54  ;;  %v5826_v12 = vpack.c.bf16 %v2297_v10, %v2289_v9  ;;  %v2314_v54 = vld [vmem:[%s13399_s3 + $0x2c8] sm:$0xff]  ;;  %v2361_v21 = vld [vmem:[%s13399_s3 + $0x440] sm:$0xff]  ;;  %v5904_v5 = vpack.c.bf16 %v2364_v63, %v2356_v62  ;;  %v2427_v63 = vld [vmem:[%s13399_s3 + $0x650] sm:$0xff] }
 0x3ec   :  { %v2370_v9 = vld [vmem:[%s13399_s3 + $0x488] sm:$0xff] }
 0x3ed   :  { %2087 = vmatmul.mubr.f32.vlgmr.msra.gmra.mrb[20].mxu0 %v9599_v47  ;;  %2158 = vmatmul.mubr.f32.vlgmr.msra.gmra.mrb[20].mxu1 %v9599_v47  ;;  %v2225_v47 = vld [vmem:[%s13399_s3] sm:$0xff]  ;;  %v2378_v10 = vld [vmem:[%s13399_s3 + $0x4c8] sm:$0xff] }
 0x3ee   :  { %v5810_v58 = vpack.c.bf16 %v2233_v14, %v2225_v47  ;;  %5875 = vmatpush1.bf16.msra.mxu1 %v5874_v18  ;;  %v5890_v47 = vpack.c.bf16 %v2299_v13, %v2291_v11  ;;  %v2306_v14 = vld [vmem:[%s13399_s3 + $0x288] sm:$0xff]  ;;  %v2313_v18 = vld [vmem:[%s13399_s3 + $0x2c0] sm:$0xff]  ;;  %v2372_v11 = vld [vmem:[%s13399_s3 + $0x498] sm:$0xff] }
 0x3ef   :  { %5877 = vmatprep.subr.bf16.mxu1 %v5876_v22  ;;  %v5828_v15 = vpack.c.bf16 %v2314_v54, %v2306_v14  ;;  %v5830_v2 = vpack.c.bf16 %v2313_v18, %v2305_v17  ;;  %v2380_v13 = vld [vmem:[%s13399_s3 + $0x4d8] sm:$0xff]  ;;  %v2377_v14 = vld [vmem:[%s13399_s3 + $0x4c0] sm:$0xff]  ;;  %v2386_v18 = vld [vmem:[%s13399_s3 + $0x508] sm:$0xff] }
 0x3f0   :  { %5811 = vmatpush1.bf16.msra.mxu0 %v5810_v58  ;;  %v2308_v58 = vld [vmem:[%s13399_s3 + $0x298] sm:$0xff]  ;;  %v5908_v54 = vpack.c.bf16 %v2380_v13, %v2372_v11  ;;  %v2443_v13 = vld [vmem:[%s13399_s3 + $0x6d0] sm:$0xff] }
 0x3f1   :  { %5813 = vmatprep.subr.bf16.mxu0 %v5812_v20  ;;  %v5892_v52 = vpack.c.bf16 %v2316_v16, %v2308_v58  ;;  %v2315_v20 = vld [vmem:[%s13399_s3 + $0x2d0] sm:$0xff] }
 0x3f2   :  { %5879 = vmatpush1.bf16.msra.mxu1 %v5878_v23  ;;  %v5894_v22 = vpack.c.bf16 %v2315_v20, %v2307_v19  ;;  %v5896_v23 = vpack.c.bf16 %v2332_v29, %v2324_v26  ;;  %v2379_v16 = vld [vmem:[%s13399_s3 + $0x4d0] sm:$0xff]  ;;  %v2396_v20 = vld [vmem:[%s13399_s3 + $0x558] sm:$0xff] }
 0x3f3   :  { %5881 = vmatprep.subr.bf16.mxu1 %v5880_v37  ;;  %v2338_v37 = vld [vmem:[%s13399_s3 + $0x388] sm:$0xff]  ;;  %v2395_v29 = vld [vmem:[%s13399_s3 + $0x550] sm:$0xff] }
 0x3f4   :  { %5815 = vmatpush1.bf16.msra.mxu0 %v5814_v27  ;;  %v5832_v27 = vpack.c.bf16 %v2330_v25, %v2322_v24  ;;  %v5836_v40 = vpack.c.bf16 %v2346_v38, %v2338_v37  ;;  %v2393_v24 = vld [vmem:[%s13399_s3 + $0x540] sm:$0xff] }
 0x3f5   :  { %5817 = vmatprep.subr.bf16.mxu0 %v5816_v32  ;;  %v5834_v32 = vpack.c.bf16 %v2329_v31, %v2321_v30  ;;  %v2402_v31 = vld [vmem:[%s13399_s3 + $0x588] sm:$0xff]  ;;  %v2409_v37 = vld [vmem:[%s13399_s3 + $0x5c0] sm:$0xff] }
 0x3f6   :  { %5883 = vmatpush1.bf16.msra.mxu1 %v5882_v46  ;;  %v5838_v46 = vpack.c.bf16 %v2345_v44, %v2337_v43  ;;  %v2418_v44 = vld [vmem:[%s13399_s3 + $0x608] sm:$0xff] }
 0x3f7   :  { %5885 = vmatprep.subr.bf16.mxu1 %v5884_v59  ;;  %v2362_v59 = vld [vmem:[%s13399_s3 + $0x448] sm:$0xff] }
 0x3f8   :  { %5819 = vmatpush1.bf16.msra.mxu0 %v5818_v41  ;;  %v2348_v41 = vld [vmem:[%s13399_s3 + $0x3d8] sm:$0xff]  ;;  %v5840_v36 = vpack.c.bf16 %v2362_v59, %v2354_v51  ;;  %v2425_v51 = vld [vmem:[%s13399_s3 + $0x640] sm:$0xff] }
 0x3f9   :  { %5821 = vmatprep.subr.bf16.mxu0 %v5820_v48  ;;  %v5900_v45 = vpack.c.bf16 %v2348_v41, %v2340_v39  ;;  %v2339_v48 = vld [vmem:[%s13399_s3 + $0x390] sm:$0xff] }
 0x3fa   :  { %5887 = vmatpush1.bf16.msra.mxu1 %v5886_v53  ;;  %v5902_v50 = vpack.c.bf16 %v2347_v49, %v2339_v48  ;;  %v2355_v53 = vld [vmem:[%s13399_s3 + $0x410] sm:$0xff]  ;;  %v2428_v49 = vld [vmem:[%s13399_s3 + $0x658] sm:$0xff] }
 0x3fb   :  { %5889 = vmatprep.subr.bf16.mxu1 %v5888_v42  ;;  %v2411_v41 = vld [vmem:[%s13399_s3 + $0x5d0] sm:$0xff] }
 0x3fc   :  { %5823 = vmatpush1.bf16.msra.mxu0 %v5822_v6  ;;  %v5842_v6 = vpack.c.bf16 %v2361_v21, %v2353_v1  ;;  %v2434_v21 = vld [vmem:[%s13399_s3 + $0x688] sm:$0xff] }
 0x3fd   :  { %5825 = vmatprep.subr.bf16.mxu0 %v5824_v55  ;;  %v2363_v55 = vld [vmem:[%s13399_s3 + $0x450] sm:$0xff] }
 0x3fe   :  { %5891 = vmatpush1.bf16.msra.mxu1 %v5890_v47  ;;  %v5906_v42 = vpack.c.bf16 %v2363_v55, %v2355_v53  ;;  %v2369_v47 = vld [vmem:[%s13399_s3 + $0x480] sm:$0xff]  ;;  %v2444_v55 = vld [vmem:[%s13399_s3 + $0x6d8] sm:$0xff] }
 0x3ff   :  { %5893 = vmatprep.subr.bf16.mxu1 %v5892_v52  ;;  %v5846_v58 = vpack.c.bf16 %v2377_v14, %v2369_v47  ;;  %v2394_v52 = vld [vmem:[%s13399_s3 + $0x548] sm:$0xff] }
 0x400   :  { %5827 = vmatpush1.bf16.msra.mxu0 %v5826_v12  ;;  %v5844_v12 = vpack.c.bf16 %v2378_v10, %v2370_v9  ;;  %v5848_v19 = vpack.c.bf16 %v2394_v52, %v2386_v18  ;;  %v2441_v9 = vld [vmem:[%s13399_s3 + $0x6c0] sm:$0xff]  ;;  %v2450_v47 = vld [vmem:[%s13399_s3 + $0x708] sm:$0xff] }
 0x401   :  { %5829 = vmatprep.subr.bf16.mxu0 %v5828_v15  ;;  %v2371_v15 = vld [vmem:[%s13399_s3 + $0x490] sm:$0xff]  ;;  %v2449_v18 = vld [vmem:[%s13399_s3 + $0x700] sm:$0xff] }
 0x402   :  { %5895 = vmatpush1.bf16.msra.mxu1 %v5894_v22  ;;  %v5910_v17 = vpack.c.bf16 %v2379_v16, %v2371_v15  ;;  %v2385_v22 = vld [vmem:[%s13399_s3 + $0x500] sm:$0xff]  ;;  %v2460_v15 = vld [vmem:[%s13399_s3 + $0x758] sm:$0xff] }
 0x403   :  { %5897 = vmatprep.subr.bf16.mxu1 %v5896_v23  ;;  %v5850_v26 = vpack.c.bf16 %v2393_v24, %v2385_v22  ;;  %v2410_v23 = vld [vmem:[%s13399_s3 + $0x5c8] sm:$0xff]  ;;  %v2457_v52 = vld [vmem:[%s13399_s3 + $0x740] sm:$0xff] }
 0x404   :  { %5831 = vmatpush1.bf16.msra.mxu0 %v5830_v2  ;;  %v2388_v2 = vld [vmem:[%s13399_s3 + $0x518] sm:$0xff]  ;;  %v5852_v33 = vpack.c.bf16 %v2410_v23, %v2402_v31  ;;  %v2466_v22 = vld [vmem:[%s13399_s3 + $0x788] sm:$0xff]  ;;  %v2473_v23 = vld [vmem:[%s13399_s3 + $0x7c0] sm:$0xff] }
 0x405   :  { %5833 = vmatprep.subr.bf16.mxu0 %v5832_v27  ;;  %v5912_v25 = vpack.c.bf16 %v2396_v20, %v2388_v2  ;;  %v2387_v27 = vld [vmem:[%s13399_s3 + $0x510] sm:$0xff]  ;;  %v2474_v24 = vld [vmem:[%s13399_s3 + $0x7c8] sm:$0xff] }
 0x406   :  { %5899 = vmatpush1.bf16.msra.mxu1 %v5898_v35  ;;  %v5914_v30 = vpack.c.bf16 %v2395_v29, %v2387_v27  ;;  %v2401_v35 = vld [vmem:[%s13399_s3 + $0x580] sm:$0xff]  ;;  %v2451_v2 = vld [vmem:[%s13399_s3 + $0x710] sm:$0xff]  ;;  %v2468_v27 = vld [vmem:[%s13399_s3 + $0x798] sm:$0xff] }
 0x407   :  { %5901 = vmatprep.subr.bf16.mxu1 %v5900_v45  ;;  %v5854_v39 = vpack.c.bf16 %v2409_v37, %v2401_v35  ;;  %v2426_v45 = vld [vmem:[%s13399_s3 + $0x648] sm:$0xff]  ;;  %v2459_v20 = vld [vmem:[%s13399_s3 + $0x750] sm:$0xff]  ;;  %v2476_v29 = vld [vmem:[%s13399_s3 + $0x7d8] sm:$0xff] }
 0x408   :  { %5835 = vmatpush1.bf16.msra.mxu0 %v5834_v32  ;;  %v2404_v32 = vld [vmem:[%s13399_s3 + $0x598] sm:$0xff]  ;;  %v5856_v48 = vpack.c.bf16 %v2426_v45, %v2418_v44  ;;  %v5932_v31 = vpack.c.bf16 %v2476_v29, %v2468_v27  ;;  %v2230_v37 = vld [vmem:[%s13399_s3 + $0x28] sm:$0xff] }
 0x409   :  { %5837 = vmatprep.subr.bf16.mxu0 %v5836_v40  ;;  %v5916_v38 = vpack.c.bf16 %v2412_v34, %v2404_v32  ;;  %v2403_v40 = vld [vmem:[%s13399_s3 + $0x590] sm:$0xff] }
 0x40a   :  { %5903 = vmatpush1.bf16.msra.mxu1 %v5902_v50  ;;  %v5918_v43 = vpack.c.bf16 %v2411_v41, %v2403_v40  ;;  %v2417_v50 = vld [vmem:[%s13399_s3 + $0x600] sm:$0xff]  ;;  %v2467_v32 = vld [vmem:[%s13399_s3 + $0x790] sm:$0xff]  ;;  %v2240_v41 = vld [vmem:[%s13399_s3 + $0x78] sm:$0xff] }
 0x40b   :  { %5905 = vmatprep.subr.bf16.mxu1 %v5904_v5  ;;  %v5858_v62 = vpack.c.bf16 %v2425_v51, %v2417_v50  ;;  %v2442_v5 = vld [vmem:[%s13399_s3 + $0x6c8] sm:$0xff] }
 0x40c   :  { %5839 = vmatpush1.bf16.msra.mxu0 %v5838_v46  ;;  %v2420_v46 = vld [vmem:[%s13399_s3 + $0x618] sm:$0xff]  ;;  %v5860_v53 = vpack.c.bf16 %v2442_v5, %v2434_v21 }
 0x40d   :  { %5841 = vmatprep.subr.bf16.mxu0 %v5840_v36  ;;  %v5920_v59 = vpack.c.bf16 %v2428_v49, %v2420_v46  ;;  %v2419_v36 = vld [vmem:[%s13399_s3 + $0x610] sm:$0xff] }
 0x40e   :  { %5907 = vmatpush1.bf16.msra.mxu1 %v5906_v42  ;;  %v5922_v1 = vpack.c.bf16 %v2427_v63, %v2419_v36  ;;  %v2433_v42 = vld [vmem:[%s13399_s3 + $0x680] sm:$0xff] }
 0x40f   :  { %5909 = vmatprep.subr.bf16.mxu1 %v5908_v54  ;;  %v5862_v11 = vpack.c.bf16 %v2441_v9, %v2433_v42  ;;  %v2458_v54 = vld [vmem:[%s13399_s3 + $0x748] sm:$0xff] }
 0x410   :  { %5843 = vmatpush1.bf16.msra.mxu0 %v5842_v6  ;;  %v2436_v6 = vld [vmem:[%s13399_s3 + $0x698] sm:$0xff]  ;;  %v5864_v16 = vpack.c.bf16 %v2458_v54, %v2450_v47 }
 0x411   :  { %5845 = vmatprep.subr.bf16.mxu0 %v5844_v12  ;;  %v5924_v10 = vpack.c.bf16 %v2444_v55, %v2436_v6  ;;  %v2435_v12 = vld [vmem:[%s13399_s3 + $0x690] sm:$0xff] }
 0x412   :  { %5911 = vmatpush1.bf16.msra.mxu1 %v5910_v17  ;;  %v5926_v14 = vpack.c.bf16 %v2443_v13, %v2435_v12 }
 0x413   :  { %5913 = vmatprep.subr.bf16.mxu1 %v5912_v25  ;;  %v5930_v25 = vpack.c.bf16 %v2459_v20, %v2451_v2 }
 0x414   :  { %5847 = vmatpush1.bf16.msra.mxu0 %v5846_v58  ;;  %v2452_v58 = vld [vmem:[%s13399_s3 + $0x718] sm:$0xff] }
 0x415   :  { %5849 = vmatprep.subr.bf16.mxu0 %v5848_v19  ;;  %v5928_v17 = vpack.c.bf16 %v2460_v15, %v2452_v58  ;;  %v5866_v19 = vpack.c.bf16 %v2457_v52, %v2449_v18 }
 0x416   :  { %5915 = vmatpush1.bf16.msra.mxu1 %v5914_v30  ;;  %v2465_v30 = vld [vmem:[%s13399_s3 + $0x780] sm:$0xff] }
 0x417   :  { %5917 = vmatprep.subr.bf16.mxu1 %v5916_v38  ;;  %v5870_v34 = vpack.c.bf16 %v2473_v23, %v2465_v30  ;;  %v2238_v38 = vld [vmem:[%s13399_s3 + $0x68] sm:$0xff] }
 0x418   :  { %5851 = vmatpush1.bf16.msra.mxu0 %v5850_v26  ;;  %v5868_v26 = vpack.c.bf16 %v2474_v24, %v2466_v22  ;;  %v5936_v40 = vpack.c.bf16 %v2238_v38, %v2230_v37  ;;  %v2239_v37 = vld [vmem:[%s13399_s3 + $0x70] sm:$0xff] }
 0x419   :  { %5853 = vmatprep.subr.bf16.mxu0 %v5852_v33  ;;  %v2475_v33 = vld [vmem:[%s13399_s3 + $0x7d0] sm:$0xff] }
 0x41a   :  { %5919 = vmatpush1.bf16.msra.mxu1 %v5918_v43  ;;  %v5934_v35 = vpack.c.bf16 %v2475_v33, %v2467_v32  ;;  %v2229_v33 = vld [vmem:[%s13399_s3 + $0x20] sm:$0xff] }
 0x41b   :  { %5921 = vmatprep.subr.bf16.mxu1 %v5920_v59 }
 0x41c   :  { %5855 = vmatpush1.bf16.msra.mxu0 %v5854_v39  ;;  %v2232_v39 = vld [vmem:[%s13399_s3 + $0x38] sm:$0xff] }
 0x41d   :  { %5857 = vmatprep.subr.bf16.mxu0 %v5856_v48  ;;  %v6000_v43 = vpack.c.bf16 %v2240_v41, %v2232_v39  ;;  %v2246_v39 = vld [vmem:[%s13399_s3 + $0xa8] sm:$0xff] }
 0x41e   :  { %5923 = vmatpush1.bf16.msra.mxu1 %v5922_v1  ;;  %v2254_v41 = vld [vmem:[%s13399_s3 + $0xe8] sm:$0xff] }
 0x41f   :  { %5925 = vmatprep.subr.bf16.mxu1 %v5924_v10 }
 0x420   :  { %5859 = vmatpush1.bf16.msra.mxu0 %v5858_v62 }
 0x421   :  { %5861 = vmatprep.subr.bf16.mxu0 %v5860_v53 }
 0x422   :  { %5927 = vmatpush1.bf16.msra.mxu1 %v5926_v14 }
 0x423   :  { %5929 = vmatprep.subr.bf16.mxu1 %v5928_v17 }
 0x424   :  { %5863 = vmatpush1.bf16.msra.mxu0 %v5862_v11 }
 0x425   :  { %5865 = vmatprep.subr.bf16.mxu0 %v5864_v16 }
 0x426   :  { %5931 = vmatpush1.bf16.msra.mxu1 %v5930_v25 }
 0x427   :  { %5933 = vmatprep.subr.bf16.mxu1 %v5932_v31 }
 0x428   :  { %5867 = vmatpush1.bf16.msra.mxu0 %v5866_v19 }
 0x429   :  { %5869 = vmatprep.subr.bf16.mxu0 %v5868_v26 }
 0x42a   :  { %5935 = vmatpush1.bf16.msra.mxu1 %v5934_v35  ;;  %v2237_v35 = vld [vmem:[%s13399_s3 + $0x60] sm:$0xff] }
 0x42b   :  { %6001 = vmatprep.subr.bf16.mxu1 %v6000_v43  ;;  %v2248_v43 = vld [vmem:[%s13399_s3 + $0xb8] sm:$0xff] }
 0x42c   :  { %5871 = vmatpush1.bf16.msra.mxu0 %v5870_v34 }
 0x42d   :  { %5937 = vmatprep.subr.bf16.mxu0 %v5936_v40 }
 0x480   :  { %v1946_v44 = vpop.f32.mrb[6].mxu0  ;;  %v2017_v45 = vpop.f32.mrb[6].mxu1 }
 0x481   :  { %v6964_v46 = vadd.f32 %v1946_v44, %v7943_v56  ;;  %v1948_v48 = vpop.f32.mrb[7].mxu0  ;;  %v2019_v49 = vpop.f32.mrb[7].mxu1  ;;  %v6978_v62 = vadd.f32 %v2017_v45, %v7960_v7  ;;  %v2256_v44 = vld [vmem:[%s13399_s3 + $0xf8] sm:$0xff] }
 0x482   :  { %v6965_v50 = vadd.f32 %v1948_v48, %v7947_v57  ;;  %v6979_v15 = vadd.f32 %v2019_v49, %v7954_v0  ;;  %v5938_v48 = vpack.c.bf16 %v2237_v35, %v2229_v33  ;;  %v2295_v35 = vld [vmem:[%s13399_s3 + $0x230] sm:$0xff] }
 0x483   :  { %v4946_v51 = vmul.f32 -1.442695, %v6964_v46 }
 0x484   :  { %v4947_v59 = vmul.f32 -1.442695, %v6965_v50  ;;  %v4948_v17 = vmul.f32 -1.442695, %v6979_v15  ;;  %v2245_v50 = vld [vmem:[%s13399_s3 + $0xa0] sm:$0xff]  ;;  %v2280_v15 = vld [vmem:[%s13399_s3 + $0x1b8] sm:$0xff] }
 0x485   :  { %7097 = vpow2.f32 %v4946_v51  ;;  %v2253_v51 = vld [vmem:[%s13399_s3 + $0xe0] sm:$0xff] }
 0x486   :  { %7099 = vpow2.f32 %v4947_v59 }
 0x487   :  { %7101 = vtanh.f32 %v6978_v62  ;;  %v2247_v62 = vld [vmem:[%s13399_s3 + $0xb0] sm:$0xff] }
 0x48f   :  { %v7098_v36 = vpop.eup %7097 }
 0x490   :  { %v7100_v63 = vpop.eup %7099  ;;  %v2204_v1 = vadd.f32 1.0, %v7098_v36  ;;  %v2255_v36 = vld [vmem:[%s13399_s3 + $0xf0] sm:$0xff] }
 0x491   :  { %v2210_v21 = vadd.f32 1.0, %v7100_v63  ;;  %v7102_v5 = vpop.eup %7101  ;;  %v2262_v63 = vld [vmem:[%s13399_s3 + $0x128] sm:$0xff] }
 0x492   :  { %7103 = vrcp.f32 %v2204_v1  ;;  %v5940_v1 = vpack.c.bf16 %v2254_v41, %v2246_v39  ;;  %v2312_v39 = vld [vmem:[%s13399_s3 + $0x2b8] sm:$0xff] }
 0x493   :  { %7105 = vrcp.f32 %v2210_v21  ;;  %v6004_v21 = vpack.c.bf16 %v2256_v44, %v2248_v43  ;;  %v2309_v44 = vld [vmem:[%s13399_s3 + $0x2a0] sm:$0xff] }
 0x49c   :  { %v7104_v6 = vpop.eup %7103 }
 0x49d   :  { %v7106_v53 = vpop.eup %7105  ;;  %v2221_v55 = vmul.f32 %v7104_v6, %v7102_v5  ;;  %v2270_v5 = vld [vmem:[%s13399_s3 + $0x168] sm:$0xff]  ;;  %v2264_v6 = vld [vmem:[%s13399_s3 + $0x138] sm:$0xff] }
 0x49e   :  { %v2220_v42 = vmul.f32 %v7106_v53, %v9557_v4  ;;  %v2272_v53 = vld [vmem:[%s13399_s3 + $0x178] sm:$0xff] }
 0x4a0   :  { %v10350_v9 = vadd.f32 %v2221_v55, %v2220_v42  ;;  %v5942_v55 = vpack.c.bf16 %v2253_v51, %v2245_v50  ;;  %v6006_v42 = vpack.c.bf16 %v2255_v36, %v2247_v62  ;;  %v2319_v50 = vld [vmem:[%s13399_s3 + $0x2f0] sm:$0xff]  ;;  %v2326_v51 = vld [vmem:[%s13399_s3 + $0x328] sm:$0xff]  ;;  %v2328_v36 = vld [vmem:[%s13399_s3 + $0x338] sm:$0xff] }
 0x4a1   :  { %v2334_v62 = vld [vmem:[%s13399_s3 + $0x368] sm:$0xff] }
 0x4c0   :  { %v2088_v10 = vpop.f32.mrb[20].mxu0  ;;  %v2159_v11 = vpop.f32.mrb[20].mxu1 }
 0x4c1   :  { %v2172_v12 = vadd.f32 %v2088_v10, %v8753_v60  ;;  %v2090_v13 = vpop.f32.mrb[21].mxu0  ;;  %v2161_v47 = vpop.f32.mrb[21].mxu1  ;;  %v2174_v18 = vadd.f32 %v2159_v11, %v8769_v3  ;;  %v2261_v10 = vld [vmem:[%s13399_s3 + $0x120] sm:$0xff] }
 0x4c2   :  { %v2173_v14 = vadd.f32 %v2090_v13, %v8757_v61  ;;  %v2175_v16 = vadd.f32 %v2161_v47, %v8763_v8  ;;  %v2269_v11 = vld [vmem:[%s13399_s3 + $0x160] sm:$0xff]  ;;  %v6008_v13 = vpack.c.bf16 %v2272_v53, %v2264_v6  ;;  %v2263_v47 = vld [vmem:[%s13399_s3 + $0x130] sm:$0xff]  ;;  %v5960_v53 = vpack.c.bf16 %v2334_v62, %v2326_v51 }
 0x4c3   :  { %v4943_v54 = vmul.f32 -1.442695, %v2172_v12  ;;  %v5944_v12 = vpack.c.bf16 %v2270_v5, %v2262_v63  ;;  %v2336_v63 = vld [vmem:[%s13399_s3 + $0x378] sm:$0xff]  ;;  %v2325_v5 = vld [vmem:[%s13399_s3 + $0x320] sm:$0xff] }
 0x4c4   :  { %v4944_v58 = vmul.f32 -1.442695, %v2173_v14  ;;  %v4945_v4 = vmul.f32 -1.442695, %v2175_v16  ;;  %v2271_v14 = vld [vmem:[%s13399_s3 + $0x170] sm:$0xff]  ;;  %v2288_v16 = vld [vmem:[%s13399_s3 + $0x1f8] sm:$0xff] }
 0x4c5   :  { %7107 = vpow2.f32 %v4943_v54  ;;  %v2278_v54 = vld [vmem:[%s13399_s3 + $0x1a8] sm:$0xff]  ;;  %v2333_v6 = vld [vmem:[%s13399_s3 + $0x360] sm:$0xff] }
 0x4c6   :  { %7109 = vpow2.f32 %v4944_v58  ;;  %v2286_v58 = vld [vmem:[%s13399_s3 + $0x1e8] sm:$0xff]  ;;  %v2389_v62 = vld [vmem:[%s13399_s3 + $0x520] sm:$0xff] }
 0x4c7   :  { %7111 = vpow2.f32 %v4948_v17  ;;  %v5946_v17 = vpack.c.bf16 %v2269_v11, %v2261_v10  ;;  %v2335_v10 = vld [vmem:[%s13399_s3 + $0x370] sm:$0xff]  ;;  %v2342_v11 = vld [vmem:[%s13399_s3 + $0x3a8] sm:$0xff] }
 0x4c8   :  { %7113 = vpow2.f32 %v4945_v4  ;;  %v6010_v4 = vpack.c.bf16 %v2271_v14, %v2263_v47  ;;  %v2352_v47 = vld [vmem:[%s13399_s3 + $0x3f8] sm:$0xff]  ;;  %v5962_v14 = vpack.c.bf16 %v2333_v6, %v2325_v5  ;;  %v2399_v5 = vld [vmem:[%s13399_s3 + $0x570] sm:$0xff]  ;;  %v2406_v6 = vld [vmem:[%s13399_s3 + $0x5a8] sm:$0xff] }
 0x4c9   :  { %7115 = vtanh.f32 %v2174_v18  ;;  %v2277_v18 = vld [vmem:[%s13399_s3 + $0x1a0] sm:$0xff] }
 0x4cf   :  { %v7108_v52 = vpop.eup %7107 }
 0x4d0   :  { %v7110_v2 = vpop.eup %7109  ;;  %v2179_v19 = vadd.f32 1.0, %v7108_v52  ;;  %v2285_v52 = vld [vmem:[%s13399_s3 + $0x1e0] sm:$0xff] }
 0x4d1   :  { %v2185_v20 = vadd.f32 1.0, %v7110_v2  ;;  %v7112_v22 = vpop.eup %7111  ;;  %v5948_v2 = vpack.c.bf16 %v2286_v58, %v2278_v54  ;;  %v2341_v58 = vld [vmem:[%s13399_s3 + $0x3a0] sm:$0xff] }
 0x4d2   :  { %7117 = vrcp.f32 %v2179_v19  ;;  %v7114_v24 = vpop.eup %7113  ;;  %v2217_v23 = vadd.f32 1.0, %v7112_v22  ;;  %v6012_v19 = vpack.c.bf16 %v2288_v16, %v2280_v15  ;;  %v2287_v22 = vld [vmem:[%s13399_s3 + $0x1f0] sm:$0xff]  ;;  %v2349_v15 = vld [vmem:[%s13399_s3 + $0x3e0] sm:$0xff] }
 0x4d3   :  { %7119 = vrcp.f32 %v2185_v20  ;;  %v7116_v25 = vpop.eup %7115  ;;  %v2192_v30 = vadd.f32 1.0, %v7114_v24  ;;  %v2279_v20 = vld [vmem:[%s13399_s3 + $0x1b0] sm:$0xff]  ;;  %v2294_v24 = vld [vmem:[%s13399_s3 + $0x228] sm:$0xff] }
 0x4d4   :  { %7121 = vtanh.f32 %v10350_v9 }
 0x4d5   :  { %7123 = vrcp.f32 %v2192_v30  ;;  %v6014_v30 = vpack.c.bf16 %v2287_v22, %v2279_v20  ;;  %v2368_v20 = vld [vmem:[%s13399_s3 + $0x478] sm:$0xff]  ;;  %v5966_v22 = vpack.c.bf16 %v2349_v15, %v2341_v58  ;;  %v2415_v58 = vld [vmem:[%s13399_s3 + $0x5f0] sm:$0xff]  ;;  %v2422_v15 = vld [vmem:[%s13399_s3 + $0x628] sm:$0xff] }
 0x4dc   :  { %v7118_v26 = vpop.eup %7117 }
 0x4dd   :  { %v7120_v27 = vpop.eup %7119  ;;  %v2196_v29 = vmul.f32 %v7118_v26, %v7116_v25  ;;  %v2302_v25 = vld [vmem:[%s13399_s3 + $0x268] sm:$0xff]  ;;  %v2296_v26 = vld [vmem:[%s13399_s3 + $0x238] sm:$0xff] }
 0x4de   :  { %v2195_v31 = vmul.f32 %v7120_v27, %v9565_v28  ;;  %v7122_v34 = vpop.eup %7121  ;;  %v2231_v28 = vld [vmem:[%s13399_s3 + $0x30] sm:$0xff]  ;;  %v2304_v27 = vld [vmem:[%s13399_s3 + $0x278] sm:$0xff]  ;;  %v5952_v33 = vpack.c.bf16 %v2302_v25, %v2294_v24  ;;  %v2357_v25 = vld [vmem:[%s13399_s3 + $0x420] sm:$0xff] }
 0x4df   :  { %v7124_v38 = vpop.eup %7123  ;;  %v6002_v49 = vpack.c.bf16 %v2239_v37, %v2231_v28  ;;  %v2303_v28 = vld [vmem:[%s13399_s3 + $0x270] sm:$0xff]  ;;  %v2310_v37 = vld [vmem:[%s13399_s3 + $0x2a8] sm:$0xff] }
 0x4e0   :  { %v10358_v32 = vadd.f32 %v2196_v29, %v2195_v31  ;;  %v5950_v29 = vpack.c.bf16 %v2285_v52, %v2277_v18  ;;  %v2293_v31 = vld [vmem:[%s13399_s3 + $0x220] sm:$0xff]  ;;  %v6018_v43 = vpack.c.bf16 %v2303_v28, %v2295_v35  ;;  %v2351_v18 = vld [vmem:[%s13399_s3 + $0x3f0] sm:$0xff]  ;;  %v2358_v52 = vld [vmem:[%s13399_s3 + $0x428] sm:$0xff] }
 0x4e1   :  { %v2384_v35 = vld [vmem:[%s13399_s3 + $0x4f8] sm:$0xff] }
 0x4e2   :  { %7125 = vtanh.f32 %v10358_v32 }
 0x4e3   :  { %7127 = vrcp.f32 %v2217_v23  ;;  %v2301_v23 = vld [vmem:[%s13399_s3 + $0x260] sm:$0xff] }
 0x4e4   :  { %v5954_v41 = vpack.c.bf16 %v2301_v23, %v2293_v31  ;;  %v2367_v31 = vld [vmem:[%s13399_s3 + $0x470] sm:$0xff]  ;;  %v2374_v23 = vld [vmem:[%s13399_s3 + $0x4a8] sm:$0xff] }
 0x4ec   :  { %v7126_v40 = vpop.eup %7125 }
 0x4ed   :  { %v7128_v45 = vpop.eup %7127  ;;  %v2199_v46 = vmul.f32 %v7126_v40, %v7124_v38  ;;  %v2318_v38 = vld [vmem:[%s13399_s3 + $0x2e8] sm:$0xff]  ;;  %v2320_v40 = vld [vmem:[%s13399_s3 + $0x2f8] sm:$0xff] }
 0x4ee   :  { %v10392_v59 = vmul.f32 %v7128_v45, %v7122_v34  ;;  %v6016_v34 = vpack.c.bf16 %v2304_v27, %v2296_v26  ;;  %v2317_v45 = vld [vmem:[%s13399_s3 + $0x2e0] sm:$0xff] }
 0x4ef   :  { %2200 = vst [vmem:[%s13403_s5 + $0x10] sm:$0xff] %v2199_v46  ;;  %2545 = vmatprep.mubr.f32.mxu0 %v2199_v46  ;;  %2616 = vmatprep.mubr.f32.mxu1 %v2199_v46  ;;  %v2365_v26 = vld [vmem:[%s13399_s3 + $0x460] sm:$0xff] }
 0x4f0   :  { %2546 = vmatmul.mubr.f32.vlgmr.msra.gmra.mrb[8].mxu0 %v10392_v59  ;;  %2617 = vmatmul.mubr.f32.vlgmr.msra.gmra.mrb[8].mxu1 %v10392_v59  ;;  %v5970_v28 = vpack.c.bf16 %v2365_v26, %v2357_v25  ;;  %v2431_v25 = vld [vmem:[%s13399_s3 + $0x670] sm:$0xff]  ;;  %v2438_v26 = vld [vmem:[%s13399_s3 + $0x6a8] sm:$0xff] }
 0x4f1   :  { %5939 = vmatpush1.bf16.msra.mxu0 %v5938_v48  ;;  %6003 = vmatpush1.bf16.msra.mxu1 %v6002_v49  ;;  %v6020_v48 = vpack.c.bf16 %v2320_v40, %v2312_v39  ;;  %v2311_v49 = vld [vmem:[%s13399_s3 + $0x2b0] sm:$0xff]  ;;  %v2381_v39 = vld [vmem:[%s13399_s3 + $0x4e0] sm:$0xff] }
 0x4f2   :  { %2687 = vmatprep.mubr.f32.mxu0 %v2199_v46  ;;  %2758 = vmatprep.mubr.f32.mxu1 %v2199_v46  ;;  %v5956_v46 = vpack.c.bf16 %v2318_v38, %v2310_v37  ;;  %v2373_v38 = vld [vmem:[%s13399_s3 + $0x4a0] sm:$0xff] }
 0x4f3   :  { %5941 = vmatprep.subr.bf16.mxu0 %v5940_v1  ;;  %6005 = vmatprep.subr.bf16.mxu1 %v6004_v21  ;;  %v5958_v1 = vpack.c.bf16 %v2317_v45, %v2309_v44  ;;  %v6022_v21 = vpack.c.bf16 %v2319_v50, %v2311_v49  ;;  %v2383_v44 = vld [vmem:[%s13399_s3 + $0x4f0] sm:$0xff]  ;;  %v2390_v45 = vld [vmem:[%s13399_s3 + $0x528] sm:$0xff]  ;;  %v2400_v49 = vld [vmem:[%s13399_s3 + $0x578] sm:$0xff]  ;;  %v5974_v50 = vpack.c.bf16 %v2381_v39, %v2373_v38 }
 0x4f4   :  { %v2447_v38 = vld [vmem:[%s13399_s3 + $0x6f0] sm:$0xff]  ;;  %v2454_v39 = vld [vmem:[%s13399_s3 + $0x728] sm:$0xff] }
 0x4f5   :  { %5943 = vmatpush1.bf16.msra.mxu0 %v5942_v55  ;;  %6007 = vmatpush1.bf16.msra.mxu1 %v6006_v42  ;;  %v6024_v55 = vpack.c.bf16 %v2336_v63, %v2328_v36  ;;  %v2327_v42 = vld [vmem:[%s13399_s3 + $0x330] sm:$0xff]  ;;  %v2397_v36 = vld [vmem:[%s13399_s3 + $0x560] sm:$0xff] }
 0x4f6   :  { %5945 = vmatprep.subr.bf16.mxu0 %v5944_v12  ;;  %6009 = vmatprep.subr.bf16.mxu1 %v6008_v13  ;;  %v2350_v12 = vld [vmem:[%s13399_s3 + $0x3e8] sm:$0xff]  ;;  %v2344_v13 = vld [vmem:[%s13399_s3 + $0x3b8] sm:$0xff]  ;;  %v6026_v54 = vpack.c.bf16 %v2335_v10, %v2327_v42  ;;  %v5978_v10 = vpack.c.bf16 %v2397_v36, %v2389_v62  ;;  %v2463_v62 = vld [vmem:[%s13399_s3 + $0x770] sm:$0xff] }
 0x4f7   :  { %v5964_v16 = vpack.c.bf16 %v2350_v12, %v2342_v11  ;;  %v2416_v42 = vld [vmem:[%s13399_s3 + $0x5f8] sm:$0xff]  ;;  %v2405_v12 = vld [vmem:[%s13399_s3 + $0x5a0] sm:$0xff]  ;;  %v2470_v36 = vld [vmem:[%s13399_s3 + $0x7a8] sm:$0xff] }
 0x4f9   :  { %5947 = vmatpush1.bf16.msra.mxu0 %v5946_v17  ;;  %6011 = vmatpush1.bf16.msra.mxu1 %v6010_v4  ;;  %v6028_v17 = vpack.c.bf16 %v2352_v47, %v2344_v13  ;;  %v2343_v4 = vld [vmem:[%s13399_s3 + $0x3b0] sm:$0xff]  ;;  %v2413_v13 = vld [vmem:[%s13399_s3 + $0x5e0] sm:$0xff] }
 0x4fa   :  { %5949 = vmatprep.subr.bf16.mxu0 %v5948_v2  ;;  %6013 = vmatprep.subr.bf16.mxu1 %v6012_v19  ;;  %v2366_v2 = vld [vmem:[%s13399_s3 + $0x468] sm:$0xff]  ;;  %v2360_v19 = vld [vmem:[%s13399_s3 + $0x438] sm:$0xff]  ;;  %v6030_v24 = vpack.c.bf16 %v2351_v18, %v2343_v4  ;;  %v5982_v18 = vpack.c.bf16 %v2413_v13, %v2405_v12  ;;  %v2479_v12 = vld [vmem:[%s13399_s3 + $0x7f0] sm:$0xff] }
 0x4fb   :  { %v5968_v27 = vpack.c.bf16 %v2366_v2, %v2358_v52  ;;  %v2432_v4 = vld [vmem:[%s13399_s3 + $0x678] sm:$0xff]  ;;  %v2421_v2 = vld [vmem:[%s13399_s3 + $0x620] sm:$0xff] }
 0x4fd   :  { %5951 = vmatpush1.bf16.msra.mxu0 %v5950_v29  ;;  %6015 = vmatpush1.bf16.msra.mxu1 %v6014_v30  ;;  %v6032_v29 = vpack.c.bf16 %v2368_v20, %v2360_v19  ;;  %v2359_v30 = vld [vmem:[%s13399_s3 + $0x430] sm:$0xff]  ;;  %v2429_v19 = vld [vmem:[%s13399_s3 + $0x660] sm:$0xff] }
 0x4fe   :  { %5953 = vmatprep.subr.bf16.mxu0 %v5952_v33  ;;  %6017 = vmatprep.subr.bf16.mxu1 %v6016_v34  ;;  %v2382_v33 = vld [vmem:[%s13399_s3 + $0x4e8] sm:$0xff]  ;;  %v2376_v34 = vld [vmem:[%s13399_s3 + $0x4b8] sm:$0xff]  ;;  %v6034_v37 = vpack.c.bf16 %v2367_v31, %v2359_v30  ;;  %v5986_v31 = vpack.c.bf16 %v2429_v19, %v2421_v2  ;;  %v2836_v2 = vld [vmem:[%s13399_s3 + $0x50] sm:$0xff] }
 0x4ff   :  { %v5972_v40 = vpack.c.bf16 %v2382_v33, %v2374_v23  ;;  %v2448_v30 = vld [vmem:[%s13399_s3 + $0x6f8] sm:$0xff]  ;;  %v2437_v33 = vld [vmem:[%s13399_s3 + $0x6a0] sm:$0xff]  ;;  %v2843_v19 = vld [vmem:[%s13399_s3 + $0x88] sm:$0xff] }
 0x501   :  { %5955 = vmatpush1.bf16.msra.mxu0 %v5954_v41  ;;  %6019 = vmatpush1.bf16.msra.mxu1 %v6018_v43  ;;  %v6036_v41 = vpack.c.bf16 %v2384_v35, %v2376_v34  ;;  %v2375_v43 = vld [vmem:[%s13399_s3 + $0x4b0] sm:$0xff]  ;;  %v2445_v34 = vld [vmem:[%s13399_s3 + $0x6e0] sm:$0xff] }
 0x502   :  { %5957 = vmatprep.subr.bf16.mxu0 %v5956_v46  ;;  %6021 = vmatprep.subr.bf16.mxu1 %v6020_v48  ;;  %v2398_v46 = vld [vmem:[%s13399_s3 + $0x568] sm:$0xff]  ;;  %v2392_v48 = vld [vmem:[%s13399_s3 + $0x538] sm:$0xff]  ;;  %v6038_v51 = vpack.c.bf16 %v2383_v44, %v2375_v43  ;;  %v5990_v44 = vpack.c.bf16 %v2445_v34, %v2437_v33  ;;  %v2852_v33 = vld [vmem:[%s13399_s3 + $0xd0] sm:$0xff] }
 0x503   :  { %v5976_v63 = vpack.c.bf16 %v2398_v46, %v2390_v45  ;;  %v2464_v43 = vld [vmem:[%s13399_s3 + $0x778] sm:$0xff]  ;;  %v2453_v46 = vld [vmem:[%s13399_s3 + $0x720] sm:$0xff]  ;;  %v2859_v34 = vld [vmem:[%s13399_s3 + $0x108] sm:$0xff] }
 0x505   :  { %5959 = vmatpush1.bf16.msra.mxu0 %v5958_v1  ;;  %6023 = vmatpush1.bf16.msra.mxu1 %v6022_v21  ;;  %v6040_v1 = vpack.c.bf16 %v2400_v49, %v2392_v48  ;;  %v2391_v21 = vld [vmem:[%s13399_s3 + $0x530] sm:$0xff]  ;;  %v2461_v48 = vld [vmem:[%s13399_s3 + $0x760] sm:$0xff] }
 0x506   :  { %5961 = vmatprep.subr.bf16.mxu0 %v5960_v53  ;;  %6025 = vmatprep.subr.bf16.mxu1 %v6024_v55  ;;  %v2414_v53 = vld [vmem:[%s13399_s3 + $0x5e8] sm:$0xff]  ;;  %v2408_v55 = vld [vmem:[%s13399_s3 + $0x5b8] sm:$0xff]  ;;  %v6042_v11 = vpack.c.bf16 %v2399_v5, %v2391_v21  ;;  %v5994_v5 = vpack.c.bf16 %v2461_v48, %v2453_v46 }
 0x507   :  { %v5980_v47 = vpack.c.bf16 %v2414_v53, %v2406_v6  ;;  %v2480_v21 = vld [vmem:[%s13399_s3 + $0x7f8] sm:$0xff]  ;;  %v2469_v53 = vld [vmem:[%s13399_s3 + $0x7a0] sm:$0xff]  ;;  %v2875_v48 = vld [vmem:[%s13399_s3 + $0x188] sm:$0xff] }
 0x509   :  { %5963 = vmatpush1.bf16.msra.mxu0 %v5962_v14  ;;  %6027 = vmatpush1.bf16.msra.mxu1 %v6026_v54  ;;  %v6044_v14 = vpack.c.bf16 %v2416_v42, %v2408_v55  ;;  %v2407_v54 = vld [vmem:[%s13399_s3 + $0x5b0] sm:$0xff] }
 0x50a   :  { %5965 = vmatprep.subr.bf16.mxu0 %v5964_v16  ;;  %6029 = vmatprep.subr.bf16.mxu1 %v6028_v17  ;;  %v2430_v16 = vld [vmem:[%s13399_s3 + $0x668] sm:$0xff]  ;;  %v2424_v17 = vld [vmem:[%s13399_s3 + $0x638] sm:$0xff]  ;;  %v6046_v52 = vpack.c.bf16 %v2415_v58, %v2407_v54 }
 0x50b   :  { %v5984_v20 = vpack.c.bf16 %v2430_v16, %v2422_v15  ;;  %v2835_v54 = vld [vmem:[%s13399_s3 + $0x48] sm:$0xff]  ;;  %v2829_v58 = vld [vmem:[%s13399_s3 + $0x18] sm:$0xff] }
 0x50c   :  { %v2837_v16 = vld [vmem:[%s13399_s3 + $0x58] sm:$0xff] }
 0x50d   :  { %5967 = vmatpush1.bf16.msra.mxu0 %v5966_v22  ;;  %6031 = vmatpush1.bf16.msra.mxu1 %v6030_v24  ;;  %v6048_v22 = vpack.c.bf16 %v2432_v4, %v2424_v17  ;;  %v2423_v24 = vld [vmem:[%s13399_s3 + $0x630] sm:$0xff]  ;;  %v2834_v17 = vld [vmem:[%s13399_s3 + $0x40] sm:$0xff]  ;;  %v6128_v4 = vpack.c.bf16 %v2837_v16, %v2829_v58 }
 0x50e   :  { %5969 = vmatprep.subr.bf16.mxu0 %v5968_v27  ;;  %6033 = vmatprep.subr.bf16.mxu1 %v6032_v29  ;;  %v2446_v27 = vld [vmem:[%s13399_s3 + $0x6e8] sm:$0xff]  ;;  %v2440_v29 = vld [vmem:[%s13399_s3 + $0x6b8] sm:$0xff]  ;;  %v6050_v23 = vpack.c.bf16 %v2431_v25, %v2423_v24  ;;  %v2892_v58 = vld [vmem:[%s13399_s3 + $0x210] sm:$0xff] }
 0x50f   :  { %v5988_v35 = vpack.c.bf16 %v2446_v27, %v2438_v26  ;;  %v2845_v24 = vld [vmem:[%s13399_s3 + $0x98] sm:$0xff]  ;;  %v2900_v16 = vld [vmem:[%s13399_s3 + $0x250] sm:$0xff] }
 0x510   :  { %v2853_v25 = vld [vmem:[%s13399_s3 + $0xd8] sm:$0xff] }
 0x511   :  { %5971 = vmatpush1.bf16.msra.mxu0 %v5970_v28  ;;  %6035 = vmatpush1.bf16.msra.mxu1 %v6034_v37  ;;  %v6052_v28 = vpack.c.bf16 %v2448_v30, %v2440_v29  ;;  %v2439_v37 = vld [vmem:[%s13399_s3 + $0x6b0] sm:$0xff]  ;;  %v6132_v27 = vpack.c.bf16 %v2853_v25, %v2845_v24  ;;  %v2842_v29 = vld [vmem:[%s13399_s3 + $0x80] sm:$0xff] }
 0x512   :  { %5973 = vmatprep.subr.bf16.mxu0 %v5972_v40  ;;  %6037 = vmatprep.subr.bf16.mxu1 %v6036_v41  ;;  %v2462_v40 = vld [vmem:[%s13399_s3 + $0x768] sm:$0xff]  ;;  %v2456_v41 = vld [vmem:[%s13399_s3 + $0x738] sm:$0xff]  ;;  %v6054_v45 = vpack.c.bf16 %v2447_v38, %v2439_v37  ;;  %v2850_v30 = vld [vmem:[%s13399_s3 + $0xc0] sm:$0xff] }
 0x513   :  { %v5992_v49 = vpack.c.bf16 %v2462_v40, %v2454_v39  ;;  %v2861_v38 = vld [vmem:[%s13399_s3 + $0x118] sm:$0xff]  ;;  %v2858_v40 = vld [vmem:[%s13399_s3 + $0x100] sm:$0xff]  ;;  %v2908_v25 = vld [vmem:[%s13399_s3 + $0x290] sm:$0xff] }
 0x514   :  { %v2869_v39 = vld [vmem:[%s13399_s3 + $0x158] sm:$0xff] }
 0x515   :  { %5975 = vmatpush1.bf16.msra.mxu0 %v5974_v50  ;;  %6039 = vmatpush1.bf16.msra.mxu1 %v6038_v51  ;;  %v6056_v50 = vpack.c.bf16 %v2464_v43, %v2456_v41  ;;  %v2455_v51 = vld [vmem:[%s13399_s3 + $0x730] sm:$0xff]  ;;  %v6136_v41 = vpack.c.bf16 %v2869_v39, %v2861_v38  ;;  %v2866_v43 = vld [vmem:[%s13399_s3 + $0x140] sm:$0xff] }
 0x516   :  { %5977 = vmatprep.subr.bf16.mxu0 %v5976_v63  ;;  %6041 = vmatprep.subr.bf16.mxu1 %v6040_v1  ;;  %v2478_v63 = vld [vmem:[%s13399_s3 + $0x7e8] sm:$0xff]  ;;  %v2472_v1 = vld [vmem:[%s13399_s3 + $0x7b8] sm:$0xff]  ;;  %v6058_v6 = vpack.c.bf16 %v2463_v62, %v2455_v51  ;;  %v6074_v46 = vpack.c.bf16 %v2866_v43, %v2858_v40  ;;  %v2924_v38 = vld [vmem:[%s13399_s3 + $0x310] sm:$0xff] }
 0x517   :  { %v5996_v55 = vpack.c.bf16 %v2478_v63, %v2470_v36  ;;  %v6060_v42 = vpack.c.bf16 %v2480_v21, %v2472_v1  ;;  %v2885_v36 = vld [vmem:[%s13399_s3 + $0x1d8] sm:$0xff]  ;;  %v2874_v63 = vld [vmem:[%s13399_s3 + $0x180] sm:$0xff]  ;;  %v2932_v39 = vld [vmem:[%s13399_s3 + $0x350] sm:$0xff] }
 0x518   :  { %v2882_v1 = vld [vmem:[%s13399_s3 + $0x1c0] sm:$0xff]  ;;  %v6154_v40 = vpack.c.bf16 %v2932_v39, %v2924_v38  ;;  %v2947_v43 = vld [vmem:[%s13399_s3 + $0x3c8] sm:$0xff]  ;;  %v3013_v39 = vld [vmem:[%s13399_s3 + $0x5d8] sm:$0xff] }
 0x519   :  { %5979 = vmatpush1.bf16.msra.mxu0 %v5978_v10  ;;  %6043 = vmatpush1.bf16.msra.mxu1 %v6042_v11  ;;  %v2477_v10 = vld [vmem:[%s13399_s3 + $0x7e0] sm:$0xff]  ;;  %v2471_v11 = vld [vmem:[%s13399_s3 + $0x7b0] sm:$0xff] }
 0x51a   :  { %5981 = vmatprep.subr.bf16.mxu0 %v5980_v47  ;;  %6045 = vmatprep.subr.bf16.mxu1 %v6044_v14  ;;  %v5998_v13 = vpack.c.bf16 %v2477_v10, %v2469_v53  ;;  %v6062_v47 = vpack.c.bf16 %v2479_v12, %v2471_v11  ;;  %v2827_v14 = vld [vmem:[%s13399_s3 + $0x8] sm:$0xff]  ;;  %v2901_v10 = vld [vmem:[%s13399_s3 + $0x258] sm:$0xff]  ;;  %v6078_v11 = vpack.c.bf16 %v2882_v1, %v2874_v63 }
 0x51b   :  { %v6064_v15 = vpack.c.bf16 %v2835_v54, %v2827_v14  ;;  %v2891_v53 = vld [vmem:[%s13399_s3 + $0x208] sm:$0xff]  ;;  %v2890_v14 = vld [vmem:[%s13399_s3 + $0x200] sm:$0xff] }
 0x51c   :  { %v2898_v54 = vld [vmem:[%s13399_s3 + $0x240] sm:$0xff]  ;;  %v2955_v1 = vld [vmem:[%s13399_s3 + $0x408] sm:$0xff] }
 0x51d   :  { %5983 = vmatpush1.bf16.msra.mxu0 %v5982_v18  ;;  %6047 = vmatpush1.bf16.msra.mxu1 %v6046_v52  ;;  %v2828_v52 = vld [vmem:[%s13399_s3 + $0x10] sm:$0xff] }
 0x51e   :  { %5985 = vmatprep.subr.bf16.mxu0 %v5984_v20  ;;  %6049 = vmatprep.subr.bf16.mxu1 %v6048_v22  ;;  %v6130_v20 = vpack.c.bf16 %v2836_v2, %v2828_v52  ;;  %v2851_v22 = vld [vmem:[%s13399_s3 + $0xc8] sm:$0xff]  ;;  %v2917_v2 = vld [vmem:[%s13399_s3 + $0x2d8] sm:$0xff] }
 0x51f   :  { %v6068_v26 = vpack.c.bf16 %v2851_v22, %v2843_v19  ;;  %v2906_v19 = vld [vmem:[%s13399_s3 + $0x280] sm:$0xff] }
 0x521   :  { %5987 = vmatpush1.bf16.msra.mxu0 %v5986_v31  ;;  %6051 = vmatpush1.bf16.msra.mxu1 %v6050_v23  ;;  %v2844_v31 = vld [vmem:[%s13399_s3 + $0x90] sm:$0xff]  ;;  %v6070_v23 = vpack.c.bf16 %v2850_v30, %v2842_v29  ;;  %v2923_v29 = vld [vmem:[%s13399_s3 + $0x308] sm:$0xff] }
 0x522   :  { %5989 = vmatprep.subr.bf16.mxu0 %v5988_v35  ;;  %6053 = vmatprep.subr.bf16.mxu1 %v6052_v28  ;;  %v2867_v35 = vld [vmem:[%s13399_s3 + $0x148] sm:$0xff]  ;;  %v6134_v28 = vpack.c.bf16 %v2852_v33, %v2844_v31  ;;  %v2925_v31 = vld [vmem:[%s13399_s3 + $0x318] sm:$0xff] }
 0x523   :  { %v6072_v37 = vpack.c.bf16 %v2867_v35, %v2859_v34  ;;  %v2931_v30 = vld [vmem:[%s13399_s3 + $0x348] sm:$0xff]  ;;  %v2933_v33 = vld [vmem:[%s13399_s3 + $0x358] sm:$0xff]  ;;  %v2922_v34 = vld [vmem:[%s13399_s3 + $0x300] sm:$0xff] }
 0x524   :  { %v2930_v35 = vld [vmem:[%s13399_s3 + $0x340] sm:$0xff] }
 0x525   :  { %5991 = vmatpush1.bf16.msra.mxu0 %v5990_v44  ;;  %6055 = vmatpush1.bf16.msra.mxu1 %v6054_v45  ;;  %v2860_v44 = vld [vmem:[%s13399_s3 + $0x110] sm:$0xff] }
 0x526   :  { %5993 = vmatprep.subr.bf16.mxu0 %v5992_v49  ;;  %6057 = vmatprep.subr.bf16.mxu1 %v6056_v50  ;;  %v2868_v45 = vld [vmem:[%s13399_s3 + $0x150] sm:$0xff]  ;;  %v2883_v49 = vld [vmem:[%s13399_s3 + $0x1c8] sm:$0xff]  ;;  %v2877_v50 = vld [vmem:[%s13399_s3 + $0x198] sm:$0xff] }
 0x527   :  { %v6138_v51 = vpack.c.bf16 %v2868_v45, %v2860_v44  ;;  %v6076_v62 = vpack.c.bf16 %v2883_v49, %v2875_v48  ;;  %v6140_v21 = vpack.c.bf16 %v2885_v36, %v2877_v50  ;;  %v2941_v44 = vld [vmem:[%s13399_s3 + $0x398] sm:$0xff]  ;;  %v2938_v48 = vld [vmem:[%s13399_s3 + $0x380] sm:$0xff]  ;;  %v2948_v36 = vld [vmem:[%s13399_s3 + $0x3d0] sm:$0xff] }
 0x528   :  { %v2946_v49 = vld [vmem:[%s13399_s3 + $0x3c0] sm:$0xff] }
 0x529   :  { %5995 = vmatpush1.bf16.msra.mxu0 %v5994_v5  ;;  %6059 = vmatpush1.bf16.msra.mxu1 %v6058_v6  ;;  %v2876_v5 = vld [vmem:[%s13399_s3 + $0x190] sm:$0xff] }
 0x52a   :  { %5997 = vmatprep.subr.bf16.mxu0 %v5996_v55  ;;  %6061 = vmatprep.subr.bf16.mxu1 %v6060_v42  ;;  %v2884_v6 = vld [vmem:[%s13399_s3 + $0x1d0] sm:$0xff]  ;;  %v2899_v55 = vld [vmem:[%s13399_s3 + $0x248] sm:$0xff]  ;;  %v2893_v42 = vld [vmem:[%s13399_s3 + $0x218] sm:$0xff] }
 0x52b   :  { %v6142_v12 = vpack.c.bf16 %v2884_v6, %v2876_v5  ;;  %v2957_v5 = vld [vmem:[%s13399_s3 + $0x418] sm:$0xff] }
 0x52d   :  { %5999 = vmatpush1.bf16.msra.mxu0 %v5998_v13  ;;  %6063 = vmatpush1.bf16.msra.mxu1 %v6062_v47  ;;  %v6080_v13 = vpack.c.bf16 %v2899_v55, %v2891_v53  ;;  %v6144_v47 = vpack.c.bf16 %v2901_v10, %v2893_v42  ;;  %v2965_v53 = vld [vmem:[%s13399_s3 + $0x458] sm:$0xff]  ;;  %v2954_v55 = vld [vmem:[%s13399_s3 + $0x400] sm:$0xff] }
 0x52e   :  { %6065 = vmatprep.subr.bf16.mxu0 %v6064_v15  ;;  %6129 = vmatprep.subr.bf16.mxu1 %v6128_v4  ;;  %v6082_v15 = vpack.c.bf16 %v2898_v54, %v2890_v14  ;;  %v2915_v4 = vld [vmem:[%s13399_s3 + $0x2c8] sm:$0xff]  ;;  %v2962_v42 = vld [vmem:[%s13399_s3 + $0x440] sm:$0xff]  ;;  %v6160_v10 = vpack.c.bf16 %v2965_v53, %v2957_v5  ;;  %v3028_v53 = vld [vmem:[%s13399_s3 + $0x650] sm:$0xff] }
 0x52f   :  { %v2971_v14 = vld [vmem:[%s13399_s3 + $0x488] sm:$0xff] }
 0x530   :  { %2688 = vmatmul.mubr.f32.vlgmr.msra.gmra.mrb[22].mxu0 %v10392_v59  ;;  %2759 = vmatmul.mubr.f32.vlgmr.msra.gmra.mrb[22].mxu1 %v10392_v59  ;;  %v2826_v59 = vld [vmem:[%s13399_s3] sm:$0xff]  ;;  %v2979_v54 = vld [vmem:[%s13399_s3 + $0x4c8] sm:$0xff] }
 0x531   :  { %v6066_v18 = vpack.c.bf16 %v2834_v17, %v2826_v59  ;;  %6131 = vmatpush1.bf16.msra.mxu1 %v6130_v20  ;;  %v6146_v59 = vpack.c.bf16 %v2900_v16, %v2892_v58  ;;  %v2907_v17 = vld [vmem:[%s13399_s3 + $0x288] sm:$0xff]  ;;  %v2914_v20 = vld [vmem:[%s13399_s3 + $0x2c0] sm:$0xff]  ;;  %v2973_v58 = vld [vmem:[%s13399_s3 + $0x498] sm:$0xff] }
 0x532   :  { %6133 = vmatprep.subr.bf16.mxu1 %v6132_v27  ;;  %v6084_v52 = vpack.c.bf16 %v2915_v4, %v2907_v17  ;;  %v6086_v24 = vpack.c.bf16 %v2914_v20, %v2906_v19  ;;  %v2981_v16 = vld [vmem:[%s13399_s3 + $0x4d8] sm:$0xff]  ;;  %v2978_v17 = vld [vmem:[%s13399_s3 + $0x4c0] sm:$0xff]  ;;  %v2987_v20 = vld [vmem:[%s13399_s3 + $0x508] sm:$0xff] }
 0x533   :  { %6067 = vmatpush1.bf16.msra.mxu0 %v6066_v18  ;;  %v2909_v18 = vld [vmem:[%s13399_s3 + $0x298] sm:$0xff]  ;;  %v6164_v4 = vpack.c.bf16 %v2981_v16, %v2973_v58  ;;  %v3044_v16 = vld [vmem:[%s13399_s3 + $0x6d0] sm:$0xff] }
 0x534   :  { %6069 = vmatprep.subr.bf16.mxu0 %v6068_v26  ;;  %v6148_v22 = vpack.c.bf16 %v2917_v2, %v2909_v18  ;;  %v2916_v26 = vld [vmem:[%s13399_s3 + $0x2d0] sm:$0xff] }
 0x535   :  { %6135 = vmatpush1.bf16.msra.mxu1 %v6134_v28  ;;  %v6150_v27 = vpack.c.bf16 %v2916_v26, %v2908_v25  ;;  %v6152_v28 = vpack.c.bf16 %v2933_v33, %v2925_v31  ;;  %v2980_v2 = vld [vmem:[%s13399_s3 + $0x4d0] sm:$0xff]  ;;  %v2997_v26 = vld [vmem:[%s13399_s3 + $0x558] sm:$0xff] }
 0x536   :  { %6137 = vmatprep.subr.bf16.mxu1 %v6136_v41  ;;  %v2939_v41 = vld [vmem:[%s13399_s3 + $0x388] sm:$0xff]  ;;  %v2996_v33 = vld [vmem:[%s13399_s3 + $0x550] sm:$0xff] }
 0x537   :  { %6071 = vmatpush1.bf16.msra.mxu0 %v6070_v23  ;;  %v6088_v23 = vpack.c.bf16 %v2931_v30, %v2923_v29  ;;  %v6092_v45 = vpack.c.bf16 %v2947_v43, %v2939_v41  ;;  %v2994_v29 = vld [vmem:[%s13399_s3 + $0x540] sm:$0xff] }
 0x538   :  { %6073 = vmatprep.subr.bf16.mxu0 %v6072_v37  ;;  %v6090_v37 = vpack.c.bf16 %v2930_v35, %v2922_v34  ;;  %v3003_v35 = vld [vmem:[%s13399_s3 + $0x588] sm:$0xff]  ;;  %v3010_v41 = vld [vmem:[%s13399_s3 + $0x5c0] sm:$0xff] }
 0x539   :  { %6139 = vmatpush1.bf16.msra.mxu1 %v6138_v51  ;;  %v6094_v51 = vpack.c.bf16 %v2946_v49, %v2938_v48  ;;  %v3019_v49 = vld [vmem:[%s13399_s3 + $0x608] sm:$0xff] }
 0x53a   :  { %6141 = vmatprep.subr.bf16.mxu1 %v6140_v21  ;;  %v2963_v21 = vld [vmem:[%s13399_s3 + $0x448] sm:$0xff] }
 0x53b   :  { %6075 = vmatpush1.bf16.msra.mxu0 %v6074_v46  ;;  %v2949_v46 = vld [vmem:[%s13399_s3 + $0x3d8] sm:$0xff]  ;;  %v6096_v6 = vpack.c.bf16 %v2963_v21, %v2955_v1  ;;  %v3026_v1 = vld [vmem:[%s13399_s3 + $0x640] sm:$0xff] }
 0x53c   :  { %6077 = vmatprep.subr.bf16.mxu0 %v6076_v62  ;;  %v6156_v50 = vpack.c.bf16 %v2949_v46, %v2941_v44  ;;  %v2940_v62 = vld [vmem:[%s13399_s3 + $0x390] sm:$0xff] }
 0x53d   :  { %6143 = vmatpush1.bf16.msra.mxu1 %v6142_v12  ;;  %v6158_v63 = vpack.c.bf16 %v2948_v36, %v2940_v62  ;;  %v2956_v12 = vld [vmem:[%s13399_s3 + $0x410] sm:$0xff]  ;;  %v3029_v36 = vld [vmem:[%s13399_s3 + $0x658] sm:$0xff] }
 0x53e   :  { %6145 = vmatprep.subr.bf16.mxu1 %v6144_v47  ;;  %v3012_v46 = vld [vmem:[%s13399_s3 + $0x5d0] sm:$0xff] }
 0x53f   :  { %6079 = vmatpush1.bf16.msra.mxu0 %v6078_v11  ;;  %v6098_v11 = vpack.c.bf16 %v2962_v42, %v2954_v55  ;;  %v3035_v42 = vld [vmem:[%s13399_s3 + $0x688] sm:$0xff] }
 0x540   :  { %6081 = vmatprep.subr.bf16.mxu0 %v6080_v13  ;;  %v2964_v13 = vld [vmem:[%s13399_s3 + $0x450] sm:$0xff] }
 0x541   :  { %6147 = vmatpush1.bf16.msra.mxu1 %v6146_v59  ;;  %v6162_v47 = vpack.c.bf16 %v2964_v13, %v2956_v12  ;;  %v2970_v59 = vld [vmem:[%s13399_s3 + $0x480] sm:$0xff]  ;;  %v3045_v13 = vld [vmem:[%s13399_s3 + $0x6d8] sm:$0xff] }
 0x542   :  { %6149 = vmatprep.subr.bf16.mxu1 %v6148_v22  ;;  %v6102_v18 = vpack.c.bf16 %v2978_v17, %v2970_v59  ;;  %v2995_v22 = vld [vmem:[%s13399_s3 + $0x548] sm:$0xff] }
 0x543   :  { %6083 = vmatpush1.bf16.msra.mxu0 %v6082_v15  ;;  %v6100_v15 = vpack.c.bf16 %v2979_v54, %v2971_v14  ;;  %v6104_v25 = vpack.c.bf16 %v2995_v22, %v2987_v20  ;;  %v3042_v14 = vld [vmem:[%s13399_s3 + $0x6c0] sm:$0xff]  ;;  %v3051_v59 = vld [vmem:[%s13399_s3 + $0x708] sm:$0xff] }
 0x544   :  { %6085 = vmatprep.subr.bf16.mxu0 %v6084_v52  ;;  %v2972_v52 = vld [vmem:[%s13399_s3 + $0x490] sm:$0xff]  ;;  %v3050_v20 = vld [vmem:[%s13399_s3 + $0x700] sm:$0xff] }
 0x545   :  { %6151 = vmatpush1.bf16.msra.mxu1 %v6150_v27  ;;  %v6166_v19 = vpack.c.bf16 %v2980_v2, %v2972_v52  ;;  %v2986_v27 = vld [vmem:[%s13399_s3 + $0x500] sm:$0xff]  ;;  %v3061_v52 = vld [vmem:[%s13399_s3 + $0x758] sm:$0xff] }
 0x546   :  { %6153 = vmatprep.subr.bf16.mxu1 %v6152_v28  ;;  %v6106_v31 = vpack.c.bf16 %v2994_v29, %v2986_v27  ;;  %v3011_v28 = vld [vmem:[%s13399_s3 + $0x5c8] sm:$0xff]  ;;  %v3058_v22 = vld [vmem:[%s13399_s3 + $0x740] sm:$0xff] }
 0x547   :  { %6087 = vmatpush1.bf16.msra.mxu0 %v6086_v24  ;;  %v2989_v24 = vld [vmem:[%s13399_s3 + $0x518] sm:$0xff]  ;;  %v6108_v38 = vpack.c.bf16 %v3011_v28, %v3003_v35  ;;  %v3067_v27 = vld [vmem:[%s13399_s3 + $0x788] sm:$0xff]  ;;  %v3074_v28 = vld [vmem:[%s13399_s3 + $0x7c0] sm:$0xff] }
 0x548   :  { %6089 = vmatprep.subr.bf16.mxu0 %v6088_v23  ;;  %v6168_v30 = vpack.c.bf16 %v2997_v26, %v2989_v24  ;;  %v2988_v23 = vld [vmem:[%s13399_s3 + $0x510] sm:$0xff]  ;;  %v3075_v29 = vld [vmem:[%s13399_s3 + $0x7c8] sm:$0xff] }
 0x549   :  { %6155 = vmatpush1.bf16.msra.mxu1 %v6154_v40  ;;  %v6170_v34 = vpack.c.bf16 %v2996_v33, %v2988_v23  ;;  %v3002_v40 = vld [vmem:[%s13399_s3 + $0x580] sm:$0xff]  ;;  %v3052_v24 = vld [vmem:[%s13399_s3 + $0x710] sm:$0xff]  ;;  %v3069_v23 = vld [vmem:[%s13399_s3 + $0x798] sm:$0xff] }
 0x54a   :  { %6157 = vmatprep.subr.bf16.mxu1 %v6156_v50  ;;  %v6110_v44 = vpack.c.bf16 %v3010_v41, %v3002_v40  ;;  %v3027_v50 = vld [vmem:[%s13399_s3 + $0x648] sm:$0xff]  ;;  %v3060_v26 = vld [vmem:[%s13399_s3 + $0x750] sm:$0xff]  ;;  %v3077_v33 = vld [vmem:[%s13399_s3 + $0x7d8] sm:$0xff] }
 0x54b   :  { %6091 = vmatpush1.bf16.msra.mxu0 %v6090_v37  ;;  %v3005_v37 = vld [vmem:[%s13399_s3 + $0x598] sm:$0xff]  ;;  %v6112_v62 = vpack.c.bf16 %v3027_v50, %v3019_v49  ;;  %v6188_v35 = vpack.c.bf16 %v3077_v33, %v3069_v23  ;;  %v2831_v41 = vld [vmem:[%s13399_s3 + $0x28] sm:$0xff] }
 0x54c   :  { %6093 = vmatprep.subr.bf16.mxu0 %v6092_v45  ;;  %v6172_v43 = vpack.c.bf16 %v3013_v39, %v3005_v37  ;;  %v3004_v45 = vld [vmem:[%s13399_s3 + $0x590] sm:$0xff] }
 0x54d   :  { %6159 = vmatpush1.bf16.msra.mxu1 %v6158_v63  ;;  %v6174_v48 = vpack.c.bf16 %v3012_v46, %v3004_v45  ;;  %v3018_v63 = vld [vmem:[%s13399_s3 + $0x600] sm:$0xff]  ;;  %v3068_v37 = vld [vmem:[%s13399_s3 + $0x790] sm:$0xff]  ;;  %v2841_v46 = vld [vmem:[%s13399_s3 + $0x78] sm:$0xff] }
 0x54e   :  { %6161 = vmatprep.subr.bf16.mxu1 %v6160_v10  ;;  %v6114_v5 = vpack.c.bf16 %v3026_v1, %v3018_v63  ;;  %v3043_v10 = vld [vmem:[%s13399_s3 + $0x6c8] sm:$0xff] }
 0x54f   :  { %6095 = vmatpush1.bf16.msra.mxu0 %v6094_v51  ;;  %v3021_v51 = vld [vmem:[%s13399_s3 + $0x618] sm:$0xff]  ;;  %v6116_v12 = vpack.c.bf16 %v3043_v10, %v3035_v42 }
 0x550   :  { %6097 = vmatprep.subr.bf16.mxu0 %v6096_v6  ;;  %v6176_v21 = vpack.c.bf16 %v3029_v36, %v3021_v51  ;;  %v3020_v6 = vld [vmem:[%s13399_s3 + $0x610] sm:$0xff] }
 0x551   :  { %6163 = vmatpush1.bf16.msra.mxu1 %v6162_v47  ;;  %v6178_v55 = vpack.c.bf16 %v3028_v53, %v3020_v6  ;;  %v3034_v47 = vld [vmem:[%s13399_s3 + $0x680] sm:$0xff] }
 0x552   :  { %6165 = vmatprep.subr.bf16.mxu1 %v6164_v4  ;;  %v6118_v58 = vpack.c.bf16 %v3042_v14, %v3034_v47  ;;  %v3059_v4 = vld [vmem:[%s13399_s3 + $0x748] sm:$0xff] }
 0x553   :  { %6099 = vmatpush1.bf16.msra.mxu0 %v6098_v11  ;;  %v3037_v11 = vld [vmem:[%s13399_s3 + $0x698] sm:$0xff]  ;;  %v6120_v2 = vpack.c.bf16 %v3059_v4, %v3051_v59 }
 0x554   :  { %6101 = vmatprep.subr.bf16.mxu0 %v6100_v15  ;;  %v6180_v54 = vpack.c.bf16 %v3045_v13, %v3037_v11  ;;  %v3036_v15 = vld [vmem:[%s13399_s3 + $0x690] sm:$0xff] }
 0x555   :  { %6167 = vmatpush1.bf16.msra.mxu1 %v6166_v19  ;;  %v6182_v17 = vpack.c.bf16 %v3044_v16, %v3036_v15 }
 0x556   :  { %6169 = vmatprep.subr.bf16.mxu1 %v6168_v30  ;;  %v6186_v30 = vpack.c.bf16 %v3060_v26, %v3052_v24 }
 0x557   :  { %6103 = vmatpush1.bf16.msra.mxu0 %v6102_v18  ;;  %v3053_v18 = vld [vmem:[%s13399_s3 + $0x718] sm:$0xff] }
 0x558   :  { %6105 = vmatprep.subr.bf16.mxu0 %v6104_v25  ;;  %v6184_v19 = vpack.c.bf16 %v3061_v52, %v3053_v18  ;;  %v6122_v25 = vpack.c.bf16 %v3058_v22, %v3050_v20 }
 0x559   :  { %6171 = vmatpush1.bf16.msra.mxu1 %v6170_v34  ;;  %v3066_v34 = vld [vmem:[%s13399_s3 + $0x780] sm:$0xff] }
 0x55a   :  { %6173 = vmatprep.subr.bf16.mxu1 %v6172_v43  ;;  %v6126_v39 = vpack.c.bf16 %v3074_v28, %v3066_v34  ;;  %v2839_v43 = vld [vmem:[%s13399_s3 + $0x68] sm:$0xff] }
 0x55b   :  { %6107 = vmatpush1.bf16.msra.mxu0 %v6106_v31  ;;  %v6124_v31 = vpack.c.bf16 %v3075_v29, %v3067_v27  ;;  %v6192_v45 = vpack.c.bf16 %v2839_v43, %v2831_v41  ;;  %v2840_v41 = vld [vmem:[%s13399_s3 + $0x70] sm:$0xff] }
 0x55c   :  { %6109 = vmatprep.subr.bf16.mxu0 %v6108_v38  ;;  %v3076_v38 = vld [vmem:[%s13399_s3 + $0x7d0] sm:$0xff] }
 0x55d   :  { %6175 = vmatpush1.bf16.msra.mxu1 %v6174_v48  ;;  %v6190_v40 = vpack.c.bf16 %v3076_v38, %v3068_v37  ;;  %v2830_v38 = vld [vmem:[%s13399_s3 + $0x20] sm:$0xff] }
 0x55e   :  { %6177 = vmatprep.subr.bf16.mxu1 %v6176_v21 }
 0x55f   :  { %6111 = vmatpush1.bf16.msra.mxu0 %v6110_v44  ;;  %v2833_v44 = vld [vmem:[%s13399_s3 + $0x38] sm:$0xff] }
 0x560   :  { %6113 = vmatprep.subr.bf16.mxu0 %v6112_v62  ;;  %v6256_v48 = vpack.c.bf16 %v2841_v46, %v2833_v44  ;;  %v2847_v44 = vld [vmem:[%s13399_s3 + $0xa8] sm:$0xff] }
 0x561   :  { %6179 = vmatpush1.bf16.msra.mxu1 %v6178_v55  ;;  %v2855_v46 = vld [vmem:[%s13399_s3 + $0xe8] sm:$0xff] }
 0x562   :  { %6181 = vmatprep.subr.bf16.mxu1 %v6180_v54 }
 0x563   :  { %6115 = vmatpush1.bf16.msra.mxu0 %v6114_v5 }
 0x564   :  { %6117 = vmatprep.subr.bf16.mxu0 %v6116_v12 }
 0x565   :  { %6183 = vmatpush1.bf16.msra.mxu1 %v6182_v17 }
 0x566   :  { %6185 = vmatprep.subr.bf16.mxu1 %v6184_v19 }
 0x567   :  { %6119 = vmatpush1.bf16.msra.mxu0 %v6118_v58 }
 0x568   :  { %6121 = vmatprep.subr.bf16.mxu0 %v6120_v2 }
 0x569   :  { %6187 = vmatpush1.bf16.msra.mxu1 %v6186_v30 }
 0x56a   :  { %6189 = vmatprep.subr.bf16.mxu1 %v6188_v35 }
 0x56b   :  { %6123 = vmatpush1.bf16.msra.mxu0 %v6122_v25 }
 0x56c   :  { %6125 = vmatprep.subr.bf16.mxu0 %v6124_v31 }
 0x56d   :  { %6191 = vmatpush1.bf16.msra.mxu1 %v6190_v40  ;;  %v2838_v40 = vld [vmem:[%s13399_s3 + $0x60] sm:$0xff] }
 0x56e   :  { %6257 = vmatprep.subr.bf16.mxu1 %v6256_v48  ;;  %v2849_v48 = vld [vmem:[%s13399_s3 + $0xb8] sm:$0xff] }
 0x56f   :  { %6127 = vmatpush1.bf16.msra.mxu0 %v6126_v39 }
 0x570   :  { %6193 = vmatprep.subr.bf16.mxu0 %v6192_v45 }
 0x5c3   :  { %v2547_v49 = vpop.f32.mrb[8].mxu0  ;;  %v2618_v50 = vpop.f32.mrb[8].mxu1 }
 0x5c4   :  { %v6966_v51 = vadd.f32 %v2547_v49, %v7943_v56  ;;  %v2549_v62 = vpop.f32.mrb[9].mxu0  ;;  %v2620_v36 = vpop.f32.mrb[9].mxu1  ;;  %v6980_v5 = vadd.f32 %v2618_v50, %v7960_v7  ;;  %v2857_v49 = vld [vmem:[%s13399_s3 + $0xf8] sm:$0xff] }
 0x5c5   :  { %v6967_v63 = vadd.f32 %v2549_v62, %v7947_v57  ;;  %v6981_v52 = vadd.f32 %v2620_v36, %v7954_v0  ;;  %v6194_v62 = vpack.c.bf16 %v2838_v40, %v2830_v38  ;;  %v2896_v40 = vld [vmem:[%s13399_s3 + $0x230] sm:$0xff] }
 0x5c6   :  { %v4952_v1 = vmul.f32 -1.442695, %v6966_v51 }
 0x5c7   :  { %v4953_v21 = vmul.f32 -1.442695, %v6967_v63  ;;  %v4954_v19 = vmul.f32 -1.442695, %v6981_v52  ;;  %v2846_v63 = vld [vmem:[%s13399_s3 + $0xa0] sm:$0xff]  ;;  %v2881_v52 = vld [vmem:[%s13399_s3 + $0x1b8] sm:$0xff] }
 0x5c8   :  { %7129 = vpow2.f32 %v4952_v1  ;;  %v2854_v1 = vld [vmem:[%s13399_s3 + $0xe0] sm:$0xff] }
 0x5c9   :  { %7131 = vpow2.f32 %v4953_v21 }
 0x5ca   :  { %7133 = vtanh.f32 %v6980_v5  ;;  %v2848_v5 = vld [vmem:[%s13399_s3 + $0xb0] sm:$0xff] }
 0x5d2   :  { %v7130_v6 = vpop.eup %7129 }
 0x5d3   :  { %v7132_v53 = vpop.eup %7131  ;;  %v2805_v55 = vadd.f32 1.0, %v7130_v6  ;;  %v2856_v6 = vld [vmem:[%s13399_s3 + $0xf0] sm:$0xff] }
 0x5d4   :  { %v2811_v42 = vadd.f32 1.0, %v7132_v53  ;;  %v7134_v10 = vpop.eup %7133  ;;  %v2863_v53 = vld [vmem:[%s13399_s3 + $0x128] sm:$0xff] }
 0x5d5   :  { %7135 = vrcp.f32 %v2805_v55  ;;  %v6196_v55 = vpack.c.bf16 %v2855_v46, %v2847_v44  ;;  %v2913_v44 = vld [vmem:[%s13399_s3 + $0x2b8] sm:$0xff] }
 0x5d6   :  { %7137 = vrcp.f32 %v2811_v42  ;;  %v6260_v42 = vpack.c.bf16 %v2857_v49, %v2849_v48  ;;  %v2910_v49 = vld [vmem:[%s13399_s3 + $0x2a0] sm:$0xff] }
 0x5df   :  { %v7136_v11 = vpop.eup %7135 }
 0x5e0   :  { %v7138_v12 = vpop.eup %7137  ;;  %v2822_v13 = vmul.f32 %v7136_v11, %v7134_v10  ;;  %v2871_v10 = vld [vmem:[%s13399_s3 + $0x168] sm:$0xff]  ;;  %v2865_v11 = vld [vmem:[%s13399_s3 + $0x138] sm:$0xff] }
 0x5e1   :  { %v2821_v47 = vmul.f32 %v7138_v12, %v10350_v9  ;;  %v2873_v12 = vld [vmem:[%s13399_s3 + $0x178] sm:$0xff] }
 0x5e3   :  { %v11143_v14 = vadd.f32 %v2822_v13, %v2821_v47  ;;  %v6198_v13 = vpack.c.bf16 %v2854_v1, %v2846_v63  ;;  %v6262_v47 = vpack.c.bf16 %v2856_v6, %v2848_v5  ;;  %v2920_v63 = vld [vmem:[%s13399_s3 + $0x2f0] sm:$0xff]  ;;  %v2927_v1 = vld [vmem:[%s13399_s3 + $0x328] sm:$0xff]  ;;  %v2929_v6 = vld [vmem:[%s13399_s3 + $0x338] sm:$0xff] }
 0x5e4   :  { %v2935_v5 = vld [vmem:[%s13399_s3 + $0x368] sm:$0xff] }
 0x603   :  { %v2689_v54 = vpop.f32.mrb[22].mxu0  ;;  %v2760_v58 = vpop.f32.mrb[22].mxu1 }
 0x604   :  { %v2773_v15 = vadd.f32 %v2689_v54, %v8753_v60  ;;  %v2691_v16 = vpop.f32.mrb[23].mxu0  ;;  %v2762_v59 = vpop.f32.mrb[23].mxu1  ;;  %v2775_v20 = vadd.f32 %v2760_v58, %v8769_v3  ;;  %v2862_v54 = vld [vmem:[%s13399_s3 + $0x120] sm:$0xff] }
 0x605   :  { %v2774_v17 = vadd.f32 %v2691_v16, %v8757_v61  ;;  %v2776_v2 = vadd.f32 %v2762_v59, %v8763_v8  ;;  %v2870_v58 = vld [vmem:[%s13399_s3 + $0x160] sm:$0xff]  ;;  %v6264_v16 = vpack.c.bf16 %v2873_v12, %v2865_v11  ;;  %v2864_v59 = vld [vmem:[%s13399_s3 + $0x130] sm:$0xff]  ;;  %v6216_v12 = vpack.c.bf16 %v2935_v5, %v2927_v1 }
 0x606   :  { %v4949_v4 = vmul.f32 -1.442695, %v2773_v15  ;;  %v6200_v15 = vpack.c.bf16 %v2871_v10, %v2863_v53  ;;  %v2937_v53 = vld [vmem:[%s13399_s3 + $0x378] sm:$0xff]  ;;  %v2926_v10 = vld [vmem:[%s13399_s3 + $0x320] sm:$0xff] }
 0x607   :  { %v4950_v18 = vmul.f32 -1.442695, %v2774_v17  ;;  %v4951_v9 = vmul.f32 -1.442695, %v2776_v2  ;;  %v2872_v17 = vld [vmem:[%s13399_s3 + $0x170] sm:$0xff]  ;;  %v2889_v2 = vld [vmem:[%s13399_s3 + $0x1f8] sm:$0xff] }
 0x608   :  { %7139 = vpow2.f32 %v4949_v4  ;;  %v2879_v4 = vld [vmem:[%s13399_s3 + $0x1a8] sm:$0xff]  ;;  %v2934_v11 = vld [vmem:[%s13399_s3 + $0x360] sm:$0xff] }
 0x609   :  { %7141 = vpow2.f32 %v4950_v18  ;;  %v2887_v18 = vld [vmem:[%s13399_s3 + $0x1e8] sm:$0xff]  ;;  %v2990_v5 = vld [vmem:[%s13399_s3 + $0x520] sm:$0xff] }
 0x60a   :  { %7143 = vpow2.f32 %v4954_v19  ;;  %v6202_v19 = vpack.c.bf16 %v2870_v58, %v2862_v54  ;;  %v2936_v54 = vld [vmem:[%s13399_s3 + $0x370] sm:$0xff]  ;;  %v2943_v58 = vld [vmem:[%s13399_s3 + $0x3a8] sm:$0xff] }
 0x60b   :  { %7145 = vpow2.f32 %v4951_v9  ;;  %v6266_v9 = vpack.c.bf16 %v2872_v17, %v2864_v59  ;;  %v2953_v59 = vld [vmem:[%s13399_s3 + $0x3f8] sm:$0xff]  ;;  %v6218_v17 = vpack.c.bf16 %v2934_v11, %v2926_v10  ;;  %v3000_v10 = vld [vmem:[%s13399_s3 + $0x570] sm:$0xff]  ;;  %v3007_v11 = vld [vmem:[%s13399_s3 + $0x5a8] sm:$0xff] }
 0x60c   :  { %7147 = vtanh.f32 %v2775_v20  ;;  %v2878_v20 = vld [vmem:[%s13399_s3 + $0x1a0] sm:$0xff] }
 0x612   :  { %v7140_v22 = vpop.eup %7139 }
 0x613   :  { %v7142_v24 = vpop.eup %7141  ;;  %v2780_v25 = vadd.f32 1.0, %v7140_v22  ;;  %v2886_v22 = vld [vmem:[%s13399_s3 + $0x1e0] sm:$0xff] }
 0x614   :  { %v2786_v26 = vadd.f32 1.0, %v7142_v24  ;;  %v7144_v27 = vpop.eup %7143  ;;  %v6204_v24 = vpack.c.bf16 %v2887_v18, %v2879_v4  ;;  %v2942_v18 = vld [vmem:[%s13399_s3 + $0x3a0] sm:$0xff] }
 0x615   :  { %7149 = vrcp.f32 %v2780_v25  ;;  %v7146_v29 = vpop.eup %7145  ;;  %v2818_v28 = vadd.f32 1.0, %v7144_v27  ;;  %v6268_v25 = vpack.c.bf16 %v2889_v2, %v2881_v52  ;;  %v2888_v27 = vld [vmem:[%s13399_s3 + $0x1f0] sm:$0xff]  ;;  %v2950_v52 = vld [vmem:[%s13399_s3 + $0x3e0] sm:$0xff] }
 0x616   :  { %7151 = vrcp.f32 %v2786_v26  ;;  %v7148_v30 = vpop.eup %7147  ;;  %v2793_v34 = vadd.f32 1.0, %v7146_v29  ;;  %v2880_v26 = vld [vmem:[%s13399_s3 + $0x1b0] sm:$0xff]  ;;  %v2895_v29 = vld [vmem:[%s13399_s3 + $0x228] sm:$0xff] }
 0x617   :  { %7153 = vtanh.f32 %v11143_v14 }
 0x618   :  { %7155 = vrcp.f32 %v2793_v34  ;;  %v6270_v34 = vpack.c.bf16 %v2888_v27, %v2880_v26  ;;  %v2969_v26 = vld [vmem:[%s13399_s3 + $0x478] sm:$0xff]  ;;  %v6222_v27 = vpack.c.bf16 %v2950_v52, %v2942_v18  ;;  %v3016_v18 = vld [vmem:[%s13399_s3 + $0x5f0] sm:$0xff]  ;;  %v3023_v52 = vld [vmem:[%s13399_s3 + $0x628] sm:$0xff] }
 0x61f   :  { %v7150_v31 = vpop.eup %7149 }
 0x620   :  { %v7152_v23 = vpop.eup %7151  ;;  %v2797_v33 = vmul.f32 %v7150_v31, %v7148_v30  ;;  %v2903_v30 = vld [vmem:[%s13399_s3 + $0x268] sm:$0xff]  ;;  %v2897_v31 = vld [vmem:[%s13399_s3 + $0x238] sm:$0xff] }
 0x621   :  { %v2796_v35 = vmul.f32 %v7152_v23, %v10358_v32  ;;  %v7154_v39 = vpop.eup %7153  ;;  %v2832_v32 = vld [vmem:[%s13399_s3 + $0x30] sm:$0xff]  ;;  %v2905_v23 = vld [vmem:[%s13399_s3 + $0x278] sm:$0xff]  ;;  %v6208_v38 = vpack.c.bf16 %v2903_v30, %v2895_v29  ;;  %v2958_v30 = vld [vmem:[%s13399_s3 + $0x420] sm:$0xff] }
 0x622   :  { %v7156_v43 = vpop.eup %7155  ;;  %v6258_v36 = vpack.c.bf16 %v2840_v41, %v2832_v32  ;;  %v2904_v32 = vld [vmem:[%s13399_s3 + $0x270] sm:$0xff]  ;;  %v2911_v41 = vld [vmem:[%s13399_s3 + $0x2a8] sm:$0xff] }
 0x623   :  { %v11151_v37 = vadd.f32 %v2797_v33, %v2796_v35  ;;  %v6206_v33 = vpack.c.bf16 %v2886_v22, %v2878_v20  ;;  %v2894_v35 = vld [vmem:[%s13399_s3 + $0x220] sm:$0xff]  ;;  %v6274_v48 = vpack.c.bf16 %v2904_v32, %v2896_v40  ;;  %v2952_v20 = vld [vmem:[%s13399_s3 + $0x3f0] sm:$0xff]  ;;  %v2959_v22 = vld [vmem:[%s13399_s3 + $0x428] sm:$0xff] }
 0x624   :  { %v2985_v40 = vld [vmem:[%s13399_s3 + $0x4f8] sm:$0xff] }
 0x625   :  { %7157 = vtanh.f32 %v11151_v37 }
 0x626   :  { %7159 = vrcp.f32 %v2818_v28  ;;  %v2902_v28 = vld [vmem:[%s13399_s3 + $0x260] sm:$0xff] }
 0x627   :  { %v6210_v46 = vpack.c.bf16 %v2902_v28, %v2894_v35  ;;  %v2968_v35 = vld [vmem:[%s13399_s3 + $0x470] sm:$0xff]  ;;  %v2975_v28 = vld [vmem:[%s13399_s3 + $0x4a8] sm:$0xff] }
 0x62f   :  { %v7158_v45 = vpop.eup %7157 }
 0x630   :  { %v7160_v50 = vpop.eup %7159  ;;  %v2800_v51 = vmul.f32 %v7158_v45, %v7156_v43  ;;  %v2919_v43 = vld [vmem:[%s13399_s3 + $0x2e8] sm:$0xff]  ;;  %v2921_v45 = vld [vmem:[%s13399_s3 + $0x2f8] sm:$0xff] }
 0x631   :  { %v11185_v21 = vmul.f32 %v7160_v50, %v7154_v39  ;;  %v6272_v39 = vpack.c.bf16 %v2905_v23, %v2897_v31  ;;  %v2918_v50 = vld [vmem:[%s13399_s3 + $0x2e0] sm:$0xff] }
 0x632   :  { %2801 = vst [vmem:[%s13403_s5 + $0x18] sm:$0xff] %v2800_v51  ;;  %3146 = vmatprep.mubr.f32.mxu0 %v2800_v51  ;;  %3217 = vmatprep.mubr.f32.mxu1 %v2800_v51  ;;  %v2966_v31 = vld [vmem:[%s13399_s3 + $0x460] sm:$0xff] }
 0x633   :  { %3147 = vmatmul.mubr.f32.vlgmr.msra.gmra.mrb[10].mxu0 %v11185_v21  ;;  %3218 = vmatmul.mubr.f32.vlgmr.msra.gmra.mrb[10].mxu1 %v11185_v21  ;;  %v6226_v32 = vpack.c.bf16 %v2966_v31, %v2958_v30  ;;  %v3032_v30 = vld [vmem:[%s13399_s3 + $0x670] sm:$0xff]  ;;  %v3039_v31 = vld [vmem:[%s13399_s3 + $0x6a8] sm:$0xff] }
 0x634   :  { %6195 = vmatpush1.bf16.msra.mxu0 %v6194_v62  ;;  %6259 = vmatpush1.bf16.msra.mxu1 %v6258_v36  ;;  %v6276_v62 = vpack.c.bf16 %v2921_v45, %v2913_v44  ;;  %v2912_v36 = vld [vmem:[%s13399_s3 + $0x2b0] sm:$0xff]  ;;  %v2982_v44 = vld [vmem:[%s13399_s3 + $0x4e0] sm:$0xff] }
 0x635   :  { %3288 = vmatprep.mubr.f32.mxu0 %v2800_v51  ;;  %3359 = vmatprep.mubr.f32.mxu1 %v2800_v51  ;;  %v6212_v51 = vpack.c.bf16 %v2919_v43, %v2911_v41  ;;  %v2974_v43 = vld [vmem:[%s13399_s3 + $0x4a0] sm:$0xff] }
 0x636   :  { %6197 = vmatprep.subr.bf16.mxu0 %v6196_v55  ;;  %6261 = vmatprep.subr.bf16.mxu1 %v6260_v42  ;;  %v6214_v55 = vpack.c.bf16 %v2918_v50, %v2910_v49  ;;  %v6278_v42 = vpack.c.bf16 %v2920_v63, %v2912_v36  ;;  %v2984_v49 = vld [vmem:[%s13399_s3 + $0x4f0] sm:$0xff]  ;;  %v2991_v50 = vld [vmem:[%s13399_s3 + $0x528] sm:$0xff]  ;;  %v3001_v36 = vld [vmem:[%s13399_s3 + $0x578] sm:$0xff]  ;;  %v6230_v63 = vpack.c.bf16 %v2982_v44, %v2974_v43 }
 0x637   :  { %v3048_v43 = vld [vmem:[%s13399_s3 + $0x6f0] sm:$0xff]  ;;  %v3055_v44 = vld [vmem:[%s13399_s3 + $0x728] sm:$0xff] }
 0x638   :  { %6199 = vmatpush1.bf16.msra.mxu0 %v6198_v13  ;;  %6263 = vmatpush1.bf16.msra.mxu1 %v6262_v47  ;;  %v6280_v13 = vpack.c.bf16 %v2937_v53, %v2929_v6  ;;  %v2928_v47 = vld [vmem:[%s13399_s3 + $0x330] sm:$0xff]  ;;  %v2998_v6 = vld [vmem:[%s13399_s3 + $0x560] sm:$0xff] }
 0x639   :  { %6201 = vmatprep.subr.bf16.mxu0 %v6200_v15  ;;  %6265 = vmatprep.subr.bf16.mxu1 %v6264_v16  ;;  %v2951_v15 = vld [vmem:[%s13399_s3 + $0x3e8] sm:$0xff]  ;;  %v2945_v16 = vld [vmem:[%s13399_s3 + $0x3b8] sm:$0xff]  ;;  %v6282_v4 = vpack.c.bf16 %v2936_v54, %v2928_v47  ;;  %v6234_v54 = vpack.c.bf16 %v2998_v6, %v2990_v5  ;;  %v3064_v5 = vld [vmem:[%s13399_s3 + $0x770] sm:$0xff] }
 0x63a   :  { %v6220_v2 = vpack.c.bf16 %v2951_v15, %v2943_v58  ;;  %v3017_v47 = vld [vmem:[%s13399_s3 + $0x5f8] sm:$0xff]  ;;  %v3006_v15 = vld [vmem:[%s13399_s3 + $0x5a0] sm:$0xff]  ;;  %v3071_v6 = vld [vmem:[%s13399_s3 + $0x7a8] sm:$0xff] }
 0x63c   :  { %6203 = vmatpush1.bf16.msra.mxu0 %v6202_v19  ;;  %6267 = vmatpush1.bf16.msra.mxu1 %v6266_v9  ;;  %v6284_v19 = vpack.c.bf16 %v2953_v59, %v2945_v16  ;;  %v2944_v9 = vld [vmem:[%s13399_s3 + $0x3b0] sm:$0xff]  ;;  %v3014_v16 = vld [vmem:[%s13399_s3 + $0x5e0] sm:$0xff] }
 0x63d   :  { %6205 = vmatprep.subr.bf16.mxu0 %v6204_v24  ;;  %6269 = vmatprep.subr.bf16.mxu1 %v6268_v25  ;;  %v2967_v24 = vld [vmem:[%s13399_s3 + $0x468] sm:$0xff]  ;;  %v2961_v25 = vld [vmem:[%s13399_s3 + $0x438] sm:$0xff]  ;;  %v6286_v29 = vpack.c.bf16 %v2952_v20, %v2944_v9  ;;  %v6238_v20 = vpack.c.bf16 %v3014_v16, %v3006_v15  ;;  %v3080_v15 = vld [vmem:[%s13399_s3 + $0x7f0] sm:$0xff] }
 0x63e   :  { %v6224_v23 = vpack.c.bf16 %v2967_v24, %v2959_v22  ;;  %v3033_v9 = vld [vmem:[%s13399_s3 + $0x678] sm:$0xff]  ;;  %v3022_v24 = vld [vmem:[%s13399_s3 + $0x620] sm:$0xff] }
 0x640   :  { %6207 = vmatpush1.bf16.msra.mxu0 %v6206_v33  ;;  %6271 = vmatpush1.bf16.msra.mxu1 %v6270_v34  ;;  %v6288_v33 = vpack.c.bf16 %v2969_v26, %v2961_v25  ;;  %v2960_v34 = vld [vmem:[%s13399_s3 + $0x430] sm:$0xff]  ;;  %v3030_v25 = vld [vmem:[%s13399_s3 + $0x660] sm:$0xff] }
 0x641   :  { %6209 = vmatprep.subr.bf16.mxu0 %v6208_v38  ;;  %6273 = vmatprep.subr.bf16.mxu1 %v6272_v39  ;;  %v2983_v38 = vld [vmem:[%s13399_s3 + $0x4e8] sm:$0xff]  ;;  %v2977_v39 = vld [vmem:[%s13399_s3 + $0x4b8] sm:$0xff]  ;;  %v6290_v41 = vpack.c.bf16 %v2968_v35, %v2960_v34  ;;  %v6242_v35 = vpack.c.bf16 %v3030_v25, %v3022_v24  ;;  %v3437_v24 = vld [vmem:[%s13399_s3 + $0x50] sm:$0xff] }
 0x642   :  { %v6228_v45 = vpack.c.bf16 %v2983_v38, %v2975_v28  ;;  %v3049_v34 = vld [vmem:[%s13399_s3 + $0x6f8] sm:$0xff]  ;;  %v3038_v38 = vld [vmem:[%s13399_s3 + $0x6a0] sm:$0xff]  ;;  %v3444_v25 = vld [vmem:[%s13399_s3 + $0x88] sm:$0xff] }
 0x644   :  { %6211 = vmatpush1.bf16.msra.mxu0 %v6210_v46  ;;  %6275 = vmatpush1.bf16.msra.mxu1 %v6274_v48  ;;  %v6292_v46 = vpack.c.bf16 %v2985_v40, %v2977_v39  ;;  %v2976_v48 = vld [vmem:[%s13399_s3 + $0x4b0] sm:$0xff]  ;;  %v3046_v39 = vld [vmem:[%s13399_s3 + $0x6e0] sm:$0xff] }
 0x645   :  { %6213 = vmatprep.subr.bf16.mxu0 %v6212_v51  ;;  %6277 = vmatprep.subr.bf16.mxu1 %v6276_v62  ;;  %v2999_v51 = vld [vmem:[%s13399_s3 + $0x568] sm:$0xff]  ;;  %v2993_v62 = vld [vmem:[%s13399_s3 + $0x538] sm:$0xff]  ;;  %v6294_v1 = vpack.c.bf16 %v2984_v49, %v2976_v48  ;;  %v6246_v49 = vpack.c.bf16 %v3046_v39, %v3038_v38  ;;  %v3453_v38 = vld [vmem:[%s13399_s3 + $0xd0] sm:$0xff] }
 0x646   :  { %v6232_v53 = vpack.c.bf16 %v2999_v51, %v2991_v50  ;;  %v3065_v48 = vld [vmem:[%s13399_s3 + $0x778] sm:$0xff]  ;;  %v3054_v51 = vld [vmem:[%s13399_s3 + $0x720] sm:$0xff]  ;;  %v3460_v39 = vld [vmem:[%s13399_s3 + $0x108] sm:$0xff] }
 0x648   :  { %6215 = vmatpush1.bf16.msra.mxu0 %v6214_v55  ;;  %6279 = vmatpush1.bf16.msra.mxu1 %v6278_v42  ;;  %v6296_v55 = vpack.c.bf16 %v3001_v36, %v2993_v62  ;;  %v2992_v42 = vld [vmem:[%s13399_s3 + $0x530] sm:$0xff]  ;;  %v3062_v62 = vld [vmem:[%s13399_s3 + $0x760] sm:$0xff] }
 0x649   :  { %6217 = vmatprep.subr.bf16.mxu0 %v6216_v12  ;;  %6281 = vmatprep.subr.bf16.mxu1 %v6280_v13  ;;  %v3015_v12 = vld [vmem:[%s13399_s3 + $0x5e8] sm:$0xff]  ;;  %v3009_v13 = vld [vmem:[%s13399_s3 + $0x5b8] sm:$0xff]  ;;  %v6298_v58 = vpack.c.bf16 %v3000_v10, %v2992_v42  ;;  %v6250_v10 = vpack.c.bf16 %v3062_v62, %v3054_v51 }
 0x64a   :  { %v6236_v59 = vpack.c.bf16 %v3015_v12, %v3007_v11  ;;  %v3081_v42 = vld [vmem:[%s13399_s3 + $0x7f8] sm:$0xff]  ;;  %v3070_v12 = vld [vmem:[%s13399_s3 + $0x7a0] sm:$0xff]  ;;  %v3476_v62 = vld [vmem:[%s13399_s3 + $0x188] sm:$0xff] }
 0x64c   :  { %6219 = vmatpush1.bf16.msra.mxu0 %v6218_v17  ;;  %6283 = vmatpush1.bf16.msra.mxu1 %v6282_v4  ;;  %v6300_v17 = vpack.c.bf16 %v3017_v47, %v3009_v13  ;;  %v3008_v4 = vld [vmem:[%s13399_s3 + $0x5b0] sm:$0xff] }
 0x64d   :  { %6221 = vmatprep.subr.bf16.mxu0 %v6220_v2  ;;  %6285 = vmatprep.subr.bf16.mxu1 %v6284_v19  ;;  %v3031_v2 = vld [vmem:[%s13399_s3 + $0x668] sm:$0xff]  ;;  %v3025_v19 = vld [vmem:[%s13399_s3 + $0x638] sm:$0xff]  ;;  %v6302_v22 = vpack.c.bf16 %v3016_v18, %v3008_v4 }
 0x64e   :  { %v6240_v26 = vpack.c.bf16 %v3031_v2, %v3023_v52  ;;  %v3436_v4 = vld [vmem:[%s13399_s3 + $0x48] sm:$0xff]  ;;  %v3430_v18 = vld [vmem:[%s13399_s3 + $0x18] sm:$0xff] }
 0x64f   :  { %v3438_v2 = vld [vmem:[%s13399_s3 + $0x58] sm:$0xff] }
 0x650   :  { %6223 = vmatpush1.bf16.msra.mxu0 %v6222_v27  ;;  %6287 = vmatpush1.bf16.msra.mxu1 %v6286_v29  ;;  %v6304_v27 = vpack.c.bf16 %v3033_v9, %v3025_v19  ;;  %v3024_v29 = vld [vmem:[%s13399_s3 + $0x630] sm:$0xff]  ;;  %v3435_v19 = vld [vmem:[%s13399_s3 + $0x40] sm:$0xff]  ;;  %v6384_v9 = vpack.c.bf16 %v3438_v2, %v3430_v18 }
 0x651   :  { %6225 = vmatprep.subr.bf16.mxu0 %v6224_v23  ;;  %6289 = vmatprep.subr.bf16.mxu1 %v6288_v33  ;;  %v3047_v23 = vld [vmem:[%s13399_s3 + $0x6e8] sm:$0xff]  ;;  %v3041_v33 = vld [vmem:[%s13399_s3 + $0x6b8] sm:$0xff]  ;;  %v6306_v28 = vpack.c.bf16 %v3032_v30, %v3024_v29  ;;  %v3493_v18 = vld [vmem:[%s13399_s3 + $0x210] sm:$0xff] }
 0x652   :  { %v6244_v40 = vpack.c.bf16 %v3047_v23, %v3039_v31  ;;  %v3446_v29 = vld [vmem:[%s13399_s3 + $0x98] sm:$0xff]  ;;  %v3501_v2 = vld [vmem:[%s13399_s3 + $0x250] sm:$0xff] }
 0x653   :  { %v3454_v30 = vld [vmem:[%s13399_s3 + $0xd8] sm:$0xff] }
 0x654   :  { %6227 = vmatpush1.bf16.msra.mxu0 %v6226_v32  ;;  %6291 = vmatpush1.bf16.msra.mxu1 %v6290_v41  ;;  %v6308_v32 = vpack.c.bf16 %v3049_v34, %v3041_v33  ;;  %v3040_v41 = vld [vmem:[%s13399_s3 + $0x6b0] sm:$0xff]  ;;  %v6388_v23 = vpack.c.bf16 %v3454_v30, %v3446_v29  ;;  %v3443_v33 = vld [vmem:[%s13399_s3 + $0x80] sm:$0xff] }
 0x655   :  { %6229 = vmatprep.subr.bf16.mxu0 %v6228_v45  ;;  %6293 = vmatprep.subr.bf16.mxu1 %v6292_v46  ;;  %v3063_v45 = vld [vmem:[%s13399_s3 + $0x768] sm:$0xff]  ;;  %v3057_v46 = vld [vmem:[%s13399_s3 + $0x738] sm:$0xff]  ;;  %v6310_v50 = vpack.c.bf16 %v3048_v43, %v3040_v41  ;;  %v3451_v34 = vld [vmem:[%s13399_s3 + $0xc0] sm:$0xff] }
 0x656   :  { %v6248_v36 = vpack.c.bf16 %v3063_v45, %v3055_v44  ;;  %v3462_v43 = vld [vmem:[%s13399_s3 + $0x118] sm:$0xff]  ;;  %v3459_v45 = vld [vmem:[%s13399_s3 + $0x100] sm:$0xff]  ;;  %v3509_v30 = vld [vmem:[%s13399_s3 + $0x290] sm:$0xff] }
 0x657   :  { %v3470_v44 = vld [vmem:[%s13399_s3 + $0x158] sm:$0xff] }
 0x658   :  { %6231 = vmatpush1.bf16.msra.mxu0 %v6230_v63  ;;  %6295 = vmatpush1.bf16.msra.mxu1 %v6294_v1  ;;  %v6312_v63 = vpack.c.bf16 %v3065_v48, %v3057_v46  ;;  %v3056_v1 = vld [vmem:[%s13399_s3 + $0x730] sm:$0xff]  ;;  %v6392_v46 = vpack.c.bf16 %v3470_v44, %v3462_v43  ;;  %v3467_v48 = vld [vmem:[%s13399_s3 + $0x140] sm:$0xff] }
 0x659   :  { %6233 = vmatprep.subr.bf16.mxu0 %v6232_v53  ;;  %6297 = vmatprep.subr.bf16.mxu1 %v6296_v55  ;;  %v3079_v53 = vld [vmem:[%s13399_s3 + $0x7e8] sm:$0xff]  ;;  %v3073_v55 = vld [vmem:[%s13399_s3 + $0x7b8] sm:$0xff]  ;;  %v6314_v11 = vpack.c.bf16 %v3064_v5, %v3056_v1  ;;  %v6330_v51 = vpack.c.bf16 %v3467_v48, %v3459_v45  ;;  %v3525_v43 = vld [vmem:[%s13399_s3 + $0x310] sm:$0xff] }
 0x65a   :  { %v6252_v13 = vpack.c.bf16 %v3079_v53, %v3071_v6  ;;  %v6316_v47 = vpack.c.bf16 %v3081_v42, %v3073_v55  ;;  %v3486_v6 = vld [vmem:[%s13399_s3 + $0x1d8] sm:$0xff]  ;;  %v3475_v53 = vld [vmem:[%s13399_s3 + $0x180] sm:$0xff]  ;;  %v3533_v44 = vld [vmem:[%s13399_s3 + $0x350] sm:$0xff] }
 0x65b   :  { %v3483_v55 = vld [vmem:[%s13399_s3 + $0x1c0] sm:$0xff]  ;;  %v6410_v45 = vpack.c.bf16 %v3533_v44, %v3525_v43  ;;  %v3548_v48 = vld [vmem:[%s13399_s3 + $0x3c8] sm:$0xff]  ;;  %v3614_v44 = vld [vmem:[%s13399_s3 + $0x5d8] sm:$0xff] }
 0x65c   :  { %6235 = vmatpush1.bf16.msra.mxu0 %v6234_v54  ;;  %6299 = vmatpush1.bf16.msra.mxu1 %v6298_v58  ;;  %v3078_v54 = vld [vmem:[%s13399_s3 + $0x7e0] sm:$0xff]  ;;  %v3072_v58 = vld [vmem:[%s13399_s3 + $0x7b0] sm:$0xff] }
 0x65d   :  { %6237 = vmatprep.subr.bf16.mxu0 %v6236_v59  ;;  %6301 = vmatprep.subr.bf16.mxu1 %v6300_v17  ;;  %v6254_v16 = vpack.c.bf16 %v3078_v54, %v3070_v12  ;;  %v6318_v59 = vpack.c.bf16 %v3080_v15, %v3072_v58  ;;  %v3428_v17 = vld [vmem:[%s13399_s3 + $0x8] sm:$0xff]  ;;  %v3502_v54 = vld [vmem:[%s13399_s3 + $0x258] sm:$0xff]  ;;  %v6334_v58 = vpack.c.bf16 %v3483_v55, %v3475_v53 }
 0x65e   :  { %v6320_v52 = vpack.c.bf16 %v3436_v4, %v3428_v17  ;;  %v3492_v12 = vld [vmem:[%s13399_s3 + $0x208] sm:$0xff]  ;;  %v3491_v17 = vld [vmem:[%s13399_s3 + $0x200] sm:$0xff] }
 0x65f   :  { %v3499_v4 = vld [vmem:[%s13399_s3 + $0x240] sm:$0xff]  ;;  %v3556_v55 = vld [vmem:[%s13399_s3 + $0x408] sm:$0xff] }
 0x660   :  { %6239 = vmatpush1.bf16.msra.mxu0 %v6238_v20  ;;  %6303 = vmatpush1.bf16.msra.mxu1 %v6302_v22  ;;  %v3429_v22 = vld [vmem:[%s13399_s3 + $0x10] sm:$0xff] }
 0x661   :  { %6241 = vmatprep.subr.bf16.mxu0 %v6240_v26  ;;  %6305 = vmatprep.subr.bf16.mxu1 %v6304_v27  ;;  %v6386_v26 = vpack.c.bf16 %v3437_v24, %v3429_v22  ;;  %v3452_v27 = vld [vmem:[%s13399_s3 + $0xc8] sm:$0xff]  ;;  %v3518_v24 = vld [vmem:[%s13399_s3 + $0x2d8] sm:$0xff] }
 0x662   :  { %v6324_v31 = vpack.c.bf16 %v3452_v27, %v3444_v25  ;;  %v3507_v25 = vld [vmem:[%s13399_s3 + $0x280] sm:$0xff] }
 0x664   :  { %6243 = vmatpush1.bf16.msra.mxu0 %v6242_v35  ;;  %6307 = vmatpush1.bf16.msra.mxu1 %v6306_v28  ;;  %v3445_v35 = vld [vmem:[%s13399_s3 + $0x90] sm:$0xff]  ;;  %v6326_v28 = vpack.c.bf16 %v3451_v34, %v3443_v33  ;;  %v3524_v33 = vld [vmem:[%s13399_s3 + $0x308] sm:$0xff] }
 0x665   :  { %6245 = vmatprep.subr.bf16.mxu0 %v6244_v40  ;;  %6309 = vmatprep.subr.bf16.mxu1 %v6308_v32  ;;  %v3468_v40 = vld [vmem:[%s13399_s3 + $0x148] sm:$0xff]  ;;  %v6390_v32 = vpack.c.bf16 %v3453_v38, %v3445_v35  ;;  %v3526_v35 = vld [vmem:[%s13399_s3 + $0x318] sm:$0xff] }
 0x666   :  { %v6328_v41 = vpack.c.bf16 %v3468_v40, %v3460_v39  ;;  %v3532_v34 = vld [vmem:[%s13399_s3 + $0x348] sm:$0xff]  ;;  %v3534_v38 = vld [vmem:[%s13399_s3 + $0x358] sm:$0xff]  ;;  %v3523_v39 = vld [vmem:[%s13399_s3 + $0x300] sm:$0xff] }
 0x667   :  { %v3531_v40 = vld [vmem:[%s13399_s3 + $0x340] sm:$0xff] }
 0x668   :  { %6247 = vmatpush1.bf16.msra.mxu0 %v6246_v49  ;;  %6311 = vmatpush1.bf16.msra.mxu1 %v6310_v50  ;;  %v3461_v49 = vld [vmem:[%s13399_s3 + $0x110] sm:$0xff] }
 0x669   :  { %6249 = vmatprep.subr.bf16.mxu0 %v6248_v36  ;;  %6313 = vmatprep.subr.bf16.mxu1 %v6312_v63  ;;  %v3469_v50 = vld [vmem:[%s13399_s3 + $0x150] sm:$0xff]  ;;  %v3484_v36 = vld [vmem:[%s13399_s3 + $0x1c8] sm:$0xff]  ;;  %v3478_v63 = vld [vmem:[%s13399_s3 + $0x198] sm:$0xff] }
 0x66a   :  { %v6394_v1 = vpack.c.bf16 %v3469_v50, %v3461_v49  ;;  %v6332_v5 = vpack.c.bf16 %v3484_v36, %v3476_v62  ;;  %v6396_v42 = vpack.c.bf16 %v3486_v6, %v3478_v63  ;;  %v3542_v49 = vld [vmem:[%s13399_s3 + $0x398] sm:$0xff]  ;;  %v3539_v62 = vld [vmem:[%s13399_s3 + $0x380] sm:$0xff]  ;;  %v3549_v6 = vld [vmem:[%s13399_s3 + $0x3d0] sm:$0xff] }
 0x66b   :  { %v3547_v36 = vld [vmem:[%s13399_s3 + $0x3c0] sm:$0xff] }
 0x66c   :  { %6251 = vmatpush1.bf16.msra.mxu0 %v6250_v10  ;;  %6315 = vmatpush1.bf16.msra.mxu1 %v6314_v11  ;;  %v3477_v10 = vld [vmem:[%s13399_s3 + $0x190] sm:$0xff] }
 0x66d   :  { %6253 = vmatprep.subr.bf16.mxu0 %v6252_v13  ;;  %6317 = vmatprep.subr.bf16.mxu1 %v6316_v47  ;;  %v3485_v11 = vld [vmem:[%s13399_s3 + $0x1d0] sm:$0xff]  ;;  %v3500_v13 = vld [vmem:[%s13399_s3 + $0x248] sm:$0xff]  ;;  %v3494_v47 = vld [vmem:[%s13399_s3 + $0x218] sm:$0xff] }
 0x66e   :  { %v6398_v15 = vpack.c.bf16 %v3485_v11, %v3477_v10  ;;  %v3558_v10 = vld [vmem:[%s13399_s3 + $0x418] sm:$0xff] }
 0x670   :  { %6255 = vmatpush1.bf16.msra.mxu0 %v6254_v16  ;;  %6319 = vmatpush1.bf16.msra.mxu1 %v6318_v59  ;;  %v6336_v16 = vpack.c.bf16 %v3500_v13, %v3492_v12  ;;  %v6400_v59 = vpack.c.bf16 %v3502_v54, %v3494_v47  ;;  %v3566_v12 = vld [vmem:[%s13399_s3 + $0x458] sm:$0xff]  ;;  %v3555_v13 = vld [vmem:[%s13399_s3 + $0x400] sm:$0xff] }
 0x671   :  { %6321 = vmatprep.subr.bf16.mxu0 %v6320_v52  ;;  %6385 = vmatprep.subr.bf16.mxu1 %v6384_v9  ;;  %v6338_v52 = vpack.c.bf16 %v3499_v4, %v3491_v17  ;;  %v3516_v9 = vld [vmem:[%s13399_s3 + $0x2c8] sm:$0xff]  ;;  %v3563_v47 = vld [vmem:[%s13399_s3 + $0x440] sm:$0xff]  ;;  %v6416_v54 = vpack.c.bf16 %v3566_v12, %v3558_v10  ;;  %v3629_v12 = vld [vmem:[%s13399_s3 + $0x650] sm:$0xff] }
 0x672   :  { %v3572_v17 = vld [vmem:[%s13399_s3 + $0x488] sm:$0xff] }
 0x673   :  { %3289 = vmatmul.mubr.f32.vlgmr.msra.gmra.mrb[24].mxu0 %v11185_v21  ;;  %3360 = vmatmul.mubr.f32.vlgmr.msra.gmra.mrb[24].mxu1 %v11185_v21  ;;  %v3427_v21 = vld [vmem:[%s13399_s3] sm:$0xff]  ;;  %v3580_v4 = vld [vmem:[%s13399_s3 + $0x4c8] sm:$0xff] }
 0x674   :  { %v6322_v20 = vpack.c.bf16 %v3435_v19, %v3427_v21  ;;  %6387 = vmatpush1.bf16.msra.mxu1 %v6386_v26  ;;  %v6402_v21 = vpack.c.bf16 %v3501_v2, %v3493_v18  ;;  %v3508_v19 = vld [vmem:[%s13399_s3 + $0x288] sm:$0xff]  ;;  %v3515_v26 = vld [vmem:[%s13399_s3 + $0x2c0] sm:$0xff]  ;;  %v3574_v18 = vld [vmem:[%s13399_s3 + $0x498] sm:$0xff] }
 0x675   :  { %6389 = vmatprep.subr.bf16.mxu1 %v6388_v23  ;;  %v6340_v22 = vpack.c.bf16 %v3516_v9, %v3508_v19  ;;  %v6342_v29 = vpack.c.bf16 %v3515_v26, %v3507_v25  ;;  %v3582_v2 = vld [vmem:[%s13399_s3 + $0x4d8] sm:$0xff]  ;;  %v3579_v19 = vld [vmem:[%s13399_s3 + $0x4c0] sm:$0xff]  ;;  %v3588_v26 = vld [vmem:[%s13399_s3 + $0x508] sm:$0xff] }
 0x676   :  { %6323 = vmatpush1.bf16.msra.mxu0 %v6322_v20  ;;  %v3510_v20 = vld [vmem:[%s13399_s3 + $0x298] sm:$0xff]  ;;  %v6420_v9 = vpack.c.bf16 %v3582_v2, %v3574_v18  ;;  %v3645_v2 = vld [vmem:[%s13399_s3 + $0x6d0] sm:$0xff] }
 0x677   :  { %6325 = vmatprep.subr.bf16.mxu0 %v6324_v31  ;;  %v6404_v27 = vpack.c.bf16 %v3518_v24, %v3510_v20  ;;  %v3517_v31 = vld [vmem:[%s13399_s3 + $0x2d0] sm:$0xff] }
 0x678   :  { %6391 = vmatpush1.bf16.msra.mxu1 %v6390_v32  ;;  %v6406_v23 = vpack.c.bf16 %v3517_v31, %v3509_v30  ;;  %v6408_v32 = vpack.c.bf16 %v3534_v38, %v3526_v35  ;;  %v3581_v24 = vld [vmem:[%s13399_s3 + $0x4d0] sm:$0xff]  ;;  %v3598_v31 = vld [vmem:[%s13399_s3 + $0x558] sm:$0xff] }
 0x679   :  { %6393 = vmatprep.subr.bf16.mxu1 %v6392_v46  ;;  %v3540_v46 = vld [vmem:[%s13399_s3 + $0x388] sm:$0xff]  ;;  %v3597_v38 = vld [vmem:[%s13399_s3 + $0x550] sm:$0xff] }
 0x67a   :  { %6327 = vmatpush1.bf16.msra.mxu0 %v6326_v28  ;;  %v6344_v28 = vpack.c.bf16 %v3532_v34, %v3524_v33  ;;  %v6348_v50 = vpack.c.bf16 %v3548_v48, %v3540_v46  ;;  %v3595_v33 = vld [vmem:[%s13399_s3 + $0x540] sm:$0xff] }
 0x67b   :  { %6329 = vmatprep.subr.bf16.mxu0 %v6328_v41  ;;  %v6346_v41 = vpack.c.bf16 %v3531_v40, %v3523_v39  ;;  %v3604_v40 = vld [vmem:[%s13399_s3 + $0x588] sm:$0xff]  ;;  %v3611_v46 = vld [vmem:[%s13399_s3 + $0x5c0] sm:$0xff] }
 0x67c   :  { %6395 = vmatpush1.bf16.msra.mxu1 %v6394_v1  ;;  %v6350_v1 = vpack.c.bf16 %v3547_v36, %v3539_v62  ;;  %v3620_v36 = vld [vmem:[%s13399_s3 + $0x608] sm:$0xff] }
 0x67d   :  { %6397 = vmatprep.subr.bf16.mxu1 %v6396_v42  ;;  %v3564_v42 = vld [vmem:[%s13399_s3 + $0x448] sm:$0xff] }
 0x67e   :  { %6331 = vmatpush1.bf16.msra.mxu0 %v6330_v51  ;;  %v3550_v51 = vld [vmem:[%s13399_s3 + $0x3d8] sm:$0xff]  ;;  %v6352_v11 = vpack.c.bf16 %v3564_v42, %v3556_v55  ;;  %v3627_v55 = vld [vmem:[%s13399_s3 + $0x640] sm:$0xff] }
 0x67f   :  { %6333 = vmatprep.subr.bf16.mxu0 %v6332_v5  ;;  %v6412_v63 = vpack.c.bf16 %v3550_v51, %v3542_v49  ;;  %v3541_v5 = vld [vmem:[%s13399_s3 + $0x390] sm:$0xff] }
 0x680   :  { %6399 = vmatpush1.bf16.msra.mxu1 %v6398_v15  ;;  %v6414_v53 = vpack.c.bf16 %v3549_v6, %v3541_v5  ;;  %v3557_v15 = vld [vmem:[%s13399_s3 + $0x410] sm:$0xff]  ;;  %v3630_v6 = vld [vmem:[%s13399_s3 + $0x658] sm:$0xff] }
 0x681   :  { %6401 = vmatprep.subr.bf16.mxu1 %v6400_v59  ;;  %v3613_v51 = vld [vmem:[%s13399_s3 + $0x5d0] sm:$0xff] }
 0x682   :  { %6335 = vmatpush1.bf16.msra.mxu0 %v6334_v58  ;;  %v6354_v58 = vpack.c.bf16 %v3563_v47, %v3555_v13  ;;  %v3636_v47 = vld [vmem:[%s13399_s3 + $0x688] sm:$0xff] }
 0x683   :  { %6337 = vmatprep.subr.bf16.mxu0 %v6336_v16  ;;  %v3565_v16 = vld [vmem:[%s13399_s3 + $0x450] sm:$0xff] }
 0x684   :  { %6403 = vmatpush1.bf16.msra.mxu1 %v6402_v21  ;;  %v6418_v59 = vpack.c.bf16 %v3565_v16, %v3557_v15  ;;  %v3571_v21 = vld [vmem:[%s13399_s3 + $0x480] sm:$0xff]  ;;  %v3646_v16 = vld [vmem:[%s13399_s3 + $0x6d8] sm:$0xff] }
 0x685   :  { %6405 = vmatprep.subr.bf16.mxu1 %v6404_v27  ;;  %v6358_v20 = vpack.c.bf16 %v3579_v19, %v3571_v21  ;;  %v3596_v27 = vld [vmem:[%s13399_s3 + $0x548] sm:$0xff] }
 0x686   :  { %6339 = vmatpush1.bf16.msra.mxu0 %v6338_v52  ;;  %v6356_v52 = vpack.c.bf16 %v3580_v4, %v3572_v17  ;;  %v6360_v30 = vpack.c.bf16 %v3596_v27, %v3588_v26  ;;  %v3643_v17 = vld [vmem:[%s13399_s3 + $0x6c0] sm:$0xff]  ;;  %v3652_v21 = vld [vmem:[%s13399_s3 + $0x708] sm:$0xff] }
 0x687   :  { %6341 = vmatprep.subr.bf16.mxu0 %v6340_v22  ;;  %v3573_v22 = vld [vmem:[%s13399_s3 + $0x490] sm:$0xff]  ;;  %v3651_v26 = vld [vmem:[%s13399_s3 + $0x700] sm:$0xff] }
 0x688   :  { %6407 = vmatpush1.bf16.msra.mxu1 %v6406_v23  ;;  %v6422_v25 = vpack.c.bf16 %v3581_v24, %v3573_v22  ;;  %v3587_v23 = vld [vmem:[%s13399_s3 + $0x500] sm:$0xff]  ;;  %v3662_v22 = vld [vmem:[%s13399_s3 + $0x758] sm:$0xff] }
 0x689   :  { %6409 = vmatprep.subr.bf16.mxu1 %v6408_v32  ;;  %v6362_v35 = vpack.c.bf16 %v3595_v33, %v3587_v23  ;;  %v3612_v32 = vld [vmem:[%s13399_s3 + $0x5c8] sm:$0xff]  ;;  %v3659_v27 = vld [vmem:[%s13399_s3 + $0x740] sm:$0xff] }
 0x68a   :  { %6343 = vmatpush1.bf16.msra.mxu0 %v6342_v29  ;;  %v3590_v29 = vld [vmem:[%s13399_s3 + $0x518] sm:$0xff]  ;;  %v6364_v43 = vpack.c.bf16 %v3612_v32, %v3604_v40  ;;  %v3668_v23 = vld [vmem:[%s13399_s3 + $0x788] sm:$0xff]  ;;  %v3675_v32 = vld [vmem:[%s13399_s3 + $0x7c0] sm:$0xff] }
 0x68b   :  { %6345 = vmatprep.subr.bf16.mxu0 %v6344_v28  ;;  %v6424_v34 = vpack.c.bf16 %v3598_v31, %v3590_v29  ;;  %v3589_v28 = vld [vmem:[%s13399_s3 + $0x510] sm:$0xff]  ;;  %v3676_v33 = vld [vmem:[%s13399_s3 + $0x7c8] sm:$0xff] }
 0x68c   :  { %6411 = vmatpush1.bf16.msra.mxu1 %v6410_v45  ;;  %v6426_v39 = vpack.c.bf16 %v3597_v38, %v3589_v28  ;;  %v3603_v45 = vld [vmem:[%s13399_s3 + $0x580] sm:$0xff]  ;;  %v3653_v29 = vld [vmem:[%s13399_s3 + $0x710] sm:$0xff]  ;;  %v3670_v28 = vld [vmem:[%s13399_s3 + $0x798] sm:$0xff] }
 0x68d   :  { %6413 = vmatprep.subr.bf16.mxu1 %v6412_v63  ;;  %v6366_v49 = vpack.c.bf16 %v3611_v46, %v3603_v45  ;;  %v3628_v63 = vld [vmem:[%s13399_s3 + $0x648] sm:$0xff]  ;;  %v3661_v31 = vld [vmem:[%s13399_s3 + $0x750] sm:$0xff]  ;;  %v3678_v38 = vld [vmem:[%s13399_s3 + $0x7d8] sm:$0xff] }
 0x68e   :  { %6347 = vmatpush1.bf16.msra.mxu0 %v6346_v41  ;;  %v3606_v41 = vld [vmem:[%s13399_s3 + $0x598] sm:$0xff]  ;;  %v6368_v5 = vpack.c.bf16 %v3628_v63, %v3620_v36  ;;  %v6444_v40 = vpack.c.bf16 %v3678_v38, %v3670_v28  ;;  %v3432_v46 = vld [vmem:[%s13399_s3 + $0x28] sm:$0xff] }
 0x68f   :  { %6349 = vmatprep.subr.bf16.mxu0 %v6348_v50  ;;  %v6428_v48 = vpack.c.bf16 %v3614_v44, %v3606_v41  ;;  %v3605_v50 = vld [vmem:[%s13399_s3 + $0x590] sm:$0xff] }
 0x690   :  { %6415 = vmatpush1.bf16.msra.mxu1 %v6414_v53  ;;  %v6430_v62 = vpack.c.bf16 %v3613_v51, %v3605_v50  ;;  %v3619_v53 = vld [vmem:[%s13399_s3 + $0x600] sm:$0xff]  ;;  %v3669_v41 = vld [vmem:[%s13399_s3 + $0x790] sm:$0xff]  ;;  %v3442_v51 = vld [vmem:[%s13399_s3 + $0x78] sm:$0xff] }
 0x691   :  { %6417 = vmatprep.subr.bf16.mxu1 %v6416_v54  ;;  %v6370_v10 = vpack.c.bf16 %v3627_v55, %v3619_v53  ;;  %v3644_v54 = vld [vmem:[%s13399_s3 + $0x6c8] sm:$0xff] }
 0x692   :  { %6351 = vmatpush1.bf16.msra.mxu0 %v6350_v1  ;;  %v3622_v1 = vld [vmem:[%s13399_s3 + $0x618] sm:$0xff]  ;;  %v6372_v15 = vpack.c.bf16 %v3644_v54, %v3636_v47 }
 0x693   :  { %6353 = vmatprep.subr.bf16.mxu0 %v6352_v11  ;;  %v6432_v42 = vpack.c.bf16 %v3630_v6, %v3622_v1  ;;  %v3621_v11 = vld [vmem:[%s13399_s3 + $0x610] sm:$0xff] }
 0x694   :  { %6419 = vmatpush1.bf16.msra.mxu1 %v6418_v59  ;;  %v6434_v13 = vpack.c.bf16 %v3629_v12, %v3621_v11  ;;  %v3635_v59 = vld [vmem:[%s13399_s3 + $0x680] sm:$0xff] }
 0x695   :  { %6421 = vmatprep.subr.bf16.mxu1 %v6420_v9  ;;  %v6374_v18 = vpack.c.bf16 %v3643_v17, %v3635_v59  ;;  %v3660_v9 = vld [vmem:[%s13399_s3 + $0x748] sm:$0xff] }
 0x696   :  { %6355 = vmatpush1.bf16.msra.mxu0 %v6354_v58  ;;  %v3638_v58 = vld [vmem:[%s13399_s3 + $0x698] sm:$0xff]  ;;  %v6376_v24 = vpack.c.bf16 %v3660_v9, %v3652_v21 }
 0x697   :  { %6357 = vmatprep.subr.bf16.mxu0 %v6356_v52  ;;  %v6436_v4 = vpack.c.bf16 %v3646_v16, %v3638_v58  ;;  %v3637_v52 = vld [vmem:[%s13399_s3 + $0x690] sm:$0xff] }
 0x698   :  { %6423 = vmatpush1.bf16.msra.mxu1 %v6422_v25  ;;  %v6438_v19 = vpack.c.bf16 %v3645_v2, %v3637_v52 }
 0x699   :  { %6425 = vmatprep.subr.bf16.mxu1 %v6424_v34  ;;  %v6442_v34 = vpack.c.bf16 %v3661_v31, %v3653_v29 }
 0x69a   :  { %6359 = vmatpush1.bf16.msra.mxu0 %v6358_v20  ;;  %v3654_v20 = vld [vmem:[%s13399_s3 + $0x718] sm:$0xff] }
 0x69b   :  { %6361 = vmatprep.subr.bf16.mxu0 %v6360_v30  ;;  %v6440_v25 = vpack.c.bf16 %v3662_v22, %v3654_v20  ;;  %v6378_v30 = vpack.c.bf16 %v3659_v27, %v3651_v26 }
 0x69c   :  { %6427 = vmatpush1.bf16.msra.mxu1 %v6426_v39  ;;  %v3667_v39 = vld [vmem:[%s13399_s3 + $0x780] sm:$0xff] }
 0x69d   :  { %6429 = vmatprep.subr.bf16.mxu1 %v6428_v48  ;;  %v6382_v44 = vpack.c.bf16 %v3675_v32, %v3667_v39  ;;  %v3440_v48 = vld [vmem:[%s13399_s3 + $0x68] sm:$0xff] }
 0x69e   :  { %6363 = vmatpush1.bf16.msra.mxu0 %v6362_v35  ;;  %v6380_v35 = vpack.c.bf16 %v3676_v33, %v3668_v23  ;;  %v6448_v50 = vpack.c.bf16 %v3440_v48, %v3432_v46  ;;  %v3441_v46 = vld [vmem:[%s13399_s3 + $0x70] sm:$0xff] }
 0x69f   :  { %6365 = vmatprep.subr.bf16.mxu0 %v6364_v43  ;;  %v3677_v43 = vld [vmem:[%s13399_s3 + $0x7d0] sm:$0xff] }
 0x6a0   :  { %6431 = vmatpush1.bf16.msra.mxu1 %v6430_v62  ;;  %v6446_v45 = vpack.c.bf16 %v3677_v43, %v3669_v41  ;;  %v3431_v43 = vld [vmem:[%s13399_s3 + $0x20] sm:$0xff] }
 0x6a1   :  { %6433 = vmatprep.subr.bf16.mxu1 %v6432_v42 }
 0x6a2   :  { %6367 = vmatpush1.bf16.msra.mxu0 %v6366_v49  ;;  %v3434_v49 = vld [vmem:[%s13399_s3 + $0x38] sm:$0xff] }
 0x6a3   :  { %6369 = vmatprep.subr.bf16.mxu0 %v6368_v5  ;;  %v6512_v62 = vpack.c.bf16 %v3442_v51, %v3434_v49  ;;  %v3448_v49 = vld [vmem:[%s13399_s3 + $0xa8] sm:$0xff] }
 0x6a4   :  { %6435 = vmatpush1.bf16.msra.mxu1 %v6434_v13  ;;  %v3456_v51 = vld [vmem:[%s13399_s3 + $0xe8] sm:$0xff] }
 0x6a5   :  { %6437 = vmatprep.subr.bf16.mxu1 %v6436_v4 }
 0x6a6   :  { %6371 = vmatpush1.bf16.msra.mxu0 %v6370_v10 }
 0x6a7   :  { %6373 = vmatprep.subr.bf16.mxu0 %v6372_v15 }
 0x6a8   :  { %6439 = vmatpush1.bf16.msra.mxu1 %v6438_v19 }
 0x6a9   :  { %6441 = vmatprep.subr.bf16.mxu1 %v6440_v25 }
 0x6aa   :  { %6375 = vmatpush1.bf16.msra.mxu0 %v6374_v18 }
 0x6ab   :  { %6377 = vmatprep.subr.bf16.mxu0 %v6376_v24 }
 0x6ac   :  { %6443 = vmatpush1.bf16.msra.mxu1 %v6442_v34 }
 0x6ad   :  { %6445 = vmatprep.subr.bf16.mxu1 %v6444_v40 }
 0x6ae   :  { %6379 = vmatpush1.bf16.msra.mxu0 %v6378_v30 }
 0x6af   :  { %6381 = vmatprep.subr.bf16.mxu0 %v6380_v35 }
 0x6b0   :  { %6447 = vmatpush1.bf16.msra.mxu1 %v6446_v45  ;;  %v3439_v45 = vld [vmem:[%s13399_s3 + $0x60] sm:$0xff] }
 0x6b1   :  { %6513 = vmatprep.subr.bf16.mxu1 %v6512_v62  ;;  %v3450_v62 = vld [vmem:[%s13399_s3 + $0xb8] sm:$0xff] }
 0x6b2   :  { %6383 = vmatpush1.bf16.msra.mxu0 %v6382_v44 }
 0x6b3   :  { %6449 = vmatprep.subr.bf16.mxu0 %v6448_v50 }
 0x706   :  { %v3148_v36 = vpop.f32.mrb[10].mxu0  ;;  %v3219_v63 = vpop.f32.mrb[10].mxu1 }
 0x707   :  { %v6968_v1 = vadd.f32 %v3148_v36, %v7943_v56  ;;  %v3150_v5 = vpop.f32.mrb[11].mxu0  ;;  %v3221_v6 = vpop.f32.mrb[11].mxu1  ;;  %v6982_v10 = vadd.f32 %v3219_v63, %v7960_v7  ;;  %v3458_v36 = vld [vmem:[%s13399_s3 + $0xf8] sm:$0xff] }
 0x708   :  { %v6969_v53 = vadd.f32 %v3150_v5, %v7947_v57  ;;  %v6983_v22 = vadd.f32 %v3221_v6, %v7954_v0  ;;  %v6450_v5 = vpack.c.bf16 %v3439_v45, %v3431_v43  ;;  %v3497_v45 = vld [vmem:[%s13399_s3 + $0x230] sm:$0xff] }
 0x709   :  { %v4958_v55 = vmul.f32 -1.442695, %v6968_v1 }
 0x70a   :  { %v4959_v42 = vmul.f32 -1.442695, %v6969_v53  ;;  %v4960_v25 = vmul.f32 -1.442695, %v6983_v22  ;;  %v3447_v53 = vld [vmem:[%s13399_s3 + $0xa0] sm:$0xff]  ;;  %v3482_v22 = vld [vmem:[%s13399_s3 + $0x1b8] sm:$0xff] }
 0x70b   :  { %7161 = vpow2.f32 %v4958_v55  ;;  %v3455_v55 = vld [vmem:[%s13399_s3 + $0xe0] sm:$0xff] }
 0x70c   :  { %7163 = vpow2.f32 %v4959_v42 }
 0x70d   :  { %7165 = vtanh.f32 %v6982_v10  ;;  %v3449_v10 = vld [vmem:[%s13399_s3 + $0xb0] sm:$0xff] }
 0x715   :  { %v7162_v11 = vpop.eup %7161 }
 0x716   :  { %v7164_v12 = vpop.eup %7163  ;;  %v3406_v13 = vadd.f32 1.0, %v7162_v11  ;;  %v3457_v11 = vld [vmem:[%s13399_s3 + $0xf0] sm:$0xff] }
 0x717   :  { %v3412_v47 = vadd.f32 1.0, %v7164_v12  ;;  %v7166_v54 = vpop.eup %7165  ;;  %v3464_v12 = vld [vmem:[%s13399_s3 + $0x128] sm:$0xff] }
 0x718   :  { %7167 = vrcp.f32 %v3406_v13  ;;  %v6452_v13 = vpack.c.bf16 %v3456_v51, %v3448_v49  ;;  %v3514_v49 = vld [vmem:[%s13399_s3 + $0x2b8] sm:$0xff] }
 0x719   :  { %7169 = vrcp.f32 %v3412_v47  ;;  %v6516_v47 = vpack.c.bf16 %v3458_v36, %v3450_v62  ;;  %v3511_v36 = vld [vmem:[%s13399_s3 + $0x2a0] sm:$0xff] }
 0x722   :  { %v7168_v58 = vpop.eup %7167 }
 0x723   :  { %v7170_v15 = vpop.eup %7169  ;;  %v3423_v16 = vmul.f32 %v7168_v58, %v7166_v54  ;;  %v3472_v54 = vld [vmem:[%s13399_s3 + $0x168] sm:$0xff]  ;;  %v3466_v58 = vld [vmem:[%s13399_s3 + $0x138] sm:$0xff] }
 0x724   :  { %v3422_v59 = vmul.f32 %v7170_v15, %v11143_v14  ;;  %v3474_v15 = vld [vmem:[%s13399_s3 + $0x178] sm:$0xff] }
 0x726   :  { %v11936_v17 = vadd.f32 %v3423_v16, %v3422_v59  ;;  %v6454_v16 = vpack.c.bf16 %v3455_v55, %v3447_v53  ;;  %v6518_v59 = vpack.c.bf16 %v3457_v11, %v3449_v10  ;;  %v3521_v53 = vld [vmem:[%s13399_s3 + $0x2f0] sm:$0xff]  ;;  %v3528_v55 = vld [vmem:[%s13399_s3 + $0x328] sm:$0xff]  ;;  %v3530_v11 = vld [vmem:[%s13399_s3 + $0x338] sm:$0xff] }
 0x727   :  { %v3536_v10 = vld [vmem:[%s13399_s3 + $0x368] sm:$0xff] }
 0x746   :  { %v3290_v4 = vpop.f32.mrb[24].mxu0  ;;  %v3361_v18 = vpop.f32.mrb[24].mxu1 }
 0x747   :  { %v3374_v52 = vadd.f32 %v3290_v4, %v8753_v60  ;;  %v3292_v2 = vpop.f32.mrb[25].mxu0  ;;  %v3363_v21 = vpop.f32.mrb[25].mxu1  ;;  %v3376_v26 = vadd.f32 %v3361_v18, %v8769_v3  ;;  %v3463_v4 = vld [vmem:[%s13399_s3 + $0x120] sm:$0xff] }
 0x748   :  { %v3375_v19 = vadd.f32 %v3292_v2, %v8757_v61  ;;  %v3377_v24 = vadd.f32 %v3363_v21, %v8763_v8  ;;  %v3471_v18 = vld [vmem:[%s13399_s3 + $0x160] sm:$0xff]  ;;  %v6520_v2 = vpack.c.bf16 %v3474_v15, %v3466_v58  ;;  %v3465_v21 = vld [vmem:[%s13399_s3 + $0x130] sm:$0xff]  ;;  %v6472_v15 = vpack.c.bf16 %v3536_v10, %v3528_v55 }
 0x749   :  { %v4955_v9 = vmul.f32 -1.442695, %v3374_v52  ;;  %v6456_v52 = vpack.c.bf16 %v3472_v54, %v3464_v12  ;;  %v3538_v12 = vld [vmem:[%s13399_s3 + $0x378] sm:$0xff]  ;;  %v3527_v54 = vld [vmem:[%s13399_s3 + $0x320] sm:$0xff] }
 0x74a   :  { %v4956_v20 = vmul.f32 -1.442695, %v3375_v19  ;;  %v4957_v14 = vmul.f32 -1.442695, %v3377_v24  ;;  %v3473_v19 = vld [vmem:[%s13399_s3 + $0x170] sm:$0xff]  ;;  %v3490_v24 = vld [vmem:[%s13399_s3 + $0x1f8] sm:$0xff] }
 0x74b   :  { %7171 = vpow2.f32 %v4955_v9  ;;  %v3480_v9 = vld [vmem:[%s13399_s3 + $0x1a8] sm:$0xff]  ;;  %v3535_v58 = vld [vmem:[%s13399_s3 + $0x360] sm:$0xff] }
 0x74c   :  { %7173 = vpow2.f32 %v4956_v20  ;;  %v3488_v20 = vld [vmem:[%s13399_s3 + $0x1e8] sm:$0xff]  ;;  %v3591_v10 = vld [vmem:[%s13399_s3 + $0x520] sm:$0xff] }
 0x74d   :  { %7175 = vpow2.f32 %v4960_v25  ;;  %v6458_v25 = vpack.c.bf16 %v3471_v18, %v3463_v4  ;;  %v3537_v4 = vld [vmem:[%s13399_s3 + $0x370] sm:$0xff]  ;;  %v3544_v18 = vld [vmem:[%s13399_s3 + $0x3a8] sm:$0xff] }
 0x74e   :  { %7177 = vpow2.f32 %v4957_v14  ;;  %v6522_v14 = vpack.c.bf16 %v3473_v19, %v3465_v21  ;;  %v3554_v21 = vld [vmem:[%s13399_s3 + $0x3f8] sm:$0xff]  ;;  %v6474_v19 = vpack.c.bf16 %v3535_v58, %v3527_v54  ;;  %v3601_v54 = vld [vmem:[%s13399_s3 + $0x570] sm:$0xff]  ;;  %v3608_v58 = vld [vmem:[%s13399_s3 + $0x5a8] sm:$0xff] }
 0x74f   :  { %7179 = vtanh.f32 %v3376_v26  ;;  %v3479_v26 = vld [vmem:[%s13399_s3 + $0x1a0] sm:$0xff] }
 0x755   :  { %v7172_v27 = vpop.eup %7171 }
 0x756   :  { %v7174_v29 = vpop.eup %7173  ;;  %v3381_v30 = vadd.f32 1.0, %v7172_v27  ;;  %v3487_v27 = vld [vmem:[%s13399_s3 + $0x1e0] sm:$0xff] }
 0x757   :  { %v3387_v31 = vadd.f32 1.0, %v7174_v29  ;;  %v7176_v23 = vpop.eup %7175  ;;  %v6460_v29 = vpack.c.bf16 %v3488_v20, %v3480_v9  ;;  %v3543_v20 = vld [vmem:[%s13399_s3 + $0x3a0] sm:$0xff] }
 0x758   :  { %7181 = vrcp.f32 %v3381_v30  ;;  %v7178_v33 = vpop.eup %7177  ;;  %v3419_v32 = vadd.f32 1.0, %v7176_v23  ;;  %v6524_v30 = vpack.c.bf16 %v3490_v24, %v3482_v22  ;;  %v3489_v23 = vld [vmem:[%s13399_s3 + $0x1f0] sm:$0xff]  ;;  %v3551_v22 = vld [vmem:[%s13399_s3 + $0x3e0] sm:$0xff] }
 0x759   :  { %7183 = vrcp.f32 %v3387_v31  ;;  %v7180_v34 = vpop.eup %7179  ;;  %v3394_v39 = vadd.f32 1.0, %v7178_v33  ;;  %v3481_v31 = vld [vmem:[%s13399_s3 + $0x1b0] sm:$0xff]  ;;  %v3496_v33 = vld [vmem:[%s13399_s3 + $0x228] sm:$0xff] }
 0x75a   :  { %7185 = vtanh.f32 %v11936_v17 }
 0x75b   :  { %7187 = vrcp.f32 %v3394_v39  ;;  %v6526_v39 = vpack.c.bf16 %v3489_v23, %v3481_v31  ;;  %v3570_v31 = vld [vmem:[%s13399_s3 + $0x478] sm:$0xff]  ;;  %v6478_v23 = vpack.c.bf16 %v3551_v22, %v3543_v20  ;;  %v3617_v20 = vld [vmem:[%s13399_s3 + $0x5f0] sm:$0xff]  ;;  %v3624_v22 = vld [vmem:[%s13399_s3 + $0x628] sm:$0xff] }
 0x762   :  { %v7182_v35 = vpop.eup %7181 }
 0x763   :  { %v7184_v28 = vpop.eup %7183  ;;  %v3398_v38 = vmul.f32 %v7182_v35, %v7180_v34  ;;  %v3504_v34 = vld [vmem:[%s13399_s3 + $0x268] sm:$0xff]  ;;  %v3498_v35 = vld [vmem:[%s13399_s3 + $0x238] sm:$0xff] }
 0x764   :  { %v3397_v40 = vmul.f32 %v7184_v28, %v11151_v37  ;;  %v7186_v44 = vpop.eup %7185  ;;  %v3433_v37 = vld [vmem:[%s13399_s3 + $0x30] sm:$0xff]  ;;  %v3506_v28 = vld [vmem:[%s13399_s3 + $0x278] sm:$0xff]  ;;  %v6464_v43 = vpack.c.bf16 %v3504_v34, %v3496_v33  ;;  %v3559_v34 = vld [vmem:[%s13399_s3 + $0x420] sm:$0xff] }
 0x765   :  { %v7188_v48 = vpop.eup %7187  ;;  %v6514_v6 = vpack.c.bf16 %v3441_v46, %v3433_v37  ;;  %v3505_v37 = vld [vmem:[%s13399_s3 + $0x270] sm:$0xff]  ;;  %v3512_v46 = vld [vmem:[%s13399_s3 + $0x2a8] sm:$0xff] }
 0x766   :  { %v11944_v41 = vadd.f32 %v3398_v38, %v3397_v40  ;;  %v6462_v38 = vpack.c.bf16 %v3487_v27, %v3479_v26  ;;  %v3495_v40 = vld [vmem:[%s13399_s3 + $0x220] sm:$0xff]  ;;  %v6530_v62 = vpack.c.bf16 %v3505_v37, %v3497_v45  ;;  %v3553_v26 = vld [vmem:[%s13399_s3 + $0x3f0] sm:$0xff]  ;;  %v3560_v27 = vld [vmem:[%s13399_s3 + $0x428] sm:$0xff] }
 0x767   :  { %v3586_v45 = vld [vmem:[%s13399_s3 + $0x4f8] sm:$0xff] }
 0x768   :  { %7189 = vtanh.f32 %v11944_v41 }
 0x769   :  { %7191 = vrcp.f32 %v3419_v32  ;;  %v3503_v32 = vld [vmem:[%s13399_s3 + $0x260] sm:$0xff] }
 0x76a   :  { %v6466_v51 = vpack.c.bf16 %v3503_v32, %v3495_v40  ;;  %v3569_v40 = vld [vmem:[%s13399_s3 + $0x470] sm:$0xff]  ;;  %v3576_v32 = vld [vmem:[%s13399_s3 + $0x4a8] sm:$0xff] }
 0x772   :  { %v7190_v50 = vpop.eup %7189 }
 0x773   :  { %v7192_v63 = vpop.eup %7191  ;;  %v3401_v1 = vmul.f32 %v7190_v50, %v7188_v48  ;;  %v3520_v48 = vld [vmem:[%s13399_s3 + $0x2e8] sm:$0xff]  ;;  %v3522_v50 = vld [vmem:[%s13399_s3 + $0x2f8] sm:$0xff] }
 0x774   :  { %v11978_v42 = vmul.f32 %v7192_v63, %v7186_v44  ;;  %v6528_v44 = vpack.c.bf16 %v3506_v28, %v3498_v35  ;;  %v3519_v63 = vld [vmem:[%s13399_s3 + $0x2e0] sm:$0xff] }
 0x775   :  { %3402 = vst [vmem:[%s13403_s5 + $0x20] sm:$0xff] %v3401_v1  ;;  %3747 = vmatprep.mubr.f32.mxu0 %v3401_v1  ;;  %3818 = vmatprep.mubr.f32.mxu1 %v3401_v1  ;;  %v3567_v35 = vld [vmem:[%s13399_s3 + $0x460] sm:$0xff] }
 0x776   :  { %3748 = vmatmul.mubr.f32.vlgmr.msra.gmra.mrb[12].mxu0 %v11978_v42  ;;  %3819 = vmatmul.mubr.f32.vlgmr.msra.gmra.mrb[12].mxu1 %v11978_v42  ;;  %v6482_v37 = vpack.c.bf16 %v3567_v35, %v3559_v34  ;;  %v3633_v34 = vld [vmem:[%s13399_s3 + $0x670] sm:$0xff]  ;;  %v3640_v35 = vld [vmem:[%s13399_s3 + $0x6a8] sm:$0xff] }
 0x777   :  { %6451 = vmatpush1.bf16.msra.mxu0 %v6450_v5  ;;  %6515 = vmatpush1.bf16.msra.mxu1 %v6514_v6  ;;  %v6532_v5 = vpack.c.bf16 %v3522_v50, %v3514_v49  ;;  %v3513_v6 = vld [vmem:[%s13399_s3 + $0x2b0] sm:$0xff]  ;;  %v3583_v49 = vld [vmem:[%s13399_s3 + $0x4e0] sm:$0xff] }
 0x778   :  { %3889 = vmatprep.mubr.f32.mxu0 %v3401_v1  ;;  %3960 = vmatprep.mubr.f32.mxu1 %v3401_v1  ;;  %v6468_v1 = vpack.c.bf16 %v3520_v48, %v3512_v46  ;;  %v3575_v48 = vld [vmem:[%s13399_s3 + $0x4a0] sm:$0xff] }
 0x779   :  { %6453 = vmatprep.subr.bf16.mxu0 %v6452_v13  ;;  %6517 = vmatprep.subr.bf16.mxu1 %v6516_v47  ;;  %v6470_v13 = vpack.c.bf16 %v3519_v63, %v3511_v36  ;;  %v6534_v47 = vpack.c.bf16 %v3521_v53, %v3513_v6  ;;  %v3585_v36 = vld [vmem:[%s13399_s3 + $0x4f0] sm:$0xff]  ;;  %v3592_v63 = vld [vmem:[%s13399_s3 + $0x528] sm:$0xff]  ;;  %v3602_v6 = vld [vmem:[%s13399_s3 + $0x578] sm:$0xff]  ;;  %v6486_v53 = vpack.c.bf16 %v3583_v49, %v3575_v48 }
 0x77a   :  { %v3649_v48 = vld [vmem:[%s13399_s3 + $0x6f0] sm:$0xff]  ;;  %v3656_v49 = vld [vmem:[%s13399_s3 + $0x728] sm:$0xff] }
 0x77b   :  { %6455 = vmatpush1.bf16.msra.mxu0 %v6454_v16  ;;  %6519 = vmatpush1.bf16.msra.mxu1 %v6518_v59  ;;  %v6536_v16 = vpack.c.bf16 %v3538_v12, %v3530_v11  ;;  %v3529_v59 = vld [vmem:[%s13399_s3 + $0x330] sm:$0xff]  ;;  %v3599_v11 = vld [vmem:[%s13399_s3 + $0x560] sm:$0xff] }
 0x77c   :  { %6457 = vmatprep.subr.bf16.mxu0 %v6456_v52  ;;  %6521 = vmatprep.subr.bf16.mxu1 %v6520_v2  ;;  %v3552_v52 = vld [vmem:[%s13399_s3 + $0x3e8] sm:$0xff]  ;;  %v3546_v2 = vld [vmem:[%s13399_s3 + $0x3b8] sm:$0xff]  ;;  %v6538_v9 = vpack.c.bf16 %v3537_v4, %v3529_v59  ;;  %v6490_v4 = vpack.c.bf16 %v3599_v11, %v3591_v10  ;;  %v3665_v10 = vld [vmem:[%s13399_s3 + $0x770] sm:$0xff] }
 0x77d   :  { %v6476_v24 = vpack.c.bf16 %v3552_v52, %v3544_v18  ;;  %v3618_v59 = vld [vmem:[%s13399_s3 + $0x5f8] sm:$0xff]  ;;  %v3607_v52 = vld [vmem:[%s13399_s3 + $0x5a0] sm:$0xff]  ;;  %v3672_v11 = vld [vmem:[%s13399_s3 + $0x7a8] sm:$0xff] }
 0x77f   :  { %6459 = vmatpush1.bf16.msra.mxu0 %v6458_v25  ;;  %6523 = vmatpush1.bf16.msra.mxu1 %v6522_v14  ;;  %v6540_v25 = vpack.c.bf16 %v3554_v21, %v3546_v2  ;;  %v3545_v14 = vld [vmem:[%s13399_s3 + $0x3b0] sm:$0xff]  ;;  %v3615_v2 = vld [vmem:[%s13399_s3 + $0x5e0] sm:$0xff] }
 0x780   :  { %6461 = vmatprep.subr.bf16.mxu0 %v6460_v29  ;;  %6525 = vmatprep.subr.bf16.mxu1 %v6524_v30  ;;  %v3568_v29 = vld [vmem:[%s13399_s3 + $0x468] sm:$0xff]  ;;  %v3562_v30 = vld [vmem:[%s13399_s3 + $0x438] sm:$0xff]  ;;  %v6542_v33 = vpack.c.bf16 %v3553_v26, %v3545_v14  ;;  %v6494_v26 = vpack.c.bf16 %v3615_v2, %v3607_v52  ;;  %v3681_v52 = vld [vmem:[%s13399_s3 + $0x7f0] sm:$0xff] }
 0x781   :  { %v6480_v28 = vpack.c.bf16 %v3568_v29, %v3560_v27  ;;  %v3634_v14 = vld [vmem:[%s13399_s3 + $0x678] sm:$0xff]  ;;  %v3623_v29 = vld [vmem:[%s13399_s3 + $0x620] sm:$0xff] }
 0x783   :  { %6463 = vmatpush1.bf16.msra.mxu0 %v6462_v38  ;;  %6527 = vmatpush1.bf16.msra.mxu1 %v6526_v39  ;;  %v6544_v38 = vpack.c.bf16 %v3570_v31, %v3562_v30  ;;  %v3561_v39 = vld [vmem:[%s13399_s3 + $0x430] sm:$0xff]  ;;  %v3631_v30 = vld [vmem:[%s13399_s3 + $0x660] sm:$0xff] }
 0x784   :  { %6465 = vmatprep.subr.bf16.mxu0 %v6464_v43  ;;  %6529 = vmatprep.subr.bf16.mxu1 %v6528_v44  ;;  %v3584_v43 = vld [vmem:[%s13399_s3 + $0x4e8] sm:$0xff]  ;;  %v3578_v44 = vld [vmem:[%s13399_s3 + $0x4b8] sm:$0xff]  ;;  %v6546_v46 = vpack.c.bf16 %v3569_v40, %v3561_v39  ;;  %v6498_v40 = vpack.c.bf16 %v3631_v30, %v3623_v29  ;;  %v4038_v29 = vld [vmem:[%s13399_s3 + $0x50] sm:$0xff] }
 0x785   :  { %v6484_v50 = vpack.c.bf16 %v3584_v43, %v3576_v32  ;;  %v3650_v39 = vld [vmem:[%s13399_s3 + $0x6f8] sm:$0xff]  ;;  %v3639_v43 = vld [vmem:[%s13399_s3 + $0x6a0] sm:$0xff]  ;;  %v4045_v30 = vld [vmem:[%s13399_s3 + $0x88] sm:$0xff] }
 0x787   :  { %6467 = vmatpush1.bf16.msra.mxu0 %v6466_v51  ;;  %6531 = vmatpush1.bf16.msra.mxu1 %v6530_v62  ;;  %v6548_v51 = vpack.c.bf16 %v3586_v45, %v3578_v44  ;;  %v3577_v62 = vld [vmem:[%s13399_s3 + $0x4b0] sm:$0xff]  ;;  %v3647_v44 = vld [vmem:[%s13399_s3 + $0x6e0] sm:$0xff] }
 0x788   :  { %6469 = vmatprep.subr.bf16.mxu0 %v6468_v1  ;;  %6533 = vmatprep.subr.bf16.mxu1 %v6532_v5  ;;  %v3600_v1 = vld [vmem:[%s13399_s3 + $0x568] sm:$0xff]  ;;  %v3594_v5 = vld [vmem:[%s13399_s3 + $0x538] sm:$0xff]  ;;  %v6550_v55 = vpack.c.bf16 %v3585_v36, %v3577_v62  ;;  %v6502_v36 = vpack.c.bf16 %v3647_v44, %v3639_v43  ;;  %v4054_v43 = vld [vmem:[%s13399_s3 + $0xd0] sm:$0xff] }
 0x789   :  { %v6488_v12 = vpack.c.bf16 %v3600_v1, %v3592_v63  ;;  %v3666_v62 = vld [vmem:[%s13399_s3 + $0x778] sm:$0xff]  ;;  %v3655_v1 = vld [vmem:[%s13399_s3 + $0x720] sm:$0xff]  ;;  %v4061_v44 = vld [vmem:[%s13399_s3 + $0x108] sm:$0xff] }
 0x78b   :  { %6471 = vmatpush1.bf16.msra.mxu0 %v6470_v13  ;;  %6535 = vmatpush1.bf16.msra.mxu1 %v6534_v47  ;;  %v6552_v13 = vpack.c.bf16 %v3602_v6, %v3594_v5  ;;  %v3593_v47 = vld [vmem:[%s13399_s3 + $0x530] sm:$0xff]  ;;  %v3663_v5 = vld [vmem:[%s13399_s3 + $0x760] sm:$0xff] }
 0x78c   :  { %6473 = vmatprep.subr.bf16.mxu0 %v6472_v15  ;;  %6537 = vmatprep.subr.bf16.mxu1 %v6536_v16  ;;  %v3616_v15 = vld [vmem:[%s13399_s3 + $0x5e8] sm:$0xff]  ;;  %v3610_v16 = vld [vmem:[%s13399_s3 + $0x5b8] sm:$0xff]  ;;  %v6554_v18 = vpack.c.bf16 %v3601_v54, %v3593_v47  ;;  %v6506_v54 = vpack.c.bf16 %v3663_v5, %v3655_v1 }
 0x78d   :  { %v6492_v21 = vpack.c.bf16 %v3616_v15, %v3608_v58  ;;  %v3682_v47 = vld [vmem:[%s13399_s3 + $0x7f8] sm:$0xff]  ;;  %v3671_v15 = vld [vmem:[%s13399_s3 + $0x7a0] sm:$0xff]  ;;  %v4077_v5 = vld [vmem:[%s13399_s3 + $0x188] sm:$0xff] }
 0x78f   :  { %6475 = vmatpush1.bf16.msra.mxu0 %v6474_v19  ;;  %6539 = vmatpush1.bf16.msra.mxu1 %v6538_v9  ;;  %v6556_v19 = vpack.c.bf16 %v3618_v59, %v3610_v16  ;;  %v3609_v9 = vld [vmem:[%s13399_s3 + $0x5b0] sm:$0xff] }
 0x790   :  { %6477 = vmatprep.subr.bf16.mxu0 %v6476_v24  ;;  %6541 = vmatprep.subr.bf16.mxu1 %v6540_v25  ;;  %v3632_v24 = vld [vmem:[%s13399_s3 + $0x668] sm:$0xff]  ;;  %v3626_v25 = vld [vmem:[%s13399_s3 + $0x638] sm:$0xff]  ;;  %v6558_v27 = vpack.c.bf16 %v3617_v20, %v3609_v9 }
 0x791   :  { %v6496_v31 = vpack.c.bf16 %v3632_v24, %v3624_v22  ;;  %v4037_v9 = vld [vmem:[%s13399_s3 + $0x48] sm:$0xff]  ;;  %v4031_v20 = vld [vmem:[%s13399_s3 + $0x18] sm:$0xff] }
 0x792   :  { %v4039_v24 = vld [vmem:[%s13399_s3 + $0x58] sm:$0xff] }
 0x793   :  { %6479 = vmatpush1.bf16.msra.mxu0 %v6478_v23  ;;  %6543 = vmatpush1.bf16.msra.mxu1 %v6542_v33  ;;  %v6560_v23 = vpack.c.bf16 %v3634_v14, %v3626_v25  ;;  %v3625_v33 = vld [vmem:[%s13399_s3 + $0x630] sm:$0xff]  ;;  %v4036_v25 = vld [vmem:[%s13399_s3 + $0x40] sm:$0xff]  ;;  %v6640_v14 = vpack.c.bf16 %v4039_v24, %v4031_v20 }
 0x794   :  { %6481 = vmatprep.subr.bf16.mxu0 %v6480_v28  ;;  %6545 = vmatprep.subr.bf16.mxu1 %v6544_v38  ;;  %v3648_v28 = vld [vmem:[%s13399_s3 + $0x6e8] sm:$0xff]  ;;  %v3642_v38 = vld [vmem:[%s13399_s3 + $0x6b8] sm:$0xff]  ;;  %v6562_v32 = vpack.c.bf16 %v3633_v34, %v3625_v33  ;;  %v4094_v20 = vld [vmem:[%s13399_s3 + $0x210] sm:$0xff] }
 0x795   :  { %v6500_v45 = vpack.c.bf16 %v3648_v28, %v3640_v35  ;;  %v4047_v33 = vld [vmem:[%s13399_s3 + $0x98] sm:$0xff]  ;;  %v4102_v24 = vld [vmem:[%s13399_s3 + $0x250] sm:$0xff] }
 0x796   :  { %v4055_v34 = vld [vmem:[%s13399_s3 + $0xd8] sm:$0xff] }
 0x797   :  { %6483 = vmatpush1.bf16.msra.mxu0 %v6482_v37  ;;  %6547 = vmatpush1.bf16.msra.mxu1 %v6546_v46  ;;  %v6564_v37 = vpack.c.bf16 %v3650_v39, %v3642_v38  ;;  %v3641_v46 = vld [vmem:[%s13399_s3 + $0x6b0] sm:$0xff]  ;;  %v6644_v28 = vpack.c.bf16 %v4055_v34, %v4047_v33  ;;  %v4044_v38 = vld [vmem:[%s13399_s3 + $0x80] sm:$0xff] }
 0x798   :  { %6485 = vmatprep.subr.bf16.mxu0 %v6484_v50  ;;  %6549 = vmatprep.subr.bf16.mxu1 %v6548_v51  ;;  %v3664_v50 = vld [vmem:[%s13399_s3 + $0x768] sm:$0xff]  ;;  %v3658_v51 = vld [vmem:[%s13399_s3 + $0x738] sm:$0xff]  ;;  %v6566_v63 = vpack.c.bf16 %v3649_v48, %v3641_v46  ;;  %v4052_v39 = vld [vmem:[%s13399_s3 + $0xc0] sm:$0xff] }
 0x799   :  { %v6504_v6 = vpack.c.bf16 %v3664_v50, %v3656_v49  ;;  %v4063_v48 = vld [vmem:[%s13399_s3 + $0x118] sm:$0xff]  ;;  %v4060_v50 = vld [vmem:[%s13399_s3 + $0x100] sm:$0xff]  ;;  %v4110_v34 = vld [vmem:[%s13399_s3 + $0x290] sm:$0xff] }
 0x79a   :  { %v4071_v49 = vld [vmem:[%s13399_s3 + $0x158] sm:$0xff] }
 0x79b   :  { %6487 = vmatpush1.bf16.msra.mxu0 %v6486_v53  ;;  %6551 = vmatpush1.bf16.msra.mxu1 %v6550_v55  ;;  %v6568_v53 = vpack.c.bf16 %v3666_v62, %v3658_v51  ;;  %v3657_v55 = vld [vmem:[%s13399_s3 + $0x730] sm:$0xff]  ;;  %v6648_v51 = vpack.c.bf16 %v4071_v49, %v4063_v48  ;;  %v4068_v62 = vld [vmem:[%s13399_s3 + $0x140] sm:$0xff] }
 0x79c   :  { %6489 = vmatprep.subr.bf16.mxu0 %v6488_v12  ;;  %6553 = vmatprep.subr.bf16.mxu1 %v6552_v13  ;;  %v3680_v12 = vld [vmem:[%s13399_s3 + $0x7e8] sm:$0xff]  ;;  %v3674_v13 = vld [vmem:[%s13399_s3 + $0x7b8] sm:$0xff]  ;;  %v6570_v58 = vpack.c.bf16 %v3665_v10, %v3657_v55  ;;  %v6586_v1 = vpack.c.bf16 %v4068_v62, %v4060_v50  ;;  %v4126_v48 = vld [vmem:[%s13399_s3 + $0x310] sm:$0xff] }
 0x79d   :  { %v6508_v16 = vpack.c.bf16 %v3680_v12, %v3672_v11  ;;  %v6572_v59 = vpack.c.bf16 %v3682_v47, %v3674_v13  ;;  %v4087_v11 = vld [vmem:[%s13399_s3 + $0x1d8] sm:$0xff]  ;;  %v4076_v12 = vld [vmem:[%s13399_s3 + $0x180] sm:$0xff]  ;;  %v4134_v49 = vld [vmem:[%s13399_s3 + $0x350] sm:$0xff] }
 0x79e   :  { %v4084_v13 = vld [vmem:[%s13399_s3 + $0x1c0] sm:$0xff]  ;;  %v6666_v50 = vpack.c.bf16 %v4134_v49, %v4126_v48  ;;  %v4149_v62 = vld [vmem:[%s13399_s3 + $0x3c8] sm:$0xff]  ;;  %v4215_v49 = vld [vmem:[%s13399_s3 + $0x5d8] sm:$0xff] }
 0x79f   :  { %6491 = vmatpush1.bf16.msra.mxu0 %v6490_v4  ;;  %6555 = vmatpush1.bf16.msra.mxu1 %v6554_v18  ;;  %v3679_v4 = vld [vmem:[%s13399_s3 + $0x7e0] sm:$0xff]  ;;  %v3673_v18 = vld [vmem:[%s13399_s3 + $0x7b0] sm:$0xff] }
 0x7a0   :  { %6493 = vmatprep.subr.bf16.mxu0 %v6492_v21  ;;  %6557 = vmatprep.subr.bf16.mxu1 %v6556_v19  ;;  %v6510_v2 = vpack.c.bf16 %v3679_v4, %v3671_v15  ;;  %v6574_v21 = vpack.c.bf16 %v3681_v52, %v3673_v18  ;;  %v4029_v19 = vld [vmem:[%s13399_s3 + $0x8] sm:$0xff]  ;;  %v4103_v4 = vld [vmem:[%s13399_s3 + $0x258] sm:$0xff]  ;;  %v6590_v18 = vpack.c.bf16 %v4084_v13, %v4076_v12 }
 0x7a1   :  { %v6576_v22 = vpack.c.bf16 %v4037_v9, %v4029_v19  ;;  %v4093_v15 = vld [vmem:[%s13399_s3 + $0x208] sm:$0xff]  ;;  %v4092_v19 = vld [vmem:[%s13399_s3 + $0x200] sm:$0xff] }
 0x7a2   :  { %v4100_v9 = vld [vmem:[%s13399_s3 + $0x240] sm:$0xff]  ;;  %v4157_v13 = vld [vmem:[%s13399_s3 + $0x408] sm:$0xff] }
 0x7a3   :  { %6495 = vmatpush1.bf16.msra.mxu0 %v6494_v26  ;;  %6559 = vmatpush1.bf16.msra.mxu1 %v6558_v27  ;;  %v4030_v27 = vld [vmem:[%s13399_s3 + $0x10] sm:$0xff] }
 0x7a4   :  { %6497 = vmatprep.subr.bf16.mxu0 %v6496_v31  ;;  %6561 = vmatprep.subr.bf16.mxu1 %v6560_v23  ;;  %v6642_v31 = vpack.c.bf16 %v4038_v29, %v4030_v27  ;;  %v4053_v23 = vld [vmem:[%s13399_s3 + $0xc8] sm:$0xff]  ;;  %v4119_v29 = vld [vmem:[%s13399_s3 + $0x2d8] sm:$0xff] }
 0x7a5   :  { %v6580_v35 = vpack.c.bf16 %v4053_v23, %v4045_v30  ;;  %v4108_v30 = vld [vmem:[%s13399_s3 + $0x280] sm:$0xff] }
 0x7a7   :  { %6499 = vmatpush1.bf16.msra.mxu0 %v6498_v40  ;;  %6563 = vmatpush1.bf16.msra.mxu1 %v6562_v32  ;;  %v4046_v40 = vld [vmem:[%s13399_s3 + $0x90] sm:$0xff]  ;;  %v6582_v32 = vpack.c.bf16 %v4052_v39, %v4044_v38  ;;  %v4125_v38 = vld [vmem:[%s13399_s3 + $0x308] sm:$0xff] }
 0x7a8   :  { %6501 = vmatprep.subr.bf16.mxu0 %v6500_v45  ;;  %6565 = vmatprep.subr.bf16.mxu1 %v6564_v37  ;;  %v4069_v45 = vld [vmem:[%s13399_s3 + $0x148] sm:$0xff]  ;;  %v6646_v37 = vpack.c.bf16 %v4054_v43, %v4046_v40  ;;  %v4127_v40 = vld [vmem:[%s13399_s3 + $0x318] sm:$0xff] }
 0x7a9   :  { %v6584_v46 = vpack.c.bf16 %v4069_v45, %v4061_v44  ;;  %v4133_v39 = vld [vmem:[%s13399_s3 + $0x348] sm:$0xff]  ;;  %v4135_v43 = vld [vmem:[%s13399_s3 + $0x358] sm:$0xff]  ;;  %v4124_v44 = vld [vmem:[%s13399_s3 + $0x300] sm:$0xff] }
 0x7aa   :  { %v4132_v45 = vld [vmem:[%s13399_s3 + $0x340] sm:$0xff] }
 0x7ab   :  { %6503 = vmatpush1.bf16.msra.mxu0 %v6502_v36  ;;  %6567 = vmatpush1.bf16.msra.mxu1 %v6566_v63  ;;  %v4062_v36 = vld [vmem:[%s13399_s3 + $0x110] sm:$0xff] }
 0x7ac   :  { %6505 = vmatprep.subr.bf16.mxu0 %v6504_v6  ;;  %6569 = vmatprep.subr.bf16.mxu1 %v6568_v53  ;;  %v4070_v63 = vld [vmem:[%s13399_s3 + $0x150] sm:$0xff]  ;;  %v4085_v6 = vld [vmem:[%s13399_s3 + $0x1c8] sm:$0xff]  ;;  %v4079_v53 = vld [vmem:[%s13399_s3 + $0x198] sm:$0xff] }
 0x7ad   :  { %v6650_v55 = vpack.c.bf16 %v4070_v63, %v4062_v36  ;;  %v6588_v10 = vpack.c.bf16 %v4085_v6, %v4077_v5  ;;  %v6652_v47 = vpack.c.bf16 %v4087_v11, %v4079_v53  ;;  %v4143_v36 = vld [vmem:[%s13399_s3 + $0x398] sm:$0xff]  ;;  %v4140_v5 = vld [vmem:[%s13399_s3 + $0x380] sm:$0xff]  ;;  %v4150_v11 = vld [vmem:[%s13399_s3 + $0x3d0] sm:$0xff] }
 0x7ae   :  { %v4148_v6 = vld [vmem:[%s13399_s3 + $0x3c0] sm:$0xff] }
 0x7af   :  { %6507 = vmatpush1.bf16.msra.mxu0 %v6506_v54  ;;  %6571 = vmatpush1.bf16.msra.mxu1 %v6570_v58  ;;  %v4078_v54 = vld [vmem:[%s13399_s3 + $0x190] sm:$0xff] }
 0x7b0   :  { %6509 = vmatprep.subr.bf16.mxu0 %v6508_v16  ;;  %6573 = vmatprep.subr.bf16.mxu1 %v6572_v59  ;;  %v4086_v58 = vld [vmem:[%s13399_s3 + $0x1d0] sm:$0xff]  ;;  %v4101_v16 = vld [vmem:[%s13399_s3 + $0x248] sm:$0xff]  ;;  %v4095_v59 = vld [vmem:[%s13399_s3 + $0x218] sm:$0xff] }
 0x7b1   :  { %v6654_v52 = vpack.c.bf16 %v4086_v58, %v4078_v54  ;;  %v4159_v54 = vld [vmem:[%s13399_s3 + $0x418] sm:$0xff] }
 0x7b3   :  { %6511 = vmatpush1.bf16.msra.mxu0 %v6510_v2  ;;  %6575 = vmatpush1.bf16.msra.mxu1 %v6574_v21  ;;  %v6592_v2 = vpack.c.bf16 %v4101_v16, %v4093_v15  ;;  %v6656_v21 = vpack.c.bf16 %v4103_v4, %v4095_v59  ;;  %v4167_v15 = vld [vmem:[%s13399_s3 + $0x458] sm:$0xff]  ;;  %v4156_v16 = vld [vmem:[%s13399_s3 + $0x400] sm:$0xff] }
 0x7b4   :  { %6577 = vmatprep.subr.bf16.mxu0 %v6576_v22  ;;  %6641 = vmatprep.subr.bf16.mxu1 %v6640_v14  ;;  %v6594_v22 = vpack.c.bf16 %v4100_v9, %v4092_v19  ;;  %v4117_v14 = vld [vmem:[%s13399_s3 + $0x2c8] sm:$0xff]  ;;  %v4164_v59 = vld [vmem:[%s13399_s3 + $0x440] sm:$0xff]  ;;  %v6672_v4 = vpack.c.bf16 %v4167_v15, %v4159_v54  ;;  %v4230_v15 = vld [vmem:[%s13399_s3 + $0x650] sm:$0xff] }
 0x7b5   :  { %v4173_v19 = vld [vmem:[%s13399_s3 + $0x488] sm:$0xff] }
 0x7b6   :  { %3890 = vmatmul.mubr.f32.vlgmr.msra.gmra.mrb[26].mxu0 %v11978_v42  ;;  %3961 = vmatmul.mubr.f32.vlgmr.msra.gmra.mrb[26].mxu1 %v11978_v42  ;;  %v4028_v42 = vld [vmem:[%s13399_s3] sm:$0xff]  ;;  %v4181_v9 = vld [vmem:[%s13399_s3 + $0x4c8] sm:$0xff] }
 0x7b7   :  { %v6578_v26 = vpack.c.bf16 %v4036_v25, %v4028_v42  ;;  %6643 = vmatpush1.bf16.msra.mxu1 %v6642_v31  ;;  %v6658_v42 = vpack.c.bf16 %v4102_v24, %v4094_v20  ;;  %v4109_v25 = vld [vmem:[%s13399_s3 + $0x288] sm:$0xff]  ;;  %v4116_v31 = vld [vmem:[%s13399_s3 + $0x2c0] sm:$0xff]  ;;  %v4175_v20 = vld [vmem:[%s13399_s3 + $0x498] sm:$0xff] }
 0x7b8   :  { %6645 = vmatprep.subr.bf16.mxu1 %v6644_v28  ;;  %v6596_v27 = vpack.c.bf16 %v4117_v14, %v4109_v25  ;;  %v6598_v33 = vpack.c.bf16 %v4116_v31, %v4108_v30  ;;  %v4183_v24 = vld [vmem:[%s13399_s3 + $0x4d8] sm:$0xff]  ;;  %v4180_v25 = vld [vmem:[%s13399_s3 + $0x4c0] sm:$0xff]  ;;  %v4189_v31 = vld [vmem:[%s13399_s3 + $0x508] sm:$0xff] }
 0x7b9   :  { %6579 = vmatpush1.bf16.msra.mxu0 %v6578_v26  ;;  %v4111_v26 = vld [vmem:[%s13399_s3 + $0x298] sm:$0xff]  ;;  %v6676_v14 = vpack.c.bf16 %v4183_v24, %v4175_v20  ;;  %v4246_v24 = vld [vmem:[%s13399_s3 + $0x6d0] sm:$0xff] }
 0x7ba   :  { %6581 = vmatprep.subr.bf16.mxu0 %v6580_v35  ;;  %v6660_v23 = vpack.c.bf16 %v4119_v29, %v4111_v26  ;;  %v4118_v35 = vld [vmem:[%s13399_s3 + $0x2d0] sm:$0xff] }
 0x7bb   :  { %6647 = vmatpush1.bf16.msra.mxu1 %v6646_v37  ;;  %v6662_v28 = vpack.c.bf16 %v4118_v35, %v4110_v34  ;;  %v6664_v37 = vpack.c.bf16 %v4135_v43, %v4127_v40  ;;  %v4182_v29 = vld [vmem:[%s13399_s3 + $0x4d0] sm:$0xff]  ;;  %v4199_v35 = vld [vmem:[%s13399_s3 + $0x558] sm:$0xff] }
 0x7bc   :  { %6649 = vmatprep.subr.bf16.mxu1 %v6648_v51  ;;  %v4141_v51 = vld [vmem:[%s13399_s3 + $0x388] sm:$0xff]  ;;  %v4198_v43 = vld [vmem:[%s13399_s3 + $0x550] sm:$0xff] }
 0x7bd   :  { %6583 = vmatpush1.bf16.msra.mxu0 %v6582_v32  ;;  %v6600_v32 = vpack.c.bf16 %v4133_v39, %v4125_v38  ;;  %v6604_v63 = vpack.c.bf16 %v4149_v62, %v4141_v51  ;;  %v4196_v38 = vld [vmem:[%s13399_s3 + $0x540] sm:$0xff] }
 0x7be   :  { %6585 = vmatprep.subr.bf16.mxu0 %v6584_v46  ;;  %v6602_v46 = vpack.c.bf16 %v4132_v45, %v4124_v44  ;;  %v4205_v45 = vld [vmem:[%s13399_s3 + $0x588] sm:$0xff]  ;;  %v4212_v51 = vld [vmem:[%s13399_s3 + $0x5c0] sm:$0xff] }
 0x7bf   :  { %6651 = vmatpush1.bf16.msra.mxu1 %v6650_v55  ;;  %v6606_v55 = vpack.c.bf16 %v4148_v6, %v4140_v5  ;;  %v4221_v6 = vld [vmem:[%s13399_s3 + $0x608] sm:$0xff] }
 0x7c0   :  { %6653 = vmatprep.subr.bf16.mxu1 %v6652_v47  ;;  %v4165_v47 = vld [vmem:[%s13399_s3 + $0x448] sm:$0xff] }
 0x7c1   :  { %6587 = vmatpush1.bf16.msra.mxu0 %v6586_v1  ;;  %v4151_v1 = vld [vmem:[%s13399_s3 + $0x3d8] sm:$0xff]  ;;  %v6608_v58 = vpack.c.bf16 %v4165_v47, %v4157_v13  ;;  %v4228_v13 = vld [vmem:[%s13399_s3 + $0x640] sm:$0xff] }
 0x7c2   :  { %6589 = vmatprep.subr.bf16.mxu0 %v6588_v10  ;;  %v6668_v53 = vpack.c.bf16 %v4151_v1, %v4143_v36  ;;  %v4142_v10 = vld [vmem:[%s13399_s3 + $0x390] sm:$0xff] }
 0x7c3   :  { %6655 = vmatpush1.bf16.msra.mxu1 %v6654_v52  ;;  %v6670_v12 = vpack.c.bf16 %v4150_v11, %v4142_v10  ;;  %v4158_v52 = vld [vmem:[%s13399_s3 + $0x410] sm:$0xff]  ;;  %v4231_v11 = vld [vmem:[%s13399_s3 + $0x658] sm:$0xff] }
 0x7c4   :  { %6657 = vmatprep.subr.bf16.mxu1 %v6656_v21  ;;  %v4214_v1 = vld [vmem:[%s13399_s3 + $0x5d0] sm:$0xff] }
 0x7c5   :  { %6591 = vmatpush1.bf16.msra.mxu0 %v6590_v18  ;;  %v6610_v18 = vpack.c.bf16 %v4164_v59, %v4156_v16  ;;  %v4237_v59 = vld [vmem:[%s13399_s3 + $0x688] sm:$0xff] }
 0x7c6   :  { %6593 = vmatprep.subr.bf16.mxu0 %v6592_v2  ;;  %v4166_v2 = vld [vmem:[%s13399_s3 + $0x450] sm:$0xff] }
 0x7c7   :  { %6659 = vmatpush1.bf16.msra.mxu1 %v6658_v42  ;;  %v6674_v21 = vpack.c.bf16 %v4166_v2, %v4158_v52  ;;  %v4172_v42 = vld [vmem:[%s13399_s3 + $0x480] sm:$0xff]  ;;  %v4247_v2 = vld [vmem:[%s13399_s3 + $0x6d8] sm:$0xff] }
 0x7c8   :  { %6661 = vmatprep.subr.bf16.mxu1 %v6660_v23  ;;  %v6614_v26 = vpack.c.bf16 %v4180_v25, %v4172_v42  ;;  %v4197_v23 = vld [vmem:[%s13399_s3 + $0x548] sm:$0xff] }
 0x7c9   :  { %6595 = vmatpush1.bf16.msra.mxu0 %v6594_v22  ;;  %v6612_v22 = vpack.c.bf16 %v4181_v9, %v4173_v19  ;;  %v6616_v34 = vpack.c.bf16 %v4197_v23, %v4189_v31  ;;  %v4244_v19 = vld [vmem:[%s13399_s3 + $0x6c0] sm:$0xff]  ;;  %v4253_v42 = vld [vmem:[%s13399_s3 + $0x708] sm:$0xff] }
 0x7ca   :  { %6597 = vmatprep.subr.bf16.mxu0 %v6596_v27  ;;  %v4174_v27 = vld [vmem:[%s13399_s3 + $0x490] sm:$0xff]  ;;  %v4252_v31 = vld [vmem:[%s13399_s3 + $0x700] sm:$0xff] }
 0x7cb   :  { %6663 = vmatpush1.bf16.msra.mxu1 %v6662_v28  ;;  %v6678_v30 = vpack.c.bf16 %v4182_v29, %v4174_v27  ;;  %v4188_v28 = vld [vmem:[%s13399_s3 + $0x500] sm:$0xff]  ;;  %v4263_v27 = vld [vmem:[%s13399_s3 + $0x758] sm:$0xff] }
 0x7cc   :  { %6665 = vmatprep.subr.bf16.mxu1 %v6664_v37  ;;  %v6618_v40 = vpack.c.bf16 %v4196_v38, %v4188_v28  ;;  %v4213_v37 = vld [vmem:[%s13399_s3 + $0x5c8] sm:$0xff]  ;;  %v4260_v23 = vld [vmem:[%s13399_s3 + $0x740] sm:$0xff] }
 0x7cd   :  { %6599 = vmatpush1.bf16.msra.mxu0 %v6598_v33  ;;  %v4191_v33 = vld [vmem:[%s13399_s3 + $0x518] sm:$0xff]  ;;  %v6620_v48 = vpack.c.bf16 %v4213_v37, %v4205_v45  ;;  %v4269_v28 = vld [vmem:[%s13399_s3 + $0x788] sm:$0xff]  ;;  %v4276_v37 = vld [vmem:[%s13399_s3 + $0x7c0] sm:$0xff] }
 0x7ce   :  { %6601 = vmatprep.subr.bf16.mxu0 %v6600_v32  ;;  %v6680_v39 = vpack.c.bf16 %v4199_v35, %v4191_v33  ;;  %v4190_v32 = vld [vmem:[%s13399_s3 + $0x510] sm:$0xff]  ;;  %v4277_v38 = vld [vmem:[%s13399_s3 + $0x7c8] sm:$0xff] }
 0x7cf   :  { %6667 = vmatpush1.bf16.msra.mxu1 %v6666_v50  ;;  %v6682_v44 = vpack.c.bf16 %v4198_v43, %v4190_v32  ;;  %v4204_v50 = vld [vmem:[%s13399_s3 + $0x580] sm:$0xff]  ;;  %v4254_v33 = vld [vmem:[%s13399_s3 + $0x710] sm:$0xff]  ;;  %v4271_v32 = vld [vmem:[%s13399_s3 + $0x798] sm:$0xff] }
 0x7d0   :  { %6669 = vmatprep.subr.bf16.mxu1 %v6668_v53  ;;  %v6622_v36 = vpack.c.bf16 %v4212_v51, %v4204_v50  ;;  %v4229_v53 = vld [vmem:[%s13399_s3 + $0x648] sm:$0xff]  ;;  %v4262_v35 = vld [vmem:[%s13399_s3 + $0x750] sm:$0xff]  ;;  %v4279_v43 = vld [vmem:[%s13399_s3 + $0x7d8] sm:$0xff] }
 0x7d1   :  { %6603 = vmatpush1.bf16.msra.mxu0 %v6602_v46  ;;  %v4207_v46 = vld [vmem:[%s13399_s3 + $0x598] sm:$0xff]  ;;  %v6624_v10 = vpack.c.bf16 %v4229_v53, %v4221_v6  ;;  %v6700_v45 = vpack.c.bf16 %v4279_v43, %v4271_v32  ;;  %v4033_v51 = vld [vmem:[%s13399_s3 + $0x28] sm:$0xff] }
 0x7d2   :  { %6605 = vmatprep.subr.bf16.mxu0 %v6604_v63  ;;  %v6684_v62 = vpack.c.bf16 %v4215_v49, %v4207_v46  ;;  %v4206_v63 = vld [vmem:[%s13399_s3 + $0x590] sm:$0xff] }
 0x7d3   :  { %6671 = vmatpush1.bf16.msra.mxu1 %v6670_v12  ;;  %v6686_v5 = vpack.c.bf16 %v4214_v1, %v4206_v63  ;;  %v4220_v12 = vld [vmem:[%s13399_s3 + $0x600] sm:$0xff]  ;;  %v4270_v46 = vld [vmem:[%s13399_s3 + $0x790] sm:$0xff]  ;;  %v4043_v1 = vld [vmem:[%s13399_s3 + $0x78] sm:$0xff] }
 0x7d4   :  { %6673 = vmatprep.subr.bf16.mxu1 %v6672_v4  ;;  %v6626_v54 = vpack.c.bf16 %v4228_v13, %v4220_v12  ;;  %v4245_v4 = vld [vmem:[%s13399_s3 + $0x6c8] sm:$0xff] }
 0x7d5   :  { %6607 = vmatpush1.bf16.msra.mxu0 %v6606_v55  ;;  %v4223_v55 = vld [vmem:[%s13399_s3 + $0x618] sm:$0xff]  ;;  %v6628_v52 = vpack.c.bf16 %v4245_v4, %v4237_v59 }
 0x7d6   :  { %6609 = vmatprep.subr.bf16.mxu0 %v6608_v58  ;;  %v6688_v47 = vpack.c.bf16 %v4231_v11, %v4223_v55  ;;  %v4222_v58 = vld [vmem:[%s13399_s3 + $0x610] sm:$0xff] }
 0x7d7   :  { %6675 = vmatpush1.bf16.msra.mxu1 %v6674_v21  ;;  %v6690_v16 = vpack.c.bf16 %v4230_v15, %v4222_v58  ;;  %v4236_v21 = vld [vmem:[%s13399_s3 + $0x680] sm:$0xff] }
 0x7d8   :  { %6677 = vmatprep.subr.bf16.mxu1 %v6676_v14  ;;  %v6630_v20 = vpack.c.bf16 %v4244_v19, %v4236_v21  ;;  %v4261_v14 = vld [vmem:[%s13399_s3 + $0x748] sm:$0xff] }
 0x7d9   :  { %6611 = vmatpush1.bf16.msra.mxu0 %v6610_v18  ;;  %v4239_v18 = vld [vmem:[%s13399_s3 + $0x698] sm:$0xff]  ;;  %v6632_v29 = vpack.c.bf16 %v4261_v14, %v4253_v42 }
 0x7da   :  { %6613 = vmatprep.subr.bf16.mxu0 %v6612_v22  ;;  %v6692_v9 = vpack.c.bf16 %v4247_v2, %v4239_v18  ;;  %v4238_v22 = vld [vmem:[%s13399_s3 + $0x690] sm:$0xff] }
 0x7db   :  { %6679 = vmatpush1.bf16.msra.mxu1 %v6678_v30  ;;  %v6694_v25 = vpack.c.bf16 %v4246_v24, %v4238_v22 }
 0x7dc   :  { %6681 = vmatprep.subr.bf16.mxu1 %v6680_v39  ;;  %v6698_v39 = vpack.c.bf16 %v4262_v35, %v4254_v33 }
 0x7dd   :  { %6615 = vmatpush1.bf16.msra.mxu0 %v6614_v26  ;;  %v4255_v26 = vld [vmem:[%s13399_s3 + $0x718] sm:$0xff] }
 0x7de   :  { %6617 = vmatprep.subr.bf16.mxu0 %v6616_v34  ;;  %v6696_v30 = vpack.c.bf16 %v4263_v27, %v4255_v26  ;;  %v6634_v34 = vpack.c.bf16 %v4260_v23, %v4252_v31 }
 0x7df   :  { %6683 = vmatpush1.bf16.msra.mxu1 %v6682_v44  ;;  %v4268_v44 = vld [vmem:[%s13399_s3 + $0x780] sm:$0xff] }
 0x7e0   :  { %6685 = vmatprep.subr.bf16.mxu1 %v6684_v62  ;;  %v6638_v49 = vpack.c.bf16 %v4276_v37, %v4268_v44  ;;  %v4041_v62 = vld [vmem:[%s13399_s3 + $0x68] sm:$0xff] }
 0x7e1   :  { %6619 = vmatpush1.bf16.msra.mxu0 %v6618_v40  ;;  %v6636_v40 = vpack.c.bf16 %v4277_v38, %v4269_v28  ;;  %v12722_v63 = vpack.c.bf16 %v4041_v62, %v4033_v51  ;;  %v4042_v51 = vld [vmem:[%s13399_s3 + $0x70] sm:$0xff] }
 0x7e2   :  { %6621 = vmatprep.subr.bf16.mxu0 %v6620_v48  ;;  %v4278_v48 = vld [vmem:[%s13399_s3 + $0x7d0] sm:$0xff] }
 0x7e3   :  { %6687 = vmatpush1.bf16.msra.mxu1 %v6686_v5  ;;  %v6702_v50 = vpack.c.bf16 %v4278_v48, %v4270_v46  ;;  %v4032_v48 = vld [vmem:[%s13399_s3 + $0x20] sm:$0xff] }
 0x7e4   :  { %6689 = vmatprep.subr.bf16.mxu1 %v6688_v47 }
 0x7e5   :  { %6623 = vmatpush1.bf16.msra.mxu0 %v6622_v36  ;;  %v4035_v36 = vld [vmem:[%s13399_s3 + $0x38] sm:$0xff] }
 0x7e6   :  { %6625 = vmatprep.subr.bf16.mxu0 %v6624_v10  ;;  %v12727_v5 = vpack.c.bf16 %v4043_v1, %v4035_v36  ;;  %v4049_v36 = vld [vmem:[%s13399_s3 + $0xa8] sm:$0xff] }
 0x7e7   :  { %6691 = vmatpush1.bf16.msra.mxu1 %v6690_v16 }
 0x7e8   :  { %6693 = vmatprep.subr.bf16.mxu1 %v6692_v9 }
 0x7e9   :  { %6627 = vmatpush1.bf16.msra.mxu0 %v6626_v54 }
 0x7ea   :  { %6629 = vmatprep.subr.bf16.mxu0 %v6628_v52 }
 0x7eb   :  { %6695 = vmatpush1.bf16.msra.mxu1 %v6694_v25 }
 0x7ec   :  { %6697 = vmatprep.subr.bf16.mxu1 %v6696_v30 }
 0x7ed   :  { %6631 = vmatpush1.bf16.msra.mxu0 %v6630_v20 }
 0x7ee   :  { %6633 = vmatprep.subr.bf16.mxu0 %v6632_v29 }
 0x7ef   :  { %6699 = vmatpush1.bf16.msra.mxu1 %v6698_v39 }
 0x7f0   :  { %6701 = vmatprep.subr.bf16.mxu1 %v6700_v45 }
 0x7f1   :  { %6635 = vmatpush1.bf16.msra.mxu0 %v6634_v34 }
 0x7f2   :  { %6637 = vmatprep.subr.bf16.mxu0 %v6636_v40 }
 0x7f3   :  { %6703 = vmatpush1.bf16.msra.mxu1 %v6702_v50  ;;  %v4040_v50 = vld [vmem:[%s13399_s3 + $0x60] sm:$0xff] }
 0x7f4   :  { %6769 = vmatprep.subr.bf16.mxu1 %v12727_v5 }
 0x7f5   :  { %6639 = vmatpush1.bf16.msra.mxu0 %v6638_v49 }
 0x7f6   :  { %6705 = vmatprep.subr.bf16.mxu0 %v12722_v63 }
 0x849   :  { %v3749_v6 = vpop.f32.mrb[12].mxu0  ;;  %v3820_v53 = vpop.f32.mrb[12].mxu1 }
 0x84a   :  { %v6970_v55 = vadd.f32 %v3749_v6, %v7943_v56  ;;  %v3751_v10 = vpop.f32.mrb[13].mxu0  ;;  %v3822_v11 = vpop.f32.mrb[13].mxu1  ;;  %v6984_v54 = vadd.f32 %v3820_v53, %v7960_v7  ;;  %v4057_v6 = vld [vmem:[%s13399_s3 + $0xe8] sm:$0xff]  ;;  %v4051_v53 = vld [vmem:[%s13399_s3 + $0xb8] sm:$0xff] }
 0x84b   :  { %v6971_v12 = vadd.f32 %v3751_v10, %v7947_v57  ;;  %v6985_v27 = vadd.f32 %v3822_v11, %v7954_v0  ;;  %v4240_v0 = vld [vmem:[%s13399_s3 + $0x6a0] sm:$0xff] }
 0x84c   :  { %v4964_v13 = vmul.f32 -1.442695, %v6970_v55  ;;  %v4059_v55 = vld [vmem:[%s13399_s3 + $0xf8] sm:$0xff]  ;;  %v4248_v57 = vld [vmem:[%s13399_s3 + $0x6e0] sm:$0xff] }
 0x84d   :  { %v4965_v47 = vmul.f32 -1.442695, %v6971_v12  ;;  %v4966_v30 = vmul.f32 -1.442695, %v6985_v27  ;;  %v12771_v12 = vpack.c.bf16 %v4040_v50, %v4032_v48  ;;  %v4081_v27 = vld [vmem:[%s13399_s3 + $0x1a8] sm:$0xff]  ;;  %v4096_v48 = vld [vmem:[%s13399_s3 + $0x220] sm:$0xff] }
 0x84e   :  { %7193 = vpow2.f32 %v4964_v13 }
 0x84f   :  { %7195 = vpow2.f32 %v4965_v47  ;;  %v4048_v47 = vld [vmem:[%s13399_s3 + $0xa0] sm:$0xff] }
 0x850   :  { %7197 = vtanh.f32 %v6984_v54  ;;  %v4056_v54 = vld [vmem:[%s13399_s3 + $0xe0] sm:$0xff] }
 0x858   :  { %v7194_v58 = vpop.eup %7193 }
 0x859   :  { %v7196_v15 = vpop.eup %7195  ;;  %v4007_v16 = vadd.f32 1.0, %v7194_v58 }
 0x85a   :  { %v4013_v59 = vadd.f32 1.0, %v7196_v15  ;;  %v7198_v4 = vpop.eup %7197  ;;  %v4050_v15 = vld [vmem:[%s13399_s3 + $0xb0] sm:$0xff] }
 0x85b   :  { %7199 = vrcp.f32 %v4007_v16  ;;  %v4058_v16 = vld [vmem:[%s13399_s3 + $0xf0] sm:$0xff] }
 0x85c   :  { %7201 = vrcp.f32 %v4013_v59  ;;  %v4065_v59 = vld [vmem:[%s13399_s3 + $0x128] sm:$0xff] }
 0x865   :  { %v7200_v18 = vpop.eup %7199 }
 0x866   :  { %v7202_v52 = vpop.eup %7201  ;;  %v4024_v2 = vmul.f32 %v7200_v18, %v7198_v4  ;;  %v12795_v4 = vpack.c.bf16 %v4057_v6, %v4049_v36  ;;  %v12797_v18 = vpack.c.bf16 %v4059_v55, %v4051_v53  ;;  %v4113_v36 = vld [vmem:[%s13399_s3 + $0x2a8] sm:$0xff]  ;;  %v4115_v6 = vld [vmem:[%s13399_s3 + $0x2b8] sm:$0xff] }
 0x867   :  { %v4023_v21 = vmul.f32 %v7202_v52, %v11936_v17  ;;  %v4073_v52 = vld [vmem:[%s13399_s3 + $0x168] sm:$0xff]  ;;  %v4123_v53 = vld [vmem:[%s13399_s3 + $0x2f8] sm:$0xff] }
 0x869   :  { %v12735_v19 = vadd.f32 %v4024_v2, %v4023_v21  ;;  %v4067_v2 = vld [vmem:[%s13399_s3 + $0x138] sm:$0xff] }
 0x86a   :  { %v4075_v21 = vld [vmem:[%s13399_s3 + $0x178] sm:$0xff] }
 0x86b   :  { %13435 = vst [vmem:[#allocation11_spill] sm:$0xff] %v12735_v19 }
 0x889   :  { %v3891_v9 = vpop.f32.mrb[26].mxu0  ;;  %v3962_v20 = vpop.f32.mrb[26].mxu1 }
 0x88a   :  { %v3975_v22 = vadd.f32 %v3891_v9, %v8753_v60  ;;  %v3893_v24 = vpop.f32.mrb[27].mxu0  ;;  %v3964_v42 = vpop.f32.mrb[27].mxu1  ;;  %v3977_v31 = vadd.f32 %v3962_v20, %v8769_v3  ;;  %v12812_v9 = vpack.c.bf16 %v4056_v54, %v4048_v47  ;;  %v12814_v20 = vpack.c.bf16 %v4058_v16, %v4050_v15  ;;  %v4120_v47 = vld [vmem:[%s13399_s3 + $0x2e0] sm:$0xff]  ;;  %v4114_v16 = vld [vmem:[%s13399_s3 + $0x2b0] sm:$0xff] }
 0x88b   :  { %v3976_v25 = vadd.f32 %v3893_v24, %v8757_v61  ;;  %v3978_v29 = vadd.f32 %v3964_v42, %v8763_v8  ;;  %v4072_v24 = vld [vmem:[%s13399_s3 + $0x160] sm:$0xff]  ;;  %v12822_v42 = vpack.c.bf16 %v4073_v52, %v4065_v59  ;;  %v12934_v15 = vpack.c.bf16 %v4123_v53, %v4115_v6  ;;  %v4122_v59 = vld [vmem:[%s13399_s3 + $0x2f0] sm:$0xff]  ;;  %v4129_v52 = vld [vmem:[%s13399_s3 + $0x328] sm:$0xff] }
 0x88c   :  { %v4961_v14 = vmul.f32 -1.442695, %v3975_v22  ;;  %v4064_v22 = vld [vmem:[%s13399_s3 + $0x120] sm:$0xff]  ;;  %v4169_v6 = vld [vmem:[%s13399_s3 + $0x468] sm:$0xff]  ;;  %v4163_v53 = vld [vmem:[%s13399_s3 + $0x438] sm:$0xff] }
 0x88d   :  { %v4962_v26 = vmul.f32 -1.442695, %v3976_v25  ;;  %v4963_v17 = vmul.f32 -1.442695, %v3978_v29  ;;  %v12824_v25 = vpack.c.bf16 %v4075_v21, %v4067_v2  ;;  %v4089_v29 = vld [vmem:[%s13399_s3 + $0x1e8] sm:$0xff]  ;;  %v4131_v21 = vld [vmem:[%s13399_s3 + $0x338] sm:$0xff] }
 0x88e   :  { %7203 = vpow2.f32 %v4961_v14  ;;  %v4066_v14 = vld [vmem:[%s13399_s3 + $0x130] sm:$0xff]  ;;  %v4137_v2 = vld [vmem:[%s13399_s3 + $0x368] sm:$0xff]  ;;  %v4224_v61 = vld [vmem:[%s13399_s3 + $0x620] sm:$0xff] }
 0x88f   :  { %7205 = vpow2.f32 %v4962_v26  ;;  %v4074_v26 = vld [vmem:[%s13399_s3 + $0x170] sm:$0xff]  ;;  %v4232_v60 = vld [vmem:[%s13399_s3 + $0x660] sm:$0xff] }
 0x890   :  { %7207 = vpow2.f32 %v4966_v30  ;;  %v4083_v30 = vld [vmem:[%s13399_s3 + $0x1b8] sm:$0xff] }
 0x891   :  { %7209 = vpow2.f32 %v4963_v17  ;;  %v4091_v17 = vld [vmem:[%s13399_s3 + $0x1f8] sm:$0xff] }
 0x892   :  { %7211 = vtanh.f32 %v3977_v31  ;;  %v12848_v31 = vpack.c.bf16 %v4072_v24, %v4064_v22  ;;  %v4139_v22 = vld [vmem:[%s13399_s3 + $0x378] sm:$0xff] }
 0x898   :  { %v7204_v23 = vpop.eup %7203 }
 0x899   :  { %v7206_v33 = vpop.eup %7205  ;;  %v3982_v34 = vadd.f32 1.0, %v7204_v23  ;;  %v12850_v23 = vpack.c.bf16 %v4074_v26, %v4066_v14  ;;  %v12958_v14 = vpack.c.bf16 %v4122_v59, %v4114_v16  ;;  %v4128_v26 = vld [vmem:[%s13399_s3 + $0x320] sm:$0xff] }
 0x89a   :  { %v3988_v35 = vadd.f32 1.0, %v7206_v33  ;;  %v7208_v28 = vpop.eup %7207  ;;  %v4080_v33 = vld [vmem:[%s13399_s3 + $0x1a0] sm:$0xff] }
 0x89b   :  { %7213 = vrcp.f32 %v3982_v34  ;;  %v7210_v38 = vpop.eup %7209  ;;  %v4020_v37 = vadd.f32 1.0, %v7208_v28  ;;  %v4088_v34 = vld [vmem:[%s13399_s3 + $0x1e0] sm:$0xff]  ;;  %v12862_v28 = vpack.c.bf16 %v4091_v17, %v4083_v30  ;;  %v12970_v30 = vpack.c.bf16 %v4139_v22, %v4131_v21  ;;  %v4130_v17 = vld [vmem:[%s13399_s3 + $0x330] sm:$0xff] }
 0x89c   :  { %7215 = vrcp.f32 %v3988_v35  ;;  %v7212_v39 = vpop.eup %7211  ;;  %v3995_v44 = vadd.f32 1.0, %v7210_v38  ;;  %v12860_v35 = vpack.c.bf16 %v4089_v29, %v4081_v27  ;;  %v4082_v38 = vld [vmem:[%s13399_s3 + $0x1b0] sm:$0xff]  ;;  %v4136_v27 = vld [vmem:[%s13399_s3 + $0x360] sm:$0xff]  ;;  %v12968_v29 = vpack.c.bf16 %v4137_v2, %v4129_v52 }
 0x89d   :  { %7217 = vtanh.f32 %v12735_v19  ;;  %v4160_v59 = vld [vmem:[%s13399_s3 + $0x420] sm:$0xff]  ;;  %v4162_v22 = vld [vmem:[%s13399_s3 + $0x430] sm:$0xff] }
 0x89e   :  { %7219 = vrcp.f32 %v3995_v44  ;;  %v4107_v44 = vld [vmem:[%s13399_s3 + $0x278] sm:$0xff]  ;;  %v4168_v52 = vld [vmem:[%s13399_s3 + $0x460] sm:$0xff] }
 0x8a5   :  { %v7214_v40 = vpop.eup %7213 }
 0x8a6   :  { %v7216_v32 = vpop.eup %7215  ;;  %v3999_v43 = vmul.f32 %v7214_v40, %v7212_v39  ;;  %v4090_v39 = vld [vmem:[%s13399_s3 + $0x1f0] sm:$0xff]  ;;  %v4097_v40 = vld [vmem:[%s13399_s3 + $0x228] sm:$0xff] }
 0x8a7   :  { %v3998_v45 = vmul.f32 %v7216_v32, %v11944_v41  ;;  %v7218_v49 = vpop.eup %7217  ;;  %v4034_v41 = vld [vmem:[%s13399_s3 + $0x30] sm:$0xff]  ;;  %v4105_v32 = vld [vmem:[%s13399_s3 + $0x268] sm:$0xff] }
 0x8a8   :  { %v7220_v62 = vpop.eup %7219  ;;  %v12773_v13 = vpack.c.bf16 %v4042_v51, %v4034_v41  ;;  %v12896_v50 = vpack.c.bf16 %v4105_v32, %v4097_v40  ;;  %v4098_v51 = vld [vmem:[%s13399_s3 + $0x230] sm:$0xff]  ;;  %v4155_v40 = vld [vmem:[%s13399_s3 + $0x3f8] sm:$0xff]  ;;  %v12992_v32 = vpack.c.bf16 %v4136_v27, %v4128_v26  ;;  %v4177_v27 = vld [vmem:[%s13399_s3 + $0x4a8] sm:$0xff] }
 0x8a9   :  { %v12743_v46 = vadd.f32 %v3999_v43, %v3998_v45  ;;  %v4099_v43 = vld [vmem:[%s13399_s3 + $0x238] sm:$0xff]  ;;  %v12884_v45 = vpack.c.bf16 %v4088_v34, %v4080_v33  ;;  %v4138_v33 = vld [vmem:[%s13399_s3 + $0x370] sm:$0xff]  ;;  %v4145_v34 = vld [vmem:[%s13399_s3 + $0x3a8] sm:$0xff] }
 0x8aa   :  { %v12898_v41 = vpack.c.bf16 %v4107_v44, %v4099_v43  ;;  %v12994_v43 = vpack.c.bf16 %v4138_v33, %v4130_v17  ;;  %v4144_v44 = vld [vmem:[%s13399_s3 + $0x3a0] sm:$0xff]  ;;  %v4170_v26 = vld [vmem:[%s13399_s3 + $0x470] sm:$0xff]  ;;  %v4185_v17 = vld [vmem:[%s13399_s3 + $0x4e8] sm:$0xff] }
 0x8ab   :  { %13436 = vst [vmem:[#allocation12_spill] sm:$0xff] %v12743_v46  ;;  %7221 = vtanh.f32 %v12743_v46  ;;  %v4179_v33 = vld [vmem:[%s13399_s3 + $0x4b8] sm:$0xff]  ;;  %v4216_v46 = vld [vmem:[%s13399_s3 + $0x5e0] sm:$0xff] }
 0x8ac   :  { %7223 = vrcp.f32 %v4020_v37  ;;  %v12886_v37 = vpack.c.bf16 %v4090_v39, %v4082_v38  ;;  %v4153_v38 = vld [vmem:[%s13399_s3 + $0x3e8] sm:$0xff]  ;;  %v4147_v39 = vld [vmem:[%s13399_s3 + $0x3b8] sm:$0xff] }
 0x8b5   :  { %v7222_v1 = vpop.eup %7221 }
 0x8b6   :  { %v7224_v10 = vpop.eup %7223  ;;  %v4002_v11 = vmul.f32 %v7222_v1, %v7220_v62  ;;  %v4106_v62 = vld [vmem:[%s13399_s3 + $0x270] sm:$0xff]  ;;  %v4121_v1 = vld [vmem:[%s13399_s3 + $0x2e8] sm:$0xff] }
 0x8b7   :  { %v12781_v58 = vmul.f32 %v7224_v10, %v7218_v49  ;;  %v4104_v49 = vld [vmem:[%s13399_s3 + $0x260] sm:$0xff]  ;;  %v12922_v10 = vpack.c.bf16 %v4106_v62, %v4098_v51  ;;  %v12932_v54 = vpack.c.bf16 %v4121_v1, %v4113_v36  ;;  %v13006_v51 = vpack.c.bf16 %v4155_v40, %v4147_v39  ;;  %v4146_v62 = vld [vmem:[%s13399_s3 + $0x3b0] sm:$0xff]  ;;  %v4161_v1 = vld [vmem:[%s13399_s3 + $0x428] sm:$0xff] }
 0x8b8   :  { %4003 = vst [vmem:[%s13403_s5 + $0x28] sm:$0xff] %v4002_v11  ;;  %4348 = vmatprep.mubr.f32.mxu0 %v4002_v11  ;;  %4419 = vmatprep.mubr.f32.mxu1 %v4002_v11  ;;  %v12920_v55 = vpack.c.bf16 %v4104_v49, %v4096_v48  ;;  %v4152_v48 = vld [vmem:[%s13399_s3 + $0x3e0] sm:$0xff]  ;;  %v13004_v49 = vpack.c.bf16 %v4153_v38, %v4145_v34  ;;  %v4154_v36 = vld [vmem:[%s13399_s3 + $0x3f0] sm:$0xff]  ;;  %v4187_v34 = vld [vmem:[%s13399_s3 + $0x4f8] sm:$0xff] }
 0x8b9   :  { %4349 = vmatmul.mubr.f32.vlgmr.msra.gmra.mrb[14].mxu0 %v12781_v58  ;;  %4420 = vmatmul.mubr.f32.vlgmr.msra.gmra.mrb[14].mxu1 %v12781_v58  ;;  %v13030_v16 = vpack.c.bf16 %v4154_v36, %v4146_v62  ;;  %v13040_v2 = vpack.c.bf16 %v4169_v6, %v4161_v1  ;;  %v13064_v38 = vpack.c.bf16 %v4168_v52, %v4160_v59  ;;  %v4176_v40 = vld [vmem:[%s13399_s3 + $0x4a0] sm:$0xff]  ;;  %v4178_v36 = vld [vmem:[%s13399_s3 + $0x4b0] sm:$0xff]  ;;  %v4193_v6 = vld [vmem:[%s13399_s3 + $0x528] sm:$0xff] }
 0x8ba   :  { %6707 = vmatpush1.bf16.msra.mxu0 %v12771_v12  ;;  %6771 = vmatpush1.bf16.msra.mxu1 %v12773_v13  ;;  %v13066_v39 = vpack.c.bf16 %v4170_v26, %v4162_v22  ;;  %v13078_v62 = vpack.c.bf16 %v4187_v34, %v4179_v33  ;;  %v4186_v1 = vld [vmem:[%s13399_s3 + $0x4f0] sm:$0xff]  ;;  %v4203_v59 = vld [vmem:[%s13399_s3 + $0x578] sm:$0xff]  ;;  %v4192_v26 = vld [vmem:[%s13399_s3 + $0x520] sm:$0xff] }
 0x8bb   :  { %4490 = vmatprep.mubr.f32.mxu0 %v4002_v11  ;;  %4561 = vmatprep.mubr.f32.mxu1 %v4002_v11  ;;  %v4112_v11 = vld [vmem:[%s13399_s3 + $0x2a0] sm:$0xff]  ;;  %v13102_v22 = vpack.c.bf16 %v4186_v1, %v4178_v36  ;;  %v4194_v34 = vld [vmem:[%s13399_s3 + $0x530] sm:$0xff]  ;;  %v4217_v36 = vld [vmem:[%s13399_s3 + $0x5e8] sm:$0xff] }
 0x8bc   :  { %6709 = vmatprep.subr.bf16.mxu0 %v12795_v4  ;;  %6773 = vmatprep.subr.bf16.mxu1 %v12797_v18  ;;  %v12956_v24 = vpack.c.bf16 %v4120_v47, %v4112_v11  ;;  %v4171_v11 = vld [vmem:[%s13399_s3 + $0x478] sm:$0xff]  ;;  %v13028_v47 = vpack.c.bf16 %v4152_v48, %v4144_v44  ;;  %v4184_v44 = vld [vmem:[%s13399_s3 + $0x4e0] sm:$0xff]  ;;  %v13076_v48 = vpack.c.bf16 %v4185_v17, %v4177_v27 }
 0x8bd   :  { %v13042_v21 = vpack.c.bf16 %v4171_v11, %v4163_v53  ;;  %v4201_v53 = vld [vmem:[%s13399_s3 + $0x568] sm:$0xff]  ;;  %v4195_v11 = vld [vmem:[%s13399_s3 + $0x538] sm:$0xff]  ;;  %v13100_v52 = vpack.c.bf16 %v4184_v44, %v4176_v40  ;;  %v4200_v27 = vld [vmem:[%s13399_s3 + $0x560] sm:$0xff] }
 0x8be   :  { %6711 = vmatpush1.bf16.msra.mxu0 %v12812_v9  ;;  %6775 = vmatpush1.bf16.msra.mxu1 %v12814_v20  ;;  %v13112_v17 = vpack.c.bf16 %v4201_v53, %v4193_v6  ;;  %v13114_v33 = vpack.c.bf16 %v4203_v59, %v4195_v11  ;;  %v4202_v40 = vld [vmem:[%s13399_s3 + $0x570] sm:$0xff]  ;;  %v4209_v44 = vld [vmem:[%s13399_s3 + $0x5a8] sm:$0xff]  ;;  %v4211_v1 = vld [vmem:[%s13399_s3 + $0x5b8] sm:$0xff]  ;;  %v13136_v53 = vpack.c.bf16 %v4200_v27, %v4192_v26 }
 0x8bf   :  { %6713 = vmatprep.subr.bf16.mxu0 %v12822_v42  ;;  %6777 = vmatprep.subr.bf16.mxu1 %v12824_v25  ;;  %v4219_v6 = vld [vmem:[%s13399_s3 + $0x5f8] sm:$0xff]  ;;  %v13138_v11 = vpack.c.bf16 %v4202_v40, %v4194_v34  ;;  %v4208_v59 = vld [vmem:[%s13399_s3 + $0x5a0] sm:$0xff]  ;;  %v13148_v3 = vpack.c.bf16 %v4217_v36, %v4209_v44  ;;  %v4210_v26 = vld [vmem:[%s13399_s3 + $0x5b0] sm:$0xff] }
 0x8c0   :  { %v13150_v8 = vpack.c.bf16 %v4219_v6, %v4211_v1  ;;  %v4218_v27 = vld [vmem:[%s13399_s3 + $0x5f0] sm:$0xff]  ;;  %v4225_v34 = vld [vmem:[%s13399_s3 + $0x628] sm:$0xff]  ;;  %v4227_v44 = vld [vmem:[%s13399_s3 + $0x638] sm:$0xff]  ;;  %v13172_v1 = vpack.c.bf16 %v4216_v46, %v4208_v59 }
 0x8c1   :  { %v4233_v40 = vld [vmem:[%s13399_s3 + $0x668] sm:$0xff]  ;;  %v4235_v36 = vld [vmem:[%s13399_s3 + $0x678] sm:$0xff]  ;;  %v13174_v6 = vpack.c.bf16 %v4218_v27, %v4210_v26  ;;  %v4226_v46 = vld [vmem:[%s13399_s3 + $0x630] sm:$0xff] }
 0x8c2   :  { %6715 = vmatpush1.bf16.msra.mxu0 %v12848_v31  ;;  %6779 = vmatpush1.bf16.msra.mxu1 %v12850_v23  ;;  %13437 = vst [vmem:[#allocation13_spill] sm:$0xff] %v13172_v1  ;;  %v13184_v19 = vpack.c.bf16 %v4233_v40, %v4225_v34  ;;  %v13186_v7 = vpack.c.bf16 %v4235_v36, %v4227_v44  ;;  %v4234_v59 = vld [vmem:[%s13399_s3 + $0x670] sm:$0xff]  ;;  %v4241_v26 = vld [vmem:[%s13399_s3 + $0x6a8] sm:$0xff]  ;;  %v4243_v34 = vld [vmem:[%s13399_s3 + $0x6b8] sm:$0xff] }
 0x8c3   :  { %6717 = vmatprep.subr.bf16.mxu0 %v12860_v35  ;;  %6781 = vmatprep.subr.bf16.mxu1 %v12862_v28  ;;  %13438 = vst [vmem:[#allocation14_spill] sm:$0xff] %v13174_v6  ;;  %v4249_v27 = vld [vmem:[%s13399_s3 + $0x6e8] sm:$0xff]  ;;  %v4251_v40 = vld [vmem:[%s13399_s3 + $0x6f8] sm:$0xff]  ;;  %v13208_v44 = vpack.c.bf16 %v4232_v60, %v4224_v61  ;;  %v13210_v36 = vpack.c.bf16 %v4234_v59, %v4226_v46  ;;  %v4242_v60 = vld [vmem:[%s13399_s3 + $0x6b0] sm:$0xff] }
 0x8c4   :  { %13439 = vst [vmem:[#allocation15_spill] sm:$0xff] %v13184_v19  ;;  %13440 = vst [vmem:[#allocation16_spill] sm:$0xff] %v13186_v7  ;;  %v13220_v56 = vpack.c.bf16 %v4249_v27, %v4241_v26  ;;  %v4250_v61 = vld [vmem:[%s13399_s3 + $0x6f0] sm:$0xff]  ;;  %v4257_v46 = vld [vmem:[%s13399_s3 + $0x728] sm:$0xff] }
 0x8c5   :  { %13441 = vst [vmem:[#allocation17_spill] sm:$0xff] %v13208_v44  ;;  %13442 = vst [vmem:[#allocation18_spill] sm:$0xff] %v13210_v36  ;;  %v4265_v59 = vld [vmem:[%s13399_s3 + $0x768] sm:$0xff]  ;;  %v4259_v26 = vld [vmem:[%s13399_s3 + $0x738] sm:$0xff] }
 0x8c6   :  { %6719 = vmatpush1.bf16.msra.mxu0 %v12884_v45  ;;  %6783 = vmatpush1.bf16.msra.mxu1 %v12886_v37  ;;  %13443 = vst [vmem:[#allocation19_spill] sm:$0xff] %v13220_v56  ;;  %v4267_v27 = vld [vmem:[%s13399_s3 + $0x778] sm:$0xff] }
 0x8c7   :  { %6721 = vmatprep.subr.bf16.mxu0 %v12896_v50  ;;  %6785 = vmatprep.subr.bf16.mxu1 %v12898_v41 }
 0x8ca   :  { %6723 = vmatpush1.bf16.msra.mxu0 %v12920_v55  ;;  %6787 = vmatpush1.bf16.msra.mxu1 %v12922_v10 }
 0x8cb   :  { %6725 = vmatprep.subr.bf16.mxu0 %v12932_v54  ;;  %6789 = vmatprep.subr.bf16.mxu1 %v12934_v15 }
 0x8ce   :  { %6727 = vmatpush1.bf16.msra.mxu0 %v12956_v24  ;;  %6791 = vmatpush1.bf16.msra.mxu1 %v12958_v14 }
 0x8cf   :  { %6729 = vmatprep.subr.bf16.mxu0 %v12968_v29  ;;  %6793 = vmatprep.subr.bf16.mxu1 %v12970_v30 }
 0x8d2   :  { %6731 = vmatpush1.bf16.msra.mxu0 %v12992_v32  ;;  %6795 = vmatpush1.bf16.msra.mxu1 %v12994_v43 }
 0x8d3   :  { %6733 = vmatprep.subr.bf16.mxu0 %v13004_v49  ;;  %6797 = vmatprep.subr.bf16.mxu1 %v13006_v51 }
 0x8d6   :  { %6735 = vmatpush1.bf16.msra.mxu0 %v13028_v47  ;;  %6799 = vmatpush1.bf16.msra.mxu1 %v13030_v16 }
 0x8d7   :  { %6737 = vmatprep.subr.bf16.mxu0 %v13040_v2  ;;  %6801 = vmatprep.subr.bf16.mxu1 %v13042_v21 }
 0x8da   :  { %6739 = vmatpush1.bf16.msra.mxu0 %v13064_v38  ;;  %6803 = vmatpush1.bf16.msra.mxu1 %v13066_v39 }
 0x8db   :  { %6741 = vmatprep.subr.bf16.mxu0 %v13076_v48  ;;  %6805 = vmatprep.subr.bf16.mxu1 %v13078_v62 }
 0x8de   :  { %6743 = vmatpush1.bf16.msra.mxu0 %v13100_v52  ;;  %6807 = vmatpush1.bf16.msra.mxu1 %v13102_v22 }
 0x8df   :  { %6745 = vmatprep.subr.bf16.mxu0 %v13112_v17  ;;  %6809 = vmatprep.subr.bf16.mxu1 %v13114_v33 }
 0x8e2   :  { %6747 = vmatpush1.bf16.msra.mxu0 %v13136_v53  ;;  %6811 = vmatpush1.bf16.msra.mxu1 %v13138_v11 }
 0x8e3   :  { %6749 = vmatprep.subr.bf16.mxu0 %v13148_v3  ;;  %6813 = vmatprep.subr.bf16.mxu1 %v13150_v8 }
 0x8e6   :  { %6751 = vmatpush1.bf16.msra.mxu0 %v13172_v1  ;;  %6815 = vmatpush1.bf16.msra.mxu1 %v13174_v6  ;;  %v13222_v1 = vpack.c.bf16 %v4251_v40, %v4243_v34  ;;  %v13244_v34 = vpack.c.bf16 %v4248_v57, %v4240_v0  ;;  %v13246_v40 = vpack.c.bf16 %v4250_v61, %v4242_v60  ;;  %v4258_v57 = vld [vmem:[%s13399_s3 + $0x730] sm:$0xff]  ;;  %v4273_v60 = vld [vmem:[%s13399_s3 + $0x7a8] sm:$0xff] }
 0x8e7   :  { %6753 = vmatprep.subr.bf16.mxu0 %v13184_v19  ;;  %6817 = vmatprep.subr.bf16.mxu1 %v13186_v7  ;;  %v4256_v7 = vld [vmem:[%s13399_s3 + $0x720] sm:$0xff]  ;;  %v13256_v6 = vpack.c.bf16 %v4265_v59, %v4257_v46  ;;  %v4266_v0 = vld [vmem:[%s13399_s3 + $0x770] sm:$0xff]  ;;  %v4281_v61 = vld [vmem:[%s13399_s3 + $0x7e8] sm:$0xff] }
 0x8e8   :  { %13444 = vst [vmem:[#allocation20_spill] sm:$0xff] %v13222_v1  ;;  %13445 = vst [vmem:[#allocation21_spill] sm:$0xff] %v13246_v40  ;;  %v4264_v19 = vld [vmem:[%s13399_s3 + $0x760] sm:$0xff]  ;;  %v4275_v46 = vld [vmem:[%s13399_s3 + $0x7b8] sm:$0xff] }
 0x8e9   :  { %v4283_v59 = vld [vmem:[%s13399_s3 + $0x7f8] sm:$0xff] }
 0x8ea   :  { %6755 = vmatpush1.bf16.msra.mxu0 %v13208_v44  ;;  %6819 = vmatpush1.bf16.msra.mxu1 %v13210_v36  ;;  %v13258_v44 = vpack.c.bf16 %v4267_v27, %v4259_v26  ;;  %v13280_v26 = vpack.c.bf16 %v4264_v19, %v4256_v7  ;;  %v13282_v27 = vpack.c.bf16 %v4266_v0, %v4258_v57  ;;  %v4274_v7 = vld [vmem:[%s13399_s3 + $0x7b0] sm:$0xff] }
 0x8eb   :  { %6757 = vmatprep.subr.bf16.mxu0 %v13220_v56  ;;  %6821 = vmatprep.subr.bf16.mxu1 %v13222_v1  ;;  %v4272_v1 = vld [vmem:[%s13399_s3 + $0x7a0] sm:$0xff]  ;;  %v13289_v56 = vpack.c.bf16 %v4281_v61, %v4273_v60  ;;  %v13291_v36 = vpack.c.bf16 %v4283_v59, %v4275_v46  ;;  %v4282_v19 = vld [vmem:[%s13399_s3 + $0x7f0] sm:$0xff] }
 0x8ec   :  { %v13306_v0 = vpack.c.bf16 %v4282_v19, %v4274_v7 }
 0x8ee   :  { %6759 = vmatpush1.bf16.msra.mxu0 %v13244_v34  ;;  %6823 = vmatpush1.bf16.msra.mxu1 %v13246_v40  ;;  %v4280_v40 = vld [vmem:[%s13399_s3 + $0x7e0] sm:$0xff] }
 0x8ef   :  { %6761 = vmatprep.subr.bf16.mxu0 %v13256_v6  ;;  %6825 = vmatprep.subr.bf16.mxu1 %v13258_v44  ;;  %v13304_v57 = vpack.c.bf16 %v4280_v40, %v4272_v1  ;;  %v13463_v40 = vld [vmem:[#allocation10_spill] sm:$0xff] }
 0x8f2   :  { %6763 = vmatpush1.bf16.msra.mxu0 %v13280_v26  ;;  %6827 = vmatpush1.bf16.msra.mxu1 %v13282_v27 }
 0x8f3   :  { %6765 = vmatprep.subr.bf16.mxu0 %v13289_v56  ;;  %6829 = vmatprep.subr.bf16.mxu1 %v13291_v36 }
 0x8f6   :  { %6767 = vmatpush1.bf16.msra.mxu0 %v13304_v57  ;;  %6831 = vmatpush1.bf16.msra.mxu1 %v13306_v0 }
 0x8f7   :  { %6833 = vmatprep.subr.bf16.mxu0 %v12722_v63  ;;  %6897 = vmatprep.subr.bf16.mxu1 %v12727_v5  ;;  %v13446_v63 = vld [vmem:[#allocation13_spill] sm:$0xff]  ;;  %v13447_v5 = vld [vmem:[#allocation14_spill] sm:$0xff] }
 0x8f9   :  { %4491 = vmatmul.mubr.f32.vlgmr.msra.gmra.mrb[28].mxu0 %v12781_v58  ;;  %4562 = vmatmul.mubr.f32.vlgmr.msra.gmra.mrb[28].mxu1 %v12781_v58  ;;  %v13450_v58 = vld [vmem:[#allocation17_spill] sm:$0xff] }
 0x8fa   :  { %6835 = vmatpush1.bf16.msra.mxu0 %v12771_v12  ;;  %6899 = vmatpush1.bf16.msra.mxu1 %v12773_v13  ;;  %v13448_v12 = vld [vmem:[#allocation15_spill] sm:$0xff]  ;;  %v13449_v13 = vld [vmem:[#allocation16_spill] sm:$0xff] }
 0x8fb   :  { %6837 = vmatprep.subr.bf16.mxu0 %v12795_v4  ;;  %6901 = vmatprep.subr.bf16.mxu1 %v12797_v18  ;;  %v13451_v4 = vld [vmem:[#allocation18_spill] sm:$0xff]  ;;  %v13452_v18 = vld [vmem:[#allocation19_spill] sm:$0xff] }
 0x8fe   :  { %6839 = vmatpush1.bf16.msra.mxu0 %v12812_v9  ;;  %6903 = vmatpush1.bf16.msra.mxu1 %v12814_v20  ;;  %v13453_v9 = vld [vmem:[#allocation20_spill] sm:$0xff] }
 0x8ff   :  { %6841 = vmatprep.subr.bf16.mxu0 %v12822_v42  ;;  %6905 = vmatprep.subr.bf16.mxu1 %v12824_v25  ;;  %v13455_v42 = vld [vmem:[#allocation3_spill] sm:$0xff] }
 0x902   :  { %6843 = vmatpush1.bf16.msra.mxu0 %v12848_v31  ;;  %6907 = vmatpush1.bf16.msra.mxu1 %v12850_v23 }
 0x903   :  { %6845 = vmatprep.subr.bf16.mxu0 %v12860_v35  ;;  %6909 = vmatprep.subr.bf16.mxu1 %v12862_v28  ;;  %v13456_v35 = vld [vmem:[#allocation4_spill] sm:$0xff] }
 0x906   :  { %6847 = vmatpush1.bf16.msra.mxu0 %v12884_v45  ;;  %6911 = vmatpush1.bf16.msra.mxu1 %v12886_v37 }
 0x907   :  { %6849 = vmatprep.subr.bf16.mxu0 %v12896_v50  ;;  %6913 = vmatprep.subr.bf16.mxu1 %v12898_v41  ;;  %v13457_v50 = vld [vmem:[#allocation5_spill] sm:$0xff] }
 0x90a   :  { %6851 = vmatpush1.bf16.msra.mxu0 %v12920_v55  ;;  %6915 = vmatpush1.bf16.msra.mxu1 %v12922_v10  ;;  %v13458_v55 = vld [vmem:[#allocation6_spill] sm:$0xff] }
 0x90b   :  { %6853 = vmatprep.subr.bf16.mxu0 %v12932_v54  ;;  %6917 = vmatprep.subr.bf16.mxu1 %v12934_v15 }
 0x90e   :  { %6855 = vmatpush1.bf16.msra.mxu0 %v12956_v24  ;;  %6919 = vmatpush1.bf16.msra.mxu1 %v12958_v14 }
 0x90f   :  { %6857 = vmatprep.subr.bf16.mxu0 %v12968_v29  ;;  %6921 = vmatprep.subr.bf16.mxu1 %v12970_v30 }
 0x912   :  { %6859 = vmatpush1.bf16.msra.mxu0 %v12992_v32  ;;  %6923 = vmatpush1.bf16.msra.mxu1 %v12994_v43 }
 0x913   :  { %6861 = vmatprep.subr.bf16.mxu0 %v13004_v49  ;;  %6925 = vmatprep.subr.bf16.mxu1 %v13006_v51 }
 0x916   :  { %6863 = vmatpush1.bf16.msra.mxu0 %v13028_v47  ;;  %6927 = vmatpush1.bf16.msra.mxu1 %v13030_v16  ;;  %v13459_v47 = vld [vmem:[#allocation11_spill] sm:$0xff] }
 0x917   :  { %6865 = vmatprep.subr.bf16.mxu0 %v13040_v2  ;;  %6929 = vmatprep.subr.bf16.mxu1 %v13042_v21 }
 0x91a   :  { %6867 = vmatpush1.bf16.msra.mxu0 %v13064_v38  ;;  %6931 = vmatpush1.bf16.msra.mxu1 %v13066_v39 }
 0x91b   :  { %6869 = vmatprep.subr.bf16.mxu0 %v13076_v48  ;;  %6933 = vmatprep.subr.bf16.mxu1 %v13078_v62 }
 0x91e   :  { %6871 = vmatpush1.bf16.msra.mxu0 %v13100_v52  ;;  %6935 = vmatpush1.bf16.msra.mxu1 %v13102_v22  ;;  %v13460_v52 = vld [vmem:[#allocation7_spill] sm:$0xff] }
 0x91f   :  { %6873 = vmatprep.subr.bf16.mxu0 %v13112_v17  ;;  %6937 = vmatprep.subr.bf16.mxu1 %v13114_v33 }
 0x922   :  { %6875 = vmatpush1.bf16.msra.mxu0 %v13136_v53  ;;  %6939 = vmatpush1.bf16.msra.mxu1 %v13138_v11  ;;  %v13461_v53 = vld [vmem:[#allocation8_spill] sm:$0xff] }
 0x923   :  { %6877 = vmatprep.subr.bf16.mxu0 %v13148_v3  ;;  %6941 = vmatprep.subr.bf16.mxu1 %v13150_v8  ;;  %v13454_v3 = vld [vmem:[#allocation21_spill] sm:$0xff] }
 0x926   :  { %6879 = vmatpush1.bf16.msra.mxu0 %v13446_v63  ;;  %6943 = vmatpush1.bf16.msra.mxu1 %v13447_v5  ;;  %v13464_v5 = vld [vmem:[#allocation12_spill] sm:$0xff] }
 0x927   :  { %6881 = vmatprep.subr.bf16.mxu0 %v13448_v12  ;;  %6945 = vmatprep.subr.bf16.mxu1 %v13449_v13 }
 0x92a   :  { %6883 = vmatpush1.bf16.msra.mxu0 %v13450_v58  ;;  %6947 = vmatpush1.bf16.msra.mxu1 %v13451_v4 }
 0x92b   :  { %6885 = vmatprep.subr.bf16.mxu0 %v13452_v18  ;;  %6949 = vmatprep.subr.bf16.mxu1 %v13453_v9 }
 0x92e   :  { %6887 = vmatpush1.bf16.msra.mxu0 %v13244_v34  ;;  %6951 = vmatpush1.bf16.msra.mxu1 %v13454_v3 }
 0x92f   :  { %6889 = vmatprep.subr.bf16.mxu0 %v13256_v6  ;;  %6953 = vmatprep.subr.bf16.mxu1 %v13258_v44  ;;  %v13462_v44 = vld [vmem:[#allocation9_spill] sm:$0xff] }
 0x932   :  { %6891 = vmatpush1.bf16.msra.mxu0 %v13280_v26  ;;  %6955 = vmatpush1.bf16.msra.mxu1 %v13282_v27 }
 0x933   :  { %6893 = vmatprep.subr.bf16.mxu0 %v13289_v56  ;;  %6957 = vmatprep.subr.bf16.mxu1 %v13291_v36 }
 0x936   :  { %6895 = vmatpush1.bf16.msra.mxu0 %v13304_v57  ;;  %6959 = vmatpush1.bf16.msra.mxu1 %v13306_v0 }
 0x98c   :  { %v4350_v8 = vpop.f32.mrb[14].mxu0  ;;  %v4421_v20 = vpop.f32.mrb[14].mxu1 }
 0x98d   :  { %v6972_v25 = vadd.f32 %v4350_v8, %v13455_v42  ;;  %v4352_v31 = vpop.f32.mrb[15].mxu0  ;;  %v4423_v23 = vpop.f32.mrb[15].mxu1  ;;  %v6986_v10 = vadd.f32 %v4421_v20, %v13458_v55 }
 0x98e   :  { %v6973_v28 = vadd.f32 %v4352_v31, %v13456_v35  ;;  %v6987_v56 = vadd.f32 %v4423_v23, %v13457_v50 }
 0x98f   :  { %v4970_v45 = vmul.f32 -1.442695, %v6972_v25 }
 0x990   :  { %v4971_v37 = vmul.f32 -1.442695, %v6973_v28  ;;  %v4972_v41 = vmul.f32 -1.442695, %v6987_v56 }
 0x991   :  { %7225 = vpow2.f32 %v4970_v45 }
 0x992   :  { %7227 = vpow2.f32 %v4971_v37 }
 0x993   :  { %7229 = vpow2.f32 %v4972_v41 }
 0x994   :  { %7231 = vtanh.f32 %v6986_v10 }
 0x99b   :  { %v7226_v54 = vpop.eup %7225 }
 0x99c   :  { %v7228_v15 = vpop.eup %7227  ;;  %v4608_v24 = vadd.f32 1.0, %v7226_v54 }
 0x99d   :  { %v4614_v14 = vadd.f32 1.0, %v7228_v15  ;;  %v7230_v29 = vpop.eup %7229 }
 0x99e   :  { %7233 = vrcp.f32 %v4608_v24  ;;  %v7232_v30 = vpop.eup %7231  ;;  %v4621_v51 = vadd.f32 1.0, %v7230_v29 }
 0x99f   :  { %7235 = vrcp.f32 %v4614_v14 }
 0x9a0   :  { %7237 = vrcp.f32 %v4621_v51 }
 0x9a8   :  { %v7234_v32 = vpop.eup %7233 }
 0x9a9   :  { %v7236_v43 = vpop.eup %7235  ;;  %v4625_v49 = vmul.f32 %v7234_v32, %v7232_v30 }
 0x9aa   :  { %v4624_v16 = vmul.f32 %v7236_v43, %v13459_v47  ;;  %v7238_v21 = vpop.eup %7237 }
 0x9ac   :  { %v4626_v2 = vadd.f32 %v4625_v49, %v4624_v16 }
 0x9ae   :  { %7239 = vtanh.f32 %v4626_v2 }
 0x9b8   :  { %v7240_v38 = vpop.eup %7239 }
 0x9b9   :  { %v4628_v39 = vmul.f32 %v7240_v38, %v7238_v21 }
 0x9cc   :  { %v4492_v48 = vpop.f32.mrb[28].mxu0  ;;  %v4563_v62 = vpop.f32.mrb[28].mxu1 }
 0x9cd   :  { %v4576_v22 = vadd.f32 %v4492_v48, %v13460_v52  ;;  %v4494_v17 = vpop.f32.mrb[29].mxu0  ;;  %v4565_v33 = vpop.f32.mrb[29].mxu1  ;;  %v4578_v60 = vadd.f32 %v4563_v62, %v13463_v40 }
 0x9ce   :  { %v4577_v11 = vadd.f32 %v4494_v17, %v13461_v53  ;;  %v4579_v36 = vadd.f32 %v4565_v33, %v13462_v44 }
 0x9cf   :  { %v4967_v1 = vmul.f32 -1.442695, %v4576_v22 }
 0x9d0   :  { %v4968_v6 = vmul.f32 -1.442695, %v4577_v11  ;;  %v4969_v34 = vmul.f32 -1.442695, %v4579_v36 }
 0x9d1   :  { %7241 = vpow2.f32 %v4967_v1 }
 0x9d2   :  { %7243 = vpow2.f32 %v4968_v6 }
 0x9d3   :  { %7245 = vpow2.f32 %v4969_v34 }
 0x9d4   :  { %7247 = vtanh.f32 %v4578_v60 }
 0x9db   :  { %v7242_v61 = vpop.eup %7241 }
 0x9dc   :  { %v7244_v46 = vpop.eup %7243  ;;  %v4583_v59 = vadd.f32 1.0, %v7242_v61 }
 0x9dd   :  { %v4589_v26 = vadd.f32 1.0, %v7244_v46  ;;  %v7246_v27 = vpop.eup %7245 }
 0x9de   :  { %7249 = vrcp.f32 %v4583_v59  ;;  %v7248_v7 = vpop.eup %7247  ;;  %v4596_v63 = vadd.f32 1.0, %v7246_v27 }
 0x9df   :  { %7251 = vrcp.f32 %v4589_v26 }
 0x9e0   :  { %7253 = vrcp.f32 %v4596_v63 }
 0x9e8   :  { %v7250_v19 = vpop.eup %7249 }
 0x9e9   :  { %v7252_v57 = vpop.eup %7251  ;;  %v4600_v0 = vmul.f32 %v7250_v19, %v7248_v7 }
 0x9ea   :  { %v4599_v12 = vmul.f32 %v7252_v57, %v13464_v5  ;;  %v7254_v58 = vpop.eup %7253 }
 0x9ec   :  { %v4601_v13 = vadd.f32 %v4600_v0, %v4599_v12 }
 0x9ee   :  { %7255 = vtanh.f32 %v4601_v13 }
 0x9f8   :  { %v7256_v4 = vpop.eup %7255 }
 0x9f9   :  { %v4603_v18 = vmul.f32 %v7256_v4, %v7254_v58 }
 0x9fb   :  { %4604 = vst [vmem:[%s13403_s5 + $0x30] sm:$0xff] %v4603_v18  ;;  %4821 = vmatprep.mubr.f32.mxu0 %v4603_v18  ;;  %4892 = vmatprep.mubr.f32.mxu1 %v4603_v18 }
 0x9fc   :  { %4822 = vmatmul.mubr.f32.vlgmr.msra.gmra.mrb[30].mxu0 %v4628_v39  ;;  %4893 = vmatmul.mubr.f32.vlgmr.msra.gmra.mrb[30].mxu1 %v4628_v39 }
 0xacf   :  { %v4823_v9 = vpop.f32.mrb[30].mxu0  ;;  %v4894_v3 = vpop.f32.mrb[30].mxu1 }
 0xad0   :  { %v4824_v8 = vadd.f32 %v4823_v9, %v13460_v52  ;;  %v4825_v20 = vpop.f32.mrb[31].mxu0  ;;  %v4896_v42 = vpop.f32.mrb[31].mxu1  ;;  %v4895_v45 = vadd.f32 %v4894_v3, %v13463_v40 }
 0xad1   :  { %v4826_v25 = vadd.f32 %v4825_v20, %v13461_v53  ;;  %v4897_v35 = vadd.f32 %v4896_v42, %v13462_v44 }
 0xad2   :  { %v4973_v31 = vmul.f32 -1.442695, %v4824_v8 }
 0xad3   :  { %v4974_v23 = vmul.f32 -1.442695, %v4826_v25  ;;  %v4975_v28 = vmul.f32 -1.442695, %v4897_v35 }
 0xad4   :  { %7257 = vpow2.f32 %v4973_v31 }
 0xad5   :  { %7259 = vpow2.f32 %v4974_v23 }
 0xad6   :  { %7261 = vpow2.f32 %v4975_v28 }
 0xad7   :  { %7263 = vtanh.f32 %v4895_v45 }
 0xade   :  { %v7258_v37 = vpop.eup %7257 }
 0xadf   :  { %v7260_v50 = vpop.eup %7259  ;;  %v4902_v56 = vadd.f32 1.0, %v7258_v37 }
 0xae0   :  { %v4908_v41 = vadd.f32 1.0, %v7260_v50  ;;  %v7262_v55 = vpop.eup %7261 }
 0xae1   :  { %7265 = vrcp.f32 %v4902_v56  ;;  %v7264_v10 = vpop.eup %7263  ;;  %v4915_v14 = vadd.f32 1.0, %v7262_v55 }
 0xae2   :  { %7267 = vrcp.f32 %v4908_v41 }
 0xae3   :  { %7269 = vrcp.f32 %v4915_v14 }
 0xaeb   :  { %v7266_v54 = vpop.eup %7265 }
 0xaec   :  { %v7268_v15 = vpop.eup %7267  ;;  %v4919_v24 = vmul.f32 %v7266_v54, %v7264_v10 }
 0xaed   :  { %v4918_v29 = vmul.f32 %v7268_v15, %v4601_v13  ;;  %v7270_v32 = vpop.eup %7269 }
 0xaef   :  { %v4920_v30 = vadd.f32 %v4919_v24, %v4918_v29 }
 0xaf1   :  { %7271 = vtanh.f32 %v4920_v30 }
 0xafb   :  { %v7272_v43 = vpop.eup %7271 }
 0xafc   :  { %v4922_v49 = vmul.f32 %v7272_v43, %v7270_v32 }
 0xafe   :  { %4923 = vst [vmem:[%s13403_s5 + $0x38] sm:$0xff] %v4922_v49 }

</bundles_post_ra>
